<compile_context>
chip_gen: v7x
topology: tpu7x:2x2x1
jax: 0.10.0
libtpu: 0.0.40
codegen_flags: <defaults>
</compile_context>

<pallas_src>
import functools

import jax
import jax.numpy as jnp
from jax.experimental import pallas as pl
from jax.experimental.pallas import tpu as pltpu

_BN_EPS = 1e-5
_POSTERIOR_MU_INIT = 0.0
_POSTERIOR_RHO_INIT = -3.0
_PRIOR_MU = 0.0
_PRIOR_SIGMA = 1.0


def _round_up(x, m):
    return (x + m - 1) // m * m


# ----------------------------------------------------------------------------
# Pallas kernels
# ----------------------------------------------------------------------------
def _linear_stack_kernel(x_ref, w1_ref, b1_ref, w2_ref, b2_ref, w3_ref, b3_ref,
                         o_ref):
    """relu(relu(relu(x@W1+b1)@W2+b2)@W3+b3) for one N-tile of layer 3.

    Layers 1/2 are tiny (<=128x1024) and are recomputed per grid step so every
    step is independent -> the grid is marked "parallel" (v7x: 2 TensorCores).
    bf16 MXU inputs, f32 accumulation, f32 epilogue.
    """
    x = x_ref[...].astype(jnp.bfloat16)
    h1 = jnp.dot(x, w1_ref[...], preferred_element_type=jnp.float32)
    h1 = jnp.maximum(h1 + b1_ref[...], 0.0)
    h2 = jnp.dot(h1.astype(jnp.bfloat16), w2_ref[...],
                 preferred_element_type=jnp.float32)
    h2 = jnp.maximum(h2 + b2_ref[...], 0.0)
    h3 = jnp.dot(h2.astype(jnp.bfloat16), w3_ref[...],
                 preferred_element_type=jnp.float32)
    o_ref[...] = jnp.maximum(h3 + b3_ref[...], 0.0)


def _convt_phase_kernel(p_ref, w_ref, scale_ref, shift_ref, o_ref, *, act):
    """One output-parity phase of ConvT(k=4, s=2, p=1).

    (M, 4*Cin) @ (4*Cin, Cout) on the MXU (bf16 in, f32 acc), then fused
    eval-mode BatchNorm scale/shift (conv bias folded into shift) + activation.
    """
    acc = jnp.dot(p_ref[...], w_ref[...], preferred_element_type=jnp.float32)
    y = acc * scale_ref[...] + shift_ref[...]
    if act == "relu":
        y = jnp.maximum(y, 0.0)
    elif act == "sigmoid":
        y = 0.5 * (jnp.tanh(0.5 * y) + 1.0)   # numerically stable sigmoid (EUP)
    o_ref[...] = y


# ----------------------------------------------------------------------------
# Kernel wrappers
# ----------------------------------------------------------------------------
def linear_stack(x, lin):
    """x: (B, input_size) f32 -> (B, 8192) f32 (the 3 Bayesian linears + ReLU)."""
    b = x.shape[0]
    k1p = lin["w1"].shape[0]
    n1p = lin["w1"].shape[1]
    n2p = lin["w2"].shape[1]
    k3p = lin["w3"].shape[0]
    n3 = lin["w3"].shape[1]
    tn = 1024
    assert n3 % tn == 0

    xpad = jnp.pad(x.astype(jnp.float32), ((0, 0), (0, k1p - x.shape[1])))

    return pl.pallas_call(
        _linear_stack_kernel,
        grid=(n3 // tn,),
        in_specs=[
            pl.BlockSpec((b, k1p), lambda j: (0, 0)),
            pl.BlockSpec((k1p, n1p), lambda j: (0, 0)),
            pl.BlockSpec((1, n1p), lambda j: (0, 0)),
            pl.BlockSpec((n1p, n2p), lambda j: (0, 0)),
            pl.BlockSpec((1, n2p), lambda j: (0, 0)),
            pl.BlockSpec((k3p, tn), lambda j: (0, j)),
            pl.BlockSpec((1, tn), lambda j: (0, j)),
        ],
        out_specs=pl.BlockSpec((b, tn), lambda j: (0, j)),
        out_shape=jax.ShapeDtypeStruct((b, n3), jnp.float32),
        compiler_params=pltpu.CompilerParams(
            dimension_semantics=("parallel",)),
    )(xpad, lin["w1"], lin["b1"], lin["w2"], lin["b2"], lin["w3"], lin["b3"])


def convt_bn_act(x_nhwc, p, act):
    """ConvTranspose2d(k=4, s=2, p=1) + (BN) + activation, NHWC in/out.

    Sub-pixel decomposition: output pixel (2p+rh, 2q+rw) only sees the 2x2
    input window with top-left (p+rh-1, q+rw-1), so each phase (rh, rw) is a
    plain 2x2 conv -> one matmul per phase, all 4 phases in one pallas_call
    (grid over phases), then a depth-to-space interleave.
    """
    n, h, w, c = x_nhwc.shape
    cout = p["w"].shape[-1]
    m = n * h * w
    k = 4 * c

    xp = jnp.pad(x_nhwc, ((0, 0), (1, 1), (1, 1), (0, 0)))
    phases = []
    for rh in (0, 1):
        for rw in (0, 1):
            taps = [xp[:, rh + dh:rh + dh + h, rw + dw:rw + dw + w, :]
                    for dh in (0, 1) for dw in (0, 1)]
            phases.append(jnp.concatenate(taps, axis=-1).reshape(m, k))
    patches = jnp.stack(phases, axis=0).astype(jnp.bfloat16)   # (4, M, 4*Cin)

    out = pl.pallas_call(
        functools.partial(_convt_phase_kernel, act=act),
        grid=(4,),
        in_specs=[
            pl.BlockSpec((None, m, k), lambda ph: (ph, 0, 0)),
            pl.BlockSpec((None, k, cout), lambda ph: (ph, 0, 0)),
            pl.BlockSpec((1, cout), lambda ph: (0, 0)),
            pl.BlockSpec((1, cout), lambda ph: (0, 0)),
        ],
        out_specs=pl.BlockSpec((None, m, cout), lambda ph: (ph, 0, 0)),
        out_shape=jax.ShapeDtypeStruct((4, m, cout), jnp.float32),
        compiler_params=pltpu.CompilerParams(
            dimension_semantics=("parallel",)),
    )(patches, p["w"], p["scale"], p["shift"])

    # depth-to-space: y[n, 2p+rh, 2q+rw, co] = out[rh*2+rw, (n, p, q), co]
    y = out.reshape(2, 2, n, h, w, cout)
    y = y.transpose(2, 3, 0, 4, 1, 5).reshape(n, 2 * h, 2 * w, cout)
    return y


# ----------------------------------------------------------------------------
# Bayesian parameter init + analytic KL (hoisted out of forward)
# ----------------------------------------------------------------------------
def _kl_gauss(mu, rho):
    sigma = jnp.log1p(jnp.exp(rho))
    return jnp.sum(jnp.log(_PRIOR_SIGMA) - jnp.log(sigma)
                   + (sigma ** 2 + (mu - _PRIOR_MU) ** 2)
                   / (2.0 * _PRIOR_SIGMA ** 2)
                   - 0.5)


def _bayes_init(key, shape):
    kmu, krho = jax.random.split(key)
    mu = _POSTERIOR_MU_INIT + 0.1 * jax.random.normal(kmu, shape, jnp.float32)
    rho = _POSTERIOR_RHO_INIT + 0.1 * jax.random.normal(krho, shape, jnp.float32)
    return mu, rho


def _init_bayes_linear(key, cin, cout, cin_pad, cout_pad):
    kw, kb = jax.random.split(key)
    mu_w, rho_w = _bayes_init(kw, (cin, cout))
    mu_b, rho_b = _bayes_init(kb, (cout,))
    kl = _kl_gauss(mu_w, rho_w) + _kl_gauss(mu_b, rho_b)
    # Embed in lane-dense padded buffers (zeros are inert through matmul+ReLU).
    w = jnp.zeros((cin_pad, cout_pad), jnp.float32).at[:cin, :cout].set(mu_w)
    b = jnp.zeros((1, cout_pad), jnp.float32).at[0, :cout].set(mu_b)
    return w.astype(jnp.bfloat16), b, kl


def _phase_weight(w):
    """(Cin, Cout, 4, 4) ConvT weight -> (4 phases, 4*Cin, Cout) matmul weight."""
    blocks = []
    for rh in (0, 1):
        for rw in (0, 1):
            taps = []
            for dh in (0, 1):
                for dw in (0, 1):
                    kh = (3 - 2 * dh) if rh == 0 else (2 - 2 * dh)
                    kw = (3 - 2 * dw) if rw == 0 else (2 - 2 * dw)
                    taps.append(w[:, :, kh, kw])           # (Cin, Cout)
            blocks.append(jnp.concatenate(taps, axis=0))   # (4*Cin, Cout)
    return jnp.stack(blocks, axis=0)


def _init_bayes_convt(key, cin, cout, cout_pad, with_bn):
    kw, kb = jax.random.split(key)
    mu_w, rho_w = _bayes_init(kw, (cin, cout, 4, 4))
    mu_b, rho_b = _bayes_init(kb, (cout,))
    kl = _kl_gauss(mu_w, rho_w) + _kl_gauss(mu_b, rho_b)

    wp = _phase_weight(mu_w)                                # (4, 4*cin, cout)
    wp = jnp.pad(wp, ((0, 0), (0, 0), (0, cout_pad - cout)))

    if with_bn:
        gamma = jnp.ones((cout,), jnp.float32)
        beta = jnp.zeros((cout,), jnp.float32)
        rmean = jnp.zeros((cout,), jnp.float32)
        rvar = jnp.ones((cout,), jnp.float32)
        s = gamma / jnp.sqrt(rvar + _BN_EPS)
        sh = (mu_b - rmean) * s + beta
    else:
        s = jnp.ones((cout,), jnp.float32)
        sh = mu_b
    scale = jnp.zeros((1, cout_pad), jnp.float32).at[0, :cout].set(s)
    shift = jnp.zeros((1, cout_pad), jnp.float32).at[0, :cout].set(sh)
    return {"w": wp.astype(jnp.bfloat16), "scale": scale, "shift": shift}, kl


def init_params(key, input_size=28):
    k1, k2, k3, k4, k5, k6 = jax.random.split(key, 6)
    kin = _round_up(max(input_size, 1), 128)

    w1, b1, kl1 = _init_bayes_linear(k1, input_size, 108, kin, 128)
    w2, b2, kl2 = _init_bayes_linear(k2, 108, 972, 128, 1024)
    w3, b3, kl3 = _init_bayes_linear(k3, 972, 512 * 4 * 4, 1024, 512 * 4 * 4)
    conv1, kl4 = _init_bayes_convt(k4, 512, 256, 256, with_bn=True)
    conv2, kl5 = _init_bayes_convt(k5, 256, 128, 128, with_bn=True)
    conv3, kl6 = _init_bayes_convt(k6, 128, 1, 128, with_bn=False)

    return {
        "lin": {"w1": w1, "b1": b1, "w2": w2, "b2": b2, "w3": w3, "b3": b3},
        "conv1": conv1, "conv2": conv2, "conv3": conv3,
        # KL depends only on (mu, rho), not on x -> computed once here.
        "kl_sum": kl1 + kl2 + kl3 + kl4 + kl5 + kl6,
    }


# ----------------------------------------------------------------------------
# Model forward
# ----------------------------------------------------------------------------
def forward(params, x):
    """x: (B, input_size) f32 -> (img (B, 32, 32), kl_sum scalar)."""
    b = x.shape[0]
    h = linear_stack(x, params["lin"])                        # (B, 8192)
    # x.view(B, 512, 4, 4) (NCHW) -> NHWC for the conv stack
    h = h.reshape(b, 512, 4, 4).transpose(0, 2, 3, 1)         # (B, 4, 4, 512)
    h = convt_bn_act(h, params["conv1"], act="relu")          # (B, 8, 8, 256)
    h = convt_bn_act(h, params["conv2"], act="relu")          # (B, 16, 16, 128)
    h = convt_bn_act(h, params["conv3"], act="sigmoid")       # (B, 32, 32, 128) padded
    img = h[..., 0]                                           # real channel 0; squeeze(dim=1)
    return img, params["kl_sum"]


# ----------------------------------------------------------------------------
if __name__ == "__main__":
    key = jax.random.PRNGKey(0)
    pkey, xkey = jax.random.split(key)

    input_size = 28
    batch = 2
    params = init_params(pkey, input_size=input_size)
    x = jax.random.normal(xkey, (batch, input_size), dtype=jnp.float32)

    fwd = jax.jit(forward)
    out, kl = fwd(params, x)
    out = jax.block_until_ready(out)
    kl = jax.block_until_ready(kl)

    assert out.shape == (batch, 32, 32), out.shape
    assert bool(jnp.all(jnp.isfinite(out)))
    assert bool(jnp.all((out >= 0.0) & (out <= 1.0)))   # sigmoid output range
    assert bool(jnp.isfinite(kl))
    print("KERNEL_OK")
</pallas_src>

<mosaic_0001>
module attributes {stable_mosaic.version = 11 : i64} {
  func.func @_linear_stack_kernel(%arg0: i32, %arg1: memref<2x128xf32, #tpu.memory_space<vmem>>, %arg2: memref<128x128xbf16, #tpu.memory_space<vmem>>, %arg3: memref<1x128xf32, #tpu.memory_space<vmem>>, %arg4: memref<128x1024xbf16, #tpu.memory_space<vmem>>, %arg5: memref<1x1024xf32, #tpu.memory_space<vmem>>, %arg6: memref<1024x1024xbf16, #tpu.memory_space<vmem>>, %arg7: memref<1x1024xf32, #tpu.memory_space<vmem>>, %arg8: memref<2x1024xf32, #tpu.memory_space<vmem>>) attributes {dimension_semantics = [#tpu.dimension_semantics<parallel>], iteration_bounds = array<i64: 8>, scalar_prefetch = 0 : i64, scratch_operands = 0 : i64, tpu.core_type = #tpu.core_type<tc>, window_params = [{pipeline_mode = #tpu.pipeline_mode<synchronous>, transform_indices = @transform_0, window_bounds = array<i64: 2, 128>}, {pipeline_mode = #tpu.pipeline_mode<synchronous>, transform_indices = @transform_1, window_bounds = array<i64: 128, 128>}, {pipeline_mode = #tpu.pipeline_mode<synchronous>, transform_indices = @transform_2, window_bounds = array<i64: 1, 128>}, {pipeline_mode = #tpu.pipeline_mode<synchronous>, transform_indices = @transform_3, window_bounds = array<i64: 128, 1024>}, {pipeline_mode = #tpu.pipeline_mode<synchronous>, transform_indices = @transform_4, window_bounds = array<i64: 1, 1024>}, {transform_indices = @transform_5, window_bounds = array<i64: 1024, 1024>}, {transform_indices = @transform_6, window_bounds = array<i64: 1, 1024>}, {transform_indices = @transform_7, window_bounds = array<i64: 2, 1024>}]} {
    %c0 = arith.constant 0 : index
    %c0_0 = arith.constant 0 : index
    %0 = vector.load %arg1[%c0, %c0_0] : memref<2x128xf32, #tpu.memory_space<vmem>>, vector<2x128xf32>
    %1 = arith.truncf %0 : vector<2x128xf32> to vector<2x128xbf16>
    %c0_1 = arith.constant 0 : index
    %c0_2 = arith.constant 0 : index
    %2 = vector.load %arg2[%c0_1, %c0_2] : memref<128x128xbf16, #tpu.memory_space<vmem>>, vector<128x128xbf16>
    %cst = arith.constant dense<0.000000e+00> : vector<2x128xf32>
    %3 = tpu.matmul %1, %2, %cst {dimension_numbers = #tpu.dot_dimension_numbers<[1], [0], [0], [1], [0, 0, 1, 1], [], []>} : vector<2x128xbf16>, vector<128x128xbf16>, vector<2x128xf32> -> vector<2x128xf32>
    %c0_3 = arith.constant 0 : index
    %c0_4 = arith.constant 0 : index
    %4 = vector.load %arg3[%c0_3, %c0_4] : memref<1x128xf32, #tpu.memory_space<vmem>>, vector<1x128xf32>
    %5 = vector.broadcast %4 : vector<1x128xf32> to vector<2x128xf32>
    %6 = arith.addf %3, %5 : vector<2x128xf32>
    %cst_5 = arith.constant 0.000000e+00 : f32
    %7 = vector.broadcast %cst_5 : f32 to vector<2x128xf32>
    %8 = arith.maximumf %6, %7 : vector<2x128xf32>
    %9 = arith.truncf %8 : vector<2x128xf32> to vector<2x128xbf16>
    %c0_6 = arith.constant 0 : index
    %c0_7 = arith.constant 0 : index
    %10 = vector.load %arg4[%c0_6, %c0_7] : memref<128x1024xbf16, #tpu.memory_space<vmem>>, vector<128x1024xbf16>
    %cst_8 = arith.constant dense<0.000000e+00> : vector<2x1024xf32>
    %11 = tpu.matmul %9, %10, %cst_8 {dimension_numbers = #tpu.dot_dimension_numbers<[1], [0], [0], [1], [0, 0, 1, 1], [], []>} : vector<2x128xbf16>, vector<128x1024xbf16>, vector<2x1024xf32> -> vector<2x1024xf32>
    %c0_9 = arith.constant 0 : index
    %c0_10 = arith.constant 0 : index
    %12 = vector.load %arg5[%c0_9, %c0_10] : memref<1x1024xf32, #tpu.memory_space<vmem>>, vector<1x1024xf32>
    %13 = vector.broadcast %12 : vector<1x1024xf32> to vector<2x1024xf32>
    %14 = arith.addf %11, %13 : vector<2x1024xf32>
    %cst_11 = arith.constant 0.000000e+00 : f32
    %15 = vector.broadcast %cst_11 : f32 to vector<2x1024xf32>
    %16 = arith.maximumf %14, %15 : vector<2x1024xf32>
    %17 = arith.truncf %16 : vector<2x1024xf32> to vector<2x1024xbf16>
    %c0_12 = arith.constant 0 : index
    %c0_13 = arith.constant 0 : index
    %18 = vector.load %arg6[%c0_12, %c0_13] : memref<1024x1024xbf16, #tpu.memory_space<vmem>>, vector<1024x1024xbf16>
    %cst_14 = arith.constant dense<0.000000e+00> : vector<2x1024xf32>
    %19 = tpu.matmul %17, %18, %cst_14 {dimension_numbers = #tpu.dot_dimension_numbers<[1], [0], [0], [1], [0, 0, 1, 1], [], []>} : vector<2x1024xbf16>, vector<1024x1024xbf16>, vector<2x1024xf32> -> vector<2x1024xf32>
    %c0_15 = arith.constant 0 : index
    %c0_16 = arith.constant 0 : index
    %20 = vector.load %arg7[%c0_15, %c0_16] : memref<1x1024xf32, #tpu.memory_space<vmem>>, vector<1x1024xf32>
    %21 = vector.broadcast %20 : vector<1x1024xf32> to vector<2x1024xf32>
    %22 = arith.addf %19, %21 : vector<2x1024xf32>
    %cst_17 = arith.constant 0.000000e+00 : f32
    %23 = vector.broadcast %cst_17 : f32 to vector<2x1024xf32>
    %24 = arith.maximumf %22, %23 : vector<2x1024xf32>
    %c0_18 = arith.constant 0 : index
    %c0_19 = arith.constant 0 : index
    %25 = vector.load %arg8[%c0_18, %c0_19] : memref<2x1024xf32, #tpu.memory_space<vmem>>, vector<2x1024xf32>
    tpu.vector_store %arg8[%c0_18, %c0_19], %24 {strides = array<i32>} : memref<2x1024xf32, #tpu.memory_space<vmem>>, vector<2x1024xf32>,
    return
  }
  func.func @transform_0(%arg0: i32) -> (i32, i32) {
    %c0_i32 = arith.constant 0 : i32
    %c0_i32_0 = arith.constant 0 : i32
    %c0_i32_1 = arith.constant 0 : i32
    return %c0_i32, %c0_i32_0 : i32, i32
  }
  func.func @transform_1(%arg0: i32) -> (i32, i32) {
    %c0_i32 = arith.constant 0 : i32
    %c0_i32_0 = arith.constant 0 : i32
    %c0_i32_1 = arith.constant 0 : i32
    return %c0_i32, %c0_i32_0 : i32, i32
  }
  func.func @transform_2(%arg0: i32) -> (i32, i32) {
    %c0_i32 = arith.constant 0 : i32
    %c0_i32_0 = arith.constant 0 : i32
    %c0_i32_1 = arith.constant 0 : i32
    return %c0_i32, %c0_i32_0 : i32, i32
  }
  func.func @transform_3(%arg0: i32) -> (i32, i32) {
    %c0_i32 = arith.constant 0 : i32
    %c0_i32_0 = arith.constant 0 : i32
    %c0_i32_1 = arith.constant 0 : i32
    return %c0_i32, %c0_i32_0 : i32, i32
  }
  func.func @transform_4(%arg0: i32) -> (i32, i32) {
    %c0_i32 = arith.constant 0 : i32
    %c0_i32_0 = arith.constant 0 : i32
    %c0_i32_1 = arith.constant 0 : i32
    return %c0_i32, %c0_i32_0 : i32, i32
  }
  func.func @transform_5(%arg0: i32) -> (i32, i32) {
    %c0_i32 = arith.constant 0 : i32
    %c0_i32_0 = arith.constant 0 : i32
    return %c0_i32, %arg0 : i32, i32
  }
  func.func @transform_6(%arg0: i32) -> (i32, i32) {
    %c0_i32 = arith.constant 0 : i32
    %c0_i32_0 = arith.constant 0 : i32
    return %c0_i32, %arg0 : i32, i32
  }
  func.func @transform_7(%arg0: i32) -> (i32, i32) {
    %c0_i32 = arith.constant 0 : i32
    %c0_i32_0 = arith.constant 0 : i32
    return %c0_i32, %arg0 : i32, i32
  }
}

module attributes {stable_mosaic.version = 11 : i64} {
  func.func @_convt_phase_kernel(%arg0: i32, %arg1: memref<1x32x2048xbf16, #tpu.memory_space<vmem>>, %arg2: memref<1x2048x256xbf16, #tpu.memory_space<vmem>>, %arg3: memref<1x256xf32, #tpu.memory_space<vmem>>, %arg4: memref<1x256xf32, #tpu.memory_space<vmem>>, %arg5: memref<1x32x256xf32, #tpu.memory_space<vmem>>) attributes {dimension_semantics = [#tpu.dimension_semantics<parallel>], iteration_bounds = array<i64: 4>, scalar_prefetch = 0 : i64, scratch_operands = 0 : i64, tpu.core_type = #tpu.core_type<tc>, window_params = [{transform_indices = @transform_0, window_bounds = array<i64: 1, 32, 2048>}, {transform_indices = @transform_1, window_bounds = array<i64: 1, 2048, 256>}, {pipeline_mode = #tpu.pipeline_mode<synchronous>, transform_indices = @transform_2, window_bounds = array<i64: 1, 256>}, {pipeline_mode = #tpu.pipeline_mode<synchronous>, transform_indices = @transform_3, window_bounds = array<i64: 1, 256>}, {transform_indices = @transform_4, window_bounds = array<i64: 1, 32, 256>}]} {
    %c0 = arith.constant 0 : index
    %c0_0 = arith.constant 0 : index
    %c0_1 = arith.constant 0 : index
    %0 = vector.load %arg1[%c0, %c0_0, %c0_1] : memref<1x32x2048xbf16, #tpu.memory_space<vmem>>, vector<1x32x2048xbf16>
    %1 = vector.shape_cast %0 : vector<1x32x2048xbf16> to vector<32x2048xbf16>
    %c0_2 = arith.constant 0 : index
    %c0_3 = arith.constant 0 : index
    %c0_4 = arith.constant 0 : index
    %2 = vector.load %arg2[%c0_2, %c0_3, %c0_4] : memref<1x2048x256xbf16, #tpu.memory_space<vmem>>, vector<1x2048x256xbf16>
    %3 = vector.shape_cast %2 : vector<1x2048x256xbf16> to vector<2048x256xbf16>
    %cst = arith.constant dense<0.000000e+00> : vector<32x256xf32>
    %4 = tpu.matmul %1, %3, %cst {dimension_numbers = #tpu.dot_dimension_numbers<[1], [0], [0], [1], [0, 0, 1, 1], [], []>} : vector<32x2048xbf16>, vector<2048x256xbf16>, vector<32x256xf32> -> vector<32x256xf32>
    %c0_5 = arith.constant 0 : index
    %c0_6 = arith.constant 0 : index
    %5 = vector.load %arg3[%c0_5, %c0_6] : memref<1x256xf32, #tpu.memory_space<vmem>>, vector<1x256xf32>
    %6 = vector.broadcast %5 : vector<1x256xf32> to vector<32x256xf32>
    %7 = arith.mulf %4, %6 : vector<32x256xf32>
    %c0_7 = arith.constant 0 : index
    %c0_8 = arith.constant 0 : index
    %8 = vector.load %arg4[%c0_7, %c0_8] : memref<1x256xf32, #tpu.memory_space<vmem>>, vector<1x256xf32>
    %9 = vector.broadcast %8 : vector<1x256xf32> to vector<32x256xf32>
    %10 = arith.addf %7, %9 : vector<32x256xf32>
    %cst_9 = arith.constant 0.000000e+00 : f32
    %11 = vector.broadcast %cst_9 : f32 to vector<32x256xf32>
    %12 = arith.maximumf %10, %11 : vector<32x256xf32>
    %c0_10 = arith.constant 0 : index
    %c0_11 = arith.constant 0 : index
    %c0_12 = arith.constant 0 : index
    %13 = vector.load %arg5[%c0_10, %c0_11, %c0_12] : memref<1x32x256xf32, #tpu.memory_space<vmem>>, vector<1x32x256xf32>
    %14 = vector.shape_cast %13 : vector<1x32x256xf32> to vector<32x256xf32>
    %15 = vector.shape_cast %12 : vector<32x256xf32> to vector<1x32x256xf32>
    tpu.vector_store %arg5[%c0_10, %c0_11, %c0_12], %15 {strides = array<i32>} : memref<1x32x256xf32, #tpu.memory_space<vmem>>, vector<1x32x256xf32>,
    return
  }
  func.func @transform_0(%arg0: i32) -> (i32, i32, i32) {
    %c0_i32 = arith.constant 0 : i32
    %c0_i32_0 = arith.constant 0 : i32
    %c0_i32_1 = arith.constant 0 : i32
    return %arg0, %c0_i32, %c0_i32_0 : i32, i32, i32
  }
  func.func @transform_1(%arg0: i32) -> (i32, i32, i32) {
    %c0_i32 = arith.constant 0 : i32
    %c0_i32_0 = arith.constant 0 : i32
    %c0_i32_1 = arith.constant 0 : i32
    return %arg0, %c0_i32, %c0_i32_0 : i32, i32, i32
  }
  func.func @transform_2(%arg0: i32) -> (i32, i32) {
    %c0_i32 = arith.constant 0 : i32
    %c0_i32_0 = arith.constant 0 : i32
    %c0_i32_1 = arith.constant 0 : i32
    return %c0_i32, %c0_i32_0 : i32, i32
  }
  func.func @transform_3(%arg0: i32) -> (i32, i32) {
    %c0_i32 = arith.constant 0 : i32
    %c0_i32_0 = arith.constant 0 : i32
    %c0_i32_1 = arith.constant 0 : i32
    return %c0_i32, %c0_i32_0 : i32, i32
  }
  func.func @transform_4(%arg0: i32) -> (i32, i32, i32) {
    %c0_i32 = arith.constant 0 : i32
    %c0_i32_0 = arith.constant 0 : i32
    %c0_i32_1 = arith.constant 0 : i32
    return %arg0, %c0_i32, %c0_i32_0 : i32, i32, i32
  }
}

module attributes {stable_mosaic.version = 11 : i64} {
  func.func @_convt_phase_kernel(%arg0: i32, %arg1: memref<1x128x1024xbf16, #tpu.memory_space<vmem>>, %arg2: memref<1x1024x128xbf16, #tpu.memory_space<vmem>>, %arg3: memref<1x128xf32, #tpu.memory_space<vmem>>, %arg4: memref<1x128xf32, #tpu.memory_space<vmem>>, %arg5: memref<1x128x128xf32, #tpu.memory_space<vmem>>) attributes {dimension_semantics = [#tpu.dimension_semantics<parallel>], iteration_bounds = array<i64: 4>, scalar_prefetch = 0 : i64, scratch_operands = 0 : i64, tpu.core_type = #tpu.core_type<tc>, window_params = [{transform_indices = @transform_0, window_bounds = array<i64: 1, 128, 1024>}, {transform_indices = @transform_1, window_bounds = array<i64: 1, 1024, 128>}, {pipeline_mode = #tpu.pipeline_mode<synchronous>, transform_indices = @transform_2, window_bounds = array<i64: 1, 128>}, {pipeline_mode = #tpu.pipeline_mode<synchronous>, transform_indices = @transform_3, window_bounds = array<i64: 1, 128>}, {transform_indices = @transform_4, window_bounds = array<i64: 1, 128, 128>}]} {
    %c0 = arith.constant 0 : index
    %c0_0 = arith.constant 0 : index
    %c0_1 = arith.constant 0 : index
    %0 = vector.load %arg1[%c0, %c0_0, %c0_1] : memref<1x128x1024xbf16, #tpu.memory_space<vmem>>, vector<1x128x1024xbf16>
    %1 = vector.shape_cast %0 : vector<1x128x1024xbf16> to vector<128x1024xbf16>
    %c0_2 = arith.constant 0 : index
    %c0_3 = arith.constant 0 : index
    %c0_4 = arith.constant 0 : index
    %2 = vector.load %arg2[%c0_2, %c0_3, %c0_4] : memref<1x1024x128xbf16, #tpu.memory_space<vmem>>, vector<1x1024x128xbf16>
    %3 = vector.shape_cast %2 : vector<1x1024x128xbf16> to vector<1024x128xbf16>
    %cst = arith.constant dense<0.000000e+00> : vector<128x128xf32>
    %4 = tpu.matmul %1, %3, %cst {dimension_numbers = #tpu.dot_dimension_numbers<[1], [0], [0], [1], [0, 0, 1, 1], [], []>} : vector<128x1024xbf16>, vector<1024x128xbf16>, vector<128x128xf32> -> vector<128x128xf32>
    %c0_5 = arith.constant 0 : index
    %c0_6 = arith.constant 0 : index
    %5 = vector.load %arg3[%c0_5, %c0_6] : memref<1x128xf32, #tpu.memory_space<vmem>>, vector<1x128xf32>
    %6 = vector.broadcast %5 : vector<1x128xf32> to vector<128x128xf32>
    %7 = arith.mulf %4, %6 : vector<128x128xf32>
    %c0_7 = arith.constant 0 : index
    %c0_8 = arith.constant 0 : index
    %8 = vector.load %arg4[%c0_7, %c0_8] : memref<1x128xf32, #tpu.memory_space<vmem>>, vector<1x128xf32>
    %9 = vector.broadcast %8 : vector<1x128xf32> to vector<128x128xf32>
    %10 = arith.addf %7, %9 : vector<128x128xf32>
    %cst_9 = arith.constant 0.000000e+00 : f32
    %11 = vector.broadcast %cst_9 : f32 to vector<128x128xf32>
    %12 = arith.maximumf %10, %11 : vector<128x128xf32>
    %c0_10 = arith.constant 0 : index
    %c0_11 = arith.constant 0 : index
    %c0_12 = arith.constant 0 : index
    %13 = vector.load %arg5[%c0_10, %c0_11, %c0_12] : memref<1x128x128xf32, #tpu.memory_space<vmem>>, vector<1x128x128xf32>
    %14 = vector.shape_cast %13 : vector<1x128x128xf32> to vector<128x128xf32>
    %15 = vector.shape_cast %12 : vector<128x128xf32> to vector<1x128x128xf32>
    tpu.vector_store %arg5[%c0_10, %c0_11, %c0_12], %15 {strides = array<i32>} : memref<1x128x128xf32, #tpu.memory_space<vmem>>, vector<1x128x128xf32>,
    return
  }
  func.func @transform_0(%arg0: i32) -> (i32, i32, i32) {
    %c0_i32 = arith.constant 0 : i32
    %c0_i32_0 = arith.constant 0 : i32
    %c0_i32_1 = arith.constant 0 : i32
    return %arg0, %c0_i32, %c0_i32_0 : i32, i32, i32
  }
  func.func @transform_1(%arg0: i32) -> (i32, i32, i32) {
    %c0_i32 = arith.constant 0 : i32
    %c0_i32_0 = arith.constant 0 : i32
    %c0_i32_1 = arith.constant 0 : i32
    return %arg0, %c0_i32, %c0_i32_0 : i32, i32, i32
  }
  func.func @transform_2(%arg0: i32) -> (i32, i32) {
    %c0_i32 = arith.constant 0 : i32
    %c0_i32_0 = arith.constant 0 : i32
    %c0_i32_1 = arith.constant 0 : i32
    return %c0_i32, %c0_i32_0 : i32, i32
  }
  func.func @transform_3(%arg0: i32) -> (i32, i32) {
    %c0_i32 = arith.constant 0 : i32
    %c0_i32_0 = arith.constant 0 : i32
    %c0_i32_1 = arith.constant 0 : i32
    return %c0_i32, %c0_i32_0 : i32, i32
  }
  func.func @transform_4(%arg0: i32) -> (i32, i32, i32) {
    %c0_i32 = arith.constant 0 : i32
    %c0_i32_0 = arith.constant 0 : i32
    %c0_i32_1 = arith.constant 0 : i32
    return %arg0, %c0_i32, %c0_i32_0 : i32, i32, i32
  }
}

module attributes {stable_mosaic.version = 11 : i64} {
  func.func @_convt_phase_kernel(%arg0: i32, %arg1: memref<1x512x512xbf16, #tpu.memory_space<vmem>>, %arg2: memref<1x512x128xbf16, #tpu.memory_space<vmem>>, %arg3: memref<1x128xf32, #tpu.memory_space<vmem>>, %arg4: memref<1x128xf32, #tpu.memory_space<vmem>>, %arg5: memref<1x512x128xf32, #tpu.memory_space<vmem>>) attributes {dimension_semantics = [#tpu.dimension_semantics<parallel>], iteration_bounds = array<i64: 4>, scalar_prefetch = 0 : i64, scratch_operands = 0 : i64, tpu.core_type = #tpu.core_type<tc>, window_params = [{transform_indices = @transform_0, window_bounds = array<i64: 1, 512, 512>}, {transform_indices = @transform_1, window_bounds = array<i64: 1, 512, 128>}, {pipeline_mode = #tpu.pipeline_mode<synchronous>, transform_indices = @transform_2, window_bounds = array<i64: 1, 128>}, {pipeline_mode = #tpu.pipeline_mode<synchronous>, transform_indices = @transform_3, window_bounds = array<i64: 1, 128>}, {transform_indices = @transform_4, window_bounds = array<i64: 1, 512, 128>}]} {
    %c0 = arith.constant 0 : index
    %c0_0 = arith.constant 0 : index
    %c0_1 = arith.constant 0 : index
    %0 = vector.load %arg1[%c0, %c0_0, %c0_1] : memref<1x512x512xbf16, #tpu.memory_space<vmem>>, vector<1x512x512xbf16>
    %1 = vector.shape_cast %0 : vector<1x512x512xbf16> to vector<512x512xbf16>
    %c0_2 = arith.constant 0 : index
    %c0_3 = arith.constant 0 : index
    %c0_4 = arith.constant 0 : index
    %2 = vector.load %arg2[%c0_2, %c0_3, %c0_4] : memref<1x512x128xbf16, #tpu.memory_space<vmem>>, vector<1x512x128xbf16>
    %3 = vector.shape_cast %2 : vector<1x512x128xbf16> to vector<512x128xbf16>
    %cst = arith.constant dense<0.000000e+00> : vector<512x128xf32>
    %4 = tpu.matmul %1, %3, %cst {dimension_numbers = #tpu.dot_dimension_numbers<[1], [0], [0], [1], [0, 0, 1, 1], [], []>} : vector<512x512xbf16>, vector<512x128xbf16>, vector<512x128xf32> -> vector<512x128xf32>
    %c0_5 = arith.constant 0 : index
    %c0_6 = arith.constant 0 : index
    %5 = vector.load %arg3[%c0_5, %c0_6] : memref<1x128xf32, #tpu.memory_space<vmem>>, vector<1x128xf32>
    %6 = vector.broadcast %5 : vector<1x128xf32> to vector<512x128xf32>
    %7 = arith.mulf %4, %6 : vector<512x128xf32>
    %c0_7 = arith.constant 0 : index
    %c0_8 = arith.constant 0 : index
    %8 = vector.load %arg4[%c0_7, %c0_8] : memref<1x128xf32, #tpu.memory_space<vmem>>, vector<1x128xf32>
    %9 = vector.broadcast %8 : vector<1x128xf32> to vector<512x128xf32>
    %10 = arith.addf %7, %9 : vector<512x128xf32>
    %cst_9 = arith.constant 5.000000e-01 : f32
    %11 = vector.broadcast %cst_9 : f32 to vector<512x128xf32>
    %12 = arith.mulf %11, %10 : vector<512x128xf32>
    %13 = math.tanh %12 : vector<512x128xf32>
    %cst_10 = arith.constant 1.000000e+00 : f32
    %14 = vector.broadcast %cst_10 : f32 to vector<512x128xf32>
    %15 = arith.addf %13, %14 : vector<512x128xf32>
    %cst_11 = arith.constant 5.000000e-01 : f32
    %16 = vector.broadcast %cst_11 : f32 to vector<512x128xf32>
    %17 = arith.mulf %16, %15 : vector<512x128xf32>
    %c0_12 = arith.constant 0 : index
    %c0_13 = arith.constant 0 : index
    %c0_14 = arith.constant 0 : index
    %18 = vector.load %arg5[%c0_12, %c0_13, %c0_14] : memref<1x512x128xf32, #tpu.memory_space<vmem>>, vector<1x512x128xf32>
    %19 = vector.shape_cast %18 : vector<1x512x128xf32> to vector<512x128xf32>
    %20 = vector.shape_cast %17 : vector<512x128xf32> to vector<1x512x128xf32>
    tpu.vector_store %arg5[%c0_12, %c0_13, %c0_14], %20 {strides = array<i32>} : memref<1x512x128xf32, #tpu.memory_space<vmem>>, vector<1x512x128xf32>,
    return
  }
  func.func @transform_0(%arg0: i32) -> (i32, i32, i32) {
    %c0_i32 = arith.constant 0 : i32
    %c0_i32_0 = arith.constant 0 : i32
    %c0_i32_1 = arith.constant 0 : i32
    return %arg0, %c0_i32, %c0_i32_0 : i32, i32, i32
  }
  func.func @transform_1(%arg0: i32) -> (i32, i32, i32) {
    %c0_i32 = arith.constant 0 : i32
    %c0_i32_0 = arith.constant 0 : i32
    %c0_i32_1 = arith.constant 0 : i32
    return %arg0, %c0_i32, %c0_i32_0 : i32, i32, i32
  }
  func.func @transform_2(%arg0: i32) -> (i32, i32) {
    %c0_i32 = arith.constant 0 : i32
    %c0_i32_0 = arith.constant 0 : i32
    %c0_i32_1 = arith.constant 0 : i32
    return %c0_i32, %c0_i32_0 : i32, i32
  }
  func.func @transform_3(%arg0: i32) -> (i32, i32) {
    %c0_i32 = arith.constant 0 : i32
    %c0_i32_0 = arith.constant 0 : i32
    %c0_i32_1 = arith.constant 0 : i32
    return %c0_i32, %c0_i32_0 : i32, i32
  }
  func.func @transform_4(%arg0: i32) -> (i32, i32, i32) {
    %c0_i32 = arith.constant 0 : i32
    %c0_i32_0 = arith.constant 0 : i32
    %c0_i32_1 = arith.constant 0 : i32
    return %arg0, %c0_i32, %c0_i32_0 : i32, i32, i32
  }
}

</mosaic_0001>

<bundles_post_ra>
// kernel: forward.4
= control target key start
LH: loop header
LB: loop body
LE: loop exit
PB: predicated region body
PF: predicated region fallthrough
CT: control target
= control target key end

     0   :  { %s7060_s0 = inlined_call_operand.vmem [shape: f32[2,128], index: 0, kind: input, shape index: {}]   ;;  %s7061_s1 = inlined_call_operand.hbm [shape: bf16[128,128], index: 1, kind: input, shape index: {}]   ;;  %s7062_s2 = inlined_call_operand.hbm [shape: f32[1,128], index: 2, kind: input, shape index: {}]   ;;  %s7063_s3 = inlined_call_operand.hbm [shape: bf16[128,1024], index: 3, kind: input, shape index: {}]   ;;  %s7064_s4 = inlined_call_operand.hbm [shape: f32[1,1024], index: 4, kind: input, shape index: {}]   ;;  %s7065_s5 = inlined_call_operand.hbm [shape: bf16[1024,8192], index: 5, kind: input, shape index: {}]   ;;  %s7066_s6 = inlined_call_operand.hbm [shape: f32[1,8192], index: 6, kind: input, shape index: {}]   ;;  %s7067_s7 = inlined_call_operand.vmem [shape: f32[2,8192], index: 7, kind: output, shape index: {}]  }
   0x1   :  { %7078 = sst [smem:[#allocation17_spill]] %s7061_s1 }
   0x2   :  { %7079 = sst [smem:[#allocation18_spill]] %s7062_s2 }
   0x3   :  { %12 = vsyncpa [#allocation3], 0 }
   0x4   :  { %13 = vsyncpa [#allocation5], 0 }
   0x5   :  { %14 = vsyncpa [#allocation8], 0  ;;  %s6135_s24 = smov 0   ;;  %s6137_s25 = smov 0  }
   0x6   :  { %s6139_s26 = smov 0   ;;  %s6141_s27 = smov 0  }
   0x7 LB: > { %s6154_s28 = sadd.s32 4294967295, %s6078_s27   ;;  %s6157_s29 = sadd.s32 1, %s6078_s27   ;;  %s6078_s27 = sphi %s6141_s27, %s7103_s27   ;;  %s6074_s26 = sphi %s6139_s26, %s7107_s26   ;;  %s6070_s25 = sphi %s6137_s25, %s7106_s25   ;;  %s6066_s24 = sphi %s6135_s24, %s7105_s24  }
   0x8   : > { %7080 = sst [smem:[#allocation15_spill]] %s6157_s29  ;;  %s129_s30 = ssub.s32 %s6078_s27, %s6157_s29 }
   0x9   : > { %s132_s8 = sadd.s32 1, %s6074_s26  ;;  %p130_p0 = scmp.eq.s32.totalorder %s129_s30, 0 }
   0xa   : > { %p139_p1 = scmp.ne.s32.totalorder %s6074_s26, %s6070_s25  ;;  %p140_p2 = scmp.eq.s32.totalorder %s6078_s27, 0 }
   0xb   : > { %p145_p3 = scmp.ne.s32.totalorder %s6070_s25, %s6066_s24  ;;  %p7068_p5 = scmp.eq.s32.totalorder %s6154_s28, 0 }
   0xc   : > { %s6167_s9 = scalar_select %p130_p0, %s6074_s26, %s132_s8  }
   0xd   : > { %p141_p4 = por %p140_p2, %p139_p1  ;;  %p5062_p6 = scmp.ge.s32.totalorder %s6078_s27, 1 }
   0xe   : > { %7081 = sst [smem:[#allocation16_spill]] %s6167_s9  ;;  %p208_p7 = scmp.lt.s32.totalorder %s6078_s27, 9 }
   0xf   : > { %p6174_p8 = por %p7068_p5, %p145_p3  ;;  %s6080_s12 = smov [#allocation2]  }
  0x10   : > { %p6178_p9 = pnand %p5062_p6, %p208_p7  ;;  %s223_s13 = sshll.u32 %s6080_s12, 4  ;;  %s224_s13 = int_to_ptr.vmem [resolvable:$true] %s223_s13 }
  0x11   : > { %s7082_s10 = scalar_select %p6174_p8, 1, 0 }
  0x12   : > { %s7083_s11 = scalar_select %p6178_p9, 1, 0 }
  0x13   : > { %p5777_p10 = pneg %p6178_p9  ;;  %p5801_p12 = scmp.lt.s32.totalorder %s6078_s27, 8 }
  0x14   : > { %s7086_s1 = sld [smem:[#allocation17_spill]] }
  0x15   : > { %p6186_p11 = pnand %p5777_p10, %p7068_p5  ;;  %p6191_p13 = pnand %p5801_p12, %p141_p4 }
  0x17   : > { %s7084_s14 = scalar_select %p6186_p11, 1, 0 }
  0x18   : > { %s7085_s15 = scalar_select %p6191_p13, 1, 0 }
  0x19   : > { %p6203_p1 = pneg %p6186_p11 }
  0x1a   : > { %s5860_s18 = scalar_lea.hbm %s7086_s1, 1024 }
  0x1b   : > { %p5861_p0 = scmp.ne.s32.totalorder %s7086_s1, %s5860_s18  ;;  %p5867_p4 = scmp.lt.u32.totalorder %s5860_s18, %s7086_s1 }
  0x1d   : > { %p5863_p2 = pnand %p6203_p1, %p5861_p0 }
  0x1f   : > { %p5864_p3 = pneg %p5863_p2 }
  0x21   : > { %p5869_p6 = pnand %p5867_p4, %p5864_p3 }
  0x23   : > { %5872 = shalt.err (!%p5869_p6)
}
  0x24   : > { %s5873_s24 = scalar_lea.vmem %s224_s13, 1024  ;;  %p5881_p5 = scmp.lt.s32.totalorder %s224_s13, %s224_s13 }
  0x25   : > { %p5874_p7 = scmp.ne.s32.totalorder %s224_s13, %s5873_s24  ;;  %p5882_p8 = scmp.lt.s32.totalorder %s5873_s24, %s5873_s24 }
  0x27   : > { %p5876_p10 = pnand %p5874_p7, %p6203_p1  ;;  %p5883_p9 = por %p5882_p8, %p5881_p5 }
  0x29   : > { %p5877_p12 = pneg %p5876_p10 }
  0x2b   : > { %p5884_p13 = pnand %p5883_p9, %p5877_p12 }
  0x2d   : > { %5887 = shalt.err (!%p5884_p13)
}
  0x2e   : > { %s6081_s30 = smov 64   ;;  %s6082_s8 = smov 4  }
  0x2f   : > { %5780 = dma.hbm_to_vmem [thread:$0]  (!%p6186_p11), %s7086_s1, 1024, %s224_s13, [#allocation3], %s6081_s30, %s6081_s30, %s6082_s8  }
  0x30   : > { %s6083_s17 = smov [#allocation4]   ;;  %s7088_s2 = sld [smem:[#allocation18_spill]] }
  0x31   : > { %s237_s18 = sshll.u32 %s6083_s17, 4  ;;  %s238_s18 = int_to_ptr.vmem [resolvable:$true] %s237_s18 }
  0x36   : > { %s5888_s22 = scalar_lea.hbm %s7088_s2, 16 }
  0x37   : > { %p5889_p5 = scmp.ne.s32.totalorder %s7088_s2, %s5888_s22  ;;  %p5895_p13 = scmp.lt.u32.totalorder %s5888_s22, %s7088_s2 }
  0x39   : > { %p5891_p8 = pnand %p5889_p5, %p6203_p1 }
  0x3b   : > { %p5892_p9 = pneg %p5891_p8 }
  0x3d   : > { %p5897_p0 = pnand %p5895_p13, %p5892_p9 }
  0x3f   : > { %5900 = shalt.err (!%p5897_p0)
}
  0x40   : > { %s5901_s13 = scalar_lea.vmem %s238_s18, 16  ;;  %s5908_s30 = scalar_lea.vmem %s238_s18, 32 }
  0x41   : > { %p5902_p2 = scmp.ne.s32.totalorder %s238_s18, %s5901_s13  ;;  %p5909_p6 = scmp.lt.s32.totalorder %s238_s18, %s238_s18 }
  0x42   : > { %p5910_p7 = scmp.lt.s32.totalorder %s5908_s30, %s5901_s13 }
  0x43   : > { %p5904_p3 = pnand %p5902_p2, %p6203_p1 }
  0x44   : > { %p5911_p10 = por %p5910_p7, %p5909_p6 }
  0x45   : > { %p5905_p4 = pneg %p5904_p3 }
  0x47   : > { %p5912_p12 = pnand %p5911_p10, %p5905_p4 }
  0x49   : > { %5915 = shalt.err (!%p5912_p12)
}
  0x4a   : > { %5783 = dma.hbm_to_vmem [thread:$0]  (!%p6186_p11), %s7088_s2, 16, %s238_s18, [#allocation5]  }
  0x4b   : > { %s272_s29 = sand.u32 1, %s6078_s27   ;;  %s7076_s9 = sand.u32 1, %s6074_s26  }
  0x4c   : > { %s5068_s16 = sshll.u32 %s7076_s9, 12  ;;  %s5670_s17 = sshll.u32 %s6078_s27, 9 }
  0x4d   : > { %s6245_s22 = scalar_lea.hbm %s7065_s5, %s5670_s17  ;;  %s276_s23 = scalar_lea.vmem [#allocation9], %s5068_s16 }
  0x4e   : > { %s283_s24 = sshll.u32 %s276_s23, 4  ;;  %s6249_s13 = scalar_lea.sflag [#allocation3], %s272_s29  ;;  %s6247_s24 = int_to_ptr.vmem [resolvable:$true] %s283_s24 }
  0x4f   : > { %s5916_s18 = scalar_lea.hbm %s6245_s22, 65536  ;;  %p7089_p8 = scmp.ne.s32.totalorder %s7085_s15, 0 }
  0x50   : > { %p5917_p5 = scmp.ne.s32.totalorder %s6245_s22, %s5916_s18  ;;  %s5921_s12 = scalar_lea.hbm %s7065_s5, 524288 }
  0x51   : > { %p7077_p9 = pneg %p7089_p8  ;;  %p5922_p2 = scmp.lt.u32.totalorder %s6245_s22, %s7065_s5 }
  0x52   : > { %p5923_p3 = scmp.lt.u32.totalorder %s5921_s12, %s5916_s18  ;;  %p5925_p6 = scmp.lt.u32.totalorder %s5916_s18, %s6245_s22 }
  0x53   : > { %p5919_p13 = pnand %p7077_p9, %p5917_p5 }
  0x54   : > { %p5924_p4 = por %p5923_p3, %p5922_p2 }
  0x55   : > { %p5920_p0 = pneg %p5919_p13 }
  0x56   : > { %p5926_p7 = por %p5925_p6, %p5924_p4 }
  0x58   : > { %p5927_p10 = pnand %p5926_p7, %p5920_p0 }
  0x5a   : > { %5930 = shalt.err (!%p5927_p10)
}
  0x5b   : > { %s5931_s29 = scalar_lea.vmem %s6247_s24, 65536  ;;  %s6084_s16 = smov [#allocation9]  }
  0x5c   : > { %p5932_p12 = scmp.ne.s32.totalorder %s6247_s24, %s5931_s29  ;;  %s5936_s20 = sshll.u32 %s6084_s16, 4  ;;  %s5937_s20 = int_to_ptr.vmem [resolvable:$false] %s5936_s20 }
  0x5d   : > { %s5938_s23 = scalar_lea.vmem %s5937_s20, 131072  ;;  %p5939_p11 = scmp.lt.s32.totalorder %s6247_s24, %s5937_s20 }
  0x5e   : > { %p5934_p5 = pnand %p5932_p12, %p7077_p9  ;;  %p5940_p2 = scmp.lt.s32.totalorder %s5938_s23, %s5931_s29 }
  0x60   : > { %p5935_p13 = pneg %p5934_p5  ;;  %p5941_p3 = por %p5940_p2, %p5939_p11 }
  0x62   : > { %p5942_p4 = pnand %p5941_p3, %p5935_p13 }
  0x64   : > { %5945 = shalt.err (!%p5942_p4)
}
  0x65   : > { %s6085_s18 = smov 4096   ;;  %s6086_s30 = smov 512  }
  0x66   : > { %s6087_s8 = smov 32   ;;  %s6088_s12 = smov [#allocation6]  }
  0x67   : > { %5793 = dma.hbm_to_vmem [thread:$0]  (!%p7089_p8), %s6245_s22, 65536, %s6247_s24, %s6249_s13, %s6085_s18, %s6086_s30, %s6087_s8  }
  0x68   : > { %s247_s17 = sshll.u32 %s6088_s12, 4  ;;  %s6089_s19 = smov [#allocation7]   ;;  %s248_s17 = int_to_ptr.vmem [resolvable:$true] %s247_s17 }
  0x69   : > { %s261_s16 = sshll.u32 %s6089_s19, 4  ;;  %s5946_s23 = scalar_lea.hbm %s7063_s3, 8192  ;;  %s6277_s16 = int_to_ptr.vmem [resolvable:$true] %s261_s16 }
  0x6a   : > { %p5947_p11 = scmp.ne.s32.totalorder %s7063_s3, %s5946_s23  ;;  %p5953_p7 = scmp.lt.u32.totalorder %s5946_s23, %s7063_s3 }
  0x6c   : > { %p5949_p0 = pnand %p5947_p11, %p6203_p1 }
  0x6e   : > { %p5950_p6 = pneg %p5949_p0 }
  0x70   : > { %p5955_p10 = pnand %p5953_p7, %p5950_p6 }
  0x72   : > { %5958 = shalt.err (!%p5955_p10)
}
  0x73   : > { %s5959_s24 = scalar_lea.vmem %s248_s17, 8192  ;;  %p5967_p2 = scmp.lt.s32.totalorder %s248_s17, %s248_s17 }
  0x74   : > { %p5960_p12 = scmp.ne.s32.totalorder %s248_s17, %s5959_s24  ;;  %p5968_p3 = scmp.lt.s32.totalorder %s5959_s24, %s5959_s24 }
  0x76   : > { %p5962_p5 = pnand %p5960_p12, %p6203_p1  ;;  %p5969_p4 = por %p5968_p3, %p5967_p2 }
  0x78   : > { %p5963_p13 = pneg %p5962_p5 }
  0x7a   : > { %p5970_p9 = pnand %p5969_p4, %p5963_p13 }
  0x7c   : > { %5973 = shalt.err (!%p5970_p9)
}
  0x7d   : > { %p7090_p11 = scmp.ne.s32.totalorder %s7084_s14, 0  ;;  %s5974_s12 = scalar_lea.hbm %s7064_s4, 128 }
  0x7e   : > { %p5975_p0 = scmp.ne.s32.totalorder %s7064_s4, %s5974_s12  ;;  %p5981_p9 = scmp.lt.u32.totalorder %s5974_s12, %s7064_s4 }
  0x7f   : > { %5786 = dma.hbm_to_vmem [thread:$0]  (!%p7090_p11), %s7063_s3, 8192, %s248_s17, [#allocation5], %s6086_s30, %s6086_s30, %s6087_s8  }
  0x80   : > { %p5977_p6 = pnand %p5975_p0, %p6203_p1 }
  0x82   : > { %p5978_p7 = pneg %p5977_p6 }
  0x84   : > { %p5983_p10 = pnand %p5981_p9, %p5978_p7 }
  0x86   : > { %5986 = shalt.err (!%p5983_p10)
}
  0x87   : > { %s5987_s30 = scalar_lea.vmem %s6277_s16, 128  ;;  %p5995_p2 = scmp.lt.s32.totalorder %s6277_s16, %s6277_s16 }
  0x88   : > { %p5988_p12 = scmp.ne.s32.totalorder %s6277_s16, %s5987_s30  ;;  %p5996_p3 = scmp.lt.s32.totalorder %s5987_s30, %s5987_s30 }
  0x8a   : > { %p5990_p5 = pnand %p5988_p12, %p6203_p1  ;;  %p5997_p4 = por %p5996_p3, %p5995_p2 }
  0x8c   : > { %p5991_p13 = pneg %p5990_p5 }
  0x8e   : > { %p5998_p0 = pnand %p5997_p4, %p5991_p13 }
  0x90   : > { %6001 = shalt.err (!%p5998_p0)
}
  0x91   : > { %5789 = dma.hbm_to_vmem [thread:$0]  (!%p7090_p11), %s7064_s4, 128, %s6277_s16, [#allocation8]  }
  0x92   : > { %s7091_s22 = sand.u32 1, %s6074_s26   ;;  %s5671_s24 = sshll.u32 %s6078_s27, 7 }
  0x93   : > { %s5071_s21 = sshll.u32 %s7091_s22, 3  ;;  %s6326_s2 = scalar_lea.hbm %s7066_s6, %s5671_s24 }
  0x94   : > { %s297_s14 = scalar_lea.vmem [#allocation10], %s5071_s21  ;;  %s6002_s12 = scalar_lea.hbm %s6326_s2, 128 }
  0x95   : > { %s305_s18 = sshll.u32 %s297_s14, 4  ;;  %p6003_p1 = scmp.ne.s32.totalorder %s6326_s2, %s6002_s12  ;;  %s306_s18 = int_to_ptr.vmem [resolvable:$true] %s305_s18 }
  0x96   : > { %p7092_p6 = pneg %p7089_p8  ;;  %s6007_s19 = scalar_lea.hbm %s7066_s6, 1024 }
  0x97   : > { %p6008_p9 = scmp.lt.u32.totalorder %s6326_s2, %s7066_s6  ;;  %p6009_p10 = scmp.lt.u32.totalorder %s6007_s19, %s6002_s12 }
  0x98   : > { %p6005_p11 = pnand %p6003_p1, %p7092_p6  ;;  %p6011_p5 = scmp.lt.u32.totalorder %s6002_s12, %s6326_s2 }
  0x99   : > { %p6010_p12 = por %p6009_p10, %p6008_p9 }
  0x9a   : > { %p6006_p7 = pneg %p6005_p11 }
  0x9b   : > { %p6012_p13 = por %p6011_p5, %p6010_p12 }
  0x9d   : > { %p6013_p2 = pnand %p6012_p13, %p6006_p7 }
  0x9f   : > { %6016 = shalt.err (!%p6013_p2)
}
  0xa0   : > { %s6017_s23 = scalar_lea.vmem %s306_s18, 128  ;;  %p7093_p4 = pmov %p7092_p6 }
  0xa1   : > { %p6018_p3 = scmp.ne.s32.totalorder %s306_s18, %s6017_s23  ;;  %s6090_s30 = smov [#allocation10]  }
  0xa2   : > { %s6022_s8 = sshll.u32 %s6090_s30, 4  ;;  %s6023_s8 = int_to_ptr.vmem [resolvable:$false] %s6022_s8 }
  0xa3   : > { %p6020_p0 = pnand %p6018_p3, %p7093_p4  ;;  %s6024_s17 = scalar_lea.vmem %s6023_s8, 256 }
  0xa4   : > { %p6025_p6 = scmp.lt.s32.totalorder %s306_s18, %s6023_s8  ;;  %p6026_p11 = scmp.lt.s32.totalorder %s6024_s17, %s6017_s23 }
  0xa5   : > { %p6021_p1 = pneg %p6020_p0 }
  0xa6   : > { %p6027_p9 = por %p6026_p11, %p6025_p6 }
  0xa8   : > { %p6028_p10 = pnand %p6027_p9, %p6021_p1 }
  0xaa   : > { %6031 = shalt.err (!%p6028_p10)
}
  0xab   : > { %5796 = dma.hbm_to_vmem [thread:$0]  (!%p7089_p8), %s6326_s2, 128, %s306_s18, %s6249_s13  }
  0xac   : > { %p7094_p7 = scmp.ne.s32.totalorder %s7083_s11, 0 }
  0xad   : > { %p7095_p12 = scmp.eq.s32.totalorder (!%p7094_p7), %s6154_s28, 0 }
  0xae   : > { %314 = sbr.rel (%p7094_p7) target bundleno = 1338 (0x53a), region = 48 }
  0xb5   : > { %6049 = dma.done.wait (%p7095_p12), [#allocation3], 1024   ;;  %p7096_p5 = pmov %p7095_p12 }
  0xb7   : > { %6051 = vsyncadd (%p7096_p5), [#allocation3], 4294966272  ;;  %p7097_p13 = pmov %p7096_p5 }
  0xb8   : > { %p7098_p2 = pmov %p7096_p5 }
  0xb9   : > { %6053 = dma.done.wait (%p7097_p13), [#allocation5], 8208  }
  0xba   : > { %6055 = vsyncadd (%p7098_p2), [#allocation5], 4294959088  ;;  %p7099_p3 = pmov %p7098_p2 }
  0xbb   : > { %p7100_p8 = pmov %p7098_p2 }
  0xbc   : > { %6057 = dma.done.wait (%p7099_p3), [#allocation8], 128  }
  0xbd   : > { %6059 = vsyncadd (%p7100_p8), [#allocation8], 4294967168  ;;  %s332_s11 = sand.u32 1, %s6154_s28   ;;  %s334_s15 = sand.u32 1, %s6070_s25  }
  0xbe   : > { %s5079_s13 = sshll.u32 %s334_s15, 12  ;;  %s333_s22 = scalar_lea.sflag [#allocation3], %s332_s11 }
  0xbf   : > { %s6366_s21 = scalar_lea.vmem [#allocation9], %s5079_s13  ;;  %p7101_p4 = scmp.ne.s32.totalorder %s7082_s10, 0 }
  0xc1   : > { %6061 = dma.done.wait (%p7101_p4), %s333_s22, 65664  }
  0xc2   : > { %6063 = vsyncadd (%p7101_p4), %s333_s22, 4294901632  ;;  %v6091_v0 = vmov 0.0   ;;  %vm6092_vm0 = vmmov 0   ;;  %v5851_v1 = vld [vmem:[#allocation2] sm:$0xff]   ;;  %v5852_v2 = vld [vmem:[#allocation2 + $0x8] sm:$0xff]   ;;  %s5080_s1 = sshll.u32 %s334_s15, 3 }
  0xc3   : > { %5681 = vmatprep.subr.bf16.mxu0 %v6091_v0  ;;  %5697 = vmatprep.mubr.msk.bf16.mxu0 %vm6092_vm0, %v6091_v0  ;;  %v5853_v3 = vld [vmem:[#allocation2 + $0x10] sm:$0xff]   ;;  %v505_v4 = vld [vmem:[#allocation6] sm:$0xff]  ;;  %v5854_v9 = vld [vmem:[#allocation2 + $0x18] sm:$0xff]   ;;  %s345_s9 = scalar_lea.vmem [#allocation10], %s5080_s1  ;;  %s5081_s2 = sshll.u32 %s6154_s28, 3 }
  0xc4   : > { %5682 = vmatpush3.bf16.msra.mxu0 %v5851_v1  ;;  %v509_v5 = vld [vmem:[#allocation6 + $0x20] sm:$0xff]  ;;  %v5857_v26 = vld [vmem:[#allocation2 + $0x30] sm:$0xff]   ;;  %v5858_v32 = vld [vmem:[#allocation2 + $0x38] sm:$0xff]   ;;  %p6969_p0 = scmp.lt.s32.totalorder %s5081_s2, 63 }
  0xc5   : > { %5683 = vmatprep.subr.bf16.mxu0 %v6091_v0  ;;  %v5093_v6 = vcombine.high %v505_v4, %v509_v5  ;;  %v5092_v7 = vcombine.low %v505_v4, %v509_v5  ;;  %v513_v8 = vld [vmem:[#allocation6 + $0x40] sm:$0xff]  ;;  %v506_v29 = vld [vmem:[#allocation6 + $0x8] sm:$0xff]  ;;  %v390_v34 = vld [vmem:[%s7060_s0] sm:$0x3] }
  0xc6   : > { %v517_v10 = vld [vmem:[#allocation6 + $0x60] sm:$0xff]  ;;  %v510_v30 = vld [vmem:[#allocation6 + $0x28] sm:$0xff]  ;;  %v391_v41 = vpack.c.bf16 %v390_v34, %v390_v34  ;;  %v523_v34 = vld [vmem:[#allocation6 + $0x90] sm:$0xff]  ;;  %s7109_s2 = smov (!%p6969_p0, %s5081_s2), 63 }
  0xc7   : > { %931 = vmatprep.subr.bf16.mxu1 %v5093_v6  ;;  %v5101_v11 = vcombine.high %v513_v8, %v517_v10  ;;  %v521_v12 = vld [vmem:[#allocation6 + $0x80] sm:$0xff]  ;;  %v5100_v14 = vcombine.low %v513_v8, %v517_v10  ;;  %v5095_v37 = vcombine.high %v506_v29, %v510_v30  ;;  %v514_v38 = vld [vmem:[#allocation6 + $0x48] sm:$0xff]  ;;  %v5094_v43 = vcombine.low %v506_v29, %v510_v30  ;;  %s5082_s28 = sshll.u32 %s7109_s2, 1 }
  0xc8   : > { %5684 = vmatpush3.bf16.msra.mxu0 %v5852_v2  ;;  %v525_v13 = vld [vmem:[#allocation6 + $0xa0] sm:$0xff]  ;;  %932 = vmatpush1.bf16.msra.mxu1 %v5092_v7  ;;  %v518_v39 = vld [vmem:[#allocation6 + $0x68] sm:$0xff]  ;;  %s7003_s16 = scalar_lea.vmem %s7067_s7, %s5082_s28 }
  0xc9   : > { %5685 = vmatprep.subr.bf16.mxu0 %v6091_v0  ;;  %933 = vmatprep.subr.bf16.mxu1 %v5101_v11  ;;  %v5109_v15 = vcombine.high %v521_v12, %v525_v13  ;;  %v5855_v16 = vld [vmem:[#allocation2 + $0x20] sm:$0xff]   ;;  %v5108_v19 = vcombine.low %v521_v12, %v525_v13  ;;  %v5856_v21 = vld [vmem:[#allocation2 + $0x28] sm:$0xff]   ;;  %v5103_v44 = vcombine.high %v514_v38, %v518_v39  ;;  %v507_v11 = vld [vmem:[#allocation6 + $0x10] sm:$0xff] }
  0xca   : > { %v529_v17 = vld [vmem:[#allocation6 + $0xc0] sm:$0xff]  ;;  %v522_v45 = vld [vmem:[#allocation6 + $0x88] sm:$0xff]  ;;  %v5102_v48 = vcombine.low %v514_v38, %v518_v39  ;;  %v511_v12 = vld [vmem:[#allocation6 + $0x30] sm:$0xff] }
  0xcb   : > { %v533_v18 = vld [vmem:[#allocation6 + $0xe0] sm:$0xff]  ;;  %v526_v46 = vld [vmem:[#allocation6 + $0xa8] sm:$0xff]  ;;  %v508_v13 = vld [vmem:[#allocation6 + $0x18] sm:$0xff] }
  0xcc   : > { %5686 = vmatpush3.bf16.msra.mxu0 %v5853_v3  ;;  %934 = vmatpush1.bf16.msra.mxu1 %v5100_v14  ;;  %v5117_v20 = vcombine.high %v529_v17, %v533_v18  ;;  %v537_v22 = vld [vmem:[#allocation6 + $0x100] sm:$0xff]  ;;  %v5116_v24 = vcombine.low %v529_v17, %v533_v18  ;;  %v5111_v49 = vcombine.high %v522_v45, %v526_v46  ;;  %v530_v50 = vld [vmem:[#allocation6 + $0xc8] sm:$0xff] }
  0xcd   : > { %5687 = vmatprep.subr.bf16.mxu0 %v6091_v0  ;;  %935 = vmatprep.subr.bf16.mxu1 %v5109_v15  ;;  %v541_v23 = vld [vmem:[#allocation6 + $0x120] sm:$0xff]  ;;  %v534_v51 = vld [vmem:[#allocation6 + $0xe8] sm:$0xff]  ;;  %v5110_v52 = vcombine.low %v522_v45, %v526_v46  ;;  %v5097_v14 = vcombine.high %v507_v11, %v511_v12  ;;  %v512_v15 = vld [vmem:[#allocation6 + $0x38] sm:$0xff] }
  0xce   : > { %v5125_v25 = vcombine.high %v537_v22, %v541_v23  ;;  %v545_v27 = vld [vmem:[#allocation6 + $0x140] sm:$0xff]  ;;  %v5124_v31 = vcombine.low %v537_v22, %v541_v23  ;;  %v5119_v53 = vcombine.high %v530_v50, %v534_v51  ;;  %v538_v54 = vld [vmem:[#allocation6 + $0x108] sm:$0xff]  ;;  %v5118_v56 = vcombine.low %v530_v50, %v534_v51  ;;  %v536_v45 = vld [vmem:[#allocation6 + $0xf8] sm:$0xff] }
  0xcf   : > { %v549_v28 = vld [vmem:[#allocation6 + $0x160] sm:$0xff]  ;;  %v542_v55 = vld [vmem:[#allocation6 + $0x128] sm:$0xff]  ;;  %v5098_v17 = vcombine.low %v508_v13, %v512_v15  ;;  %v5099_v18 = vcombine.high %v508_v13, %v512_v15  ;;  %v539_v50 = vld [vmem:[#allocation6 + $0x110] sm:$0xff] }
  0xd0   : > { %5688 = vmatpush3.bf16.msra.mxu0 %v5854_v9  ;;  %936 = vmatpush1.bf16.msra.mxu1 %v5108_v19  ;;  %v5133_v33 = vcombine.high %v545_v27, %v549_v28  ;;  %v553_v35 = vld [vmem:[#allocation6 + $0x180] sm:$0xff]  ;;  %v5132_v40 = vcombine.low %v545_v27, %v549_v28  ;;  %v5127_v57 = vcombine.high %v538_v54, %v542_v55  ;;  %v546_v58 = vld [vmem:[#allocation6 + $0x148] sm:$0xff]  ;;  %v6093_v19 = vmov 0   ;;  %v516_v27 = vld [vmem:[#allocation6 + $0x58] sm:$0xff] }
  0xd1   : > { %5689 = vmatprep.subr.bf16.mxu0 %v6091_v0  ;;  %937 = vmatprep.subr.bf16.mxu1 %v5117_v20  ;;  %v557_v36 = vld [vmem:[#allocation6 + $0x1a0] sm:$0xff]  ;;  %v550_v59 = vld [vmem:[#allocation6 + $0x168] sm:$0xff]  ;;  %v5126_v60 = vcombine.low %v538_v54, %v542_v55  ;;  %v5083_v20 = vld [vmem:[#allocation4] ss:$0 sm:$0xff] }
  0xd2   : > { %v5141_v42 = vcombine.high %v553_v35, %v557_v36  ;;  %v5140_v47 = vcombine.low %v553_v35, %v557_v36  ;;  %v5135_v61 = vcombine.high %v546_v58, %v550_v59  ;;  %v554_v62 = vld [vmem:[#allocation6 + $0x188] sm:$0xff]  ;;  %v561_v3 = vld [vmem:[#allocation6 + $0x1c0] sm:$0xff]  ;;  %963 = vmatprep.mubr.bf16.mxu1 %v6093_v19  ;;  %v520_v28 = vld [vmem:[#allocation6 + $0x78] sm:$0xff] }
  0xd3   : > { %v558_v63 = vld [vmem:[#allocation6 + $0x1a8] sm:$0xff]  ;;  %v565_v4 = vld [vmem:[#allocation6 + $0x1e0] sm:$0xff]  ;;  %v527_v35 = vld [vmem:[#allocation6 + $0xb0] sm:$0xff]  ;;  %v5106_v39 = vcombine.low %v516_v27, %v520_v28 }
  0xd4   : > { %5690 = vmatpush3.bf16.msra.mxu0 %v5855_v16  ;;  %938 = vmatpush1.bf16.msra.mxu1 %v5116_v24  ;;  %v5143_v1 = vcombine.high %v554_v62, %v558_v63  ;;  %v5142_v2 = vcombine.low %v554_v62, %v558_v63  ;;  %v562_v5 = vld [vmem:[#allocation6 + $0x1c8] sm:$0xff]  ;;  %v5149_v6 = vcombine.high %v561_v3, %v565_v4  ;;  %v515_v24 = vld [vmem:[#allocation6 + $0x50] sm:$0xff]  ;;  %v524_v36 = vld [vmem:[#allocation6 + $0x98] sm:$0xff] }
  0xd5   : > { %5691 = vmatprep.subr.bf16.mxu0 %v6091_v0  ;;  %939 = vmatprep.subr.bf16.mxu1 %v5125_v25  ;;  %v566_v7 = vld [vmem:[#allocation6 + $0x1e8] sm:$0xff]  ;;  %v5148_v10 = vcombine.low %v561_v3, %v565_v4  ;;  %v5096_v16 = vcombine.low %v507_v11, %v511_v12  ;;  %v5112_v46 = vcombine.low %v523_v34, %v527_v35  ;;  %v543_v51 = vld [vmem:[#allocation6 + $0x130] sm:$0xff]  ;;  %v556_v4 = vld [vmem:[#allocation6 + $0x198] sm:$0xff] }
  0xd6   : > { %v5150_v8 = vcombine.low %v562_v5, %v566_v7  ;;  %v5151_v9 = vcombine.high %v562_v5, %v566_v7  ;;  %v5128_v62 = vcombine.low %v539_v50, %v543_v51  ;;  %v559_v3 = vld [vmem:[#allocation6 + $0x1b0] sm:$0xff]  ;;  %v560_v5 = vld [vmem:[#allocation6 + $0x1b8] sm:$0xff] }
  0xd7   : > { %v567_v11 = vld [vmem:[#allocation6 + $0x1f0] sm:$0xff]  ;;  %v564_v12 = vld [vmem:[#allocation6 + $0x1d8] sm:$0xff]  ;;  %v5146_v15 = vcombine.low %v556_v4, %v560_v5 }
  0xd8   : > { %5692 = vmatpush3.bf16.msra.mxu0 %v5856_v21  ;;  %940 = vmatpush1.bf16.msra.mxu1 %v5124_v31  ;;  %v568_v13 = vld [vmem:[#allocation6 + $0x1f8] sm:$0xff] }
  0xd9   : > { %5693 = vmatprep.subr.bf16.mxu0 %v6091_v0  ;;  %941 = vmatprep.subr.bf16.mxu1 %v5133_v33  ;;  %v5107_v33 = vcombine.high %v516_v27, %v520_v28  ;;  %v1123_v27 = vld [vmem:[%s6366_s21 + $0x60] sm:$0xff]  ;;  %v1120_v28 = vld [vmem:[%s6366_s21 + $0x48] sm:$0xff] }
  0xdc   : > { %5694 = vmatpush3.bf16.msra.mxu0 %v5857_v26  ;;  %942 = vmatpush1.bf16.msra.mxu1 %v5132_v40  ;;  %v519_v26 = vld [vmem:[#allocation6 + $0x70] sm:$0xff]  ;;  %v5113_v40 = vcombine.high %v523_v34, %v527_v35  ;;  %v1127_v35 = vld [vmem:[%s6366_s21 + $0x80] sm:$0xff] }
  0xdd   : > { %5695 = vmatprep.subr.bf16.mxu0 %v6091_v0  ;;  %943 = vmatprep.subr.bf16.mxu1 %v5141_v42  ;;  %v5134_v0 = vcombine.low %v546_v58, %v550_v59  ;;  %v5104_v38 = vcombine.low %v515_v24, %v519_v26  ;;  %v531_v42 = vld [vmem:[#allocation6 + $0xd0] sm:$0xff] }
  0xde   : > { %v547_v58 = vld [vmem:[#allocation6 + $0x150] sm:$0xff] }
  0xdf   : > { %v551_v59 = vld [vmem:[#allocation6 + $0x170] sm:$0xff] }
  0xe0   : > { %5696 = vmatpush3.bf16.msra.mxu0 %v5858_v32  ;;  %944 = vmatpush1.bf16.msra.mxu1 %v5140_v47  ;;  %v5105_v32 = vcombine.high %v515_v24, %v519_v26  ;;  %v1119_v26 = vld [vmem:[%s6366_s21 + $0x40] sm:$0xff] }
  0xe1   : > { %972 = vmatprep.subr.bf16.mxu0 %v5095_v37  ;;  %945 = vmatprep.subr.bf16.mxu1 %v5149_v6  ;;  %v528_v37 = vld [vmem:[#allocation6 + $0xb8] sm:$0xff]  ;;  %v5136_v6 = vcombine.low %v547_v58, %v551_v59 }
  0xe2   : > { %v5114_v47 = vcombine.low %v524_v36, %v528_v37 }
  0xe3   : > { %5698 = vmatmul.mubr.bf16.vlgmr.msra.gmra.mrb[0].mxu0 %v391_v41  ;;  %v5115_v41 = vcombine.high %v524_v36, %v528_v37  ;;  %v1131_v36 = vld [vmem:[%s6366_s21 + $0xa0] sm:$0xff]  ;;  %v1128_v37 = vld [vmem:[%s6366_s21 + $0x88] sm:$0xff] }
  0xe4   : > { %973 = vmatpush1.bf16.msra.mxu0 %v5094_v43  ;;  %946 = vmatpush1.bf16.msra.mxu1 %v5148_v10  ;;  %v535_v43 = vld [vmem:[#allocation6 + $0xf0] sm:$0xff] }
  0xe5   : > { %974 = vmatprep.subr.bf16.mxu0 %v5103_v44  ;;  %1004 = vmatprep.mubr.bf16.mxu0 %v6093_v19  ;;  %v532_v44 = vld [vmem:[#allocation6 + $0xd8] sm:$0xff]  ;;  %v5120_v54 = vcombine.low %v531_v42, %v535_v43  ;;  %v563_v10 = vld [vmem:[#allocation6 + $0x1d0] sm:$0xff] }
  0xe6   : > { %1013 = vmatprep.subr.bf16.mxu1 %v5097_v14  ;;  %v5122_v55 = vcombine.low %v532_v44, %v536_v45 }
  0xe8   : > { %975 = vmatpush1.bf16.msra.mxu0 %v5102_v48  ;;  %v5121_v48 = vcombine.high %v531_v42, %v535_v43  ;;  %v1135_v43 = vld [vmem:[%s6366_s21 + $0xc0] sm:$0xff] }
  0xe9   : > { %976 = vmatprep.subr.bf16.mxu0 %v5111_v49  ;;  %v5123_v49 = vcombine.high %v532_v44, %v536_v45  ;;  %v1139_v44 = vld [vmem:[%s6366_s21 + $0xe0] sm:$0xff]  ;;  %v1136_v45 = vld [vmem:[%s6366_s21 + $0xc8] sm:$0xff] }
  0xec   : > { %977 = vmatpush1.bf16.msra.mxu0 %v5110_v52  ;;  %v540_v52 = vld [vmem:[#allocation6 + $0x118] sm:$0xff] }
  0xed   : > { %978 = vmatprep.subr.bf16.mxu0 %v5119_v53  ;;  %v544_v53 = vld [vmem:[#allocation6 + $0x138] sm:$0xff] }
  0xee   : > { %v5130_v63 = vcombine.low %v540_v52, %v544_v53 }
  0xf0   : > { %979 = vmatpush1.bf16.msra.mxu0 %v5118_v56  ;;  %v5129_v56 = vcombine.high %v539_v50, %v543_v51  ;;  %v1143_v50 = vld [vmem:[%s6366_s21 + $0x100] sm:$0xff] }
  0xf1   : > { %980 = vmatprep.subr.bf16.mxu0 %v5127_v57  ;;  %v5131_v57 = vcombine.high %v540_v52, %v544_v53  ;;  %v1147_v51 = vld [vmem:[%s6366_s21 + $0x120] sm:$0xff]  ;;  %v1144_v52 = vld [vmem:[%s6366_s21 + $0x108] sm:$0xff] }
  0xf2   : > { %v1148_v53 = vld [vmem:[%s6366_s21 + $0x128] sm:$0xff] }
  0xf4   : > { %981 = vmatpush1.bf16.msra.mxu0 %v5126_v60  ;;  %v548_v60 = vld [vmem:[#allocation6 + $0x158] sm:$0xff] }
  0xf5   : > { %982 = vmatprep.subr.bf16.mxu0 %v5135_v61  ;;  %v552_v61 = vld [vmem:[#allocation6 + $0x178] sm:$0xff] }
  0xf6   : > { %v5138_v7 = vcombine.low %v548_v60, %v552_v61 }
  0xf8   : > { %983 = vmatpush1.bf16.msra.mxu0 %v5134_v0  ;;  %v5137_v0 = vcombine.high %v547_v58, %v551_v59  ;;  %v1151_v58 = vld [vmem:[%s6366_s21 + $0x140] sm:$0xff] }
  0xf9   : > { %984 = vmatprep.subr.bf16.mxu0 %v5143_v1  ;;  %v5139_v1 = vcombine.high %v548_v60, %v552_v61  ;;  %v1155_v59 = vld [vmem:[%s6366_s21 + $0x160] sm:$0xff]  ;;  %v1152_v60 = vld [vmem:[%s6366_s21 + $0x148] sm:$0xff] }
  0xfa   : > { %v1156_v61 = vld [vmem:[%s6366_s21 + $0x168] sm:$0xff] }
  0xfc   : > { %985 = vmatpush1.bf16.msra.mxu0 %v5142_v2  ;;  %v555_v2 = vld [vmem:[#allocation6 + $0x190] sm:$0xff] }
  0xfd   : > { %986 = vmatprep.subr.bf16.mxu0 %v5151_v9  ;;  %v5147_v9 = vcombine.high %v556_v4, %v560_v5  ;;  %v5144_v14 = vcombine.low %v555_v2, %v559_v3  ;;  %v1160_v4 = vld [vmem:[%s6366_s21 + $0x188] sm:$0xff] }
  0xfe   : > { %v1164_v5 = vld [vmem:[%s6366_s21 + $0x1a8] sm:$0xff] }
 0x100   : > { %987 = vmatpush1.bf16.msra.mxu0 %v5150_v8  ;;  %v5145_v8 = vcombine.high %v555_v2, %v559_v3  ;;  %v1159_v2 = vld [vmem:[%s6366_s21 + $0x180] sm:$0xff] }
 0x101   : > { %1054 = vmatprep.subr.bf16.mxu0 %v5099_v18  ;;  %v1111_v18 = vld [vmem:[%s6366_s21] sm:$0xff] }
 0x102   : > { %v1163_v3 = vld [vmem:[%s6366_s21 + $0x1a0] sm:$0xff] }
 0x1b6   : > { %v497_v21 = vpop.f32.mrb[0].mxu0 }
 0x1b7   : > { %v498_v22 = vadd.f32 %v5083_v20, %v497_v21  ;;  %v5699_v23 = vpop.f32.mrb[1].mxu0  ;;  %v1112_v20 = vld [vmem:[%s6366_s21 + $0x8] sm:$0xff] }
 0x1b8   : > { %v500_v25 = vpop.f32.mrb[2].mxu0  ;;  %v1116_v21 = vld [vmem:[%s6366_s21 + $0x28] sm:$0xff]  ;;  %v5154_v23 = vcombine.low %v564_v12, %v568_v13 }
 0x1b9   : > { %v503_v29 = vmax.f32 %v498_v22, 0.0  ;;  %v5700_v30 = vpop.f32.mrb[3].mxu0  ;;  %v5152_v22 = vcombine.low %v563_v10, %v567_v11  ;;  %v5159_v25 = vcombine.high %v1112_v20, %v1116_v21 }
 0x1bb   : > { %v6375_v31 = vpack.c.bf16 %v503_v29, %v503_v29  ;;  %v1124_v29 = vld [vmem:[%s6366_s21 + $0x68] sm:$0xff] }
 0x1bc   : > { %v5167_v34 = vcombine.high %v1120_v28, %v1124_v29 }
 0x1bd   : > { %964 = vmatmul.mubr.bf16.vlgmr.msra.gmra.mrb[0].mxu1 %v6375_v31  ;;  %1005 = vmatmul.mubr.bf16.vlgmr.msra.gmra.mrb[4].mxu0 %v6375_v31 }
 0x1be   : > { %1014 = vmatpush1.bf16.msra.mxu1 %v5096_v16  ;;  %1055 = vmatpush1.bf16.msra.mxu0 %v5098_v17  ;;  %v5153_v16 = vcombine.high %v563_v10, %v567_v11  ;;  %v5155_v17 = vcombine.high %v564_v12, %v568_v13  ;;  %v1167_v10 = vld [vmem:[%s6366_s21 + $0x1c0] sm:$0xff]  ;;  %v1168_v12 = vld [vmem:[%s6366_s21 + $0x1c8] sm:$0xff] }
 0x1bf   : > { %1015 = vmatprep.subr.bf16.mxu1 %v5105_v32  ;;  %1056 = vmatprep.subr.bf16.mxu0 %v5107_v33  ;;  %v5158_v32 = vcombine.low %v1112_v20, %v1116_v21  ;;  %v5165_v33 = vcombine.high %v1119_v26, %v1123_v27  ;;  %v1171_v11 = vld [vmem:[%s6366_s21 + $0x1e0] sm:$0xff]  ;;  %v1172_v13 = vld [vmem:[%s6366_s21 + $0x1e8] sm:$0xff] }
 0x1c0   : > { %1045 = vmatprep.mubr.bf16.mxu1 %v6093_v19  ;;  %1086 = vmatprep.mubr.bf16.mxu0 %v6093_v19  ;;  %v1115_v19 = vld [vmem:[%s6366_s21 + $0x20] sm:$0xff]  ;;  %v1176_v20 = vld [vmem:[%s6366_s21 + $0x208] sm:$0xff] }
 0x1c1   : > { %v5157_v24 = vcombine.high %v1111_v18, %v1115_v19  ;;  %v5156_v30 = vcombine.low %v1111_v18, %v1115_v19  ;;  %v1175_v18 = vld [vmem:[%s6366_s21 + $0x200] sm:$0xff]  ;;  %v1180_v21 = vld [vmem:[%s6366_s21 + $0x228] sm:$0xff] }
 0x1c2   : > { %1016 = vmatpush1.bf16.msra.mxu1 %v5104_v38  ;;  %1057 = vmatpush1.bf16.msra.mxu0 %v5106_v39  ;;  %v1132_v38 = vld [vmem:[%s6366_s21 + $0xa8] sm:$0xff]  ;;  %v5164_v39 = vcombine.low %v1119_v26, %v1123_v27  ;;  %v1179_v19 = vld [vmem:[%s6366_s21 + $0x220] sm:$0xff] }
 0x1c3   : > { %1017 = vmatprep.subr.bf16.mxu1 %v5113_v40  ;;  %1058 = vmatprep.subr.bf16.mxu0 %v5115_v41  ;;  %v5166_v40 = vcombine.low %v1120_v28, %v1124_v29  ;;  %v5173_v41 = vcombine.high %v1127_v35, %v1131_v36  ;;  %v5175_v42 = vcombine.high %v1128_v37, %v1132_v38  ;;  %v1183_v26 = vld [vmem:[%s6366_s21 + $0x240] sm:$0xff]  ;;  %v1184_v28 = vld [vmem:[%s6366_s21 + $0x248] sm:$0xff] }
 0x1c4   : > { %v1187_v27 = vld [vmem:[%s6366_s21 + $0x260] sm:$0xff]  ;;  %v1188_v29 = vld [vmem:[%s6366_s21 + $0x268] sm:$0xff] }
 0x1c6   : > { %1018 = vmatpush1.bf16.msra.mxu1 %v5112_v46  ;;  %1059 = vmatpush1.bf16.msra.mxu0 %v5114_v47  ;;  %v1140_v46 = vld [vmem:[%s6366_s21 + $0xe8] sm:$0xff]  ;;  %v5172_v47 = vcombine.low %v1127_v35, %v1131_v36  ;;  %v1191_v35 = vld [vmem:[%s6366_s21 + $0x280] sm:$0xff] }
 0x1c7   : > { %1019 = vmatprep.subr.bf16.mxu1 %v5121_v48  ;;  %1060 = vmatprep.subr.bf16.mxu0 %v5123_v49  ;;  %v5181_v48 = vcombine.high %v1135_v43, %v1139_v44  ;;  %v5183_v49 = vcombine.high %v1136_v45, %v1140_v46  ;;  %v1195_v36 = vld [vmem:[%s6366_s21 + $0x2a0] sm:$0xff] }
 0x1ca   : > { %1020 = vmatpush1.bf16.msra.mxu1 %v5120_v54  ;;  %1061 = vmatpush1.bf16.msra.mxu0 %v5122_v55  ;;  %v5180_v54 = vcombine.low %v1135_v43, %v1139_v44  ;;  %v5182_v55 = vcombine.low %v1136_v45, %v1140_v46  ;;  %v1199_v43 = vld [vmem:[%s6366_s21 + $0x2c0] sm:$0xff]  ;;  %v1200_v45 = vld [vmem:[%s6366_s21 + $0x2c8] sm:$0xff] }
 0x1cb   : > { %1021 = vmatprep.subr.bf16.mxu1 %v5129_v56  ;;  %1062 = vmatprep.subr.bf16.mxu0 %v5131_v57  ;;  %v5189_v56 = vcombine.high %v1143_v50, %v1147_v51  ;;  %v5191_v57 = vcombine.high %v1144_v52, %v1148_v53  ;;  %v1203_v44 = vld [vmem:[%s6366_s21 + $0x2e0] sm:$0xff]  ;;  %v1204_v46 = vld [vmem:[%s6366_s21 + $0x2e8] sm:$0xff] }
 0x1ce   : > { %1022 = vmatpush1.bf16.msra.mxu1 %v5128_v62  ;;  %1063 = vmatpush1.bf16.msra.mxu0 %v5130_v63  ;;  %v5188_v62 = vcombine.low %v1143_v50, %v1147_v51  ;;  %v5190_v63 = vcombine.low %v1144_v52, %v1148_v53  ;;  %v1207_v50 = vld [vmem:[%s6366_s21 + $0x300] sm:$0xff]  ;;  %v1208_v52 = vld [vmem:[%s6366_s21 + $0x308] sm:$0xff] }
 0x1cf   : > { %1023 = vmatprep.subr.bf16.mxu1 %v5137_v0  ;;  %1064 = vmatprep.subr.bf16.mxu0 %v5139_v1  ;;  %v5197_v0 = vcombine.high %v1151_v58, %v1155_v59  ;;  %v5199_v1 = vcombine.high %v1152_v60, %v1156_v61  ;;  %v1211_v51 = vld [vmem:[%s6366_s21 + $0x320] sm:$0xff]  ;;  %v1212_v53 = vld [vmem:[%s6366_s21 + $0x328] sm:$0xff] }
 0x1d2   : > { %1024 = vmatpush1.bf16.msra.mxu1 %v5136_v6  ;;  %1065 = vmatpush1.bf16.msra.mxu0 %v5138_v7  ;;  %v5196_v6 = vcombine.low %v1151_v58, %v1155_v59  ;;  %v5198_v7 = vcombine.low %v1152_v60, %v1156_v61  ;;  %v1215_v58 = vld [vmem:[%s6366_s21 + $0x340] sm:$0xff]  ;;  %v1216_v60 = vld [vmem:[%s6366_s21 + $0x348] sm:$0xff] }
 0x1d3   : > { %1025 = vmatprep.subr.bf16.mxu1 %v5145_v8  ;;  %1066 = vmatprep.subr.bf16.mxu0 %v5147_v9  ;;  %v5205_v8 = vcombine.high %v1159_v2, %v1163_v3  ;;  %v5207_v9 = vcombine.high %v1160_v4, %v1164_v5  ;;  %v1219_v59 = vld [vmem:[%s6366_s21 + $0x360] sm:$0xff]  ;;  %v1220_v61 = vld [vmem:[%s6366_s21 + $0x368] sm:$0xff] }
 0x1d6   : > { %1026 = vmatpush1.bf16.msra.mxu1 %v5144_v14  ;;  %1067 = vmatpush1.bf16.msra.mxu0 %v5146_v15  ;;  %v5204_v14 = vcombine.low %v1159_v2, %v1163_v3  ;;  %v5206_v15 = vcombine.low %v1160_v4, %v1164_v5  ;;  %v5260_v2 = vcombine.low %v1215_v58, %v1219_v59  ;;  %v1223_v4 = vld [vmem:[%s6366_s21 + $0x380] sm:$0xff] }
 0x1d7   : > { %1027 = vmatprep.subr.bf16.mxu1 %v5153_v16  ;;  %1068 = vmatprep.subr.bf16.mxu0 %v5155_v17  ;;  %v5213_v16 = vcombine.high %v1167_v10, %v1171_v11  ;;  %v5215_v17 = vcombine.high %v1168_v12, %v1172_v13  ;;  %v5262_v3 = vcombine.low %v1216_v60, %v1220_v61  ;;  %v1227_v5 = vld [vmem:[%s6366_s21 + $0x3a0] sm:$0xff] }
 0x1da   : > { %1028 = vmatpush1.bf16.msra.mxu1 %v5152_v22  ;;  %1069 = vmatpush1.bf16.msra.mxu0 %v5154_v23  ;;  %v5212_v22 = vcombine.low %v1167_v10, %v1171_v11  ;;  %v5214_v23 = vcombine.low %v1168_v12, %v1172_v13  ;;  %v5268_v10 = vcombine.low %v1223_v4, %v1227_v5  ;;  %v1231_v12 = vld [vmem:[%s6366_s21 + $0x3c0] sm:$0xff] }
 0x1db   : > { %4225 = vmatprep.subr.bf16.mxu1 %v5157_v24  ;;  %4389 = vmatprep.subr.bf16.mxu0 %v5159_v25  ;;  %v5221_v24 = vcombine.high %v1175_v18, %v1179_v19  ;;  %v5223_v25 = vcombine.high %v1176_v20, %v1180_v21  ;;  %v1235_v13 = vld [vmem:[%s6366_s21 + $0x3e0] sm:$0xff] }
 0x1dd   : > { %1046 = vmatmul.mubr.bf16.vlgmr.msra.gmra.mrb[4].mxu1 %v6375_v31  ;;  %1087 = vmatmul.mubr.bf16.vlgmr.msra.gmra.mrb[8].mxu0 %v6375_v31  ;;  %v5174_v31 = vcombine.low %v1128_v37, %v1132_v38  ;;  %v1192_v37 = vld [vmem:[%s6366_s21 + $0x288] sm:$0xff] }
 0x1de   : > { %4226 = vmatpush1.bf16.msra.mxu1 %v5156_v30  ;;  %4390 = vmatpush1.bf16.msra.mxu0 %v5158_v32  ;;  %v5220_v30 = vcombine.low %v1175_v18, %v1179_v19  ;;  %v5222_v32 = vcombine.low %v1176_v20, %v1180_v21  ;;  %v1196_v38 = vld [vmem:[%s6366_s21 + $0x2a8] sm:$0xff]  ;;  %v5276_v18 = vcombine.low %v1231_v12, %v1235_v13  ;;  %v1239_v20 = vld [vmem:[%s6366_s21 + $0x400] sm:$0xff] }
 0x1df   : > { %4227 = vmatprep.subr.bf16.mxu1 %v5165_v33  ;;  %4391 = vmatprep.subr.bf16.mxu0 %v5167_v34  ;;  %v5229_v33 = vcombine.high %v1183_v26, %v1187_v27  ;;  %v5231_v34 = vcombine.high %v1184_v28, %v1188_v29  ;;  %v1243_v21 = vld [vmem:[%s6366_s21 + $0x420] sm:$0xff] }
 0x1e2   : > { %4228 = vmatpush1.bf16.msra.mxu1 %v5164_v39  ;;  %4392 = vmatpush1.bf16.msra.mxu0 %v5166_v40  ;;  %v5228_v39 = vcombine.low %v1183_v26, %v1187_v27  ;;  %v5230_v40 = vcombine.low %v1184_v28, %v1188_v29  ;;  %v571_v28 = vlaneseq }
 0x1e3   : > { %4229 = vmatprep.subr.bf16.mxu1 %v5173_v41  ;;  %4393 = vmatprep.subr.bf16.mxu0 %v5175_v42  ;;  %v5237_v41 = vcombine.high %v1191_v35, %v1195_v36  ;;  %v5239_v42 = vcombine.high %v1192_v37, %v1196_v38 }
 0x1e4   : > { %v6449_v29 = vshrl.u32 %v571_v28, 7  ;;  %v1287_v28 = vld [vmem:[%s6366_s21 + $0x580] sm:$0xff] }
 0x1e6   : > { %4230 = vmatpush1.bf16.msra.mxu1 %v5172_v47  ;;  %4394 = vmatpush1.bf16.msra.mxu0 %v5174_v31  ;;  %v5236_v47 = vcombine.low %v1191_v35, %v1195_v36  ;;  %v5238_v31 = vcombine.low %v1192_v37, %v1196_v38 }
 0x1e7   : > { %4231 = vmatprep.subr.bf16.mxu1 %v5181_v48  ;;  %4395 = vmatprep.subr.bf16.mxu0 %v5183_v49  ;;  %v5245_v48 = vcombine.high %v1199_v43, %v1203_v44  ;;  %v5247_v49 = vcombine.high %v1200_v45, %v1204_v46 }
 0x1ea   : > { %4232 = vmatpush1.bf16.msra.mxu1 %v5180_v54  ;;  %4396 = vmatpush1.bf16.msra.mxu0 %v5182_v55  ;;  %v5244_v54 = vcombine.low %v1199_v43, %v1203_v44  ;;  %v5246_v55 = vcombine.low %v1200_v45, %v1204_v46 }
 0x1eb   : > { %4233 = vmatprep.subr.bf16.mxu1 %v5189_v56  ;;  %4397 = vmatprep.subr.bf16.mxu0 %v5191_v57  ;;  %v5253_v56 = vcombine.high %v1207_v50, %v1211_v51  ;;  %v5255_v57 = vcombine.high %v1208_v52, %v1212_v53 }
 0x1ee   : > { %4234 = vmatpush1.bf16.msra.mxu1 %v5188_v62  ;;  %4398 = vmatpush1.bf16.msra.mxu0 %v5190_v63  ;;  %v5252_v62 = vcombine.low %v1207_v50, %v1211_v51  ;;  %v5254_v63 = vcombine.low %v1208_v52, %v1212_v53  ;;  %v1247_v50 = vld [vmem:[%s6366_s21 + $0x440] sm:$0xff]  ;;  %v1248_v53 = vld [vmem:[%s6366_s21 + $0x448] sm:$0xff] }
 0x1ef   : > { %4235 = vmatprep.subr.bf16.mxu1 %v5197_v0  ;;  %4399 = vmatprep.subr.bf16.mxu0 %v5199_v1  ;;  %v5261_v0 = vcombine.high %v1215_v58, %v1219_v59  ;;  %v5263_v1 = vcombine.high %v1216_v60, %v1220_v61  ;;  %v1251_v52 = vld [vmem:[%s6366_s21 + $0x460] sm:$0xff]  ;;  %v1256_v61 = vld [vmem:[%s6366_s21 + $0x488] sm:$0xff] }
 0x1f0   : > { %v5293_v58 = vcombine.high %v1247_v50, %v1251_v52  ;;  %v1259_v60 = vld [vmem:[%s6366_s21 + $0x4a0] sm:$0xff] }
 0x1f2   : > { %4236 = vmatpush1.bf16.msra.mxu1 %v5196_v6  ;;  %4400 = vmatpush1.bf16.msra.mxu0 %v5198_v7  ;;  %v1224_v6 = vld [vmem:[%s6366_s21 + $0x388] sm:$0xff]  ;;  %v5269_v7 = vcombine.high %v1223_v4, %v1227_v5  ;;  %v1263_v4 = vld [vmem:[%s6366_s21 + $0x4c0] sm:$0xff] }
 0x1f3   : > { %4237 = vmatprep.subr.bf16.mxu1 %v5205_v8  ;;  %4401 = vmatprep.subr.bf16.mxu0 %v5207_v9  ;;  %v1228_v8 = vld [vmem:[%s6366_s21 + $0x3a8] sm:$0xff]  ;;  %v1267_v5 = vld [vmem:[%s6366_s21 + $0x4e0] sm:$0xff] }
 0x1f4   : > { %v5271_v9 = vcombine.high %v1224_v6, %v1228_v8  ;;  %v5270_v11 = vcombine.low %v1224_v6, %v1228_v8  ;;  %v1264_v6 = vld [vmem:[%s6366_s21 + $0x4c8] sm:$0xff] }
 0x1f6   : > { %4238 = vmatpush1.bf16.msra.mxu1 %v5204_v14  ;;  %4402 = vmatpush1.bf16.msra.mxu0 %v5206_v15  ;;  %v1232_v14 = vld [vmem:[%s6366_s21 + $0x3c8] sm:$0xff]  ;;  %v5277_v15 = vcombine.high %v1231_v12, %v1235_v13  ;;  %v1271_v12 = vld [vmem:[%s6366_s21 + $0x500] sm:$0xff] }
 0x1f7   : > { %4239 = vmatprep.subr.bf16.mxu1 %v5213_v16  ;;  %4403 = vmatprep.subr.bf16.mxu0 %v5215_v17  ;;  %v1236_v16 = vld [vmem:[%s6366_s21 + $0x3e8] sm:$0xff]  ;;  %v1275_v13 = vld [vmem:[%s6366_s21 + $0x520] sm:$0xff] }
 0x1f8   : > { %v5279_v17 = vcombine.high %v1232_v14, %v1236_v16  ;;  %v5278_v19 = vcombine.low %v1232_v14, %v1236_v16  ;;  %v1272_v14 = vld [vmem:[%s6366_s21 + $0x508] sm:$0xff]  ;;  %v5308_v16 = vcombine.low %v1263_v4, %v1267_v5 }
 0x1fa   : > { %4240 = vmatpush1.bf16.msra.mxu1 %v5212_v22  ;;  %4404 = vmatpush1.bf16.msra.mxu0 %v5214_v23  ;;  %v1240_v22 = vld [vmem:[%s6366_s21 + $0x408] sm:$0xff]  ;;  %v5285_v23 = vcombine.high %v1239_v20, %v1243_v21 }
 0x1fb   : > { %4241 = vmatprep.subr.bf16.mxu1 %v5221_v24  ;;  %4405 = vmatprep.subr.bf16.mxu0 %v5223_v25  ;;  %v1244_v24 = vld [vmem:[%s6366_s21 + $0x428] sm:$0xff]  ;;  %v5284_v25 = vcombine.low %v1239_v20, %v1243_v21  ;;  %v1279_v20 = vld [vmem:[%s6366_s21 + $0x540] sm:$0xff] }
 0x1fc   : > { %v5286_v26 = vcombine.low %v1240_v22, %v1244_v24  ;;  %v5287_v27 = vcombine.high %v1240_v22, %v1244_v24  ;;  %v1283_v21 = vld [vmem:[%s6366_s21 + $0x560] sm:$0xff]  ;;  %v1280_v22 = vld [vmem:[%s6366_s21 + $0x548] sm:$0xff]  ;;  %v5316_v24 = vcombine.low %v1271_v12, %v1275_v13 }
 0x1fe   : > { %4242 = vmatpush1.bf16.msra.mxu1 %v5220_v30  ;;  %4406 = vmatpush1.bf16.msra.mxu0 %v5222_v32  ;;  %v573_v30 = vsub.s32 0, %v6449_v29  ;;  %v6452_v32 = vld [vmem:[#allocation7] sm:$0xff] }
 0x1ff   : > { %4243 = vmatprep.subr.bf16.mxu1 %v5229_v33  ;;  %4407 = vmatprep.subr.bf16.mxu0 %v5231_v34  ;;  %v577_v33 = vsub.s32 1, %v6449_v29  ;;  %v585_v34 = vsub.s32 3, %v6449_v29 }
 0x200   : > { %v574_v35 = vrot.slane %v6452_v32, %v573_v30 }
 0x201   : > { %v578_v36 = vrot.slane %v6452_v32, %v577_v33  ;;  %v586_v37 = vrot.slane %v6452_v32, %v585_v34 }
 0x202   : > { %4244 = vmatpush1.bf16.msra.mxu1 %v5228_v39  ;;  %4408 = vmatpush1.bf16.msra.mxu0 %v5230_v40 }
 0x203   : > { %4245 = vmatprep.subr.bf16.mxu1 %v5237_v41  ;;  %4409 = vmatprep.subr.bf16.mxu0 %v5239_v42 }
 0x206   : > { %4246 = vmatpush1.bf16.msra.mxu1 %v5236_v47  ;;  %4410 = vmatpush1.bf16.msra.mxu0 %v5238_v31 }
 0x207   : > { %4247 = vmatprep.subr.bf16.mxu1 %v5245_v48  ;;  %4411 = vmatprep.subr.bf16.mxu0 %v5247_v49 }
 0x20a   : > { %4248 = vmatpush1.bf16.msra.mxu1 %v5244_v54  ;;  %4412 = vmatpush1.bf16.msra.mxu0 %v5246_v55  ;;  %v1252_v54 = vld [vmem:[%s6366_s21 + $0x468] sm:$0xff] }
 0x20b   : > { %4249 = vmatprep.subr.bf16.mxu1 %v5253_v56  ;;  %4413 = vmatprep.subr.bf16.mxu0 %v5255_v57  ;;  %v1255_v57 = vld [vmem:[%s6366_s21 + $0x480] sm:$0xff]  ;;  %v5295_v59 = vcombine.high %v1248_v53, %v1252_v54 }
 0x20c   : > { %v5300_v8 = vcombine.low %v1255_v57, %v1259_v60 }
 0x20e   : > { %4250 = vmatpush1.bf16.msra.mxu1 %v5252_v62  ;;  %4414 = vmatpush1.bf16.msra.mxu0 %v5254_v63  ;;  %v1260_v62 = vld [vmem:[%s6366_s21 + $0x4a8] sm:$0xff] }
 0x20f   : > { %4251 = vmatprep.subr.bf16.mxu1 %v5261_v0  ;;  %4415 = vmatprep.subr.bf16.mxu0 %v5263_v1  ;;  %v5292_v0 = vcombine.low %v1247_v50, %v1251_v52  ;;  %v5294_v1 = vcombine.low %v1248_v53, %v1252_v54  ;;  %v1303_v50 = vld [vmem:[%s6366_s21 + $0x600] sm:$0xff]  ;;  %v1304_v54 = vld [vmem:[%s6366_s21 + $0x608] sm:$0xff] }
 0x210   : > { %v1307_v53 = vld [vmem:[%s6366_s21 + $0x620] sm:$0xff] }
 0x212   : > { %4252 = vmatpush1.bf16.msra.mxu1 %v5260_v2  ;;  %4416 = vmatpush1.bf16.msra.mxu0 %v5262_v3  ;;  %v5301_v2 = vcombine.high %v1255_v57, %v1259_v60  ;;  %v5303_v3 = vcombine.high %v1256_v61, %v1260_v62  ;;  %v1308_v57 = vld [vmem:[%s6366_s21 + $0x628] sm:$0xff] }
 0x213   : > { %4253 = vmatprep.subr.bf16.mxu1 %v5269_v7  ;;  %4417 = vmatprep.subr.bf16.mxu0 %v5271_v9  ;;  %v1268_v7 = vld [vmem:[%s6366_s21 + $0x4e8] sm:$0xff]  ;;  %v5302_v9 = vcombine.low %v1256_v61, %v1260_v62 }
 0x216   : > { %4254 = vmatpush1.bf16.msra.mxu1 %v5268_v10  ;;  %4418 = vmatpush1.bf16.msra.mxu0 %v5270_v11  ;;  %v5309_v10 = vcombine.high %v1263_v4, %v1267_v5  ;;  %v5311_v11 = vcombine.high %v1264_v6, %v1268_v7  ;;  %v5351_v4 = vcombine.high %v1304_v54, %v1308_v57  ;;  %v1311_v5 = vld [vmem:[%s6366_s21 + $0x640] sm:$0xff] }
 0x217   : > { %4255 = vmatprep.subr.bf16.mxu1 %v5277_v15  ;;  %4419 = vmatprep.subr.bf16.mxu0 %v5279_v17  ;;  %v1276_v15 = vld [vmem:[%s6366_s21 + $0x528] sm:$0xff]  ;;  %v5310_v17 = vcombine.low %v1264_v6, %v1268_v7  ;;  %v1315_v6 = vld [vmem:[%s6366_s21 + $0x660] sm:$0xff] }
 0x218   : > { %v1312_v7 = vld [vmem:[%s6366_s21 + $0x648] sm:$0xff] }
 0x21a   : > { %4256 = vmatpush1.bf16.msra.mxu1 %v5276_v18  ;;  %4420 = vmatpush1.bf16.msra.mxu0 %v5278_v19  ;;  %v5317_v18 = vcombine.high %v1271_v12, %v1275_v13  ;;  %v5319_v19 = vcombine.high %v1272_v14, %v1276_v15  ;;  %v1319_v13 = vld [vmem:[%s6366_s21 + $0x680] sm:$0xff] }
 0x21b   : > { %4266 = vmatprep.subr.bf16.mxu1 %v5285_v23  ;;  %4430 = vmatprep.subr.bf16.mxu0 %v5287_v27  ;;  %v1284_v23 = vld [vmem:[%s6366_s21 + $0x568] sm:$0xff] }
 0x21c   : > { %v5327_v27 = vcombine.high %v1280_v22, %v1284_v23 }
 0x290   : > { %v965_v38 = vpop.f32.mrb[0].mxu1  ;;  %v6465_v39 = vpop.f32.mrb[4].mxu0 }
 0x291   : > { %v966_v40 = vadd.f32 %v965_v38, %v574_v35  ;;  %v967_v41 = vpop.f32.mrb[1].mxu1  ;;  %v1008_v42 = vpop.f32.mrb[5].mxu0  ;;  %v1291_v35 = vld [vmem:[%s6366_s21 + $0x5a0] sm:$0xff]  ;;  %v5324_v38 = vcombine.low %v1279_v20, %v1283_v21 }
 0x292   : > { %v968_v43 = vadd.f32 %v967_v41, %v578_v36  ;;  %v1009_v44 = vadd.f32 %v1008_v42, %v586_v37  ;;  %v969_v45 = vpop.f32.mrb[2].mxu1  ;;  %v1010_v46 = vpop.f32.mrb[6].mxu0  ;;  %v1288_v36 = vld [vmem:[%s6366_s21 + $0x588] sm:$0xff]  ;;  %v5333_v41 = vcombine.high %v1287_v28, %v1291_v35 }
 0x293   : > { %v1095_v47 = vmax.f32 %v966_v40, 0.0  ;;  %v970_v31 = vpop.f32.mrb[3].mxu1  ;;  %v1011_v48 = vpop.f32.mrb[7].mxu0  ;;  %v1292_v37 = vld [vmem:[%s6366_s21 + $0x5a8] sm:$0xff]  ;;  %v5326_v40 = vcombine.low %v1280_v22, %v1284_v23  ;;  %v1331_v22 = vld [vmem:[%s6366_s21 + $0x6e0] sm:$0xff] }
 0x294   : > { %v1096_v49 = vmax.f32 %v968_v43, 0.0  ;;  %v1098_v51 = vmax.f32 %v1009_v44, 0.0  ;;  %v5335_v42 = vcombine.high %v1288_v36, %v1292_v37  ;;  %v1295_v43 = vld [vmem:[%s6366_s21 + $0x5c0] sm:$0xff]  ;;  %v1296_v45 = vld [vmem:[%s6366_s21 + $0x5c8] sm:$0xff]  ;;  %v5334_v31 = vcombine.low %v1288_v36, %v1292_v37 }
 0x295   : > { %v6473_v56 = vpack.c.bf16 %v1095_v47, %v1095_v47  ;;  %v1299_v44 = vld [vmem:[%s6366_s21 + $0x5e0] sm:$0xff]  ;;  %v1300_v46 = vld [vmem:[%s6366_s21 + $0x5e8] sm:$0xff]  ;;  %v5332_v47 = vcombine.low %v1287_v28, %v1291_v35 }
 0x296   : > { %v6471_v55 = vpack.c.bf16 %v1096_v49, %v1096_v49  ;;  %v6481_v63 = vpack.c.bf16 %v1098_v51, %v1098_v51  ;;  %v5341_v48 = vcombine.high %v1295_v43, %v1299_v44  ;;  %v5343_v49 = vcombine.high %v1296_v45, %v1300_v46  ;;  %v1328_v23 = vld [vmem:[%s6366_s21 + $0x6c8] sm:$0xff]  ;;  %v1335_v35 = vld [vmem:[%s6366_s21 + $0x700] sm:$0xff] }
 0x297   : > { %v5340_v62 = vcombine.low %v1295_v43, %v1299_v44  ;;  %v1339_v36 = vld [vmem:[%s6366_s21 + $0x720] sm:$0xff]  ;;  %v1336_v37 = vld [vmem:[%s6366_s21 + $0x708] sm:$0xff] }
 0x298   : > { %4257 = vmatprep.mubr.bf16.mxu1 %v6471_v55  ;;  %4421 = vmatprep.mubr.bf16.mxu0 %v6471_v55  ;;  %v1343_v44 = vld [vmem:[%s6366_s21 + $0x740] sm:$0xff] }
 0x299   : > { %4258 = vmatmul.mubr.bf16.vlgmr.msra.gmra.mrb[8].mxu1 %v6473_v56  ;;  %4422 = vmatmul.mubr.bf16.vlgmr.msra.gmra.mrb[12].mxu0 %v6473_v56 }
 0x29a   : > { %4267 = vmatpush1.bf16.msra.mxu1 %v5284_v25  ;;  %4431 = vmatpush1.bf16.msra.mxu0 %v5286_v26  ;;  %v5318_v25 = vcombine.low %v1272_v14, %v1276_v15  ;;  %v5325_v26 = vcombine.high %v1279_v20, %v1283_v21  ;;  %v1323_v14 = vld [vmem:[%s6366_s21 + $0x6a0] sm:$0xff]  ;;  %v1320_v15 = vld [vmem:[%s6366_s21 + $0x688] sm:$0xff] }
 0x29b   : > { %4298 = vmatprep.mubr.bf16.mxu1 %v6481_v63  ;;  %4462 = vmatprep.mubr.bf16.mxu0 %v6481_v63  ;;  %v1327_v21 = vld [vmem:[%s6366_s21 + $0x6c0] sm:$0xff] }
 0x29c   : > { %4268 = vmatprep.subr.bf16.mxu1 %v5293_v58  ;;  %4432 = vmatprep.subr.bf16.mxu0 %v5295_v59 }
 0x29e   : > { %4269 = vmatpush1.bf16.msra.mxu1 %v5292_v0  ;;  %4433 = vmatpush1.bf16.msra.mxu0 %v5294_v1  ;;  %v5342_v0 = vcombine.low %v1296_v45, %v1300_v46  ;;  %v1347_v45 = vld [vmem:[%s6366_s21 + $0x760] sm:$0xff]  ;;  %v1344_v46 = vld [vmem:[%s6366_s21 + $0x748] sm:$0xff] }
 0x29f   : > { %4270 = vmatprep.subr.bf16.mxu1 %v5301_v2  ;;  %4434 = vmatprep.subr.bf16.mxu0 %v5303_v3  ;;  %v5349_v3 = vcombine.high %v1303_v50, %v1307_v53 }
 0x2a2   : > { %4271 = vmatpush1.bf16.msra.mxu1 %v5300_v8  ;;  %4435 = vmatpush1.bf16.msra.mxu0 %v5302_v9  ;;  %v1316_v8 = vld [vmem:[%s6366_s21 + $0x668] sm:$0xff]  ;;  %v5348_v9 = vcombine.low %v1303_v50, %v1307_v53  ;;  %v5389_v50 = vcombine.high %v1343_v44, %v1347_v45 }
 0x2a3   : > { %4272 = vmatprep.subr.bf16.mxu1 %v5309_v10  ;;  %4436 = vmatprep.subr.bf16.mxu0 %v5311_v11  ;;  %v5350_v10 = vcombine.low %v1304_v54, %v1308_v57  ;;  %v5357_v11 = vcombine.high %v1311_v5, %v1315_v6  ;;  %v5359_v12 = vcombine.high %v1312_v7, %v1316_v8  ;;  %v1351_v54 = vld [vmem:[%s6366_s21 + $0x780] sm:$0xff]  ;;  %v593_v57 = vsub.s32 5, %v6449_v29 }
 0x2a6   : > { %4273 = vmatpush1.bf16.msra.mxu1 %v5308_v16  ;;  %4437 = vmatpush1.bf16.msra.mxu0 %v5310_v17  ;;  %v1324_v16 = vld [vmem:[%s6366_s21 + $0x6a8] sm:$0xff]  ;;  %v5356_v17 = vcombine.low %v1311_v5, %v1315_v6  ;;  %v1359_v5 = vld [vmem:[%s6366_s21 + $0x7c0] sm:$0xff]  ;;  %v594_v6 = vrot.slane %v6452_v32, %v593_v57 }
 0x2a7   : > { %4274 = vmatprep.subr.bf16.mxu1 %v5317_v18  ;;  %4438 = vmatprep.subr.bf16.mxu0 %v5319_v19  ;;  %v5358_v18 = vcombine.low %v1312_v7, %v1316_v8  ;;  %v5365_v19 = vcombine.high %v1319_v13, %v1323_v14  ;;  %v5367_v20 = vcombine.high %v1320_v15, %v1324_v16  ;;  %v1363_v7 = vld [vmem:[%s6366_s21 + $0x7e0] sm:$0xff]  ;;  %v1360_v8 = vld [vmem:[%s6366_s21 + $0x7c8] sm:$0xff] }
 0x2aa   : > { %4275 = vmatpush1.bf16.msra.mxu1 %v5316_v24  ;;  %4439 = vmatpush1.bf16.msra.mxu0 %v5318_v25  ;;  %v1332_v24 = vld [vmem:[%s6366_s21 + $0x6e8] sm:$0xff]  ;;  %v5364_v25 = vcombine.low %v1319_v13, %v1323_v14  ;;  %v5405_v13 = vcombine.high %v1359_v5, %v1363_v7 }
 0x2ab   : > { %4276 = vmatprep.subr.bf16.mxu1 %v5325_v26  ;;  %4440 = vmatprep.subr.bf16.mxu0 %v5327_v27  ;;  %v5366_v26 = vcombine.low %v1320_v15, %v1324_v16  ;;  %v5373_v27 = vcombine.high %v1327_v21, %v1331_v22  ;;  %v5375_v28 = vcombine.high %v1328_v23, %v1332_v24  ;;  %v1367_v15 = vld [vmem:[%s6366_s21 + $0x800] sm:$0xff] }
 0x2ae   : > { %4277 = vmatpush1.bf16.msra.mxu1 %v5324_v38  ;;  %4441 = vmatpush1.bf16.msra.mxu0 %v5326_v40  ;;  %v1340_v38 = vld [vmem:[%s6366_s21 + $0x728] sm:$0xff]  ;;  %v5372_v40 = vcombine.low %v1327_v21, %v1331_v22 }
 0x2af   : > { %4278 = vmatprep.subr.bf16.mxu1 %v5333_v41  ;;  %4442 = vmatprep.subr.bf16.mxu0 %v5335_v42  ;;  %v5374_v41 = vcombine.low %v1328_v23, %v1332_v24  ;;  %v5381_v42 = vcombine.high %v1335_v35, %v1339_v36  ;;  %v5383_v43 = vcombine.high %v1336_v37, %v1340_v38 }
 0x2b0   : > { %v6508_v51 = vpop.f32.mrb[4].mxu1  ;;  %v6510_v52 = vpop.f32.mrb[8].mxu0 }
 0x2b1   : > { %v6515_v58 = vpop.f32.mrb[5].mxu1  ;;  %v6517_v59 = vpop.f32.mrb[9].mxu0 }
 0x2b2   : > { %v1051_v60 = vpop.f32.mrb[6].mxu1  ;;  %v1092_v61 = vpop.f32.mrb[10].mxu0  ;;  %4279 = vmatpush1.bf16.msra.mxu1 %v5332_v47  ;;  %4443 = vmatpush1.bf16.msra.mxu0 %v5334_v31  ;;  %v1348_v47 = vld [vmem:[%s6366_s21 + $0x768] sm:$0xff]  ;;  %v5380_v31 = vcombine.low %v1335_v35, %v1339_v36  ;;  %v1050_v16 = vadd.f32 %v6515_v58, %v594_v6 }
 0x2b3   : > { %v1052_v1 = vpop.f32.mrb[7].mxu1  ;;  %v1093_v2 = vpop.f32.mrb[11].mxu0  ;;  %4280 = vmatprep.subr.bf16.mxu1 %v5341_v48  ;;  %4444 = vmatprep.subr.bf16.mxu0 %v5343_v49  ;;  %v5382_v48 = vcombine.low %v1336_v37, %v1340_v38  ;;  %v581_v49 = vsub.s32 2, %v6449_v29  ;;  %v5391_v53 = vcombine.high %v1344_v46, %v1348_v47  ;;  %v1355_v60 = vld [vmem:[%s6366_s21 + $0x7a0] sm:$0xff]  ;;  %v1352_v61 = vld [vmem:[%s6366_s21 + $0x788] sm:$0xff] }
 0x2b4   : > { %v5390_v1 = vcombine.low %v1344_v46, %v1348_v47  ;;  %v1100_v24 = vmax.f32 %v1050_v16, 0.0  ;;  %v1376_v58 = vld [vmem:[%s6366_s21 + $0x848] sm:$0xff] }
 0x2b5   : > { %v582_v2 = vrot.slane %v6452_v32, %v581_v49 }
 0x2b6   : > { %4281 = vmatpush1.bf16.msra.mxu1 %v5340_v62  ;;  %4445 = vmatpush1.bf16.msra.mxu0 %v5342_v0  ;;  %v1356_v62 = vld [vmem:[%s6366_s21 + $0x7a8] sm:$0xff]  ;;  %v5388_v0 = vcombine.low %v1343_v44, %v1347_v45  ;;  %v6567_v37 = vpack.c.bf16 %v1100_v24, %v1100_v24  ;;  %v1423_v24 = vld [vmem:[%s6366_s21 + $0x9c0] sm:$0xff] }
 0x2b7   : > { %4282 = vmatprep.subr.bf16.mxu1 %v5349_v3  ;;  %4446 = vmatprep.subr.bf16.mxu0 %v5351_v4  ;;  %v5397_v3 = vcombine.high %v1351_v54, %v1355_v60  ;;  %v5399_v4 = vcombine.high %v1352_v61, %v1356_v62  ;;  %v1388_v44 = vld [vmem:[%s6366_s21 + $0x8a8] sm:$0xff] }
 0x2ba   : > { %4283 = vmatpush1.bf16.msra.mxu1 %v5348_v9  ;;  %4447 = vmatpush1.bf16.msra.mxu0 %v5350_v10  ;;  %v1364_v9 = vld [vmem:[%s6366_s21 + $0x7e8] sm:$0xff]  ;;  %v5396_v10 = vcombine.low %v1351_v54, %v1355_v60 }
 0x2bb   : > { %4284 = vmatprep.subr.bf16.mxu1 %v5357_v11  ;;  %4448 = vmatprep.subr.bf16.mxu0 %v5359_v12  ;;  %v5398_v11 = vcombine.low %v1352_v61, %v1356_v62  ;;  %v1007_v12 = vadd.f32 %v6465_v39, %v582_v2  ;;  %v5407_v14 = vcombine.high %v1360_v8, %v1364_v9  ;;  %v1396_v54 = vld [vmem:[%s6366_s21 + $0x8e8] sm:$0xff]  ;;  %v1403_v2 = vld [vmem:[%s6366_s21 + $0x920] sm:$0xff] }
 0x2bc   : > { %v5406_v21 = vcombine.low %v1360_v8, %v1364_v9  ;;  %v1407_v9 = vld [vmem:[%s6366_s21 + $0x940] sm:$0xff] }
 0x2bd   : > { %v1097_v22 = vmax.f32 %v1007_v12, 0.0  ;;  %v1412_v12 = vld [vmem:[%s6366_s21 + $0x968] sm:$0xff] }
 0x2be   : > { %4285 = vmatpush1.bf16.msra.mxu1 %v5356_v17  ;;  %4449 = vmatpush1.bf16.msra.mxu0 %v5358_v18  ;;  %v1371_v17 = vld [vmem:[%s6366_s21 + $0x820] sm:$0xff]  ;;  %v1368_v18 = vld [vmem:[%s6366_s21 + $0x808] sm:$0xff] }
 0x2bf   : > { %4286 = vmatprep.subr.bf16.mxu1 %v5365_v19  ;;  %4450 = vmatprep.subr.bf16.mxu0 %v5367_v20  ;;  %v1372_v19 = vld [vmem:[%s6366_s21 + $0x828] sm:$0xff]  ;;  %v5404_v20 = vcombine.low %v1359_v5, %v1363_v7  ;;  %v5413_v39 = vcombine.high %v1367_v15, %v1371_v17  ;;  %v6565_v35 = vpack.c.bf16 %v1097_v22, %v1097_v22 }
 0x2c0   : > { %v5415_v23 = vcombine.high %v1368_v18, %v1372_v19  ;;  %v5414_v36 = vcombine.low %v1368_v18, %v1372_v19  ;;  %v1419_v18 = vld [vmem:[%s6366_s21 + $0x9a0] sm:$0xff]  ;;  %v1416_v19 = vld [vmem:[%s6366_s21 + $0x988] sm:$0xff] }
 0x2c2   : > { %4287 = vmatpush1.bf16.msra.mxu1 %v5364_v25  ;;  %4451 = vmatpush1.bf16.msra.mxu0 %v5366_v26  ;;  %v1375_v25 = vld [vmem:[%s6366_s21 + $0x840] sm:$0xff] }
 0x2c3   : > { %4288 = vmatprep.subr.bf16.mxu1 %v5373_v27  ;;  %4452 = vmatprep.subr.bf16.mxu0 %v5375_v28  ;;  %v1379_v26 = vld [vmem:[%s6366_s21 + $0x860] sm:$0xff]  ;;  %v1380_v27 = vld [vmem:[%s6366_s21 + $0x868] sm:$0xff]  ;;  %v5412_v28 = vcombine.low %v1367_v15, %v1371_v17 }
 0x2c4   : > { %v5421_v38 = vcombine.high %v1375_v25, %v1379_v26  ;;  %v5420_v45 = vcombine.low %v1375_v25, %v1379_v26  ;;  %v5422_v46 = vcombine.low %v1376_v58, %v1380_v27  ;;  %v1415_v17 = vld [vmem:[%s6366_s21 + $0x980] sm:$0xff]  ;;  %v1424_v26 = vld [vmem:[%s6366_s21 + $0x9c8] sm:$0xff] }
 0x2c5   : > { %v1427_v25 = vld [vmem:[%s6366_s21 + $0x9e0] sm:$0xff] }
 0x2c6   : > { %4289 = vmatpush1.bf16.msra.mxu1 %v5372_v40  ;;  %4453 = vmatpush1.bf16.msra.mxu0 %v5374_v41  ;;  %v5423_v40 = vcombine.high %v1376_v58, %v1380_v27  ;;  %v1383_v41 = vld [vmem:[%s6366_s21 + $0x880] sm:$0xff]  ;;  %v1428_v58 = vld [vmem:[%s6366_s21 + $0x9e8] sm:$0xff]  ;;  %v5460_v27 = vcombine.low %v1415_v17, %v1419_v18 }
 0x2c7   : > { %4290 = vmatprep.subr.bf16.mxu1 %v5381_v42  ;;  %4454 = vmatprep.subr.bf16.mxu0 %v5383_v43  ;;  %v1387_v42 = vld [vmem:[%s6366_s21 + $0x8a0] sm:$0xff]  ;;  %v1384_v43 = vld [vmem:[%s6366_s21 + $0x888] sm:$0xff] }
 0x2c8   : > { %v5429_v47 = vcombine.high %v1383_v41, %v1387_v42  ;;  %v5428_v60 = vcombine.low %v1383_v41, %v1387_v42  ;;  %v5430_v61 = vcombine.low %v1384_v43, %v1388_v44  ;;  %v1435_v41 = vld [vmem:[%s6366_s21 + $0xa20] sm:$0xff]  ;;  %v1432_v42 = vld [vmem:[%s6366_s21 + $0xa08] sm:$0xff] }
 0x2ca   : > { %4291 = vmatpush1.bf16.msra.mxu1 %v5380_v31  ;;  %4455 = vmatpush1.bf16.msra.mxu0 %v5382_v48  ;;  %v5431_v31 = vcombine.high %v1384_v43, %v1388_v44  ;;  %v1391_v48 = vld [vmem:[%s6366_s21 + $0x8c0] sm:$0xff]  ;;  %v1436_v43 = vld [vmem:[%s6366_s21 + $0xa28] sm:$0xff]  ;;  %v5468_v44 = vcombine.low %v1423_v24, %v1427_v25 }
 0x2cb   : > { %4292 = vmatprep.subr.bf16.mxu1 %v5389_v50  ;;  %4456 = vmatprep.subr.bf16.mxu0 %v5391_v53  ;;  %v1395_v50 = vld [vmem:[%s6366_s21 + $0x8e0] sm:$0xff]  ;;  %v1392_v53 = vld [vmem:[%s6366_s21 + $0x8c8] sm:$0xff] }
 0x2cc   : > { %v5437_v62 = vcombine.high %v1391_v48, %v1395_v50  ;;  %v5436_v5 = vcombine.low %v1391_v48, %v1395_v50  ;;  %v5438_v6 = vcombine.low %v1392_v53, %v1396_v54  ;;  %v1443_v48 = vld [vmem:[%s6366_s21 + $0xa60] sm:$0xff]  ;;  %v1440_v50 = vld [vmem:[%s6366_s21 + $0xa48] sm:$0xff] }
 0x2ce   : > { %4293 = vmatpush1.bf16.msra.mxu1 %v5388_v0  ;;  %4457 = vmatpush1.bf16.msra.mxu0 %v5390_v1  ;;  %v5439_v0 = vcombine.high %v1392_v53, %v1396_v54  ;;  %v1399_v1 = vld [vmem:[%s6366_s21 + $0x900] sm:$0xff]  ;;  %v1444_v53 = vld [vmem:[%s6366_s21 + $0xa68] sm:$0xff] }
 0x2cf   : > { %4294 = vmatprep.subr.bf16.mxu1 %v5397_v3  ;;  %4458 = vmatprep.subr.bf16.mxu0 %v5399_v4  ;;  %v1400_v3 = vld [vmem:[%s6366_s21 + $0x908] sm:$0xff]  ;;  %v5445_v7 = vcombine.high %v1399_v1, %v1403_v2 }
 0x2d0   : > { %v1404_v4 = vld [vmem:[%s6366_s21 + $0x928] sm:$0xff] }
 0x2d1   : > { %v5447_v8 = vcombine.high %v1400_v3, %v1404_v4 }
 0x2d2   : > { %4295 = vmatpush1.bf16.msra.mxu1 %v5396_v10  ;;  %4459 = vmatpush1.bf16.msra.mxu0 %v5398_v11  ;;  %v1411_v10 = vld [vmem:[%s6366_s21 + $0x960] sm:$0xff]  ;;  %v1408_v11 = vld [vmem:[%s6366_s21 + $0x948] sm:$0xff] }
 0x2d3   : > { %4296 = vmatprep.subr.bf16.mxu1 %v5405_v13  ;;  %4460 = vmatprep.subr.bf16.mxu0 %v5407_v14  ;;  %v5444_v13 = vcombine.low %v1399_v1, %v1403_v2  ;;  %v5446_v14 = vcombine.low %v1400_v3, %v1404_v4  ;;  %v5453_v15 = vcombine.high %v1407_v9, %v1411_v10  ;;  %v1451_v1 = vld [vmem:[%s6366_s21 + $0xaa0] sm:$0xff]  ;;  %v1448_v2 = vld [vmem:[%s6366_s21 + $0xa88] sm:$0xff] }
 0x2d4   : > { %v5455_v16 = vcombine.high %v1408_v11, %v1412_v12  ;;  %v5454_v22 = vcombine.low %v1408_v11, %v1412_v12  ;;  %v1452_v3 = vld [vmem:[%s6366_s21 + $0xaa8] sm:$0xff] }
 0x2d5   : > { %v1460_v11 = vld [vmem:[%s6366_s21 + $0xae8] sm:$0xff] }
 0x2d6   : > { %4297 = vmatpush1.bf16.msra.mxu1 %v5404_v20  ;;  %4461 = vmatpush1.bf16.msra.mxu0 %v5406_v21  ;;  %v1420_v20 = vld [vmem:[%s6366_s21 + $0x9a8] sm:$0xff]  ;;  %v5452_v21 = vcombine.low %v1407_v9, %v1411_v10  ;;  %v1459_v9 = vld [vmem:[%s6366_s21 + $0xae0] sm:$0xff] }
 0x2d7   : > { %4307 = vmatprep.subr.bf16.mxu1 %v5413_v39  ;;  %4471 = vmatprep.subr.bf16.mxu0 %v5415_v23  ;;  %v5461_v39 = vcombine.high %v1415_v17, %v1419_v18  ;;  %v5463_v23 = vcombine.high %v1416_v19, %v1420_v20  ;;  %v1456_v10 = vld [vmem:[%s6366_s21 + $0xac8] sm:$0xff]  ;;  %v1467_v17 = vld [vmem:[%s6366_s21 + $0xb20] sm:$0xff] }
 0x2d8   : > { %v1464_v18 = vld [vmem:[%s6366_s21 + $0xb08] sm:$0xff] }
 0x2d9   : > { %4299 = vmatmul.mubr.bf16.vlgmr.msra.gmra.mrb[8].mxu1 %v6565_v35  ;;  %4463 = vmatmul.mubr.bf16.vlgmr.msra.gmra.mrb[12].mxu0 %v6565_v35 }
 0x2da   : > { %4308 = vmatpush1.bf16.msra.mxu1 %v5412_v28  ;;  %4339 = vmatprep.mubr.bf16.mxu1 %v6567_v37  ;;  %v5462_v28 = vcombine.low %v1416_v19, %v1420_v20  ;;  %v1468_v19 = vld [vmem:[%s6366_s21 + $0xb28] sm:$0xff] }
 0x2db   : > { %4472 = vmatpush1.bf16.msra.mxu0 %v5414_v36  ;;  %4503 = vmatprep.mubr.bf16.mxu0 %v6567_v37  ;;  %v5469_v36 = vcombine.high %v1423_v24, %v1427_v25  ;;  %v1475_v24 = vld [vmem:[%s6366_s21 + $0xb60] sm:$0xff]  ;;  %v1472_v25 = vld [vmem:[%s6366_s21 + $0xb48] sm:$0xff] }
 0x2dc   : > { %4309 = vmatprep.subr.bf16.mxu1 %v5421_v38  ;;  %4473 = vmatprep.subr.bf16.mxu0 %v5423_v40  ;;  %v5471_v38 = vcombine.high %v1424_v26, %v1428_v58  ;;  %v1431_v40 = vld [vmem:[%s6366_s21 + $0xa00] sm:$0xff] }
 0x2dd   : > { %v5476_v54 = vcombine.low %v1431_v40, %v1435_v41 }
 0x2de   : > { %4310 = vmatpush1.bf16.msra.mxu1 %v5420_v45  ;;  %v5470_v45 = vcombine.low %v1424_v26, %v1428_v58  ;;  %v1476_v26 = vld [vmem:[%s6366_s21 + $0xb68] sm:$0xff] }
 0x2df   : > { %4474 = vmatpush1.bf16.msra.mxu0 %v5422_v46  ;;  %4311 = vmatprep.subr.bf16.mxu1 %v5429_v47  ;;  %v5477_v46 = vcombine.high %v1431_v40, %v1435_v41  ;;  %v5479_v47 = vcombine.high %v1432_v42, %v1436_v43  ;;  %v1479_v40 = vld [vmem:[%s6366_s21 + $0xb80] sm:$0xff] }
 0x2e0   : > { %4475 = vmatprep.subr.bf16.mxu0 %v5431_v31  ;;  %v1439_v31 = vld [vmem:[%s6366_s21 + $0xa40] sm:$0xff] }
 0x2e1   : > { %v5484_v4 = vcombine.low %v1439_v31, %v1443_v48  ;;  %v1483_v41 = vld [vmem:[%s6366_s21 + $0xba0] sm:$0xff] }
 0x2e2   : > { %4312 = vmatpush1.bf16.msra.mxu1 %v5428_v60  ;;  %v5478_v60 = vcombine.low %v1432_v42, %v1436_v43  ;;  %v601_v42 = vsub.s32 7, %v6449_v29  ;;  %v1480_v43 = vld [vmem:[%s6366_s21 + $0xb88] sm:$0xff] }
 0x2e3   : > { %4476 = vmatpush1.bf16.msra.mxu0 %v5430_v61  ;;  %4313 = vmatprep.subr.bf16.mxu1 %v5437_v62  ;;  %v5485_v61 = vcombine.high %v1439_v31, %v1443_v48  ;;  %v5487_v62 = vcombine.high %v1440_v50, %v1444_v53  ;;  %v5525_v31 = vcombine.high %v1479_v40, %v1483_v41 }
 0x2e4   : > { %4477 = vmatprep.subr.bf16.mxu0 %v5439_v0  ;;  %v1447_v0 = vld [vmem:[%s6366_s21 + $0xa80] sm:$0xff] }
 0x2e5   : > { %v5492_v12 = vcombine.low %v1447_v0, %v1451_v1 }
 0x2e6   : > { %4314 = vmatpush1.bf16.msra.mxu1 %v5436_v5  ;;  %v5486_v5 = vcombine.low %v1440_v50, %v1444_v53  ;;  %v1487_v50 = vld [vmem:[%s6366_s21 + $0xbc0] sm:$0xff] }
 0x2e7   : > { %4478 = vmatpush1.bf16.msra.mxu0 %v5438_v6  ;;  %4315 = vmatprep.subr.bf16.mxu1 %v5445_v7  ;;  %v5493_v6 = vcombine.high %v1447_v0, %v1451_v1  ;;  %v5495_v7 = vcombine.high %v1448_v2, %v1452_v3  ;;  %v1491_v53 = vld [vmem:[%s6366_s21 + $0xbe0] sm:$0xff] }
 0x2e8   : > { %4479 = vmatprep.subr.bf16.mxu0 %v5447_v8  ;;  %v1455_v8 = vld [vmem:[%s6366_s21 + $0xac0] sm:$0xff] }
 0x2e9   : > { %v5500_v20 = vcombine.low %v1455_v8, %v1459_v9 }
 0x2ea   : > { %4316 = vmatpush1.bf16.msra.mxu1 %v5444_v13  ;;  %v5494_v13 = vcombine.low %v1448_v2, %v1452_v3  ;;  %v5533_v2 = vcombine.high %v1487_v50, %v1491_v53 }
 0x2eb   : > { %4480 = vmatpush1.bf16.msra.mxu0 %v5446_v14  ;;  %4317 = vmatprep.subr.bf16.mxu1 %v5453_v15  ;;  %v5501_v14 = vcombine.high %v1455_v8, %v1459_v9  ;;  %v5503_v15 = vcombine.high %v1456_v10, %v1460_v11  ;;  %v5532_v8 = vcombine.low %v1487_v50, %v1491_v53  ;;  %v1532_v50 = vld [vmem:[%s6366_s21 + $0xd28] sm:$0xff] }
 0x2ec   : > { %4481 = vmatprep.subr.bf16.mxu0 %v5455_v16  ;;  %v1463_v16 = vld [vmem:[%s6366_s21 + $0xb00] sm:$0xff] }
 0x2ed   : > { %v5508_v58 = vcombine.low %v1463_v16, %v1467_v17 }
 0x2ee   : > { %4318 = vmatpush1.bf16.msra.mxu1 %v5452_v21  ;;  %v5502_v21 = vcombine.low %v1456_v10, %v1460_v11 }
 0x2ef   : > { %4482 = vmatpush1.bf16.msra.mxu0 %v5454_v22  ;;  %4319 = vmatprep.subr.bf16.mxu1 %v5461_v39  ;;  %v5509_v22 = vcombine.high %v1463_v16, %v1467_v17  ;;  %v5511_v39 = vcombine.high %v1464_v18, %v1468_v19  ;;  %v1508_v16 = vld [vmem:[%s6366_s21 + $0xc68] sm:$0xff] }
 0x2f0   : > { %4483 = vmatprep.subr.bf16.mxu0 %v5463_v23  ;;  %v1471_v23 = vld [vmem:[%s6366_s21 + $0xb40] sm:$0xff] }
 0x2f2   : > { %4320 = vmatpush1.bf16.msra.mxu1 %v5460_v27  ;;  %v589_v27 = vsub.s32 4, %v6449_v29 }
 0x2f3   : > { %4484 = vmatpush1.bf16.msra.mxu0 %v5462_v28  ;;  %4321 = vmatprep.subr.bf16.mxu1 %v5469_v36  ;;  %v5510_v28 = vcombine.low %v1464_v18, %v1468_v19  ;;  %v5517_v36 = vcombine.high %v1471_v23, %v1475_v24 }
 0x2f4   : > { %4485 = vmatprep.subr.bf16.mxu0 %v5471_v38  ;;  %v5519_v38 = vcombine.high %v1472_v25, %v1476_v26 }
 0x2f6   : > { %4322 = vmatpush1.bf16.msra.mxu1 %v5468_v44  ;;  %v1484_v44 = vld [vmem:[%s6366_s21 + $0xba8] sm:$0xff] }
 0x2f7   : > { %4486 = vmatpush1.bf16.msra.mxu0 %v5470_v45  ;;  %4323 = vmatprep.subr.bf16.mxu1 %v5477_v46  ;;  %v5516_v45 = vcombine.low %v1471_v23, %v1475_v24  ;;  %v590_v46 = vrot.slane %v6452_v32, %v589_v27  ;;  %v5527_v48 = vcombine.high %v1480_v43, %v1484_v44  ;;  %v1512_v23 = vld [vmem:[%s6366_s21 + $0xc88] sm:$0xff] }
 0x2f8   : > { %4487 = vmatprep.subr.bf16.mxu0 %v5479_v47  ;;  %v5518_v47 = vcombine.low %v1472_v25, %v1476_v26  ;;  %v5526_v1 = vcombine.low %v1480_v43, %v1484_v44  ;;  %v1516_v24 = vld [vmem:[%s6366_s21 + $0xca8] sm:$0xff] }
 0x2f9   : > { %v1048_v0 = vadd.f32 %v6508_v51, %v590_v46  ;;  %v5558_v44 = vcombine.low %v1512_v23, %v1516_v24 }
 0x2fa   : > { %4324 = vmatpush1.bf16.msra.mxu1 %v5476_v54  ;;  %v602_v54 = vrot.slane %v6452_v32, %v601_v42  ;;  %v1496_v32 = vld [vmem:[%s6366_s21 + $0xc08] sm:$0xff] }
 0x2fb   : > { %4488 = vmatpush1.bf16.msra.mxu0 %v5478_v60  ;;  %4325 = vmatprep.subr.bf16.mxu1 %v5485_v61  ;;  %v1488_v60 = vld [vmem:[%s6366_s21 + $0xbc8] sm:$0xff]  ;;  %v1099_v9 = vmax.f32 %v1048_v0, 0.0  ;;  %v1539_v0 = vld [vmem:[%s6366_s21 + $0xd60] sm:$0xff] }
 0x2fc   : > { %4489 = vmatprep.subr.bf16.mxu0 %v5487_v62  ;;  %v1492_v61 = vld [vmem:[%s6366_s21 + $0xbe8] sm:$0xff]  ;;  %v5524_v62 = vcombine.low %v1479_v40, %v1483_v41 }
 0x2fd   : > { %v5535_v3 = vcombine.high %v1488_v60, %v1492_v61  ;;  %v5534_v51 = vcombine.low %v1488_v60, %v1492_v61  ;;  %v6647_v17 = vpack.c.bf16 %v1099_v9, %v1099_v9  ;;  %v1520_v40 = vld [vmem:[%s6366_s21 + $0xcc8] sm:$0xff] }
 0x2fe   : > { %4326 = vmatpush1.bf16.msra.mxu1 %v5484_v4  ;;  %v1495_v4 = vld [vmem:[%s6366_s21 + $0xc00] sm:$0xff]  ;;  %v1524_v41 = vld [vmem:[%s6366_s21 + $0xce8] sm:$0xff] }
 0x2ff   : > { %4490 = vmatpush1.bf16.msra.mxu0 %v5486_v5  ;;  %4327 = vmatprep.subr.bf16.mxu1 %v5493_v6  ;;  %v1499_v5 = vld [vmem:[%s6366_s21 + $0xc20] sm:$0xff]  ;;  %v1091_v6 = vadd.f32 %v6517_v59, %v602_v54  ;;  %v5567_v46 = vcombine.high %v1520_v40, %v1524_v41  ;;  %v5566_v54 = vcombine.low %v1520_v40, %v1524_v41  ;;  %v1548_v9 = vld [vmem:[%s6366_s21 + $0xda8] sm:$0xff] }
 0x300   : > { %4491 = vmatprep.subr.bf16.mxu0 %v5495_v7  ;;  %v1500_v7 = vld [vmem:[%s6366_s21 + $0xc28] sm:$0xff]  ;;  %v5541_v10 = vcombine.high %v1495_v4, %v1499_v5  ;;  %v5540_v59 = vcombine.low %v1495_v4, %v1499_v5 }
 0x301   : > { %v5543_v11 = vcombine.high %v1496_v32, %v1500_v7  ;;  %v5542_v18 = vcombine.low %v1496_v32, %v1500_v7  ;;  %v1543_v32 = vld [vmem:[%s6366_s21 + $0xd80] sm:$0xff]  ;;  %v1568_v40 = vld [vmem:[%s6366_s21 + $0xe48] sm:$0xff] }
 0x302   : > { %4328 = vmatpush1.bf16.msra.mxu1 %v5492_v12  ;;  %v1102_v12 = vmax.f32 %v1091_v6, 0.0  ;;  %v1547_v7 = vld [vmem:[%s6366_s21 + $0xda0] sm:$0xff]  ;;  %v1572_v41 = vld [vmem:[%s6366_s21 + $0xe68] sm:$0xff] }
 0x303   : > { %4492 = vmatpush1.bf16.msra.mxu0 %v5494_v13  ;;  %4329 = vmatprep.subr.bf16.mxu1 %v5501_v14  ;;  %v1503_v13 = vld [vmem:[%s6366_s21 + $0xc40] sm:$0xff] }
 0x304   : > { %4493 = vmatprep.subr.bf16.mxu0 %v5503_v15  ;;  %v1507_v14 = vld [vmem:[%s6366_s21 + $0xc60] sm:$0xff]  ;;  %v1504_v15 = vld [vmem:[%s6366_s21 + $0xc48] sm:$0xff] }
 0x305   : > { %v5549_v19 = vcombine.high %v1503_v13, %v1507_v14  ;;  %v5548_v25 = vcombine.low %v1503_v13, %v1507_v14  ;;  %v5550_v26 = vcombine.low %v1504_v15, %v1508_v16  ;;  %v1551_v13 = vld [vmem:[%s6366_s21 + $0xdc0] sm:$0xff] }
 0x306   : > { %4330 = vmatpush1.bf16.msra.mxu1 %v5500_v20  ;;  %v1511_v20 = vld [vmem:[%s6366_s21 + $0xc80] sm:$0xff] }
 0x307   : > { %4494 = vmatpush1.bf16.msra.mxu0 %v5502_v21  ;;  %4331 = vmatprep.subr.bf16.mxu1 %v5509_v22  ;;  %v1515_v21 = vld [vmem:[%s6366_s21 + $0xca0] sm:$0xff]  ;;  %v6651_v22 = vpack.c.bf16 %v1102_v12, %v1102_v12 }
 0x308   : > { %4495 = vmatprep.subr.bf16.mxu0 %v5511_v39  ;;  %v5551_v39 = vcombine.high %v1504_v15, %v1508_v16  ;;  %v5556_v43 = vcombine.low %v1511_v20, %v1515_v21  ;;  %v1555_v14 = vld [vmem:[%s6366_s21 + $0xde0] sm:$0xff]  ;;  %v1556_v15 = vld [vmem:[%s6366_s21 + $0xde8] sm:$0xff]  ;;  %v5588_v16 = vcombine.low %v1543_v32, %v1547_v7 }
 0x30a   : > { %4332 = vmatpush1.bf16.msra.mxu1 %v5508_v58  ;;  %v5557_v58 = vcombine.high %v1511_v20, %v1515_v21  ;;  %v1559_v21 = vld [vmem:[%s6366_s21 + $0xe00] sm:$0xff] }
 0x30b   : > { %4496 = vmatpush1.bf16.msra.mxu0 %v5510_v28  ;;  %4333 = vmatprep.subr.bf16.mxu1 %v5517_v36  ;;  %v5559_v28 = vcombine.high %v1512_v23, %v1516_v24  ;;  %v1519_v36 = vld [vmem:[%s6366_s21 + $0xcc0] sm:$0xff]  ;;  %v1560_v23 = vld [vmem:[%s6366_s21 + $0xe08] sm:$0xff] }
 0x30c   : > { %4497 = vmatprep.subr.bf16.mxu0 %v5519_v38  ;;  %v1523_v38 = vld [vmem:[%s6366_s21 + $0xce0] sm:$0xff]  ;;  %v1564_v24 = vld [vmem:[%s6366_s21 + $0xe28] sm:$0xff] }
 0x30d   : > { %v5564_v53 = vcombine.low %v1519_v36, %v1523_v38 }
 0x30e   : > { %4334 = vmatpush1.bf16.msra.mxu1 %v5516_v45  ;;  %v5565_v45 = vcombine.high %v1519_v36, %v1523_v38  ;;  %v1567_v36 = vld [vmem:[%s6366_s21 + $0xe40] sm:$0xff] }
 0x30f   : > { %4498 = vmatpush1.bf16.msra.mxu0 %v5518_v47  ;;  %4335 = vmatprep.subr.bf16.mxu1 %v5525_v31  ;;  %v1527_v47 = vld [vmem:[%s6366_s21 + $0xd00] sm:$0xff] }
 0x310   : > { %4499 = vmatprep.subr.bf16.mxu0 %v5527_v48  ;;  %v1531_v31 = vld [vmem:[%s6366_s21 + $0xd20] sm:$0xff]  ;;  %v1528_v48 = vld [vmem:[%s6366_s21 + $0xd08] sm:$0xff] }
 0x311   : > { %v5573_v60 = vcombine.high %v1527_v47, %v1531_v31  ;;  %v5575_v61 = vcombine.high %v1528_v48, %v1532_v50  ;;  %v5574_v4 = vcombine.low %v1528_v48, %v1532_v50  ;;  %v1571_v38 = vld [vmem:[%s6366_s21 + $0xe60] sm:$0xff]  ;;  %v1576_v48 = vld [vmem:[%s6366_s21 + $0xe88] sm:$0xff] }
 0x312   : > { %4336 = vmatpush1.bf16.msra.mxu1 %v5524_v62  ;;  %v1535_v62 = vld [vmem:[%s6366_s21 + $0xd40] sm:$0xff]  ;;  %v1580_v50 = vld [vmem:[%s6366_s21 + $0xea8] sm:$0xff] }
 0x313   : > { %4500 = vmatpush1.bf16.msra.mxu0 %v5526_v1  ;;  %4337 = vmatprep.subr.bf16.mxu1 %v5533_v2  ;;  %v1536_v1 = vld [vmem:[%s6366_s21 + $0xd48] sm:$0xff]  ;;  %v5581_v5 = vcombine.high %v1535_v62, %v1539_v0 }
 0x314   : > { %4501 = vmatprep.subr.bf16.mxu0 %v5535_v3  ;;  %v1540_v2 = vld [vmem:[%s6366_s21 + $0xd68] sm:$0xff]  ;;  %v5572_v3 = vcombine.low %v1527_v47, %v1531_v31  ;;  %v1575_v47 = vld [vmem:[%s6366_s21 + $0xe80] sm:$0xff] }
 0x315   : > { %v5583_v6 = vcombine.high %v1536_v1, %v1540_v2  ;;  %v1579_v31 = vld [vmem:[%s6366_s21 + $0xea0] sm:$0xff] }
 0x316   : > { %4338 = vmatpush1.bf16.msra.mxu1 %v5532_v8  ;;  %v1544_v8 = vld [vmem:[%s6366_s21 + $0xd88] sm:$0xff] }
 0x317   : > { %4502 = vmatpush1.bf16.msra.mxu0 %v5534_v51  ;;  %4348 = vmatprep.subr.bf16.mxu1 %v5541_v10  ;;  %v5580_v51 = vcombine.low %v1535_v62, %v1539_v0  ;;  %v5582_v10 = vcombine.low %v1536_v1, %v1540_v2  ;;  %v5591_v12 = vcombine.high %v1544_v8, %v1548_v9  ;;  %v1583_v62 = vld [vmem:[%s6366_s21 + $0xec0] sm:$0xff]  ;;  %v1584_v1 = vld [vmem:[%s6366_s21 + $0xec8] sm:$0xff] }
 0x318   : > { %4512 = vmatprep.subr.bf16.mxu0 %v5543_v11  ;;  %v5589_v11 = vcombine.high %v1543_v32, %v1547_v7  ;;  %v1587_v0 = vld [vmem:[%s6366_s21 + $0xee0] sm:$0xff]  ;;  %v1588_v2 = vld [vmem:[%s6366_s21 + $0xee8] sm:$0xff] }
 0x319   : > { %4340 = vmatmul.mubr.bf16.vlgmr.msra.gmra.mrb[8].mxu1 %v6647_v17  ;;  %v1591_v32 = vld [vmem:[%s6366_s21 + $0xf00] sm:$0xff] }
 0x31a   : > { %4504 = vmatmul.mubr.bf16.vlgmr.msra.gmra.mrb[12].mxu0 %v6647_v17  ;;  %4349 = vmatpush1.bf16.msra.mxu1 %v5540_v59  ;;  %v1552_v59 = vld [vmem:[%s6366_s21 + $0xdc8] sm:$0xff]  ;;  %v1595_v7 = vld [vmem:[%s6366_s21 + $0xf20] sm:$0xff] }
 0x31b   : > { %4380 = vmatprep.mubr.bf16.mxu1 %v6651_v22  ;;  %4513 = vmatpush1.bf16.msra.mxu0 %v5542_v18  ;;  %v5590_v18 = vcombine.low %v1544_v8, %v1548_v9  ;;  %v5599_v20 = vcombine.high %v1552_v59, %v1556_v15  ;;  %v1592_v8 = vld [vmem:[%s6366_s21 + $0xf08] sm:$0xff] }
 0x31c   : > { %4544 = vmatprep.mubr.bf16.mxu0 %v6651_v22  ;;  %4350 = vmatprep.subr.bf16.mxu1 %v5549_v19  ;;  %v5597_v19 = vcombine.high %v1551_v13, %v1555_v14  ;;  %v1596_v9 = vld [vmem:[%s6366_s21 + $0xf28] sm:$0xff] }
 0x31d   : > { %4514 = vmatprep.subr.bf16.mxu0 %v5551_v39  ;;  %v1563_v39 = vld [vmem:[%s6366_s21 + $0xe20] sm:$0xff] }
 0x31e   : > { %4351 = vmatpush1.bf16.msra.mxu1 %v5548_v25  ;;  %v5596_v25 = vcombine.low %v1551_v13, %v1555_v14  ;;  %v1599_v13 = vld [vmem:[%s6366_s21 + $0xf40] sm:$0xff] }
 0x31f   : > { %4515 = vmatpush1.bf16.msra.mxu0 %v5550_v26  ;;  %4352 = vmatprep.subr.bf16.mxu1 %v5557_v58  ;;  %v5598_v26 = vcombine.low %v1552_v59, %v1556_v15  ;;  %v5605_v58 = vcombine.high %v1559_v21, %v1563_v39  ;;  %v1603_v14 = vld [vmem:[%s6366_s21 + $0xf60] sm:$0xff]  ;;  %v1600_v59 = vld [vmem:[%s6366_s21 + $0xf48] sm:$0xff] }
 0x320   : > { %4516 = vmatprep.subr.bf16.mxu0 %v5559_v28  ;;  %v5607_v28 = vcombine.high %v1560_v23, %v1564_v24  ;;  %v1604_v15 = vld [vmem:[%s6366_s21 + $0xf68] sm:$0xff] }
 0x322   : > { %4353 = vmatpush1.bf16.msra.mxu1 %v5556_v43  ;;  %v5604_v43 = vcombine.low %v1559_v21, %v1563_v39  ;;  %v5647_v21 = vcombine.high %v1600_v59, %v1604_v15  ;;  %v1607_v39 = vld [vmem:[%s6366_s21 + $0xf80] sm:$0xff] }
 0x323   : > { %4517 = vmatpush1.bf16.msra.mxu0 %v5558_v44  ;;  %4354 = vmatprep.subr.bf16.mxu1 %v5565_v45  ;;  %v5606_v44 = vcombine.low %v1560_v23, %v1564_v24  ;;  %v5613_v45 = vcombine.high %v1567_v36, %v1571_v38  ;;  %v1611_v23 = vld [vmem:[%s6366_s21 + $0xfa0] sm:$0xff]  ;;  %v1608_v24 = vld [vmem:[%s6366_s21 + $0xf88] sm:$0xff] }
 0x324   : > { %4518 = vmatprep.subr.bf16.mxu0 %v5567_v46  ;;  %v5615_v46 = vcombine.high %v1568_v40, %v1572_v41 }
 0x326   : > { %4355 = vmatpush1.bf16.msra.mxu1 %v5564_v53  ;;  %v5612_v53 = vcombine.low %v1567_v36, %v1571_v38  ;;  %v5646_v36 = vcombine.low %v1600_v59, %v1604_v15  ;;  %v5653_v38 = vcombine.high %v1607_v39, %v1611_v23 }
 0x327   : > { %4519 = vmatpush1.bf16.msra.mxu0 %v5566_v54  ;;  %4356 = vmatprep.subr.bf16.mxu1 %v5573_v60  ;;  %v5614_v54 = vcombine.low %v1568_v40, %v1572_v41  ;;  %v5621_v60 = vcombine.high %v1575_v47, %v1579_v31  ;;  %v1615_v41 = vld [vmem:[%s6366_s21 + $0xfc0] sm:$0xff] }
 0x328   : > { %4520 = vmatprep.subr.bf16.mxu0 %v5575_v61  ;;  %v5623_v61 = vcombine.high %v1576_v48, %v1580_v50 }
 0x32a   : > { %4357 = vmatpush1.bf16.msra.mxu1 %v5572_v3  ;;  %v5620_v3 = vcombine.low %v1575_v47, %v1579_v31 }
 0x32b   : > { %4521 = vmatpush1.bf16.msra.mxu0 %v5574_v4  ;;  %4358 = vmatprep.subr.bf16.mxu1 %v5581_v5  ;;  %v5622_v4 = vcombine.low %v1576_v48, %v1580_v50  ;;  %v5629_v5 = vcombine.high %v1583_v62, %v1587_v0 }
 0x32c   : > { %4522 = vmatprep.subr.bf16.mxu0 %v5583_v6  ;;  %v5631_v6 = vcombine.high %v1584_v1, %v1588_v2 }
 0x32e   : > { %4359 = vmatpush1.bf16.msra.mxu1 %v5580_v51  ;;  %v5628_v51 = vcombine.low %v1583_v62, %v1587_v0 }
 0x32f   : > { %4523 = vmatpush1.bf16.msra.mxu0 %v5582_v10  ;;  %4360 = vmatprep.subr.bf16.mxu1 %v5589_v11  ;;  %v5630_v10 = vcombine.low %v1584_v1, %v1588_v2  ;;  %v5637_v11 = vcombine.high %v1591_v32, %v1595_v7 }
 0x330   : > { %4524 = vmatprep.subr.bf16.mxu0 %v5591_v12  ;;  %v5639_v12 = vcombine.high %v1592_v8, %v1596_v9 }
 0x332   : > { %4361 = vmatpush1.bf16.msra.mxu1 %v5588_v16  ;;  %v5636_v16 = vcombine.low %v1591_v32, %v1595_v7  ;;  %v1126_v32 = vld [vmem:[%s6366_s21 + $0x78] sm:$0xff] }
 0x333   : > { %4525 = vmatpush1.bf16.msra.mxu0 %v5590_v18  ;;  %4362 = vmatprep.subr.bf16.mxu1 %v5597_v19  ;;  %v597_v18 = vsub.s32 6, %v6449_v29  ;;  %v5638_v19 = vcombine.low %v1592_v8, %v1596_v9 }
 0x334   : > { %4526 = vmatprep.subr.bf16.mxu0 %v5599_v20  ;;  %v5645_v20 = vcombine.high %v1599_v13, %v1603_v14 }
 0x336   : > { %4363 = vmatpush1.bf16.msra.mxu1 %v5596_v25  ;;  %v1612_v25 = vld [vmem:[%s6366_s21 + $0xfa8] sm:$0xff] }
 0x337   : > { %4527 = vmatpush1.bf16.msra.mxu0 %v5598_v26  ;;  %4364 = vmatprep.subr.bf16.mxu1 %v5605_v58  ;;  %v5644_v26 = vcombine.low %v1599_v13, %v1603_v14  ;;  %v5859_v58 = vld [vmem:[#allocation7] sm:$0xff]  ;;  %v5655_v40 = vcombine.high %v1608_v24, %v1612_v25  ;;  %v5654_v31 = vcombine.low %v1608_v24, %v1612_v25 }
 0x338   : > { %4528 = vmatprep.subr.bf16.mxu0 %v5607_v28  ;;  %v598_v28 = vrot.slane %v5859_v58, %v597_v18  ;;  %v1134_v13 = vld [vmem:[%s6366_s21 + $0xb8] sm:$0xff]  ;;  %v1149_v58 = vld [vmem:[%s6366_s21 + $0x130] sm:$0xff] }
 0x33a   : > { %4365 = vmatpush1.bf16.msra.mxu1 %v5604_v43  ;;  %v1619_v43 = vld [vmem:[%s6366_s21 + $0xfe0] sm:$0xff]  ;;  %v1089_v47 = vadd.f32 %v6510_v52, %v598_v28  ;;  %v1146_v28 = vld [vmem:[%s6366_s21 + $0x118] sm:$0xff] }
 0x33b   : > { %4529 = vmatpush1.bf16.msra.mxu0 %v5606_v44  ;;  %4366 = vmatprep.subr.bf16.mxu1 %v5613_v45  ;;  %v1616_v44 = vld [vmem:[%s6366_s21 + $0xfc8] sm:$0xff]  ;;  %v5661_v48 = vcombine.high %v1615_v41, %v1619_v43  ;;  %v5660_v62 = vcombine.low %v1615_v41, %v1619_v43 }
 0x33c   : > { %4530 = vmatprep.subr.bf16.mxu0 %v5615_v46  ;;  %v1620_v45 = vld [vmem:[%s6366_s21 + $0xfe8] sm:$0xff]  ;;  %v5652_v46 = vcombine.low %v1607_v39, %v1611_v23  ;;  %v1101_v0 = vmax.f32 %v1089_v47, 0.0  ;;  %v1142_v39 = vld [vmem:[%s6366_s21 + $0xf8] sm:$0xff] }
 0x33d   : > { %v5663_v50 = vcombine.high %v1616_v44, %v1620_v45  ;;  %v5662_v52 = vcombine.low %v1616_v44, %v1620_v45  ;;  %v1153_v44 = vld [vmem:[%s6366_s21 + $0x150] sm:$0xff]  ;;  %v1158_v47 = vld [vmem:[%s6366_s21 + $0x178] sm:$0xff] }
 0x33e   : > { %4367 = vmatpush1.bf16.msra.mxu1 %v5612_v53  ;;  %v1113_v53 = vld [vmem:[%s6366_s21 + $0x10] sm:$0xff]  ;;  %v6723_v7 = vpack.c.bf16 %v1101_v0, %v1101_v0 }
 0x33f   : > { %4531 = vmatpush1.bf16.msra.mxu0 %v5614_v54  ;;  %4368 = vmatprep.subr.bf16.mxu1 %v5621_v60  ;;  %v1117_v54 = vld [vmem:[%s6366_s21 + $0x30] sm:$0xff]  ;;  %v1114_v60 = vld [vmem:[%s6366_s21 + $0x18] sm:$0xff] }
 0x340   : > { %4532 = vmatprep.subr.bf16.mxu0 %v5623_v61  ;;  %v1118_v61 = vld [vmem:[%s6366_s21 + $0x38] sm:$0xff]  ;;  %v5161_v1 = vcombine.high %v1113_v53, %v1117_v54  ;;  %v1157_v45 = vld [vmem:[%s6366_s21 + $0x170] sm:$0xff] }
 0x341   : > { %v5163_v2 = vcombine.high %v1114_v60, %v1118_v61  ;;  %v5162_v8 = vcombine.low %v1114_v60, %v1118_v61  ;;  %v1165_v60 = vld [vmem:[%s6366_s21 + $0x1b0] sm:$0xff]  ;;  %v1162_v61 = vld [vmem:[%s6366_s21 + $0x198] sm:$0xff]  ;;  %v5200_v0 = vcombine.low %v1153_v44, %v1157_v45 }
 0x342   : > { %4369 = vmatpush1.bf16.msra.mxu1 %v5620_v3  ;;  %v1121_v3 = vld [vmem:[%s6366_s21 + $0x50] sm:$0xff] }
 0x343   : > { %4533 = vmatpush1.bf16.msra.mxu0 %v5622_v4  ;;  %4370 = vmatprep.subr.bf16.mxu1 %v5629_v5  ;;  %v1125_v4 = vld [vmem:[%s6366_s21 + $0x70] sm:$0xff]  ;;  %v5160_v5 = vcombine.low %v1113_v53, %v1117_v54 }
 0x344   : > { %4534 = vmatprep.subr.bf16.mxu0 %v5631_v6  ;;  %v1122_v6 = vld [vmem:[%s6366_s21 + $0x58] sm:$0xff]  ;;  %v5169_v9 = vcombine.high %v1121_v3, %v1125_v4  ;;  %v5168_v14 = vcombine.low %v1121_v3, %v1125_v4  ;;  %v1161_v54 = vld [vmem:[%s6366_s21 + $0x190] sm:$0xff] }
 0x345   : > { %v5170_v59 = vcombine.low %v1122_v6, %v1126_v32  ;;  %v1169_v3 = vld [vmem:[%s6366_s21 + $0x1d0] sm:$0xff] }
 0x346   : > { %4371 = vmatpush1.bf16.msra.mxu1 %v5628_v51  ;;  %v1129_v51 = vld [vmem:[%s6366_s21 + $0x90] sm:$0xff] }
 0x347   : > { %4535 = vmatpush1.bf16.msra.mxu0 %v5630_v10  ;;  %4372 = vmatprep.subr.bf16.mxu1 %v5637_v11  ;;  %v1133_v10 = vld [vmem:[%s6366_s21 + $0xb0] sm:$0xff]  ;;  %v5171_v11 = vcombine.high %v1122_v6, %v1126_v32  ;;  %v1174_v6 = vld [vmem:[%s6366_s21 + $0x1f8] sm:$0xff]  ;;  %v5208_v32 = vcombine.low %v1161_v54, %v1165_v60 }
 0x348   : > { %4536 = vmatprep.subr.bf16.mxu0 %v5639_v12  ;;  %v1130_v12 = vld [vmem:[%s6366_s21 + $0x98] sm:$0xff]  ;;  %v5177_v15 = vcombine.high %v1129_v51, %v1133_v10  ;;  %v5176_v23 = vcombine.low %v1129_v51, %v1133_v10  ;;  %v1173_v4 = vld [vmem:[%s6366_s21 + $0x1f0] sm:$0xff] }
 0x349   : > { %v5178_v24 = vcombine.low %v1130_v12, %v1134_v13  ;;  %v1177_v10 = vld [vmem:[%s6366_s21 + $0x210] sm:$0xff] }
 0x34a   : > { %4373 = vmatpush1.bf16.msra.mxu1 %v5636_v16  ;;  %v5179_v16 = vcombine.high %v1130_v12, %v1134_v13  ;;  %v1178_v12 = vld [vmem:[%s6366_s21 + $0x218] sm:$0xff] }
 0x34b   : > { %4537 = vmatpush1.bf16.msra.mxu0 %v5638_v19  ;;  %4374 = vmatprep.subr.bf16.mxu1 %v5645_v20  ;;  %v1137_v19 = vld [vmem:[%s6366_s21 + $0xd0] sm:$0xff]  ;;  %v1182_v13 = vld [vmem:[%s6366_s21 + $0x238] sm:$0xff] }
 0x34c   : > { %4538 = vmatprep.subr.bf16.mxu0 %v5647_v21  ;;  %v1141_v20 = vld [vmem:[%s6366_s21 + $0xf0] sm:$0xff]  ;;  %v1138_v21 = vld [vmem:[%s6366_s21 + $0xd8] sm:$0xff] }
 0x34d   : > { %v5185_v25 = vcombine.high %v1137_v19, %v1141_v20 }
 0x34e   : > { %4375 = vmatpush1.bf16.msra.mxu1 %v5644_v26  ;;  %v1145_v26 = vld [vmem:[%s6366_s21 + $0x110] sm:$0xff] }
 0x34f   : > { %4539 = vmatpush1.bf16.msra.mxu0 %v5646_v36  ;;  %4376 = vmatprep.subr.bf16.mxu1 %v5653_v38  ;;  %v1150_v36 = vld [vmem:[%s6366_s21 + $0x138] sm:$0xff]  ;;  %v5184_v38 = vcombine.low %v1137_v19, %v1141_v20  ;;  %v5193_v41 = vcombine.high %v1145_v26, %v1149_v58  ;;  %v1185_v19 = vld [vmem:[%s6366_s21 + $0x250] sm:$0xff] }
 0x350   : > { %4540 = vmatprep.subr.bf16.mxu0 %v5655_v40  ;;  %v5186_v40 = vcombine.low %v1138_v21, %v1142_v39  ;;  %v5195_v43 = vcombine.high %v1146_v28, %v1150_v36  ;;  %v1189_v20 = vld [vmem:[%s6366_s21 + $0x270] sm:$0xff] }
 0x352   : > { %4377 = vmatpush1.bf16.msra.mxu1 %v5652_v46  ;;  %v1154_v46 = vld [vmem:[%s6366_s21 + $0x158] sm:$0xff] }
 0x353   : > { %4541 = vmatpush1.bf16.msra.mxu0 %v5654_v31  ;;  %4378 = vmatprep.subr.bf16.mxu1 %v5661_v48  ;;  %v5192_v31 = vcombine.low %v1145_v26, %v1149_v58  ;;  %v5194_v48 = vcombine.low %v1146_v28, %v1150_v36  ;;  %v5203_v53 = vcombine.high %v1154_v46, %v1158_v47  ;;  %v1193_v26 = vld [vmem:[%s6366_s21 + $0x290] sm:$0xff]  ;;  %v1194_v28 = vld [vmem:[%s6366_s21 + $0x298] sm:$0xff] }
 0x354   : > { %4542 = vmatprep.subr.bf16.mxu0 %v5663_v50  ;;  %v5201_v50 = vcombine.high %v1153_v44, %v1157_v45  ;;  %v1197_v58 = vld [vmem:[%s6366_s21 + $0x2b0] sm:$0xff]  ;;  %v1198_v36 = vld [vmem:[%s6366_s21 + $0x2b8] sm:$0xff] }
 0x355   : > { %v1201_v44 = vld [vmem:[%s6366_s21 + $0x2d0] sm:$0xff] }
 0x356   : > { %4379 = vmatpush1.bf16.msra.mxu1 %v5660_v62  ;;  %v1166_v62 = vld [vmem:[%s6366_s21 + $0x1b8] sm:$0xff]  ;;  %v1205_v45 = vld [vmem:[%s6366_s21 + $0x2f0] sm:$0xff] }
 0x357   : > { %4543 = vmatpush1.bf16.msra.mxu0 %v5662_v52  ;;  %4553 = vmatprep.subr.bf16.mxu1 %v5161_v1  ;;  %v5202_v52 = vcombine.low %v1154_v46, %v1158_v47  ;;  %v5209_v1 = vcombine.high %v1161_v54, %v1165_v60  ;;  %v1202_v46 = vld [vmem:[%s6366_s21 + $0x2d8] sm:$0xff]  ;;  %v1209_v54 = vld [vmem:[%s6366_s21 + $0x310] sm:$0xff] }
 0x358   : > { %4717 = vmatprep.subr.bf16.mxu0 %v5163_v2  ;;  %v5211_v2 = vcombine.high %v1162_v61, %v1166_v62  ;;  %v1206_v47 = vld [vmem:[%s6366_s21 + $0x2f8] sm:$0xff]  ;;  %v1213_v60 = vld [vmem:[%s6366_s21 + $0x330] sm:$0xff] }
 0x359   : > { %4381 = vmatmul.mubr.bf16.vlgmr.msra.gmra.mrb[8].mxu1 %v6723_v7 }
 0x35a   : > { %4545 = vmatmul.mubr.bf16.vlgmr.msra.gmra.mrb[12].mxu0 %v6723_v7  ;;  %4554 = vmatpush1.bf16.msra.mxu1 %v5160_v5  ;;  %v1170_v5 = vld [vmem:[%s6366_s21 + $0x1d8] sm:$0xff] }
 0x35b   : > { %4585 = vmatprep.mubr.bf16.mxu1 %v6471_v55  ;;  %4718 = vmatpush1.bf16.msra.mxu0 %v5162_v8  ;;  %v5210_v8 = vcombine.low %v1162_v61, %v1166_v62  ;;  %v5219_v51 = vcombine.high %v1170_v5, %v1174_v6  ;;  %v1210_v61 = vld [vmem:[%s6366_s21 + $0x318] sm:$0xff] }
 0x35c   : > { %4749 = vmatprep.mubr.bf16.mxu0 %v6471_v55  ;;  %4555 = vmatprep.subr.bf16.mxu1 %v5169_v9  ;;  %v5187_v55 = vcombine.high %v1138_v21, %v1142_v39  ;;  %v5217_v9 = vcombine.high %v1169_v3, %v1173_v4  ;;  %v1186_v21 = vld [vmem:[%s6366_s21 + $0x258] sm:$0xff] }
 0x35d   : > { %4719 = vmatprep.subr.bf16.mxu0 %v5171_v11  ;;  %v1181_v11 = vld [vmem:[%s6366_s21 + $0x230] sm:$0xff]  ;;  %v1190_v39 = vld [vmem:[%s6366_s21 + $0x278] sm:$0xff] }
 0x35e   : > { %4556 = vmatpush1.bf16.msra.mxu1 %v5168_v14  ;;  %v5216_v14 = vcombine.low %v1169_v3, %v1173_v4  ;;  %v1214_v62 = vld [vmem:[%s6366_s21 + $0x338] sm:$0xff]  ;;  %v1217_v3 = vld [vmem:[%s6366_s21 + $0x350] sm:$0xff] }
 0x35f   : > { %4720 = vmatpush1.bf16.msra.mxu0 %v5170_v59  ;;  %4557 = vmatprep.subr.bf16.mxu1 %v5177_v15  ;;  %v5218_v59 = vcombine.low %v1170_v5, %v1174_v6  ;;  %v5225_v15 = vcombine.high %v1177_v10, %v1181_v11  ;;  %v1221_v4 = vld [vmem:[%s6366_s21 + $0x370] sm:$0xff]  ;;  %v1218_v5 = vld [vmem:[%s6366_s21 + $0x358] sm:$0xff] }
 0x360   : > { %4721 = vmatprep.subr.bf16.mxu0 %v5179_v16  ;;  %v5227_v16 = vcombine.high %v1178_v12, %v1182_v13  ;;  %v1222_v6 = vld [vmem:[%s6366_s21 + $0x378] sm:$0xff] }
 0x362   : > { %4558 = vmatpush1.bf16.msra.mxu1 %v5176_v23  ;;  %v5224_v23 = vcombine.low %v1177_v10, %v1181_v11  ;;  %v1225_v10 = vld [vmem:[%s6366_s21 + $0x390] sm:$0xff] }
 0x363   : > { %4722 = vmatpush1.bf16.msra.mxu0 %v5178_v24  ;;  %4559 = vmatprep.subr.bf16.mxu1 %v5185_v25  ;;  %v5226_v24 = vcombine.low %v1178_v12, %v1182_v13  ;;  %v5233_v25 = vcombine.high %v1185_v19, %v1189_v20  ;;  %v1229_v11 = vld [vmem:[%s6366_s21 + $0x3b0] sm:$0xff]  ;;  %v1226_v12 = vld [vmem:[%s6366_s21 + $0x398] sm:$0xff] }
 0x364   : > { %4723 = vmatprep.subr.bf16.mxu0 %v5187_v55  ;;  %v5235_v55 = vcombine.high %v1186_v21, %v1190_v39  ;;  %v1230_v13 = vld [vmem:[%s6366_s21 + $0x3b8] sm:$0xff] }
 0x366   : > { %4560 = vmatpush1.bf16.msra.mxu1 %v5184_v38  ;;  %v5232_v38 = vcombine.low %v1185_v19, %v1189_v20  ;;  %v1233_v19 = vld [vmem:[%s6366_s21 + $0x3d0] sm:$0xff] }
 0x367   : > { %4724 = vmatpush1.bf16.msra.mxu0 %v5186_v40  ;;  %4561 = vmatprep.subr.bf16.mxu1 %v5193_v41  ;;  %v5234_v40 = vcombine.low %v1186_v21, %v1190_v39  ;;  %v5241_v41 = vcombine.high %v1193_v26, %v1197_v58  ;;  %v1237_v20 = vld [vmem:[%s6366_s21 + $0x3f0] sm:$0xff]  ;;  %v1234_v21 = vld [vmem:[%s6366_s21 + $0x3d8] sm:$0xff] }
 0x368   : > { %4725 = vmatprep.subr.bf16.mxu0 %v5195_v43  ;;  %v5243_v43 = vcombine.high %v1194_v28, %v1198_v36  ;;  %v1238_v39 = vld [vmem:[%s6366_s21 + $0x3f8] sm:$0xff] }
 0x36a   : > { %4562 = vmatpush1.bf16.msra.mxu1 %v5192_v31  ;;  %v5240_v31 = vcombine.low %v1193_v26, %v1197_v58  ;;  %v1241_v26 = vld [vmem:[%s6366_s21 + $0x410] sm:$0xff] }
 0x36b   : > { %4726 = vmatpush1.bf16.msra.mxu0 %v5194_v48  ;;  %4563 = vmatprep.subr.bf16.mxu1 %v5201_v50  ;;  %v5242_v48 = vcombine.low %v1194_v28, %v1198_v36  ;;  %v5249_v50 = vcombine.high %v1201_v44, %v1205_v45  ;;  %v1245_v58 = vld [vmem:[%s6366_s21 + $0x430] sm:$0xff]  ;;  %v1242_v28 = vld [vmem:[%s6366_s21 + $0x418] sm:$0xff] }
 0x36c   : > { %4727 = vmatprep.subr.bf16.mxu0 %v5203_v53  ;;  %v5251_v53 = vcombine.high %v1202_v46, %v1206_v47  ;;  %v1246_v36 = vld [vmem:[%s6366_s21 + $0x438] sm:$0xff] }
 0x36e   : > { %4564 = vmatpush1.bf16.msra.mxu1 %v5200_v0  ;;  %v5248_v0 = vcombine.low %v1201_v44, %v1205_v45  ;;  %v1249_v44 = vld [vmem:[%s6366_s21 + $0x450] sm:$0xff] }
 0x36f   : > { %4728 = vmatpush1.bf16.msra.mxu0 %v5202_v52  ;;  %4565 = vmatprep.subr.bf16.mxu1 %v5209_v1  ;;  %v5250_v52 = vcombine.low %v1202_v46, %v1206_v47  ;;  %v5257_v1 = vcombine.high %v1209_v54, %v1213_v60  ;;  %v1253_v45 = vld [vmem:[%s6366_s21 + $0x470] sm:$0xff]  ;;  %v5288_v46 = vcombine.low %v1241_v26, %v1245_v58  ;;  %v1250_v47 = vld [vmem:[%s6366_s21 + $0x458] sm:$0xff] }
 0x370   : > { %4729 = vmatprep.subr.bf16.mxu0 %v5211_v2  ;;  %v5259_v2 = vcombine.high %v1210_v61, %v1214_v62 }
 0x372   : > { %4566 = vmatpush1.bf16.msra.mxu1 %v5208_v32  ;;  %v5256_v32 = vcombine.low %v1209_v54, %v1213_v60  ;;  %v1261_v54 = vld [vmem:[%s6366_s21 + $0x4b0] sm:$0xff] }
 0x373   : > { %4730 = vmatpush1.bf16.msra.mxu0 %v5210_v8  ;;  %4567 = vmatprep.subr.bf16.mxu1 %v5217_v9  ;;  %v5258_v8 = vcombine.low %v1210_v61, %v1214_v62  ;;  %v5265_v9 = vcombine.high %v1217_v3, %v1221_v4  ;;  %v1258_v61 = vld [vmem:[%s6366_s21 + $0x498] sm:$0xff] }
 0x374   : > { %4731 = vmatprep.subr.bf16.mxu0 %v5219_v51  ;;  %v5267_v51 = vcombine.high %v1218_v5, %v1222_v6  ;;  %v1262_v62 = vld [vmem:[%s6366_s21 + $0x4b8] sm:$0xff] }
 0x376   : > { %4568 = vmatpush1.bf16.msra.mxu1 %v5216_v14  ;;  %v5264_v14 = vcombine.low %v1217_v3, %v1221_v4  ;;  %v1265_v3 = vld [vmem:[%s6366_s21 + $0x4d0] sm:$0xff] }
 0x377   : > { %4732 = vmatpush1.bf16.msra.mxu0 %v5218_v59  ;;  %4569 = vmatprep.subr.bf16.mxu1 %v5225_v15  ;;  %v5266_v59 = vcombine.low %v1218_v5, %v1222_v6  ;;  %v5273_v15 = vcombine.high %v1225_v10, %v1229_v11  ;;  %v1269_v4 = vld [vmem:[%s6366_s21 + $0x4f0] sm:$0xff]  ;;  %v1266_v5 = vld [vmem:[%s6366_s21 + $0x4d8] sm:$0xff] }
 0x378   : > { %4733 = vmatprep.subr.bf16.mxu0 %v5227_v16  ;;  %v5275_v16 = vcombine.high %v1226_v12, %v1230_v13 }
 0x37a   : > { %4570 = vmatpush1.bf16.msra.mxu1 %v5224_v23  ;;  %v5272_v23 = vcombine.low %v1225_v10, %v1229_v11  ;;  %v1274_v10 = vld [vmem:[%s6366_s21 + $0x518] sm:$0xff] }
 0x37b   : > { %4734 = vmatpush1.bf16.msra.mxu0 %v5226_v24  ;;  %4571 = vmatprep.subr.bf16.mxu1 %v5233_v25  ;;  %v5274_v24 = vcombine.low %v1226_v12, %v1230_v13  ;;  %v5281_v25 = vcombine.high %v1233_v19, %v1237_v20  ;;  %v1278_v11 = vld [vmem:[%s6366_s21 + $0x538] sm:$0xff]  ;;  %v5312_v12 = vcombine.low %v1265_v3, %v1269_v4 }
 0x37c   : > { %4735 = vmatprep.subr.bf16.mxu0 %v5235_v55  ;;  %v5283_v55 = vcombine.high %v1234_v21, %v1238_v39 }
 0x37e   : > { %4572 = vmatpush1.bf16.msra.mxu1 %v5232_v38  ;;  %v5280_v38 = vcombine.low %v1233_v19, %v1237_v20  ;;  %v1282_v19 = vld [vmem:[%s6366_s21 + $0x558] sm:$0xff] }
 0x37f   : > { %4736 = vmatpush1.bf16.msra.mxu0 %v5234_v40  ;;  %4573 = vmatprep.subr.bf16.mxu1 %v5241_v41  ;;  %v5282_v40 = vcombine.low %v1234_v21, %v1238_v39  ;;  %v5289_v41 = vcombine.high %v1241_v26, %v1245_v58  ;;  %v1286_v20 = vld [vmem:[%s6366_s21 + $0x578] sm:$0xff]  ;;  %v5322_v39 = vcombine.low %v1274_v10, %v1278_v11 }
 0x380   : > { %4737 = vmatprep.subr.bf16.mxu0 %v5243_v43  ;;  %v5291_v43 = vcombine.high %v1242_v28, %v1246_v36  ;;  %v1290_v26 = vld [vmem:[%s6366_s21 + $0x598] sm:$0xff] }
 0x381   : > { %v1294_v58 = vld [vmem:[%s6366_s21 + $0x5b8] sm:$0xff] }
 0x382   : > { %4574 = vmatpush1.bf16.msra.mxu1 %v5240_v31  ;;  %v1254_v31 = vld [vmem:[%s6366_s21 + $0x478] sm:$0xff] }
 0x383   : > { %4738 = vmatpush1.bf16.msra.mxu0 %v5242_v48  ;;  %4575 = vmatprep.subr.bf16.mxu1 %v5249_v50  ;;  %v5290_v48 = vcombine.low %v1242_v28, %v1246_v36  ;;  %v5297_v50 = vcombine.high %v1249_v44, %v1253_v45  ;;  %v5299_v60 = vcombine.high %v1250_v47, %v1254_v31 }
 0x384   : > { %4739 = vmatprep.subr.bf16.mxu0 %v5251_v53  ;;  %v1257_v53 = vld [vmem:[%s6366_s21 + $0x490] sm:$0xff]  ;;  %v5330_v36 = vcombine.low %v1282_v19, %v1286_v20 }
 0x385   : > { %v5304_v6 = vcombine.low %v1257_v53, %v1261_v54 }
 0x386   : > { %4576 = vmatpush1.bf16.msra.mxu1 %v5248_v0  ;;  %v5296_v0 = vcombine.low %v1249_v44, %v1253_v45  ;;  %v1298_v44 = vld [vmem:[%s6366_s21 + $0x5d8] sm:$0xff] }
 0x387   : > { %4740 = vmatpush1.bf16.msra.mxu0 %v5250_v52  ;;  %4577 = vmatprep.subr.bf16.mxu1 %v5257_v1  ;;  %v5298_v52 = vcombine.low %v1250_v47, %v1254_v31  ;;  %v5305_v1 = vcombine.high %v1257_v53, %v1261_v54  ;;  %v1302_v45 = vld [vmem:[%s6366_s21 + $0x5f8] sm:$0xff]  ;;  %v5338_v47 = vcombine.low %v1290_v26, %v1294_v58  ;;  %v1309_v53 = vld [vmem:[%s6366_s21 + $0x630] sm:$0xff] }
 0x388   : > { %4741 = vmatprep.subr.bf16.mxu0 %v5259_v2  ;;  %v5307_v2 = vcombine.high %v1258_v61, %v1262_v62  ;;  %v1306_v54 = vld [vmem:[%s6366_s21 + $0x618] sm:$0xff] }
 0x38a   : > { %4578 = vmatpush1.bf16.msra.mxu1 %v5256_v32  ;;  %v5306_v32 = vcombine.low %v1258_v61, %v1262_v62  ;;  %v5346_v62 = vcombine.low %v1298_v44, %v1302_v45 }
 0x38b   : > { %4742 = vmatpush1.bf16.msra.mxu0 %v5258_v8  ;;  %4579 = vmatprep.subr.bf16.mxu1 %v5265_v9  ;;  %v5313_v8 = vcombine.high %v1265_v3, %v1269_v4  ;;  %v1273_v9 = vld [vmem:[%s6366_s21 + $0x510] sm:$0xff]  ;;  %v1314_v3 = vld [vmem:[%s6366_s21 + $0x658] sm:$0xff] }
 0x38c   : > { %4743 = vmatprep.subr.bf16.mxu0 %v5267_v51  ;;  %v1277_v51 = vld [vmem:[%s6366_s21 + $0x530] sm:$0xff]  ;;  %v1318_v4 = vld [vmem:[%s6366_s21 + $0x678] sm:$0xff] }
 0x38d   : > { %v5320_v21 = vcombine.low %v1273_v9, %v1277_v51 }
 0x38e   : > { %4580 = vmatpush1.bf16.msra.mxu1 %v5264_v14  ;;  %v5321_v14 = vcombine.high %v1273_v9, %v1277_v51  ;;  %v1322_v9 = vld [vmem:[%s6366_s21 + $0x698] sm:$0xff] }
 0x38f   : > { %4744 = vmatpush1.bf16.msra.mxu0 %v5266_v59  ;;  %4581 = vmatprep.subr.bf16.mxu1 %v5273_v15  ;;  %v5323_v59 = vcombine.high %v1274_v10, %v1278_v11  ;;  %v1281_v15 = vld [vmem:[%s6366_s21 + $0x550] sm:$0xff]  ;;  %v1326_v51 = vld [vmem:[%s6366_s21 + $0x6b8] sm:$0xff]  ;;  %v5362_v11 = vcombine.low %v1314_v3, %v1318_v4 }
 0x390   : > { %4745 = vmatprep.subr.bf16.mxu0 %v5275_v16  ;;  %v1285_v16 = vld [vmem:[%s6366_s21 + $0x570] sm:$0xff] }
 0x391   : > { %v5328_v28 = vcombine.low %v1281_v15, %v1285_v16 }
 0x392   : > { %4582 = vmatpush1.bf16.msra.mxu1 %v5272_v23  ;;  %v5329_v23 = vcombine.high %v1281_v15, %v1285_v16  ;;  %v1330_v15 = vld [vmem:[%s6366_s21 + $0x6d8] sm:$0xff] }
 0x393   : > { %4746 = vmatpush1.bf16.msra.mxu0 %v5274_v24  ;;  %4583 = vmatprep.subr.bf16.mxu1 %v5281_v25  ;;  %v5331_v24 = vcombine.high %v1282_v19, %v1286_v20  ;;  %v1289_v25 = vld [vmem:[%s6366_s21 + $0x590] sm:$0xff]  ;;  %v1334_v16 = vld [vmem:[%s6366_s21 + $0x6f8] sm:$0xff]  ;;  %v5370_v20 = vcombine.low %v1322_v9, %v1326_v51 }
 0x394   : > { %4747 = vmatprep.subr.bf16.mxu0 %v5283_v55  ;;  %v1293_v55 = vld [vmem:[%s6366_s21 + $0x5b0] sm:$0xff] }
 0x396   : > { %4584 = vmatpush1.bf16.msra.mxu1 %v5280_v38  ;;  %v5337_v38 = vcombine.high %v1289_v25, %v1293_v55 }
 0x397   : > { %4748 = vmatpush1.bf16.msra.mxu0 %v5282_v40  ;;  %4594 = vmatprep.subr.bf16.mxu1 %v5289_v41  ;;  %v5339_v40 = vcombine.high %v1290_v26, %v1294_v58  ;;  %v1297_v41 = vld [vmem:[%s6366_s21 + $0x5d0] sm:$0xff]  ;;  %v5378_v58 = vcombine.low %v1330_v15, %v1334_v16 }
 0x398   : > { %4758 = vmatprep.subr.bf16.mxu0 %v5291_v43  ;;  %v1301_v43 = vld [vmem:[%s6366_s21 + $0x5f0] sm:$0xff] }
 0x399   : > { %4586 = vmatmul.mubr.bf16.vlgmr.msra.gmra.mrb[12].mxu1 %v6473_v56  ;;  %v5345_v31 = vcombine.high %v1297_v41, %v1301_v43  ;;  %v5344_v61 = vcombine.low %v1297_v41, %v1301_v43  ;;  %v1346_v41 = vld [vmem:[%s6366_s21 + $0x758] sm:$0xff] }
 0x39a   : > { %4750 = vmatmul.mubr.bf16.vlgmr.msra.gmra.mrb[16].mxu0 %v6473_v56  ;;  %4595 = vmatpush1.bf16.msra.mxu1 %v5288_v46  ;;  %v1270_v56 = vld [vmem:[%s6366_s21 + $0x4f8] sm:$0xff]  ;;  %v5336_v46 = vcombine.low %v1289_v25, %v1293_v55 }
 0x39b   : > { %4626 = vmatprep.mubr.bf16.mxu1 %v6481_v63  ;;  %4759 = vmatpush1.bf16.msra.mxu0 %v5290_v48  ;;  %v5314_v13 = vcombine.low %v1266_v5, %v1270_v56  ;;  %v5347_v48 = vcombine.high %v1298_v44, %v1302_v45  ;;  %v1338_v25 = vld [vmem:[%s6366_s21 + $0x718] sm:$0xff] }
 0x39c   : > { %4790 = vmatprep.mubr.bf16.mxu0 %v6481_v63  ;;  %4596 = vmatprep.subr.bf16.mxu1 %v5297_v50  ;;  %v5315_v63 = vcombine.high %v1266_v5, %v1270_v56  ;;  %v1305_v50 = vld [vmem:[%s6366_s21 + $0x610] sm:$0xff]  ;;  %v1342_v55 = vld [vmem:[%s6366_s21 + $0x738] sm:$0xff] }
 0x39d   : > { %4760 = vmatprep.subr.bf16.mxu0 %v5299_v60  ;;  %v1310_v60 = vld [vmem:[%s6366_s21 + $0x638] sm:$0xff]  ;;  %v5352_v5 = vcombine.low %v1305_v50, %v1309_v53  ;;  %v5386_v45 = vcombine.low %v1338_v25, %v1342_v55 }
 0x39e   : > { %4597 = vmatpush1.bf16.msra.mxu1 %v5296_v0  ;;  %v5353_v0 = vcombine.high %v1305_v50, %v1309_v53  ;;  %v5354_v56 = vcombine.low %v1306_v54, %v1310_v60  ;;  %v1350_v43 = vld [vmem:[%s6366_s21 + $0x778] sm:$0xff] }
 0x39f   : > { %4761 = vmatpush1.bf16.msra.mxu0 %v5298_v52  ;;  %4598 = vmatprep.subr.bf16.mxu1 %v5305_v1  ;;  %v5355_v52 = vcombine.high %v1306_v54, %v1310_v60  ;;  %v1313_v1 = vld [vmem:[%s6366_s21 + $0x650] sm:$0xff]  ;;  %v1354_v50 = vld [vmem:[%s6366_s21 + $0x798] sm:$0xff]  ;;  %v5394_v60 = vcombine.low %v1346_v41, %v1350_v43 }
 0x3a0   : > { %4762 = vmatprep.subr.bf16.mxu0 %v5307_v2  ;;  %v1317_v2 = vld [vmem:[%s6366_s21 + $0x670] sm:$0xff]  ;;  %v1358_v53 = vld [vmem:[%s6366_s21 + $0x7b8] sm:$0xff] }
 0x3a1   : > { %v5360_v10 = vcombine.low %v1313_v1, %v1317_v2 }
 0x3a2   : > { %4599 = vmatpush1.bf16.msra.mxu1 %v5304_v6  ;;  %v5361_v6 = vcombine.high %v1313_v1, %v1317_v2  ;;  %v1362_v1 = vld [vmem:[%s6366_s21 + $0x7d8] sm:$0xff] }
 0x3a3   : > { %4763 = vmatpush1.bf16.msra.mxu0 %v5306_v32  ;;  %4600 = vmatprep.subr.bf16.mxu1 %v5313_v8  ;;  %v5363_v32 = vcombine.high %v1314_v3, %v1318_v4  ;;  %v1321_v8 = vld [vmem:[%s6366_s21 + $0x690] sm:$0xff]  ;;  %v1366_v2 = vld [vmem:[%s6366_s21 + $0x7f8] sm:$0xff]  ;;  %v5402_v4 = vcombine.low %v1354_v50, %v1358_v53 }
 0x3a4   : > { %4764 = vmatprep.subr.bf16.mxu0 %v5315_v63  ;;  %v1325_v63 = vld [vmem:[%s6366_s21 + $0x6b0] sm:$0xff] }
 0x3a5   : > { %v5368_v19 = vcombine.low %v1321_v8, %v1325_v63 }
 0x3a6   : > { %4601 = vmatpush1.bf16.msra.mxu1 %v5312_v12  ;;  %v5369_v12 = vcombine.high %v1321_v8, %v1325_v63  ;;  %v1370_v8 = vld [vmem:[%s6366_s21 + $0x818] sm:$0xff] }
 0x3a7   : > { %4765 = vmatpush1.bf16.msra.mxu0 %v5314_v13  ;;  %4602 = vmatprep.subr.bf16.mxu1 %v5321_v14  ;;  %v5371_v13 = vcombine.high %v1322_v9, %v1326_v51  ;;  %v1329_v14 = vld [vmem:[%s6366_s21 + $0x6d0] sm:$0xff]  ;;  %v1374_v63 = vld [vmem:[%s6366_s21 + $0x838] sm:$0xff]  ;;  %v5410_v51 = vcombine.low %v1362_v1, %v1366_v2 }
 0x3a8   : > { %4766 = vmatprep.subr.bf16.mxu0 %v5323_v59  ;;  %v1333_v59 = vld [vmem:[%s6366_s21 + $0x6f0] sm:$0xff] }
 0x3a9   : > { %v5376_v26 = vcombine.low %v1329_v14, %v1333_v59 }
 0x3aa   : > { %4603 = vmatpush1.bf16.msra.mxu1 %v5320_v21  ;;  %v5377_v21 = vcombine.high %v1329_v14, %v1333_v59  ;;  %v1378_v59 = vld [vmem:[%s6366_s21 + $0x858] sm:$0xff] }
 0x3ab   : > { %4767 = vmatpush1.bf16.msra.mxu0 %v5322_v39  ;;  %4604 = vmatprep.subr.bf16.mxu1 %v5329_v23  ;;  %v5379_v39 = vcombine.high %v1330_v15, %v1334_v16  ;;  %v1337_v23 = vld [vmem:[%s6366_s21 + $0x710] sm:$0xff]  ;;  %v1382_v15 = vld [vmem:[%s6366_s21 + $0x878] sm:$0xff]  ;;  %v5418_v16 = vcombine.low %v1370_v8, %v1374_v63 }
 0x3ac   : > { %4768 = vmatprep.subr.bf16.mxu0 %v5331_v24  ;;  %v1341_v24 = vld [vmem:[%s6366_s21 + $0x730] sm:$0xff] }
 0x3ad   : > { %v5384_v44 = vcombine.low %v1337_v23, %v1341_v24 }
 0x3ae   : > { %4605 = vmatpush1.bf16.msra.mxu1 %v5328_v28  ;;  %v5385_v28 = vcombine.high %v1337_v23, %v1341_v24  ;;  %v1386_v23 = vld [vmem:[%s6366_s21 + $0x898] sm:$0xff] }
 0x3af   : > { %4769 = vmatpush1.bf16.msra.mxu0 %v5330_v36  ;;  %4606 = vmatprep.subr.bf16.mxu1 %v5337_v38  ;;  %v5387_v36 = vcombine.high %v1338_v25, %v1342_v55  ;;  %v1345_v38 = vld [vmem:[%s6366_s21 + $0x750] sm:$0xff]  ;;  %v1390_v24 = vld [vmem:[%s6366_s21 + $0x8b8] sm:$0xff]  ;;  %v5426_v55 = vcombine.low %v1378_v59, %v1382_v15 }
 0x3b0   : > { %4770 = vmatprep.subr.bf16.mxu0 %v5339_v40  ;;  %v1349_v40 = vld [vmem:[%s6366_s21 + $0x770] sm:$0xff] }
 0x3b1   : > { %v5392_v54 = vcombine.low %v1345_v38, %v1349_v40 }
 0x3b2   : > { %4607 = vmatpush1.bf16.msra.mxu1 %v5336_v46  ;;  %v5393_v46 = vcombine.high %v1345_v38, %v1349_v40  ;;  %v1394_v38 = vld [vmem:[%s6366_s21 + $0x8d8] sm:$0xff] }
 0x3b3   : > { %4771 = vmatpush1.bf16.msra.mxu0 %v5338_v47  ;;  %4608 = vmatprep.subr.bf16.mxu1 %v5345_v31  ;;  %v5395_v47 = vcombine.high %v1346_v41, %v1350_v43  ;;  %v1353_v31 = vld [vmem:[%s6366_s21 + $0x790] sm:$0xff]  ;;  %v5434_v41 = vcombine.low %v1386_v23, %v1390_v24 }
 0x3b4   : > { %4772 = vmatprep.subr.bf16.mxu0 %v5347_v48  ;;  %v1357_v48 = vld [vmem:[%s6366_s21 + $0x7b0] sm:$0xff] }
 0x3b5   : > { %v5400_v3 = vcombine.low %v1353_v31, %v1357_v48 }
 0x3b6   : > { %4609 = vmatpush1.bf16.msra.mxu1 %v5344_v61  ;;  %v5401_v61 = vcombine.high %v1353_v31, %v1357_v48 }
 0x3b7   : > { %4773 = vmatpush1.bf16.msra.mxu0 %v5346_v62  ;;  %4610 = vmatprep.subr.bf16.mxu1 %v5353_v0  ;;  %v5403_v62 = vcombine.high %v1354_v50, %v1358_v53  ;;  %v1361_v0 = vld [vmem:[%s6366_s21 + $0x7d0] sm:$0xff] }
 0x3b8   : > { %4774 = vmatprep.subr.bf16.mxu0 %v5355_v52  ;;  %v1365_v52 = vld [vmem:[%s6366_s21 + $0x7f0] sm:$0xff] }
 0x3b9   : > { %v5408_v9 = vcombine.low %v1361_v0, %v1365_v52 }
 0x3ba   : > { %4611 = vmatpush1.bf16.msra.mxu1 %v5352_v5  ;;  %v5409_v5 = vcombine.high %v1361_v0, %v1365_v52 }
 0x3bb   : > { %4775 = vmatpush1.bf16.msra.mxu0 %v5354_v56  ;;  %4612 = vmatprep.subr.bf16.mxu1 %v5361_v6  ;;  %v5411_v56 = vcombine.high %v1362_v1, %v1366_v2  ;;  %v1369_v6 = vld [vmem:[%s6366_s21 + $0x810] sm:$0xff] }
 0x3bc   : > { %4776 = vmatprep.subr.bf16.mxu0 %v5363_v32  ;;  %v1373_v32 = vld [vmem:[%s6366_s21 + $0x830] sm:$0xff] }
 0x3bd   : > { %v5416_v14 = vcombine.low %v1369_v6, %v1373_v32 }
 0x3be   : > { %4613 = vmatpush1.bf16.msra.mxu1 %v5360_v10  ;;  %v5417_v10 = vcombine.high %v1369_v6, %v1373_v32 }
 0x3bf   : > { %4777 = vmatpush1.bf16.msra.mxu0 %v5362_v11  ;;  %4614 = vmatprep.subr.bf16.mxu1 %v5369_v12  ;;  %v5419_v11 = vcombine.high %v1370_v8, %v1374_v63  ;;  %v1377_v12 = vld [vmem:[%s6366_s21 + $0x850] sm:$0xff] }
 0x3c0   : > { %4778 = vmatprep.subr.bf16.mxu0 %v5371_v13  ;;  %v1381_v13 = vld [vmem:[%s6366_s21 + $0x870] sm:$0xff] }
 0x3c1   : > { %v5424_v25 = vcombine.low %v1377_v12, %v1381_v13 }
 0x3c2   : > { %4615 = vmatpush1.bf16.msra.mxu1 %v5368_v19  ;;  %v5425_v19 = vcombine.high %v1377_v12, %v1381_v13 }
 0x3c3   : > { %4779 = vmatpush1.bf16.msra.mxu0 %v5370_v20  ;;  %4616 = vmatprep.subr.bf16.mxu1 %v5377_v21  ;;  %v1385_v20 = vld [vmem:[%s6366_s21 + $0x890] sm:$0xff] }
 0x3c4   : > { %4780 = vmatprep.subr.bf16.mxu0 %v5379_v39  ;;  %v1389_v21 = vld [vmem:[%s6366_s21 + $0x8b0] sm:$0xff]  ;;  %v5427_v39 = vcombine.high %v1378_v59, %v1382_v15 }
 0x3c5   : > { %v5432_v40 = vcombine.low %v1385_v20, %v1389_v21  ;;  %v1433_v15 = vld [vmem:[%s6366_s21 + $0xa10] sm:$0xff] }
 0x3c6   : > { %4617 = vmatpush1.bf16.msra.mxu1 %v5376_v26  ;;  %v5433_v26 = vcombine.high %v1385_v20, %v1389_v21  ;;  %v1438_v20 = vld [vmem:[%s6366_s21 + $0xa38] sm:$0xff] }
 0x3c7   : > { %4781 = vmatpush1.bf16.msra.mxu0 %v5378_v58  ;;  %4618 = vmatprep.subr.bf16.mxu1 %v5385_v28  ;;  %v5435_v58 = vcombine.high %v1386_v23, %v1390_v24  ;;  %v1393_v28 = vld [vmem:[%s6366_s21 + $0x8d0] sm:$0xff] }
 0x3c8   : > { %4782 = vmatprep.subr.bf16.mxu0 %v5387_v36  ;;  %v1397_v36 = vld [vmem:[%s6366_s21 + $0x8f0] sm:$0xff] }
 0x3c9   : > { %v5441_v43 = vcombine.high %v1393_v28, %v1397_v36  ;;  %v5440_v31 = vcombine.low %v1393_v28, %v1397_v36 }
 0x3ca   : > { %4619 = vmatpush1.bf16.msra.mxu1 %v5384_v44  ;;  %v1401_v44 = vld [vmem:[%s6366_s21 + $0x910] sm:$0xff] }
 0x3cb   : > { %4783 = vmatpush1.bf16.msra.mxu0 %v5386_v45  ;;  %4620 = vmatprep.subr.bf16.mxu1 %v5393_v46  ;;  %v1405_v45 = vld [vmem:[%s6366_s21 + $0x930] sm:$0xff]  ;;  %v1402_v46 = vld [vmem:[%s6366_s21 + $0x918] sm:$0xff] }
 0x3cc   : > { %4784 = vmatprep.subr.bf16.mxu0 %v5395_v47  ;;  %v1406_v47 = vld [vmem:[%s6366_s21 + $0x938] sm:$0xff]  ;;  %v5449_v50 = vcombine.high %v1401_v44, %v1405_v45  ;;  %v5448_v0 = vcombine.low %v1401_v44, %v1405_v45 }
 0x3cd   : > { %v5451_v53 = vcombine.high %v1402_v46, %v1406_v47  ;;  %v5450_v52 = vcombine.low %v1402_v46, %v1406_v47 }
 0x3ce   : > { %4621 = vmatpush1.bf16.msra.mxu1 %v5392_v54  ;;  %v1409_v54 = vld [vmem:[%s6366_s21 + $0x950] sm:$0xff] }
 0x3cf   : > { %4785 = vmatpush1.bf16.msra.mxu0 %v5394_v60  ;;  %4622 = vmatprep.subr.bf16.mxu1 %v5401_v61  ;;  %v1413_v60 = vld [vmem:[%s6366_s21 + $0x970] sm:$0xff]  ;;  %v1410_v61 = vld [vmem:[%s6366_s21 + $0x958] sm:$0xff] }
 0x3d0   : > { %4786 = vmatprep.subr.bf16.mxu0 %v5403_v62  ;;  %v1414_v62 = vld [vmem:[%s6366_s21 + $0x978] sm:$0xff]  ;;  %v5457_v1 = vcombine.high %v1409_v54, %v1413_v60  ;;  %v5456_v6 = vcombine.low %v1409_v54, %v1413_v60 }
 0x3d1   : > { %v5459_v2 = vcombine.high %v1410_v61, %v1414_v62  ;;  %v5458_v32 = vcombine.low %v1410_v61, %v1414_v62 }
 0x3d2   : > { %4623 = vmatpush1.bf16.msra.mxu1 %v5400_v3  ;;  %v1417_v3 = vld [vmem:[%s6366_s21 + $0x990] sm:$0xff] }
 0x3d3   : > { %4787 = vmatpush1.bf16.msra.mxu0 %v5402_v4  ;;  %4624 = vmatprep.subr.bf16.mxu1 %v5409_v5  ;;  %v1421_v4 = vld [vmem:[%s6366_s21 + $0x9b0] sm:$0xff]  ;;  %v1418_v5 = vld [vmem:[%s6366_s21 + $0x998] sm:$0xff] }
 0x3d4   : > { %4788 = vmatprep.subr.bf16.mxu0 %v5411_v56  ;;  %v1422_v56 = vld [vmem:[%s6366_s21 + $0x9b8] sm:$0xff]  ;;  %v5465_v8 = vcombine.high %v1417_v3, %v1421_v4  ;;  %v5464_v12 = vcombine.low %v1417_v3, %v1421_v4 }
 0x3d5   : > { %v5467_v63 = vcombine.high %v1418_v5, %v1422_v56  ;;  %v5466_v13 = vcombine.low %v1418_v5, %v1422_v56 }
 0x3d6   : > { %4625 = vmatpush1.bf16.msra.mxu1 %v5408_v9  ;;  %v1425_v9 = vld [vmem:[%s6366_s21 + $0x9d0] sm:$0xff] }
 0x3d7   : > { %4789 = vmatpush1.bf16.msra.mxu0 %v5410_v51  ;;  %4635 = vmatprep.subr.bf16.mxu1 %v5417_v10  ;;  %v1429_v51 = vld [vmem:[%s6366_s21 + $0x9f0] sm:$0xff]  ;;  %v1426_v10 = vld [vmem:[%s6366_s21 + $0x9d8] sm:$0xff] }
 0x3d8   : > { %4799 = vmatprep.subr.bf16.mxu0 %v5419_v11  ;;  %v1430_v11 = vld [vmem:[%s6366_s21 + $0x9f8] sm:$0xff]  ;;  %v5472_v21 = vcombine.low %v1425_v9, %v1429_v51 }
 0x3d9   : > { %4627 = vmatmul.mubr.bf16.vlgmr.msra.gmra.mrb[12].mxu1 %v6565_v35  ;;  %v5475_v59 = vcombine.high %v1426_v10, %v1430_v11 }
 0x3da   : > { %4791 = vmatmul.mubr.bf16.vlgmr.msra.gmra.mrb[16].mxu0 %v6565_v35  ;;  %4636 = vmatpush1.bf16.msra.mxu1 %v5416_v14  ;;  %v1398_v35 = vld [vmem:[%s6366_s21 + $0x8f8] sm:$0xff]  ;;  %v5473_v14 = vcombine.high %v1425_v9, %v1429_v51 }
 0x3db   : > { %4667 = vmatprep.mubr.bf16.mxu1 %v6567_v37  ;;  %4800 = vmatpush1.bf16.msra.mxu0 %v5418_v16  ;;  %v5442_v48 = vcombine.low %v1394_v38, %v1398_v35  ;;  %v1437_v16 = vld [vmem:[%s6366_s21 + $0xa30] sm:$0xff] }
 0x3dc   : > { %4831 = vmatprep.mubr.bf16.mxu0 %v6567_v37  ;;  %4637 = vmatprep.subr.bf16.mxu1 %v5425_v19  ;;  %v5443_v37 = vcombine.high %v1394_v38, %v1398_v35  ;;  %v1434_v19 = vld [vmem:[%s6366_s21 + $0xa18] sm:$0xff]  ;;  %v5481_v23 = vcombine.high %v1433_v15, %v1437_v16  ;;  %v5480_v28 = vcombine.low %v1433_v15, %v1437_v16 }
 0x3dd   : > { %4801 = vmatprep.subr.bf16.mxu0 %v5427_v39  ;;  %v5474_v39 = vcombine.low %v1426_v10, %v1430_v11  ;;  %v5483_v24 = vcombine.high %v1434_v19, %v1438_v20  ;;  %v5482_v36 = vcombine.low %v1434_v19, %v1438_v20 }
 0x3de   : > { %4638 = vmatpush1.bf16.msra.mxu1 %v5424_v25  ;;  %v1441_v25 = vld [vmem:[%s6366_s21 + $0xa50] sm:$0xff] }
 0x3df   : > { %4802 = vmatpush1.bf16.msra.mxu0 %v5426_v55  ;;  %4639 = vmatprep.subr.bf16.mxu1 %v5433_v26  ;;  %v1445_v55 = vld [vmem:[%s6366_s21 + $0xa70] sm:$0xff]  ;;  %v1442_v26 = vld [vmem:[%s6366_s21 + $0xa58] sm:$0xff] }
 0x3e0   : > { %4803 = vmatprep.subr.bf16.mxu0 %v5435_v58  ;;  %v1446_v58 = vld [vmem:[%s6366_s21 + $0xa78] sm:$0xff]  ;;  %v5489_v38 = vcombine.high %v1441_v25, %v1445_v55  ;;  %v5488_v44 = vcombine.low %v1441_v25, %v1445_v55 }
 0x3e1   : > { %v5491_v35 = vcombine.high %v1442_v26, %v1446_v58  ;;  %v5490_v45 = vcombine.low %v1442_v26, %v1446_v58 }
 0x3e2   : > { %4640 = vmatpush1.bf16.msra.mxu1 %v5432_v40  ;;  %v1449_v40 = vld [vmem:[%s6366_s21 + $0xa90] sm:$0xff] }
 0x3e3   : > { %4804 = vmatpush1.bf16.msra.mxu0 %v5434_v41  ;;  %4641 = vmatprep.subr.bf16.mxu1 %v5441_v43  ;;  %v1453_v41 = vld [vmem:[%s6366_s21 + $0xab0] sm:$0xff]  ;;  %v1450_v43 = vld [vmem:[%s6366_s21 + $0xa98] sm:$0xff] }
 0x3e4   : > { %4805 = vmatprep.subr.bf16.mxu0 %v5443_v37  ;;  %v1454_v37 = vld [vmem:[%s6366_s21 + $0xab8] sm:$0xff]  ;;  %v5497_v46 = vcombine.high %v1449_v40, %v1453_v41  ;;  %v5496_v54 = vcombine.low %v1449_v40, %v1453_v41 }
 0x3e5   : > { %v5499_v47 = vcombine.high %v1450_v43, %v1454_v37  ;;  %v5498_v60 = vcombine.low %v1450_v43, %v1454_v37 }
 0x3e6   : > { %4642 = vmatpush1.bf16.msra.mxu1 %v5440_v31  ;;  %v1457_v31 = vld [vmem:[%s6366_s21 + $0xad0] sm:$0xff] }
 0x3e7   : > { %4806 = vmatpush1.bf16.msra.mxu0 %v5442_v48  ;;  %4643 = vmatprep.subr.bf16.mxu1 %v5449_v50  ;;  %v1461_v48 = vld [vmem:[%s6366_s21 + $0xaf0] sm:$0xff]  ;;  %v1458_v50 = vld [vmem:[%s6366_s21 + $0xad8] sm:$0xff] }
 0x3e8   : > { %4807 = vmatprep.subr.bf16.mxu0 %v5451_v53  ;;  %v1462_v53 = vld [vmem:[%s6366_s21 + $0xaf8] sm:$0xff]  ;;  %v5505_v61 = vcombine.high %v1457_v31, %v1461_v48  ;;  %v5504_v3 = vcombine.low %v1457_v31, %v1461_v48 }
 0x3e9   : > { %v5507_v62 = vcombine.high %v1458_v50, %v1462_v53  ;;  %v5506_v4 = vcombine.low %v1458_v50, %v1462_v53  ;;  %v1510_v31 = vld [vmem:[%s6366_s21 + $0xc78] sm:$0xff]  ;;  %v1513_v53 = vld [vmem:[%s6366_s21 + $0xc90] sm:$0xff] }
 0x3ea   : > { %4644 = vmatpush1.bf16.msra.mxu1 %v5448_v0  ;;  %v1465_v0 = vld [vmem:[%s6366_s21 + $0xb10] sm:$0xff] }
 0x3eb   : > { %4808 = vmatpush1.bf16.msra.mxu0 %v5450_v52  ;;  %4645 = vmatprep.subr.bf16.mxu1 %v5457_v1  ;;  %v1469_v52 = vld [vmem:[%s6366_s21 + $0xb30] sm:$0xff]  ;;  %v1466_v1 = vld [vmem:[%s6366_s21 + $0xb18] sm:$0xff] }
 0x3ec   : > { %4809 = vmatprep.subr.bf16.mxu0 %v5459_v2  ;;  %v1470_v2 = vld [vmem:[%s6366_s21 + $0xb38] sm:$0xff]  ;;  %v5513_v5 = vcombine.high %v1465_v0, %v1469_v52  ;;  %v5512_v9 = vcombine.low %v1465_v0, %v1469_v52 }
 0x3ed   : > { %v5515_v56 = vcombine.high %v1466_v1, %v1470_v2  ;;  %v5514_v51 = vcombine.low %v1466_v1, %v1470_v2 }
 0x3ee   : > { %4646 = vmatpush1.bf16.msra.mxu1 %v5456_v6  ;;  %v1473_v6 = vld [vmem:[%s6366_s21 + $0xb50] sm:$0xff] }
 0x3ef   : > { %4810 = vmatpush1.bf16.msra.mxu0 %v5458_v32  ;;  %4647 = vmatprep.subr.bf16.mxu1 %v5465_v8  ;;  %v1477_v32 = vld [vmem:[%s6366_s21 + $0xb70] sm:$0xff]  ;;  %v1474_v8 = vld [vmem:[%s6366_s21 + $0xb58] sm:$0xff] }
 0x3f0   : > { %4811 = vmatprep.subr.bf16.mxu0 %v5467_v63  ;;  %v1478_v63 = vld [vmem:[%s6366_s21 + $0xb78] sm:$0xff]  ;;  %v5521_v10 = vcombine.high %v1473_v6, %v1477_v32  ;;  %v5520_v15 = vcombine.low %v1473_v6, %v1477_v32 }
 0x3f1   : > { %v5523_v11 = vcombine.high %v1474_v8, %v1478_v63  ;;  %v5522_v16 = vcombine.low %v1474_v8, %v1478_v63  ;;  %v1529_v8 = vld [vmem:[%s6366_s21 + $0xd10] sm:$0xff] }
 0x3f2   : > { %4648 = vmatpush1.bf16.msra.mxu1 %v5464_v12  ;;  %v1481_v12 = vld [vmem:[%s6366_s21 + $0xb90] sm:$0xff] }
 0x3f3   : > { %4812 = vmatpush1.bf16.msra.mxu0 %v5466_v13  ;;  %4649 = vmatprep.subr.bf16.mxu1 %v5473_v14  ;;  %v1485_v13 = vld [vmem:[%s6366_s21 + $0xbb0] sm:$0xff]  ;;  %v1482_v14 = vld [vmem:[%s6366_s21 + $0xb98] sm:$0xff] }
 0x3f4   : > { %4813 = vmatprep.subr.bf16.mxu0 %v5475_v59  ;;  %v1486_v59 = vld [vmem:[%s6366_s21 + $0xbb8] sm:$0xff]  ;;  %v5529_v19 = vcombine.high %v1481_v12, %v1485_v13  ;;  %v5528_v25 = vcombine.low %v1481_v12, %v1485_v13  ;;  %v1533_v63 = vld [vmem:[%s6366_s21 + $0xd30] sm:$0xff] }
 0x3f5   : > { %v5531_v20 = vcombine.high %v1482_v14, %v1486_v59  ;;  %v5530_v55 = vcombine.low %v1482_v14, %v1486_v59  ;;  %v5577_v12 = vcombine.high %v1529_v8, %v1533_v63  ;;  %v1537_v14 = vld [vmem:[%s6366_s21 + $0xd50] sm:$0xff] }
 0x3f6   : > { %4650 = vmatpush1.bf16.msra.mxu1 %v5472_v21  ;;  %v1489_v21 = vld [vmem:[%s6366_s21 + $0xbd0] sm:$0xff] }
 0x3f7   : > { %4814 = vmatpush1.bf16.msra.mxu0 %v5474_v39  ;;  %4651 = vmatprep.subr.bf16.mxu1 %v5481_v23  ;;  %v1493_v39 = vld [vmem:[%s6366_s21 + $0xbf0] sm:$0xff]  ;;  %v1490_v23 = vld [vmem:[%s6366_s21 + $0xbd8] sm:$0xff] }
 0x3f8   : > { %4815 = vmatprep.subr.bf16.mxu0 %v5483_v24  ;;  %v1494_v24 = vld [vmem:[%s6366_s21 + $0xbf8] sm:$0xff]  ;;  %v5537_v26 = vcombine.high %v1489_v21, %v1493_v39  ;;  %v5536_v40 = vcombine.low %v1489_v21, %v1493_v39  ;;  %v1541_v59 = vld [vmem:[%s6366_s21 + $0xd70] sm:$0xff] }
 0x3f9   : > { %v5539_v58 = vcombine.high %v1490_v23, %v1494_v24  ;;  %v5538_v41 = vcombine.low %v1490_v23, %v1494_v24  ;;  %v5585_v39 = vcombine.high %v1537_v14, %v1541_v59  ;;  %v6094_v23 = vmov 1983009808  }
 0x3fa   : > { %4652 = vmatpush1.bf16.msra.mxu1 %v5480_v28  ;;  %v1497_v28 = vld [vmem:[%s6366_s21 + $0xc10] sm:$0xff]  ;;  %v4900_v24 = vunpack.c.l.s4 %v6094_v23 }
 0x3fb   : > { %4816 = vmatpush1.bf16.msra.mxu0 %v5482_v36  ;;  %4653 = vmatprep.subr.bf16.mxu1 %v5489_v38  ;;  %v1501_v36 = vld [vmem:[%s6366_s21 + $0xc30] sm:$0xff]  ;;  %v1498_v38 = vld [vmem:[%s6366_s21 + $0xc18] sm:$0xff] }
 0x3fc   : > { %4817 = vmatprep.subr.bf16.mxu0 %v5491_v35  ;;  %v1502_v35 = vld [vmem:[%s6366_s21 + $0xc38] sm:$0xff]  ;;  %v5545_v43 = vcombine.high %v1497_v28, %v1501_v36 }
 0x3fd   : > { %v5547_v37 = vcombine.high %v1498_v38, %v1502_v35  ;;  %v5546_v48 = vcombine.low %v1498_v38, %v1502_v35 }
 0x3fe   : > { %4654 = vmatpush1.bf16.msra.mxu1 %v5488_v44  ;;  %v1505_v44 = vld [vmem:[%s6366_s21 + $0xc50] sm:$0xff] }
 0x3ff   : > { %4818 = vmatpush1.bf16.msra.mxu0 %v5490_v45  ;;  %4655 = vmatprep.subr.bf16.mxu1 %v5497_v46  ;;  %v1509_v45 = vld [vmem:[%s6366_s21 + $0xc70] sm:$0xff]  ;;  %v5544_v46 = vcombine.low %v1497_v28, %v1501_v36  ;;  %v1546_v28 = vld [vmem:[%s6366_s21 + $0xd98] sm:$0xff] }
 0x400   : > { %4819 = vmatprep.subr.bf16.mxu0 %v5499_v47  ;;  %v1506_v47 = vld [vmem:[%s6366_s21 + $0xc58] sm:$0xff]  ;;  %v5553_v50 = vcombine.high %v1505_v44, %v1509_v45  ;;  %v5552_v0 = vcombine.low %v1505_v44, %v1509_v45  ;;  %v1553_v44 = vld [vmem:[%s6366_s21 + $0xdd0] sm:$0xff] }
 0x401   : > { %v5554_v52 = vcombine.low %v1506_v47, %v1510_v31  ;;  %v1550_v36 = vld [vmem:[%s6366_s21 + $0xdb8] sm:$0xff]  ;;  %v1557_v45 = vld [vmem:[%s6366_s21 + $0xdf0] sm:$0xff] }
 0x402   : > { %4656 = vmatpush1.bf16.msra.mxu1 %v5496_v54  ;;  %v1517_v54 = vld [vmem:[%s6366_s21 + $0xcb0] sm:$0xff] }
 0x403   : > { %4820 = vmatpush1.bf16.msra.mxu0 %v5498_v60  ;;  %4657 = vmatprep.subr.bf16.mxu1 %v5505_v61  ;;  %v5555_v60 = vcombine.high %v1506_v47, %v1510_v31  ;;  %v1514_v61 = vld [vmem:[%s6366_s21 + $0xc98] sm:$0xff]  ;;  %v5561_v1 = vcombine.high %v1513_v53, %v1517_v54 }
 0x404   : > { %4821 = vmatprep.subr.bf16.mxu0 %v5507_v62  ;;  %v1518_v62 = vld [vmem:[%s6366_s21 + $0xcb8] sm:$0xff] }
 0x405   : > { %v5563_v2 = vcombine.high %v1514_v61, %v1518_v62  ;;  %v5562_v6 = vcombine.low %v1514_v61, %v1518_v62 }
 0x406   : > { %4658 = vmatpush1.bf16.msra.mxu1 %v5504_v3  ;;  %v1521_v3 = vld [vmem:[%s6366_s21 + $0xcd0] sm:$0xff] }
 0x407   : > { %4822 = vmatpush1.bf16.msra.mxu0 %v5506_v4  ;;  %4659 = vmatprep.subr.bf16.mxu1 %v5513_v5  ;;  %v1525_v4 = vld [vmem:[%s6366_s21 + $0xcf0] sm:$0xff]  ;;  %v1526_v5 = vld [vmem:[%s6366_s21 + $0xcf8] sm:$0xff] }
 0x408   : > { %4823 = vmatprep.subr.bf16.mxu0 %v5515_v56  ;;  %v5560_v56 = vcombine.low %v1513_v53, %v1517_v54  ;;  %v5569_v32 = vcombine.high %v1521_v3, %v1525_v4 }
 0x40a   : > { %4660 = vmatpush1.bf16.msra.mxu1 %v5512_v9  ;;  %v1530_v9 = vld [vmem:[%s6366_s21 + $0xd18] sm:$0xff] }
 0x40b   : > { %4824 = vmatpush1.bf16.msra.mxu0 %v5514_v51  ;;  %4661 = vmatprep.subr.bf16.mxu1 %v5521_v10  ;;  %v1534_v51 = vld [vmem:[%s6366_s21 + $0xd38] sm:$0xff]  ;;  %v5568_v10 = vcombine.low %v1521_v3, %v1525_v4  ;;  %v5601_v3 = vcombine.high %v1553_v44, %v1557_v45 }
 0x40c   : > { %4825 = vmatprep.subr.bf16.mxu0 %v5523_v11  ;;  %v5579_v13 = vcombine.high %v1530_v9, %v1534_v51  ;;  %v5578_v21 = vcombine.low %v1530_v9, %v1534_v51  ;;  %v1566_v9 = vld [vmem:[%s6366_s21 + $0xe38] sm:$0xff] }
 0x40e   : > { %4662 = vmatpush1.bf16.msra.mxu1 %v5520_v15  ;;  %v1538_v15 = vld [vmem:[%s6366_s21 + $0xd58] sm:$0xff] }
 0x40f   : > { %4826 = vmatpush1.bf16.msra.mxu0 %v5522_v16  ;;  %4663 = vmatprep.subr.bf16.mxu1 %v5529_v19  ;;  %v1542_v16 = vld [vmem:[%s6366_s21 + $0xd78] sm:$0xff]  ;;  %v5576_v19 = vcombine.low %v1529_v8, %v1533_v63 }
 0x410   : > { %4827 = vmatprep.subr.bf16.mxu0 %v5531_v20  ;;  %v6951_v20 = vld [vmem:[%s345_s9] sm:$0xff]  ;;  %v1562_v63 = vld [vmem:[%s6366_s21 + $0xe18] sm:$0xff] }
 0x411   : > { %v1636_v38 = vrot.slane %v6951_v20, %v581_v49  ;;  %v1632_v35 = vrot.slane %v6951_v20, %v577_v33  ;;  %v5595_v33 = vcombine.high %v1546_v28, %v1550_v36 }
 0x412   : > { %4664 = vmatpush1.bf16.msra.mxu1 %v5528_v25  ;;  %v5587_v25 = vcombine.high %v1538_v15, %v1542_v16 }
 0x413   : > { %4828 = vmatpush1.bf16.msra.mxu0 %v5530_v55  ;;  %4665 = vmatprep.subr.bf16.mxu1 %v5537_v26  ;;  %v1545_v55 = vld [vmem:[%s6366_s21 + $0xd90] sm:$0xff] }
 0x414   : > { %4829 = vmatprep.subr.bf16.mxu0 %v5539_v58  ;;  %v1549_v26 = vld [vmem:[%s6366_s21 + $0xdb0] sm:$0xff]  ;;  %v1628_v58 = vrot.slane %v6951_v20, %v573_v30  ;;  %v1640_v30 = vrot.slane %v6951_v20, %v585_v34 }
 0x415   : > { %v5593_v49 = vcombine.high %v1545_v55, %v1549_v26  ;;  %v5592_v61 = vcombine.low %v1545_v55, %v1549_v26 }
 0x416   : > { %4666 = vmatpush1.bf16.msra.mxu1 %v5536_v40  ;;  %v5584_v40 = vcombine.low %v1537_v14, %v1541_v59  ;;  %v5611_v59 = vcombine.high %v1562_v63, %v1566_v9 }
 0x417   : > { %4830 = vmatpush1.bf16.msra.mxu0 %v5538_v41  ;;  %4676 = vmatprep.subr.bf16.mxu1 %v5545_v43  ;;  %v5586_v41 = vcombine.low %v1538_v15, %v1542_v16  ;;  %v1569_v15 = vld [vmem:[%s6366_s21 + $0xe50] sm:$0xff] }
 0x418   : > { %4840 = vmatprep.subr.bf16.mxu0 %v5547_v37  ;;  %v4901_v37 = vunpack.c.0.s8 %v4900_v24  ;;  %v1573_v16 = vld [vmem:[%s6366_s21 + $0xe70] sm:$0xff] }
 0x419   : > { %4668 = vmatmul.mubr.bf16.vlgmr.msra.gmra.mrb[12].mxu1 %v6647_v17  ;;  %v5617_v55 = vcombine.high %v1569_v15, %v1573_v16 }
 0x41a   : > { %4832 = vmatmul.mubr.bf16.vlgmr.msra.gmra.mrb[16].mxu0 %v6647_v17  ;;  %4677 = vmatpush1.bf16.msra.mxu1 %v5544_v46  ;;  %v1522_v17 = vld [vmem:[%s6366_s21 + $0xcd8] sm:$0xff] }
 0x41b   : > { %4708 = vmatprep.mubr.bf16.mxu1 %v6651_v22  ;;  %4841 = vmatpush1.bf16.msra.mxu0 %v5546_v48  ;;  %v5570_v11 = vcombine.low %v1522_v17, %v1526_v5  ;;  %v1554_v48 = vld [vmem:[%s6366_s21 + $0xdd8] sm:$0xff] }
 0x41c   : > { %4872 = vmatprep.mubr.bf16.mxu0 %v6651_v22  ;;  %4678 = vmatprep.subr.bf16.mxu1 %v5553_v50  ;;  %v5571_v22 = vcombine.high %v1522_v17, %v1526_v5  ;;  %v1558_v50 = vld [vmem:[%s6366_s21 + $0xdf8] sm:$0xff]  ;;  %v6987_v5 = vsub.s32 %v4901_v37, %v6449_v29 }
 0x41d   : > { %4842 = vmatprep.subr.bf16.mxu0 %v5555_v60  ;;  %v1586_v37 = vld [vmem:[%s6366_s21 + $0xed8] sm:$0xff] }
 0x41e   : > { %4679 = vmatpush1.bf16.msra.mxu1 %v5552_v0 }
 0x41f   : > { %4843 = vmatpush1.bf16.msra.mxu0 %v5554_v52  ;;  %4680 = vmatprep.subr.bf16.mxu1 %v5561_v1 }
 0x420   : > { %4844 = vmatprep.subr.bf16.mxu0 %v5563_v2  ;;  %v5594_v2 = vcombine.low %v1546_v28, %v1550_v36  ;;  %v1581_v28 = vld [vmem:[%s6366_s21 + $0xeb0] sm:$0xff]  ;;  %v1578_v36 = vld [vmem:[%s6366_s21 + $0xe98] sm:$0xff] }
 0x422   : > { %4681 = vmatpush1.bf16.msra.mxu1 %v5560_v56 }
 0x423   : > { %4845 = vmatpush1.bf16.msra.mxu0 %v5562_v6  ;;  %4682 = vmatprep.subr.bf16.mxu1 %v5569_v32  ;;  %v5603_v6 = vcombine.high %v1554_v48, %v1558_v50  ;;  %v1561_v32 = vld [vmem:[%s6366_s21 + $0xe10] sm:$0xff] }
 0x424   : > { %4846 = vmatprep.subr.bf16.mxu0 %v5571_v22  ;;  %v1565_v22 = vld [vmem:[%s6366_s21 + $0xe30] sm:$0xff] }
 0x425   : > { %v5608_v23 = vcombine.low %v1561_v32, %v1565_v22 }
 0x426   : > { %4683 = vmatpush1.bf16.msra.mxu1 %v5568_v10  ;;  %v5600_v10 = vcombine.low %v1553_v44, %v1557_v45 }
 0x427   : > { %4847 = vmatpush1.bf16.msra.mxu0 %v5570_v11  ;;  %4684 = vmatprep.subr.bf16.mxu1 %v5577_v12  ;;  %v5602_v12 = vcombine.low %v1554_v48, %v1558_v50  ;;  %v1597_v48 = vld [vmem:[%s6366_s21 + $0xf30] sm:$0xff]  ;;  %v1594_v50 = vld [vmem:[%s6366_s21 + $0xf18] sm:$0xff] }
 0x428   : > { %4848 = vmatprep.subr.bf16.mxu0 %v5579_v13  ;;  %v5609_v13 = vcombine.high %v1561_v32, %v1565_v22  ;;  %v1610_v32 = vld [vmem:[%s6366_s21 + $0xf98] sm:$0xff] }
 0x429   : > { %v1614_v22 = vld [vmem:[%s6366_s21 + $0xfb8] sm:$0xff] }
 0x42a   : > { %4685 = vmatpush1.bf16.msra.mxu1 %v5576_v19 }
 0x42b   : > { %4849 = vmatpush1.bf16.msra.mxu0 %v5578_v21  ;;  %4686 = vmatprep.subr.bf16.mxu1 %v5585_v39  ;;  %v1570_v21 = vld [vmem:[%s6366_s21 + $0xe58] sm:$0xff] }
 0x42c   : > { %v4382_v43 = vpop.f32.mrb[8].mxu1  ;;  %4850 = vmatprep.subr.bf16.mxu0 %v5587_v25  ;;  %v1574_v39 = vld [vmem:[%s6366_s21 + $0xe78] sm:$0xff]  ;;  %v5610_v25 = vcombine.low %v1562_v63, %v1566_v9 }
 0x42d   : > { %v5701_v46 = vadd.f32 %v4382_v43, %v1628_v58  ;;  %v4546_v47 = vpop.f32.mrb[12].mxu0  ;;  %v4384_v31 = vpop.f32.mrb[9].mxu1  ;;  %v5619_v26 = vcombine.high %v1570_v21, %v1574_v39  ;;  %v1577_v58 = vld [vmem:[%s6366_s21 + $0xe90] sm:$0xff] }
 0x42e   : > { %v5703_v53 = vadd.f32 %v4546_v47, %v1636_v38  ;;  %v5702_v54 = vadd.f32 %v4384_v31, %v1632_v35  ;;  %v4548_v60 = vpop.f32.mrb[13].mxu0  ;;  %v4386_v34 = vpop.f32.mrb[10].mxu1  ;;  %4687 = vmatpush1.bf16.msra.mxu1 %v5584_v40  ;;  %v1582_v38 = vld [vmem:[%s6366_s21 + $0xeb8] sm:$0xff]  ;;  %v5616_v35 = vcombine.low %v1569_v15, %v1573_v16  ;;  %v5618_v40 = vcombine.low %v1570_v21, %v1574_v39  ;;  %v1589_v43 = vld [vmem:[%s6366_s21 + $0xef0] sm:$0xff] }
 0x42f   : > { %v4881_v62 = vmax.f32 %v5701_v46, 0.0  ;;  %v5704_v0 = vadd.f32 %v4548_v60, %v1640_v30  ;;  %v4550_v52 = vpop.f32.mrb[14].mxu0  ;;  %4851 = vmatpush1.bf16.msra.mxu0 %v5586_v41  ;;  %v4387_v1 = vpop.f32.mrb[11].mxu1  ;;  %4688 = vmatprep.subr.bf16.mxu1 %v5593_v49  ;;  %v5625_v30 = vcombine.high %v1577_v58, %v1581_v28  ;;  %v5627_v41 = vcombine.high %v1578_v36, %v1582_v38  ;;  %v1585_v49 = vld [vmem:[%s6366_s21 + $0xed0] sm:$0xff] }
 0x430   : > { %v4883_v4 = vmax.f32 %v5703_v53, 0.0  ;;  %v4882_v17 = vmax.f32 %v5702_v54, 0.0  ;;  %v4551_v56 = vpop.f32.mrb[15].mxu0  ;;  %4852 = vmatprep.subr.bf16.mxu0 %v5595_v33  ;;  %v1590_v33 = vld [vmem:[%s6366_s21 + $0xef8] sm:$0xff]  ;;  %v5624_v44 = vcombine.low %v1577_v58, %v1581_v28  ;;  %v5626_v45 = vcombine.low %v1578_v36, %v1582_v38  ;;  %v1593_v31 = vld [vmem:[%s6366_s21 + $0xf10] sm:$0xff] }
 0x431   : > { %v4884_v8 = vmax.f32 %v5704_v0, 0.0  ;;  %v5633_v46 = vcombine.high %v1585_v49, %v1589_v43  ;;  %v5635_v47 = vcombine.high %v1586_v37, %v1590_v33  ;;  %v1598_v53 = vld [vmem:[%s6366_s21 + $0xf38] sm:$0xff]  ;;  %v5632_v54 = vcombine.low %v1585_v49, %v1589_v43  ;;  %v1605_v0 = vld [vmem:[%s6366_s21 + $0xf70] sm:$0xff] }
 0x432   : > { %v4897_v51 = vcombine.low %v4881_v62, %v4882_v17  ;;  %4689 = vmatpush1.bf16.msra.mxu1 %v5592_v61  ;;  %v5634_v60 = vcombine.low %v1586_v37, %v1590_v33  ;;  %v5641_v34 = vcombine.high %v1593_v31, %v1597_v48  ;;  %v5643_v61 = vcombine.high %v1594_v50, %v1598_v53  ;;  %v1601_v62 = vld [vmem:[%s6366_s21 + $0xf50] sm:$0xff]  ;;  %v1602_v52 = vld [vmem:[%s6366_s21 + $0xf58] sm:$0xff] }
 0x433   : > { %v4898_v11 = vcombine.low %v4883_v4, %v4884_v8  ;;  %4853 = vmatpush1.bf16.msra.mxu0 %v5594_v2  ;;  %4690 = vmatprep.subr.bf16.mxu1 %v5601_v3  ;;  %v1606_v1 = vld [vmem:[%s6366_s21 + $0xf78] sm:$0xff]  ;;  %v5640_v2 = vcombine.low %v1593_v31, %v1597_v48  ;;  %v5642_v3 = vcombine.low %v1594_v50, %v1598_v53  ;;  %v1609_v56 = vld [vmem:[%s6366_s21 + $0xf90] sm:$0xff] }
 0x434   : > { %v4905_v14 = vrot.slane %v4897_v51, %v6987_v5  ;;  %4854 = vmatprep.subr.bf16.mxu0 %v5603_v6  ;;  %v5649_v4 = vcombine.high %v1601_v62, %v1605_v0  ;;  %v5651_v17 = vcombine.high %v1602_v52, %v1606_v1  ;;  %v1613_v6 = vld [vmem:[%s6366_s21 + $0xfb0] sm:$0xff]  ;;  %v5648_v8 = vcombine.low %v1601_v62, %v1605_v0 }
 0x435   : > { %v4912_v19 = vrot.slane %v4898_v11, %v6987_v5  ;;  %v5650_v63 = vcombine.low %v1602_v52, %v1606_v1  ;;  %v5657_v9 = vcombine.high %v1609_v56, %v1613_v6  ;;  %v5659_v51 = vcombine.high %v1610_v32, %v1614_v22  ;;  %v1621_v11 = vld [vmem:[%s6366_s21 + $0xff0] sm:$0xff] }
 0x436   : > { %4691 = vmatpush1.bf16.msra.mxu1 %v5600_v10  ;;  %v1617_v10 = vld [vmem:[%s6366_s21 + $0xfd0] sm:$0xff]  ;;  %v1644_v39 = vrot.slane %v6951_v20, %v589_v27 }
 0x437   : > { %v4913_v24 = vcombine.low %v4905_v14, %v4912_v19  ;;  %4855 = vmatpush1.bf16.msra.mxu0 %v5602_v12  ;;  %4692 = vmatprep.subr.bf16.mxu1 %v5609_v13  ;;  %v1618_v12 = vld [vmem:[%s6366_s21 + $0xfd8] sm:$0xff]  ;;  %v5656_v14 = vcombine.low %v1609_v56, %v1613_v6  ;;  %v5665_v15 = vcombine.high %v1617_v10, %v1621_v11 }
 0x438   : > { %4856 = vmatprep.subr.bf16.mxu0 %v5611_v59  ;;  %v1622_v13 = vld [vmem:[%s6366_s21 + $0xff8] sm:$0xff]  ;;  %v5658_v59 = vcombine.low %v1610_v32, %v1614_v22  ;;  %v5664_v19 = vcombine.low %v1617_v10, %v1621_v11 }
 0x439   : > { %4933 = vst [vmem:[%s7003_s16] sm:$0xff] %v4913_v24  ;;  %v5667_v16 = vcombine.high %v1618_v12, %v1622_v13  ;;  %v5666_v21 = vcombine.low %v1618_v12, %v1622_v13  ;;  %v1648_v24 = vrot.slane %v6951_v20, %v593_v57 }
 0x43a   : > { %4693 = vmatpush1.bf16.msra.mxu1 %v5608_v23  ;;  %v1652_v23 = vrot.slane %v6951_v20, %v597_v18 }
 0x43b   : > { %4857 = vmatpush1.bf16.msra.mxu0 %v5610_v25  ;;  %4694 = vmatprep.subr.bf16.mxu1 %v5617_v55  ;;  %v1656_v25 = vrot.slane %v6951_v20, %v601_v42 }
 0x43c   : > { %4858 = vmatprep.subr.bf16.mxu0 %v5619_v26 }
 0x43e   : > { %4695 = vmatpush1.bf16.msra.mxu1 %v5616_v35 }
 0x43f   : > { %4859 = vmatpush1.bf16.msra.mxu0 %v5618_v40  ;;  %4696 = vmatprep.subr.bf16.mxu1 %v5625_v30 }
 0x440   : > { %4860 = vmatprep.subr.bf16.mxu0 %v5627_v41 }
 0x442   : > { %4697 = vmatpush1.bf16.msra.mxu1 %v5624_v44 }
 0x443   : > { %4861 = vmatpush1.bf16.msra.mxu0 %v5626_v45  ;;  %4698 = vmatprep.subr.bf16.mxu1 %v5633_v46 }
 0x444   : > { %4862 = vmatprep.subr.bf16.mxu0 %v5635_v47 }
 0x446   : > { %4699 = vmatpush1.bf16.msra.mxu1 %v5632_v54 }
 0x447   : > { %4863 = vmatpush1.bf16.msra.mxu0 %v5634_v60  ;;  %4700 = vmatprep.subr.bf16.mxu1 %v5641_v34 }
 0x448   : > { %4864 = vmatprep.subr.bf16.mxu0 %v5643_v61 }
 0x44a   : > { %4701 = vmatpush1.bf16.msra.mxu1 %v5640_v2 }
 0x44b   : > { %4865 = vmatpush1.bf16.msra.mxu0 %v5642_v3  ;;  %4702 = vmatprep.subr.bf16.mxu1 %v5649_v4 }
 0x44c   : > { %4866 = vmatprep.subr.bf16.mxu0 %v5651_v17 }
 0x44e   : > { %4703 = vmatpush1.bf16.msra.mxu1 %v5648_v8 }
 0x44f   : > { %4867 = vmatpush1.bf16.msra.mxu0 %v5650_v63  ;;  %4704 = vmatprep.subr.bf16.mxu1 %v5657_v9 }
 0x450   : > { %4868 = vmatprep.subr.bf16.mxu0 %v5659_v51 }
 0x452   : > { %4705 = vmatpush1.bf16.msra.mxu1 %v5656_v14 }
 0x453   : > { %4869 = vmatpush1.bf16.msra.mxu0 %v5658_v59  ;;  %4706 = vmatprep.subr.bf16.mxu1 %v5665_v15 }
 0x454   : > { %4870 = vmatprep.subr.bf16.mxu0 %v5667_v16 }
 0x456   : > { %4707 = vmatpush1.bf16.msra.mxu1 %v5664_v19 }
 0x457   : > { %4871 = vmatpush1.bf16.msra.mxu0 %v5666_v21 }
 0x459   : > { %4709 = vmatmul.mubr.bf16.vlgmr.msra.gmra.mrb[12].mxu1 %v6723_v7 }
 0x45a   : > { %4873 = vmatmul.mubr.bf16.vlgmr.msra.gmra.mrb[16].mxu0 %v6723_v7 }
 0x52c   : > { %v4710_v55 = vpop.f32.mrb[12].mxu1 }
 0x52d   : > { %v5705_v26 = vadd.f32 %v4710_v55, %v1644_v39  ;;  %v4874_v58 = vpop.f32.mrb[16].mxu0  ;;  %v4712_v7 = vpop.f32.mrb[13].mxu1 }
 0x52e   : > { %v5707_v28 = vadd.f32 %v4874_v58, %v1652_v23  ;;  %v5706_v36 = vadd.f32 %v4712_v7, %v1648_v24  ;;  %v4876_v27 = vpop.f32.mrb[17].mxu0  ;;  %v4714_v38 = vpop.f32.mrb[14].mxu1 }
 0x52f   : > { %v4885_v35 = vmax.f32 %v5705_v26, 0.0  ;;  %v5708_v40 = vadd.f32 %v4876_v27, %v1656_v25  ;;  %v4878_v18 = vpop.f32.mrb[18].mxu0  ;;  %v4715_v30 = vpop.f32.mrb[15].mxu1 }
 0x530   : > { %v4887_v41 = vmax.f32 %v5707_v28, 0.0  ;;  %v4886_v49 = vmax.f32 %v5706_v36, 0.0  ;;  %v4879_v57 = vpop.f32.mrb[19].mxu0 }
 0x531   : > { %v4888_v43 = vmax.f32 %v5708_v40, 0.0 }
 0x532   : > { %v4914_v29 = vcombine.low %v4885_v35, %v4886_v49 }
 0x533   : > { %v4915_v37 = vcombine.low %v4887_v41, %v4888_v43 }
 0x534   : > { %v4922_v42 = vrot.slane %v4914_v29, %v6987_v5 }
 0x535   : > { %v4929_v20 = vrot.slane %v4915_v37, %v6987_v5 }
 0x537   : > { %v4930_v33 = vcombine.low %v4922_v42, %v4929_v20 }
 0x539   : > { %4934 = vst [vmem:[%s7003_s16 + $0x8] sm:$0xff] %v4930_v33 }
 0x53a PF: > { %s7103_s27 = sld [smem:[#allocation15_spill]]  ;;  %s7104_s19 = sld [smem:[#allocation16_spill]] }
 0x53b   : > { %s7105_s24 = smov %s6070_s25  ;;  %s7106_s25 = smov %s6074_s26 }
 0x540   : > { %p17_p1 = scmp.ge.s32.totalorder %s7103_s27, 10   ;;  %s7107_s26 = smov %s7104_s19 }
 0x542   :  { %19 = sbr.rel (!%p17_p1) target bundleno = 7 (0x7), region = 114 }
 0x549   :  { %4957 = vsyncpa [#allocation3], 1 }
 0x54a   :  { %4959 = vsyncpa [#allocation3 + $0x1], 1 }
 0x54b   :  { %4960 = vsyncpa [#allocation5], 1 }
 0x54c   :  { %4961 = vsyncpa [#allocation8], 1 }

// kernel: forward.5
= control target key start
LH: loop header
LB: loop body
LE: loop exit
PB: predicated region body
PF: predicated region fallthrough
CT: control target
= control target key end

     0   :  { %s3278_s15 = smov 0   ;;  %s3659_s0 = inlined_call_operand.vmem [shape: bf16[4,32,2048], index: 0, kind: input, shape index: {}]   ;;  %s3660_s1 = inlined_call_operand.vmem [shape: bf16[4,2048,256], index: 1, kind: input, shape index: {}]   ;;  %s3661_s2 = inlined_call_operand.vmem [shape: f32[1,256], index: 2, kind: input, shape index: {}]   ;;  %s3662_s3 = inlined_call_operand.vmem [shape: f32[1,256], index: 3, kind: input, shape index: {}]   ;;  %s3663_s4 = inlined_call_operand.vmem [shape: f32[4,32,256], index: 4, kind: output, shape index: {}]  }
   0x1 LB: > { %s2493_s16 = sadd.s32 4294967295, %s3251_s15   ;;  %p2497_p0 = scmp.ge.s32.totalorder %s3251_s15, 1  ;;  %s3251_s15 = sphi %s3278_s15, %s14_s15  }
   0x2   : > { %p172_p1 = scmp.lt.s32.totalorder %s3251_s15, 5 }
   0x4   : > { %p173_p2 = pnand %p2497_p0, %p172_p1 }
   0x5   : > { %p203_p3 = scmp.lt.s32.totalorder (!%p173_p2), %s2493_s16, 3 }
   0x6   : > { %176 = sbr.rel (%p173_p2) target bundleno = 506 (0x1fa), region = 36 }
   0xd   : > { %s3665_s16 = smov (!%p203_p3, %s2493_s16), 3 }
   0xe   : > { %s2795_s17 = sshll.u32 %s3665_s16, 11  ;;  %s2794_s21 = sshll.u32 %s3665_s16, 8 }
   0xf   : > { %s3292_s20 = scalar_lea.vmem %s3660_s1, %s2795_s17  ;;  %s3342_s24 = scalar_lea.vmem %s3659_s0, %s2794_s21 }
  0x10   : > { %v2861_v0 = vld [vmem:[%s3292_s20 + $0x4] ss:$8 sps:$4 sm:$0xff]   ;;  %v2865_v2 = vld [vmem:[%s3292_s20] ss:$8 sps:$4 sm:$0xff]   ;;  %v2867_v4 = vld [vmem:[%s3292_s20 + $0x14] ss:$8 sps:$4 sm:$0xff]  }
  0x11   : > { %v2863_v1 = vld [vmem:[%s3292_s20 + $0x404] ss:$8 sps:$4 sm:$0xff]   ;;  %1946 = vmatprep.subr.bf16.mxu1 %v2861_v0  ;;  %v2866_v3 = vld [vmem:[%s3292_s20 + $0x400] ss:$8 sps:$4 sm:$0xff]   ;;  %v2869_v5 = vld [vmem:[%s3292_s20 + $0x414] ss:$8 sps:$4 sm:$0xff]  }
  0x12   : > { %2158 = vmatprep.subr.bf16.mxu0 %v2863_v1  ;;  %1947 = vmatpush1.bf16.msra.mxu1 %v2865_v2  ;;  %v2871_v6 = vld [vmem:[%s3292_s20 + $0x10] ss:$8 sps:$4 sm:$0xff]   ;;  %v2873_v8 = vld [vmem:[%s3292_s20 + $0x24] ss:$8 sps:$4 sm:$0xff]   ;;  %v2877_v10 = vld [vmem:[%s3292_s20 + $0x20] ss:$8 sps:$4 sm:$0xff]  }
  0x13   : > { %2159 = vmatpush1.bf16.msra.mxu0 %v2866_v3  ;;  %1948 = vmatprep.subr.bf16.mxu1 %v2867_v4  ;;  %v2872_v7 = vld [vmem:[%s3292_s20 + $0x410] ss:$8 sps:$4 sm:$0xff]   ;;  %v2875_v9 = vld [vmem:[%s3292_s20 + $0x424] ss:$8 sps:$4 sm:$0xff]   ;;  %v2878_v11 = vld [vmem:[%s3292_s20 + $0x420] ss:$8 sps:$4 sm:$0xff]  }
  0x14   : > { %2160 = vmatprep.subr.bf16.mxu0 %v2869_v5  ;;  %v2879_v12 = vld [vmem:[%s3292_s20 + $0x34] ss:$8 sps:$4 sm:$0xff]   ;;  %v2883_v14 = vld [vmem:[%s3292_s20 + $0x30] ss:$8 sps:$4 sm:$0xff]   ;;  %v2885_v16 = vld [vmem:[%s3292_s20 + $0x44] ss:$8 sps:$4 sm:$0xff]  }
  0x15   : > { %v2881_v13 = vld [vmem:[%s3292_s20 + $0x434] ss:$8 sps:$4 sm:$0xff]   ;;  %v2884_v15 = vld [vmem:[%s3292_s20 + $0x430] ss:$8 sps:$4 sm:$0xff]   ;;  %v2887_v17 = vld [vmem:[%s3292_s20 + $0x444] ss:$8 sps:$4 sm:$0xff]  }
  0x16   : > { %1949 = vmatpush1.bf16.msra.mxu1 %v2871_v6  ;;  %v2889_v18 = vld [vmem:[%s3292_s20 + $0x40] ss:$8 sps:$4 sm:$0xff]   ;;  %v2891_v20 = vld [vmem:[%s3292_s20 + $0x54] ss:$8 sps:$4 sm:$0xff]   ;;  %v2895_v22 = vld [vmem:[%s3292_s20 + $0x50] ss:$8 sps:$4 sm:$0xff]  }
  0x17   : > { %2161 = vmatpush1.bf16.msra.mxu0 %v2872_v7  ;;  %1950 = vmatprep.subr.bf16.mxu1 %v2873_v8  ;;  %v2890_v19 = vld [vmem:[%s3292_s20 + $0x440] ss:$8 sps:$4 sm:$0xff]   ;;  %v2893_v21 = vld [vmem:[%s3292_s20 + $0x454] ss:$8 sps:$4 sm:$0xff]   ;;  %v2896_v23 = vld [vmem:[%s3292_s20 + $0x450] ss:$8 sps:$4 sm:$0xff]  }
  0x18   : > { %2162 = vmatprep.subr.bf16.mxu0 %v2875_v9  ;;  %v2897_v24 = vld [vmem:[%s3292_s20 + $0x64] ss:$8 sps:$4 sm:$0xff]   ;;  %v2901_v26 = vld [vmem:[%s3292_s20 + $0x60] ss:$8 sps:$4 sm:$0xff]   ;;  %v2903_v28 = vld [vmem:[%s3292_s20 + $0x74] ss:$8 sps:$4 sm:$0xff]  }
  0x19   : > { %v2899_v25 = vld [vmem:[%s3292_s20 + $0x464] ss:$8 sps:$4 sm:$0xff]   ;;  %v2902_v27 = vld [vmem:[%s3292_s20 + $0x460] ss:$8 sps:$4 sm:$0xff]   ;;  %v2905_v29 = vld [vmem:[%s3292_s20 + $0x474] ss:$8 sps:$4 sm:$0xff]  }
  0x1a   : > { %1951 = vmatpush1.bf16.msra.mxu1 %v2877_v10  ;;  %v2907_v30 = vld [vmem:[%s3292_s20 + $0x70] ss:$8 sps:$4 sm:$0xff]   ;;  %v2909_v32 = vld [vmem:[%s3292_s20 + $0x84] ss:$8 sps:$4 sm:$0xff]   ;;  %v2913_v34 = vld [vmem:[%s3292_s20 + $0x80] ss:$8 sps:$4 sm:$0xff]  }
  0x1b   : > { %2163 = vmatpush1.bf16.msra.mxu0 %v2878_v11  ;;  %1952 = vmatprep.subr.bf16.mxu1 %v2879_v12  ;;  %v2908_v31 = vld [vmem:[%s3292_s20 + $0x470] ss:$8 sps:$4 sm:$0xff]   ;;  %v2911_v33 = vld [vmem:[%s3292_s20 + $0x484] ss:$8 sps:$4 sm:$0xff]   ;;  %v2914_v35 = vld [vmem:[%s3292_s20 + $0x480] ss:$8 sps:$4 sm:$0xff]  }
  0x1c   : > { %2164 = vmatprep.subr.bf16.mxu0 %v2881_v13  ;;  %v2915_v36 = vld [vmem:[%s3292_s20 + $0x94] ss:$8 sps:$4 sm:$0xff]   ;;  %v2919_v38 = vld [vmem:[%s3292_s20 + $0x90] ss:$8 sps:$4 sm:$0xff]   ;;  %v2921_v40 = vld [vmem:[%s3292_s20 + $0xa4] ss:$8 sps:$4 sm:$0xff]  }
  0x1d   : > { %v2917_v37 = vld [vmem:[%s3292_s20 + $0x494] ss:$8 sps:$4 sm:$0xff]   ;;  %v2920_v39 = vld [vmem:[%s3292_s20 + $0x490] ss:$8 sps:$4 sm:$0xff]   ;;  %v2923_v41 = vld [vmem:[%s3292_s20 + $0x4a4] ss:$8 sps:$4 sm:$0xff]  }
  0x1e   : > { %1953 = vmatpush1.bf16.msra.mxu1 %v2883_v14  ;;  %v2925_v42 = vld [vmem:[%s3292_s20 + $0xa0] ss:$8 sps:$4 sm:$0xff]   ;;  %v2927_v44 = vld [vmem:[%s3292_s20 + $0xb4] ss:$8 sps:$4 sm:$0xff]   ;;  %v2931_v46 = vld [vmem:[%s3292_s20 + $0xb0] ss:$8 sps:$4 sm:$0xff]  }
  0x1f   : > { %2165 = vmatpush1.bf16.msra.mxu0 %v2884_v15  ;;  %1954 = vmatprep.subr.bf16.mxu1 %v2885_v16  ;;  %v2926_v43 = vld [vmem:[%s3292_s20 + $0x4a0] ss:$8 sps:$4 sm:$0xff]   ;;  %v2929_v45 = vld [vmem:[%s3292_s20 + $0x4b4] ss:$8 sps:$4 sm:$0xff]   ;;  %v2932_v47 = vld [vmem:[%s3292_s20 + $0x4b0] ss:$8 sps:$4 sm:$0xff]  }
  0x20   : > { %2166 = vmatprep.subr.bf16.mxu0 %v2887_v17  ;;  %v218_v48 = vld [vmem:[%s3342_s24] sm:$0xff]  ;;  %v2939_v58 = vld [vmem:[%s3292_s20 + $0xd4] ss:$8 sps:$4 sm:$0xff]   ;;  %v2943_v60 = vld [vmem:[%s3292_s20 + $0xd0] ss:$8 sps:$4 sm:$0xff]   ;;  %s2796_s29 = sshll.u32 %s3665_s16, 6 }
  0x21   : > { %v226_v49 = vld [vmem:[%s3342_s24 + $0x40] sm:$0xff]  ;;  %v2941_v59 = vld [vmem:[%s3292_s20 + $0x4d4] ss:$8 sps:$4 sm:$0xff]   ;;  %v2944_v61 = vld [vmem:[%s3292_s20 + $0x4d0] ss:$8 sps:$4 sm:$0xff]   ;;  %s3646_s6 = scalar_lea.vmem %s3663_s4, %s2796_s29 }
  0x22   : > { %1955 = vmatpush1.bf16.msra.mxu1 %v2889_v18  ;;  %v2933_v50 = vld [vmem:[%s3292_s20 + $0xc4] ss:$8 sps:$4 sm:$0xff]   ;;  %v2505_v52 = vcombine.high %v218_v48, %v226_v49  ;;  %v2937_v56 = vld [vmem:[%s3292_s20 + $0xc0] ss:$8 sps:$4 sm:$0xff]   ;;  %v2951_v2 = vld [vmem:[%s3292_s20 + $0xf4] ss:$8 sps:$4 sm:$0xff]   ;;  %v2504_v8 = vcombine.low %v218_v48, %v226_v49 }
  0x23   : > { %2167 = vmatpush1.bf16.msra.mxu0 %v2890_v19  ;;  %1956 = vmatprep.subr.bf16.mxu1 %v2891_v20  ;;  %v2935_v51 = vld [vmem:[%s3292_s20 + $0x4c4] ss:$8 sps:$4 sm:$0xff]   ;;  %v2938_v57 = vld [vmem:[%s3292_s20 + $0x4c0] ss:$8 sps:$4 sm:$0xff]   ;;  %v2953_v3 = vld [vmem:[%s3292_s20 + $0x4f4] ss:$8 sps:$4 sm:$0xff]  }
  0x24   : > { %2168 = vmatprep.subr.bf16.mxu0 %v2893_v21  ;;  %v222_v53 = vld [vmem:[%s3342_s24 + $0x20] sm:$0xff]  ;;  %1978 = vmatprep.mubr.bf16.mxu1 %v2505_v52  ;;  %v2955_v4 = vld [vmem:[%s3292_s20 + $0xf0] ss:$8 sps:$4 sm:$0xff]   ;;  %v2965_v12 = vld [vmem:[%s3292_s20 + $0x114] ss:$8 sps:$4 sm:$0xff]  }
  0x25   : > { %v230_v54 = vld [vmem:[%s3342_s24 + $0x60] sm:$0xff]  ;;  %v2956_v5 = vld [vmem:[%s3292_s20 + $0x4f0] ss:$8 sps:$4 sm:$0xff]   ;;  %v2968_v13 = vld [vmem:[%s3292_s20 + $0x514] ss:$8 sps:$4 sm:$0xff]  }
  0x26   : > { %1957 = vmatpush1.bf16.msra.mxu1 %v2895_v22  ;;  %v2513_v55 = vcombine.high %v222_v53, %v230_v54  ;;  %v2945_v62 = vld [vmem:[%s3292_s20 + $0xe4] ss:$8 sps:$4 sm:$0xff]   ;;  %v2949_v0 = vld [vmem:[%s3292_s20 + $0xe0] ss:$8 sps:$4 sm:$0xff]   ;;  %v2512_v10 = vcombine.low %v222_v53, %v230_v54  ;;  %v2963_v14 = vld [vmem:[%s3292_s20 + $0x110] ss:$8 sps:$4 sm:$0xff]  }
  0x27   : > { %2169 = vmatpush1.bf16.msra.mxu0 %v2896_v23  ;;  %1958 = vmatprep.subr.bf16.mxu1 %v2897_v24  ;;  %v2947_v63 = vld [vmem:[%s3292_s20 + $0x4e4] ss:$8 sps:$4 sm:$0xff]   ;;  %v2950_v1 = vld [vmem:[%s3292_s20 + $0x4e0] ss:$8 sps:$4 sm:$0xff]   ;;  %v2966_v15 = vld [vmem:[%s3292_s20 + $0x510] ss:$8 sps:$4 sm:$0xff]  }
  0x28   : > { %2170 = vmatprep.subr.bf16.mxu0 %v2899_v25  ;;  %2190 = vmatprep.mubr.bf16.mxu0 %v2513_v55  ;;  %v2959_v6 = vld [vmem:[%s3292_s20 + $0x104] ss:$8 sps:$4 sm:$0xff]   ;;  %v2957_v9 = vld [vmem:[%s3292_s20 + $0x100] ss:$8 sps:$4 sm:$0xff]   ;;  %v2977_v20 = vld [vmem:[%s3292_s20 + $0x134] ss:$8 sps:$4 sm:$0xff]  }
  0x29   : > { %v2962_v7 = vld [vmem:[%s3292_s20 + $0x504] ss:$8 sps:$4 sm:$0xff]   ;;  %v2960_v11 = vld [vmem:[%s3292_s20 + $0x500] ss:$8 sps:$4 sm:$0xff]   ;;  %v2980_v21 = vld [vmem:[%s3292_s20 + $0x534] ss:$8 sps:$4 sm:$0xff]  }
  0x2a   : > { %1959 = vmatpush1.bf16.msra.mxu1 %v2901_v26  ;;  %v2971_v16 = vld [vmem:[%s3292_s20 + $0x124] ss:$8 sps:$4 sm:$0xff]   ;;  %v2969_v18 = vld [vmem:[%s3292_s20 + $0x120] ss:$8 sps:$4 sm:$0xff]   ;;  %v2975_v22 = vld [vmem:[%s3292_s20 + $0x130] ss:$8 sps:$4 sm:$0xff]  }
  0x2b   : > { %2171 = vmatpush1.bf16.msra.mxu0 %v2902_v27  ;;  %1960 = vmatprep.subr.bf16.mxu1 %v2903_v28  ;;  %v2974_v17 = vld [vmem:[%s3292_s20 + $0x524] ss:$8 sps:$4 sm:$0xff]   ;;  %v2972_v19 = vld [vmem:[%s3292_s20 + $0x520] ss:$8 sps:$4 sm:$0xff]   ;;  %v2978_v23 = vld [vmem:[%s3292_s20 + $0x530] ss:$8 sps:$4 sm:$0xff]  }
  0x2c   : > { %2172 = vmatprep.subr.bf16.mxu0 %v2905_v29  ;;  %v2983_v24 = vld [vmem:[%s3292_s20 + $0x144] ss:$8 sps:$4 sm:$0xff]   ;;  %v2981_v26 = vld [vmem:[%s3292_s20 + $0x140] ss:$8 sps:$4 sm:$0xff]   ;;  %v2989_v28 = vld [vmem:[%s3292_s20 + $0x154] ss:$8 sps:$4 sm:$0xff]  }
  0x2d   : > { %v2986_v25 = vld [vmem:[%s3292_s20 + $0x544] ss:$8 sps:$4 sm:$0xff]   ;;  %v2984_v27 = vld [vmem:[%s3292_s20 + $0x540] ss:$8 sps:$4 sm:$0xff]   ;;  %v2992_v29 = vld [vmem:[%s3292_s20 + $0x554] ss:$8 sps:$4 sm:$0xff]  }
  0x2e   : > { %1961 = vmatpush1.bf16.msra.mxu1 %v2907_v30  ;;  %v234_v30 = vld [vmem:[%s3342_s24 + $0x80] sm:$0xff]  ;;  %v3411_v49 = vld [vmem:[%s3342_s24 + $0x28] sm:$0xff]  ;;  %v3002_v52 = vld [vmem:[%s3292_s20 + $0x570] ss:$8 sps:$4 sm:$0xff]  }
  0x2f   : > { %2173 = vmatpush1.bf16.msra.mxu0 %v2908_v31  ;;  %1962 = vmatprep.subr.bf16.mxu1 %v2909_v32  ;;  %v242_v31 = vld [vmem:[%s3342_s24 + $0xc0] sm:$0xff]  ;;  %v2987_v32 = vld [vmem:[%s3292_s20 + $0x150] ss:$8 sps:$4 sm:$0xff]  }
  0x30   : > { %2174 = vmatprep.subr.bf16.mxu0 %v2911_v33  ;;  %v2521_v33 = vcombine.high %v234_v30, %v242_v31  ;;  %v3007_v54 = vld [vmem:[%s3292_s20 + $0x184] ss:$8 sps:$4 sm:$0xff]  }
  0x31   : > { %v3010_v55 = vld [vmem:[%s3292_s20 + $0x584] ss:$8 sps:$4 sm:$0xff]  }
  0x32   : > { %1963 = vmatpush1.bf16.msra.mxu1 %v2913_v34  ;;  %v2990_v34 = vld [vmem:[%s3292_s20 + $0x550] ss:$8 sps:$4 sm:$0xff]  }
  0x33   : > { %2175 = vmatpush1.bf16.msra.mxu0 %v2914_v35  ;;  %1964 = vmatprep.subr.bf16.mxu1 %v2915_v36  ;;  %v238_v35 = vld [vmem:[%s3342_s24 + $0xa0] sm:$0xff] }
  0x34   : > { %2176 = vmatprep.subr.bf16.mxu0 %v2917_v37  ;;  %v246_v36 = vld [vmem:[%s3342_s24 + $0xe0] sm:$0xff]  ;;  %v2520_v37 = vcombine.low %v234_v30, %v242_v31  ;;  %v3061_v30 = vld [vmem:[%s3292_s20 + $0x214] ss:$8 sps:$4 sm:$0xff]  }
  0x35   : > { %v3064_v31 = vld [vmem:[%s3292_s20 + $0x614] ss:$8 sps:$4 sm:$0xff]  }
  0x36   : > { %1965 = vmatpush1.bf16.msra.mxu1 %v2919_v38  ;;  %v2995_v38 = vld [vmem:[%s3292_s20 + $0x164] ss:$8 sps:$4 sm:$0xff]  }
  0x37   : > { %2177 = vmatpush1.bf16.msra.mxu0 %v2920_v39  ;;  %1966 = vmatprep.subr.bf16.mxu1 %v2921_v40  ;;  %v2529_v39 = vcombine.high %v238_v35, %v246_v36  ;;  %v2528_v40 = vcombine.low %v238_v35, %v246_v36  ;;  %v3059_v36 = vld [vmem:[%s3292_s20 + $0x210] ss:$8 sps:$4 sm:$0xff]  }
  0x38   : > { %2178 = vmatprep.subr.bf16.mxu0 %v2923_v41  ;;  %v2998_v41 = vld [vmem:[%s3292_s20 + $0x564] ss:$8 sps:$4 sm:$0xff]  }
  0x3a   : > { %1967 = vmatpush1.bf16.msra.mxu1 %v2925_v42  ;;  %v2993_v42 = vld [vmem:[%s3292_s20 + $0x160] ss:$8 sps:$4 sm:$0xff]  }
  0x3b   : > { %2179 = vmatpush1.bf16.msra.mxu0 %v2926_v43  ;;  %1968 = vmatprep.subr.bf16.mxu1 %v2927_v44  ;;  %v2996_v43 = vld [vmem:[%s3292_s20 + $0x560] ss:$8 sps:$4 sm:$0xff]  }
  0x3c   : > { %2180 = vmatprep.subr.bf16.mxu0 %v2929_v45  ;;  %v3401_v44 = vld [vmem:[%s3342_s24 + $0x8] sm:$0xff] }
  0x3d   : > { %v3404_v45 = vld [vmem:[%s3342_s24 + $0x48] sm:$0xff] }
  0x3e   : > { %1969 = vmatpush1.bf16.msra.mxu1 %v2931_v46  ;;  %v3001_v46 = vld [vmem:[%s3292_s20 + $0x174] ss:$8 sps:$4 sm:$0xff]   ;;  %v2507_v48 = vcombine.high %v3401_v44, %v3404_v45 }
  0x3f   : > { %2181 = vmatpush1.bf16.msra.mxu0 %v2932_v47  ;;  %1970 = vmatprep.subr.bf16.mxu1 %v2933_v50  ;;  %v3004_v47 = vld [vmem:[%s3292_s20 + $0x574] ss:$8 sps:$4 sm:$0xff]   ;;  %v3414_v50 = vld [vmem:[%s3342_s24 + $0x68] sm:$0xff] }
  0x40   : > { %2182 = vmatprep.subr.bf16.mxu0 %v2935_v51  ;;  %v2999_v51 = vld [vmem:[%s3292_s20 + $0x170] ss:$8 sps:$4 sm:$0xff]   ;;  %v2515_v53 = vcombine.high %v3411_v49, %v3414_v50 }
  0x42   : > { %1971 = vmatpush1.bf16.msra.mxu1 %v2937_v56  ;;  %v3005_v56 = vld [vmem:[%s3292_s20 + $0x180] ss:$8 sps:$4 sm:$0xff]  }
  0x43   : > { %2183 = vmatpush1.bf16.msra.mxu0 %v2938_v57  ;;  %1972 = vmatprep.subr.bf16.mxu1 %v2939_v58  ;;  %v3008_v57 = vld [vmem:[%s3292_s20 + $0x580] ss:$8 sps:$4 sm:$0xff]   ;;  %v3013_v58 = vld [vmem:[%s3292_s20 + $0x194] ss:$8 sps:$4 sm:$0xff]  }
  0x44   : > { %2184 = vmatprep.subr.bf16.mxu0 %v2941_v59  ;;  %v3016_v59 = vld [vmem:[%s3292_s20 + $0x594] ss:$8 sps:$4 sm:$0xff]  }
  0x46   : > { %1973 = vmatpush1.bf16.msra.mxu1 %v2943_v60  ;;  %v3011_v60 = vld [vmem:[%s3292_s20 + $0x190] ss:$8 sps:$4 sm:$0xff]  }
  0x47   : > { %2185 = vmatpush1.bf16.msra.mxu0 %v2944_v61  ;;  %1974 = vmatprep.subr.bf16.mxu1 %v2945_v62  ;;  %v3014_v61 = vld [vmem:[%s3292_s20 + $0x590] ss:$8 sps:$4 sm:$0xff]   ;;  %v3019_v62 = vld [vmem:[%s3292_s20 + $0x1a4] ss:$8 sps:$4 sm:$0xff]  }
  0x48   : > { %2186 = vmatprep.subr.bf16.mxu0 %v2947_v63  ;;  %v3022_v63 = vld [vmem:[%s3292_s20 + $0x5a4] ss:$8 sps:$4 sm:$0xff]  }
  0x4a   : > { %1975 = vmatpush1.bf16.msra.mxu1 %v2949_v0  ;;  %v3017_v0 = vld [vmem:[%s3292_s20 + $0x1a0] ss:$8 sps:$4 sm:$0xff]  }
  0x4b   : > { %2187 = vmatpush1.bf16.msra.mxu0 %v2950_v1  ;;  %1976 = vmatprep.subr.bf16.mxu1 %v2951_v2  ;;  %v3020_v1 = vld [vmem:[%s3292_s20 + $0x5a0] ss:$8 sps:$4 sm:$0xff]   ;;  %v3025_v2 = vld [vmem:[%s3292_s20 + $0x1b4] ss:$8 sps:$4 sm:$0xff]  }
  0x4c   : > { %2188 = vmatprep.subr.bf16.mxu0 %v2953_v3  ;;  %v3028_v3 = vld [vmem:[%s3292_s20 + $0x5b4] ss:$8 sps:$4 sm:$0xff]  }
  0x4e   : > { %1977 = vmatpush1.bf16.msra.mxu1 %v2955_v4  ;;  %v3023_v4 = vld [vmem:[%s3292_s20 + $0x1b0] ss:$8 sps:$4 sm:$0xff]  }
  0x4f   : > { %2189 = vmatpush1.bf16.msra.mxu0 %v2956_v5  ;;  %1999 = vmatprep.subr.bf16.mxu1 %v2959_v6  ;;  %v3026_v5 = vld [vmem:[%s3292_s20 + $0x5b0] ss:$8 sps:$4 sm:$0xff]   ;;  %v3031_v6 = vld [vmem:[%s3292_s20 + $0x1c4] ss:$8 sps:$4 sm:$0xff]  }
  0x50   : > { %2211 = vmatprep.subr.bf16.mxu0 %v2962_v7  ;;  %v3034_v7 = vld [vmem:[%s3292_s20 + $0x5c4] ss:$8 sps:$4 sm:$0xff]  }
  0x51   : > { %1979 = vmatmul.mubr.bf16.vlgmr.msra.gmra.mrb[0].mxu1 %v2504_v8  ;;  %v3029_v8 = vld [vmem:[%s3292_s20 + $0x1c0] ss:$8 sps:$4 sm:$0xff]  }
  0x52   : > { %2191 = vmatmul.mubr.bf16.vlgmr.msra.gmra.mrb[0].mxu0 %v2512_v10  ;;  %2000 = vmatpush1.bf16.msra.mxu1 %v2957_v9  ;;  %v3032_v9 = vld [vmem:[%s3292_s20 + $0x5c0] ss:$8 sps:$4 sm:$0xff]   ;;  %v3037_v10 = vld [vmem:[%s3292_s20 + $0x1d4] ss:$8 sps:$4 sm:$0xff]  }
  0x53   : > { %2212 = vmatpush1.bf16.msra.mxu0 %v2960_v11  ;;  %2001 = vmatprep.subr.bf16.mxu1 %v2965_v12  ;;  %v3040_v11 = vld [vmem:[%s3292_s20 + $0x5d4] ss:$8 sps:$4 sm:$0xff]   ;;  %v3035_v12 = vld [vmem:[%s3292_s20 + $0x1d0] ss:$8 sps:$4 sm:$0xff]  }
  0x54   : > { %2213 = vmatprep.subr.bf16.mxu0 %v2968_v13  ;;  %1988 = vmatprep.mubr.bf16.mxu1 %v2521_v33  ;;  %v3038_v13 = vld [vmem:[%s3292_s20 + $0x5d0] ss:$8 sps:$4 sm:$0xff]   ;;  %v247_v33 = vld [vmem:[%s3342_s24 + $0xe8] sm:$0xff] }
  0x55   : > { %2200 = vmatprep.mubr.bf16.mxu0 %v2529_v39  ;;  %v3070_v39 = vld [vmem:[%s3292_s20 + $0x624] ss:$8 sps:$4 sm:$0xff]  }
  0x56   : > { %2002 = vmatpush1.bf16.msra.mxu1 %v2963_v14  ;;  %v3043_v14 = vld [vmem:[%s3292_s20 + $0x1e4] ss:$8 sps:$4 sm:$0xff]  }
  0x57   : > { %2214 = vmatpush1.bf16.msra.mxu0 %v2966_v15  ;;  %2003 = vmatprep.subr.bf16.mxu1 %v2971_v16  ;;  %v3046_v15 = vld [vmem:[%s3292_s20 + $0x5e4] ss:$8 sps:$4 sm:$0xff]   ;;  %v3041_v16 = vld [vmem:[%s3292_s20 + $0x1e0] ss:$8 sps:$4 sm:$0xff]  }
  0x58   : > { %2215 = vmatprep.subr.bf16.mxu0 %v2974_v17  ;;  %v3044_v17 = vld [vmem:[%s3292_s20 + $0x5e0] ss:$8 sps:$4 sm:$0xff]  }
  0x59   : > { %1989 = vmatmul.mubr.bf16.gmra.mrb[4].mxu1 %v2520_v37  ;;  %v3062_v37 = vld [vmem:[%s3292_s20 + $0x610] ss:$8 sps:$4 sm:$0xff]  }
  0x5a   : > { %2004 = vmatpush1.bf16.msra.mxu1 %v2969_v18  ;;  %2201 = vmatmul.mubr.bf16.gmra.mrb[4].mxu0 %v2528_v40  ;;  %v3049_v18 = vld [vmem:[%s3292_s20 + $0x1f4] ss:$8 sps:$4 sm:$0xff]   ;;  %v3065_v40 = vld [vmem:[%s3292_s20 + $0x220] ss:$8 sps:$4 sm:$0xff]  }
  0x5b   : > { %2216 = vmatpush1.bf16.msra.mxu0 %v2972_v19  ;;  %2005 = vmatprep.subr.bf16.mxu1 %v2977_v20  ;;  %v3052_v19 = vld [vmem:[%s3292_s20 + $0x5f4] ss:$8 sps:$4 sm:$0xff]   ;;  %v3047_v20 = vld [vmem:[%s3292_s20 + $0x1f0] ss:$8 sps:$4 sm:$0xff]  }
  0x5c   : > { %2217 = vmatprep.subr.bf16.mxu0 %v2980_v21  ;;  %2031 = vmatprep.mubr.bf16.mxu1 %v2507_v48  ;;  %v3050_v21 = vld [vmem:[%s3292_s20 + $0x5f0] ss:$8 sps:$4 sm:$0xff]   ;;  %v3073_v48 = vld [vmem:[%s3292_s20 + $0x234] ss:$8 sps:$4 sm:$0xff]  }
  0x5d   : > { %2243 = vmatprep.mubr.bf16.mxu0 %v2515_v53  ;;  %v3074_v53 = vld [vmem:[%s3292_s20 + $0x630] ss:$8 sps:$4 sm:$0xff]  }
  0x5e   : > { %2006 = vmatpush1.bf16.msra.mxu1 %v2975_v22  ;;  %v3055_v22 = vld [vmem:[%s3292_s20 + $0x204] ss:$8 sps:$4 sm:$0xff]  }
  0x5f   : > { %2218 = vmatpush1.bf16.msra.mxu0 %v2978_v23  ;;  %2007 = vmatprep.subr.bf16.mxu1 %v2983_v24  ;;  %v3058_v23 = vld [vmem:[%s3292_s20 + $0x604] ss:$8 sps:$4 sm:$0xff]   ;;  %v3053_v24 = vld [vmem:[%s3292_s20 + $0x200] ss:$8 sps:$4 sm:$0xff]  }
  0x60   : > { %2219 = vmatprep.subr.bf16.mxu0 %v2986_v25  ;;  %v3056_v25 = vld [vmem:[%s3292_s20 + $0x600] ss:$8 sps:$4 sm:$0xff]  }
  0x62   : > { %2008 = vmatpush1.bf16.msra.mxu1 %v2981_v26  ;;  %v235_v26 = vld [vmem:[%s3342_s24 + $0x88] sm:$0xff] }
  0x63   : > { %2220 = vmatpush1.bf16.msra.mxu0 %v2984_v27  ;;  %2009 = vmatprep.subr.bf16.mxu1 %v2989_v28  ;;  %v2506_v27 = vcombine.low %v3401_v44, %v3404_v45  ;;  %v2514_v28 = vcombine.low %v3411_v49, %v3414_v50  ;;  %v3476_v45 = vld [vmem:[%s3342_s24 + $0x50] sm:$0xff] }
  0x64   : > { %2221 = vmatprep.subr.bf16.mxu0 %v2992_v29  ;;  %v243_v29 = vld [vmem:[%s3342_s24 + $0xc8] sm:$0xff]  ;;  %v3076_v49 = vld [vmem:[%s3292_s20 + $0x634] ss:$8 sps:$4 sm:$0xff]  }
  0x66   : > { %2010 = vmatpush1.bf16.msra.mxu1 %v2987_v32  ;;  %v239_v32 = vld [vmem:[%s3342_s24 + $0xa8] sm:$0xff] }
  0x67   : > { %2222 = vmatpush1.bf16.msra.mxu0 %v2990_v34  ;;  %2011 = vmatprep.subr.bf16.mxu1 %v2995_v38  ;;  %v2523_v34 = vcombine.high %v235_v26, %v243_v29  ;;  %v2531_v35 = vcombine.high %v239_v32, %v247_v33  ;;  %v3067_v38 = vld [vmem:[%s3292_s20 + $0x224] ss:$8 sps:$4 sm:$0xff]   ;;  %v2530_v44 = vcombine.low %v239_v32, %v247_v33  ;;  %v3137_v32 = vld [vmem:[%s3292_s20 + $0x2e0] ss:$8 sps:$4 sm:$0xff]  }
  0x68   : > { %2223 = vmatprep.subr.bf16.mxu0 %v2998_v41  ;;  %v3068_v41 = vld [vmem:[%s3292_s20 + $0x620] ss:$8 sps:$4 sm:$0xff]  }
  0x69   : > { %v3140_v33 = vld [vmem:[%s3292_s20 + $0x6e0] ss:$8 sps:$4 sm:$0xff]  }
  0x6a   : > { %2012 = vmatpush1.bf16.msra.mxu1 %v2993_v42  ;;  %v3473_v42 = vld [vmem:[%s3342_s24 + $0x10] sm:$0xff] }
  0x6b   : > { %2224 = vmatpush1.bf16.msra.mxu0 %v2996_v43  ;;  %2013 = vmatprep.subr.bf16.mxu1 %v3001_v46  ;;  %v2522_v43 = vcombine.low %v235_v26, %v243_v29  ;;  %v3479_v46 = vld [vmem:[%s3342_s24 + $0x30] sm:$0xff]  ;;  %v2509_v50 = vcombine.high %v3473_v42, %v3476_v45 }
  0x6c   : > { %2225 = vmatprep.subr.bf16.mxu0 %v3004_v47  ;;  %v3482_v47 = vld [vmem:[%s3342_s24 + $0x70] sm:$0xff] }
  0x6d   : > { %v3133_v26 = vld [vmem:[%s3292_s20 + $0x2d4] ss:$8 sps:$4 sm:$0xff]   ;;  %v3134_v29 = vld [vmem:[%s3292_s20 + $0x6d0] ss:$8 sps:$4 sm:$0xff]  }
  0x6e   : > { %2014 = vmatpush1.bf16.msra.mxu1 %v2999_v51  ;;  %v2517_v51 = vcombine.high %v3479_v46, %v3482_v47 }
  0x6f   : > { %2226 = vmatpush1.bf16.msra.mxu0 %v3002_v52  ;;  %2015 = vmatprep.subr.bf16.mxu1 %v3007_v54  ;;  %v3071_v52 = vld [vmem:[%s3292_s20 + $0x230] ss:$8 sps:$4 sm:$0xff]   ;;  %v3079_v54 = vld [vmem:[%s3292_s20 + $0x244] ss:$8 sps:$4 sm:$0xff]  }
  0x70   : > { %2227 = vmatprep.subr.bf16.mxu0 %v3010_v55  ;;  %v3082_v55 = vld [vmem:[%s3292_s20 + $0x644] ss:$8 sps:$4 sm:$0xff]  }
  0x72   : > { %2016 = vmatpush1.bf16.msra.mxu1 %v3005_v56  ;;  %v3077_v56 = vld [vmem:[%s3292_s20 + $0x240] ss:$8 sps:$4 sm:$0xff]  }
  0x73   : > { %2228 = vmatpush1.bf16.msra.mxu0 %v3008_v57  ;;  %2017 = vmatprep.subr.bf16.mxu1 %v3013_v58  ;;  %v3080_v57 = vld [vmem:[%s3292_s20 + $0x640] ss:$8 sps:$4 sm:$0xff]   ;;  %v3085_v58 = vld [vmem:[%s3292_s20 + $0x254] ss:$8 sps:$4 sm:$0xff]  }
  0x74   : > { %2229 = vmatprep.subr.bf16.mxu0 %v3016_v59  ;;  %v3088_v59 = vld [vmem:[%s3292_s20 + $0x654] ss:$8 sps:$4 sm:$0xff]  }
  0x76   : > { %2018 = vmatpush1.bf16.msra.mxu1 %v3011_v60  ;;  %v3083_v60 = vld [vmem:[%s3292_s20 + $0x250] ss:$8 sps:$4 sm:$0xff]  }
  0x77   : > { %2230 = vmatpush1.bf16.msra.mxu0 %v3014_v61  ;;  %2019 = vmatprep.subr.bf16.mxu1 %v3019_v62  ;;  %v3086_v61 = vld [vmem:[%s3292_s20 + $0x650] ss:$8 sps:$4 sm:$0xff]   ;;  %v3091_v62 = vld [vmem:[%s3292_s20 + $0x264] ss:$8 sps:$4 sm:$0xff]  }
  0x78   : > { %2231 = vmatprep.subr.bf16.mxu0 %v3022_v63  ;;  %v3094_v63 = vld [vmem:[%s3292_s20 + $0x664] ss:$8 sps:$4 sm:$0xff]  }
  0x7a   : > { %2020 = vmatpush1.bf16.msra.mxu1 %v3017_v0  ;;  %v3089_v0 = vld [vmem:[%s3292_s20 + $0x260] ss:$8 sps:$4 sm:$0xff]  }
  0x7b   : > { %2232 = vmatpush1.bf16.msra.mxu0 %v3020_v1  ;;  %2021 = vmatprep.subr.bf16.mxu1 %v3025_v2  ;;  %v3092_v1 = vld [vmem:[%s3292_s20 + $0x660] ss:$8 sps:$4 sm:$0xff]   ;;  %v3097_v2 = vld [vmem:[%s3292_s20 + $0x274] ss:$8 sps:$4 sm:$0xff]  }
  0x7c   : > { %2233 = vmatprep.subr.bf16.mxu0 %v3028_v3  ;;  %v3100_v3 = vld [vmem:[%s3292_s20 + $0x674] ss:$8 sps:$4 sm:$0xff]  }
  0x7e   : > { %2022 = vmatpush1.bf16.msra.mxu1 %v3023_v4  ;;  %v3095_v4 = vld [vmem:[%s3292_s20 + $0x270] ss:$8 sps:$4 sm:$0xff]  }
  0x7f   : > { %2234 = vmatpush1.bf16.msra.mxu0 %v3026_v5  ;;  %2023 = vmatprep.subr.bf16.mxu1 %v3031_v6  ;;  %v3098_v5 = vld [vmem:[%s3292_s20 + $0x670] ss:$8 sps:$4 sm:$0xff]   ;;  %v3103_v6 = vld [vmem:[%s3292_s20 + $0x284] ss:$8 sps:$4 sm:$0xff]  }
  0x80   : > { %2235 = vmatprep.subr.bf16.mxu0 %v3034_v7  ;;  %v3106_v7 = vld [vmem:[%s3292_s20 + $0x684] ss:$8 sps:$4 sm:$0xff]  }
  0x82   : > { %2024 = vmatpush1.bf16.msra.mxu1 %v3029_v8  ;;  %v3101_v8 = vld [vmem:[%s3292_s20 + $0x280] ss:$8 sps:$4 sm:$0xff]  }
  0x83   : > { %2236 = vmatpush1.bf16.msra.mxu0 %v3032_v9  ;;  %2025 = vmatprep.subr.bf16.mxu1 %v3037_v10  ;;  %v3104_v9 = vld [vmem:[%s3292_s20 + $0x680] ss:$8 sps:$4 sm:$0xff]   ;;  %v3109_v10 = vld [vmem:[%s3292_s20 + $0x294] ss:$8 sps:$4 sm:$0xff]  }
  0x84   : > { %2237 = vmatprep.subr.bf16.mxu0 %v3040_v11  ;;  %v3112_v11 = vld [vmem:[%s3292_s20 + $0x694] ss:$8 sps:$4 sm:$0xff]  }
  0x86   : > { %2026 = vmatpush1.bf16.msra.mxu1 %v3035_v12  ;;  %v3107_v12 = vld [vmem:[%s3292_s20 + $0x290] ss:$8 sps:$4 sm:$0xff]  }
  0x87   : > { %2238 = vmatpush1.bf16.msra.mxu0 %v3038_v13  ;;  %2027 = vmatprep.subr.bf16.mxu1 %v3043_v14  ;;  %v3110_v13 = vld [vmem:[%s3292_s20 + $0x690] ss:$8 sps:$4 sm:$0xff]   ;;  %v3115_v14 = vld [vmem:[%s3292_s20 + $0x2a4] ss:$8 sps:$4 sm:$0xff]  }
  0x88   : > { %2239 = vmatprep.subr.bf16.mxu0 %v3046_v15  ;;  %v3118_v15 = vld [vmem:[%s3292_s20 + $0x6a4] ss:$8 sps:$4 sm:$0xff]  }
  0x8a   : > { %2028 = vmatpush1.bf16.msra.mxu1 %v3041_v16  ;;  %v3113_v16 = vld [vmem:[%s3292_s20 + $0x2a0] ss:$8 sps:$4 sm:$0xff]  }
  0x8b   : > { %2240 = vmatpush1.bf16.msra.mxu0 %v3044_v17  ;;  %2029 = vmatprep.subr.bf16.mxu1 %v3049_v18  ;;  %v3116_v17 = vld [vmem:[%s3292_s20 + $0x6a0] ss:$8 sps:$4 sm:$0xff]   ;;  %v3121_v18 = vld [vmem:[%s3292_s20 + $0x2b4] ss:$8 sps:$4 sm:$0xff]  }
  0x8c   : > { %2241 = vmatprep.subr.bf16.mxu0 %v3052_v19  ;;  %v3124_v19 = vld [vmem:[%s3292_s20 + $0x6b4] ss:$8 sps:$4 sm:$0xff]  }
  0x8e   : > { %2030 = vmatpush1.bf16.msra.mxu1 %v3047_v20  ;;  %v3119_v20 = vld [vmem:[%s3292_s20 + $0x2b0] ss:$8 sps:$4 sm:$0xff]  }
  0x8f   : > { %2242 = vmatpush1.bf16.msra.mxu0 %v3050_v21  ;;  %2052 = vmatprep.subr.bf16.mxu1 %v3055_v22  ;;  %v3122_v21 = vld [vmem:[%s3292_s20 + $0x6b0] ss:$8 sps:$4 sm:$0xff]   ;;  %v3127_v22 = vld [vmem:[%s3292_s20 + $0x2c4] ss:$8 sps:$4 sm:$0xff]  }
  0x90   : > { %2264 = vmatprep.subr.bf16.mxu0 %v3058_v23  ;;  %v3130_v23 = vld [vmem:[%s3292_s20 + $0x6c4] ss:$8 sps:$4 sm:$0xff]  }
  0x91   : > { %2032 = vmatmul.mubr.bf16.vlgmr.msra.gmra.mrb[0].mxu1 %v2506_v27  ;;  %v3136_v27 = vld [vmem:[%s3292_s20 + $0x6d4] ss:$8 sps:$4 sm:$0xff]  }
  0x92   : > { %2244 = vmatmul.mubr.bf16.vlgmr.msra.gmra.mrb[0].mxu0 %v2514_v28  ;;  %2053 = vmatpush1.bf16.msra.mxu1 %v3053_v24  ;;  %v3125_v24 = vld [vmem:[%s3292_s20 + $0x2c0] ss:$8 sps:$4 sm:$0xff]   ;;  %v3131_v28 = vld [vmem:[%s3292_s20 + $0x2d0] ss:$8 sps:$4 sm:$0xff]  }
  0x93   : > { %2265 = vmatpush1.bf16.msra.mxu0 %v3056_v25  ;;  %2054 = vmatprep.subr.bf16.mxu1 %v3061_v30  ;;  %v3128_v25 = vld [vmem:[%s3292_s20 + $0x6c0] ss:$8 sps:$4 sm:$0xff]   ;;  %v3139_v30 = vld [vmem:[%s3292_s20 + $0x2e4] ss:$8 sps:$4 sm:$0xff]  }
  0x94   : > { %2266 = vmatprep.subr.bf16.mxu0 %v3064_v31  ;;  %2041 = vmatprep.mubr.bf16.mxu1 %v2523_v34  ;;  %v3142_v31 = vld [vmem:[%s3292_s20 + $0x6e4] ss:$8 sps:$4 sm:$0xff]   ;;  %v3145_v34 = vld [vmem:[%s3292_s20 + $0x2f4] ss:$8 sps:$4 sm:$0xff]  }
  0x95   : > { %2253 = vmatprep.mubr.bf16.mxu0 %v2531_v35  ;;  %v3148_v35 = vld [vmem:[%s3292_s20 + $0x6f4] ss:$8 sps:$4 sm:$0xff]  }
  0x96   : > { %2055 = vmatpush1.bf16.msra.mxu1 %v3059_v36  ;;  %v3143_v36 = vld [vmem:[%s3292_s20 + $0x2f0] ss:$8 sps:$4 sm:$0xff]  }
  0x97   : > { %2267 = vmatpush1.bf16.msra.mxu0 %v3062_v37  ;;  %2056 = vmatprep.subr.bf16.mxu1 %v3067_v38  ;;  %v3146_v37 = vld [vmem:[%s3292_s20 + $0x6f0] ss:$8 sps:$4 sm:$0xff]   ;;  %v3151_v38 = vld [vmem:[%s3292_s20 + $0x304] ss:$8 sps:$4 sm:$0xff]  }
  0x98   : > { %2268 = vmatprep.subr.bf16.mxu0 %v3070_v39  ;;  %v3154_v39 = vld [vmem:[%s3292_s20 + $0x704] ss:$8 sps:$4 sm:$0xff]  }
  0x99   : > { %2042 = vmatmul.mubr.bf16.gmra.mrb[4].mxu1 %v2522_v43  ;;  %v2516_v43 = vcombine.low %v3479_v46, %v3482_v47  ;;  %v3155_v46 = vld [vmem:[%s3292_s20 + $0x310] ss:$8 sps:$4 sm:$0xff]  }
  0x9a   : > { %2254 = vmatmul.mubr.bf16.gmra.mrb[4].mxu0 %v2530_v44  ;;  %2057 = vmatpush1.bf16.msra.mxu1 %v3065_v40  ;;  %v236_v40 = vld [vmem:[%s3342_s24 + $0x90] sm:$0xff] }
  0x9b   : > { %2269 = vmatpush1.bf16.msra.mxu0 %v3068_v41  ;;  %2058 = vmatprep.subr.bf16.mxu1 %v3073_v48  ;;  %v2508_v41 = vcombine.low %v3473_v42, %v3476_v45  ;;  %v244_v44 = vld [vmem:[%s3342_s24 + $0xd0] sm:$0xff] }
  0x9c   : > { %2270 = vmatprep.subr.bf16.mxu0 %v3076_v49  ;;  %2084 = vmatprep.mubr.bf16.mxu1 %v2509_v50  ;;  %v240_v48 = vld [vmem:[%s3342_s24 + $0xb0] sm:$0xff]  ;;  %v3149_v50 = vld [vmem:[%s3292_s20 + $0x300] ss:$8 sps:$4 sm:$0xff]   ;;  %v2525_v42 = vcombine.high %v236_v40, %v244_v44 }
  0x9d   : > { %2296 = vmatprep.mubr.bf16.mxu0 %v2517_v51  ;;  %v248_v49 = vld [vmem:[%s3342_s24 + $0xf0] sm:$0xff]  ;;  %v3152_v51 = vld [vmem:[%s3292_s20 + $0x700] ss:$8 sps:$4 sm:$0xff]  }
  0x9e   : > { %2059 = vmatpush1.bf16.msra.mxu1 %v3071_v52  ;;  %v3157_v52 = vld [vmem:[%s3292_s20 + $0x314] ss:$8 sps:$4 sm:$0xff]   ;;  %v2533_v45 = vcombine.high %v240_v48, %v248_v49  ;;  %v3158_v47 = vld [vmem:[%s3292_s20 + $0x710] ss:$8 sps:$4 sm:$0xff]  }
  0x9f   : > { %2271 = vmatpush1.bf16.msra.mxu0 %v3074_v53  ;;  %2060 = vmatprep.subr.bf16.mxu1 %v3079_v54  ;;  %v3160_v53 = vld [vmem:[%s3292_s20 + $0x714] ss:$8 sps:$4 sm:$0xff]   ;;  %v3163_v54 = vld [vmem:[%s3292_s20 + $0x324] ss:$8 sps:$4 sm:$0xff]  }
  0xa0   : > { %2272 = vmatprep.subr.bf16.mxu0 %v3082_v55  ;;  %v3166_v55 = vld [vmem:[%s3292_s20 + $0x724] ss:$8 sps:$4 sm:$0xff]  }
  0xa2   : > { %2061 = vmatpush1.bf16.msra.mxu1 %v3077_v56  ;;  %v3559_v56 = vld [vmem:[%s3342_s24 + $0x18] sm:$0xff] }
  0xa3   : > { %2273 = vmatpush1.bf16.msra.mxu0 %v3080_v57  ;;  %2062 = vmatprep.subr.bf16.mxu1 %v3085_v58  ;;  %v2524_v57 = vcombine.low %v236_v40, %v244_v44  ;;  %v2532_v58 = vcombine.low %v240_v48, %v248_v49  ;;  %v3221_v40 = vld [vmem:[%s3292_s20 + $0x3c0] ss:$8 sps:$4 sm:$0xff]   ;;  %v3232_v44 = vld [vmem:[%s3292_s20 + $0x7d4] ss:$8 sps:$4 sm:$0xff]   ;;  %v3227_v48 = vld [vmem:[%s3292_s20 + $0x3d0] ss:$8 sps:$4 sm:$0xff]  }
  0xa4   : > { %2274 = vmatprep.subr.bf16.mxu0 %v3088_v59  ;;  %v3562_v59 = vld [vmem:[%s3342_s24 + $0x58] sm:$0xff] }
  0xa5   : > { %v3230_v49 = vld [vmem:[%s3292_s20 + $0x7d0] ss:$8 sps:$4 sm:$0xff]  }
  0xa6   : > { %2063 = vmatpush1.bf16.msra.mxu1 %v3083_v60  ;;  %v3565_v60 = vld [vmem:[%s3342_s24 + $0x38] sm:$0xff] }
  0xa7   : > { %2275 = vmatpush1.bf16.msra.mxu0 %v3086_v61  ;;  %2064 = vmatprep.subr.bf16.mxu1 %v3091_v62  ;;  %v3568_v61 = vld [vmem:[%s3342_s24 + $0x78] sm:$0xff]  ;;  %v3161_v62 = vld [vmem:[%s3292_s20 + $0x320] ss:$8 sps:$4 sm:$0xff]  }
  0xa8   : > { %2276 = vmatprep.subr.bf16.mxu0 %v3094_v63  ;;  %v3164_v63 = vld [vmem:[%s3292_s20 + $0x720] ss:$8 sps:$4 sm:$0xff]  }
  0xaa   : > { %2065 = vmatpush1.bf16.msra.mxu1 %v3089_v0  ;;  %v3169_v0 = vld [vmem:[%s3292_s20 + $0x334] ss:$8 sps:$4 sm:$0xff]  }
  0xab   : > { %2277 = vmatpush1.bf16.msra.mxu0 %v3092_v1  ;;  %2066 = vmatprep.subr.bf16.mxu1 %v3097_v2  ;;  %v3172_v1 = vld [vmem:[%s3292_s20 + $0x734] ss:$8 sps:$4 sm:$0xff]   ;;  %v2511_v2 = vcombine.high %v3559_v56, %v3562_v59 }
  0xac   : > { %2278 = vmatprep.subr.bf16.mxu0 %v3100_v3  ;;  %v2519_v3 = vcombine.high %v3565_v60, %v3568_v61 }
  0xae   : > { %2067 = vmatpush1.bf16.msra.mxu1 %v3095_v4  ;;  %v3167_v4 = vld [vmem:[%s3292_s20 + $0x330] ss:$8 sps:$4 sm:$0xff]  }
  0xaf   : > { %2279 = vmatpush1.bf16.msra.mxu0 %v3098_v5  ;;  %2068 = vmatprep.subr.bf16.mxu1 %v3103_v6  ;;  %v3170_v5 = vld [vmem:[%s3292_s20 + $0x730] ss:$8 sps:$4 sm:$0xff]   ;;  %v3175_v6 = vld [vmem:[%s3292_s20 + $0x344] ss:$8 sps:$4 sm:$0xff]  }
  0xb0   : > { %2280 = vmatprep.subr.bf16.mxu0 %v3106_v7  ;;  %v3178_v7 = vld [vmem:[%s3292_s20 + $0x744] ss:$8 sps:$4 sm:$0xff]  }
  0xb2   : > { %2069 = vmatpush1.bf16.msra.mxu1 %v3101_v8  ;;  %v3173_v8 = vld [vmem:[%s3292_s20 + $0x340] ss:$8 sps:$4 sm:$0xff]  }
  0xb3   : > { %2281 = vmatpush1.bf16.msra.mxu0 %v3104_v9  ;;  %2070 = vmatprep.subr.bf16.mxu1 %v3109_v10  ;;  %v3176_v9 = vld [vmem:[%s3292_s20 + $0x740] ss:$8 sps:$4 sm:$0xff]   ;;  %v3181_v10 = vld [vmem:[%s3292_s20 + $0x354] ss:$8 sps:$4 sm:$0xff]  }
  0xb4   : > { %2282 = vmatprep.subr.bf16.mxu0 %v3112_v11  ;;  %v3184_v11 = vld [vmem:[%s3292_s20 + $0x754] ss:$8 sps:$4 sm:$0xff]  }
  0xb6   : > { %2071 = vmatpush1.bf16.msra.mxu1 %v3107_v12  ;;  %v3179_v12 = vld [vmem:[%s3292_s20 + $0x350] ss:$8 sps:$4 sm:$0xff]  }
  0xb7   : > { %2283 = vmatpush1.bf16.msra.mxu0 %v3110_v13  ;;  %2072 = vmatprep.subr.bf16.mxu1 %v3115_v14  ;;  %v3182_v13 = vld [vmem:[%s3292_s20 + $0x750] ss:$8 sps:$4 sm:$0xff]   ;;  %v3187_v14 = vld [vmem:[%s3292_s20 + $0x364] ss:$8 sps:$4 sm:$0xff]  }
  0xb8   : > { %2284 = vmatprep.subr.bf16.mxu0 %v3118_v15  ;;  %v3190_v15 = vld [vmem:[%s3292_s20 + $0x764] ss:$8 sps:$4 sm:$0xff]  }
  0xba   : > { %2073 = vmatpush1.bf16.msra.mxu1 %v3113_v16  ;;  %v3185_v16 = vld [vmem:[%s3292_s20 + $0x360] ss:$8 sps:$4 sm:$0xff]  }
  0xbb   : > { %2285 = vmatpush1.bf16.msra.mxu0 %v3116_v17  ;;  %2074 = vmatprep.subr.bf16.mxu1 %v3121_v18  ;;  %v3188_v17 = vld [vmem:[%s3292_s20 + $0x760] ss:$8 sps:$4 sm:$0xff]   ;;  %v3193_v18 = vld [vmem:[%s3292_s20 + $0x374] ss:$8 sps:$4 sm:$0xff]  }
  0xbc   : > { %2286 = vmatprep.subr.bf16.mxu0 %v3124_v19  ;;  %v3196_v19 = vld [vmem:[%s3292_s20 + $0x774] ss:$8 sps:$4 sm:$0xff]  }
  0xbe   : > { %2075 = vmatpush1.bf16.msra.mxu1 %v3119_v20  ;;  %v3191_v20 = vld [vmem:[%s3292_s20 + $0x370] ss:$8 sps:$4 sm:$0xff]  }
  0xbf   : > { %2287 = vmatpush1.bf16.msra.mxu0 %v3122_v21  ;;  %2076 = vmatprep.subr.bf16.mxu1 %v3127_v22  ;;  %v3194_v21 = vld [vmem:[%s3292_s20 + $0x770] ss:$8 sps:$4 sm:$0xff]   ;;  %v3199_v22 = vld [vmem:[%s3292_s20 + $0x384] ss:$8 sps:$4 sm:$0xff]  }
  0xc0   : > { %2288 = vmatprep.subr.bf16.mxu0 %v3130_v23  ;;  %v3202_v23 = vld [vmem:[%s3292_s20 + $0x784] ss:$8 sps:$4 sm:$0xff]  }
  0xc2   : > { %2077 = vmatpush1.bf16.msra.mxu1 %v3125_v24  ;;  %v3197_v24 = vld [vmem:[%s3292_s20 + $0x380] ss:$8 sps:$4 sm:$0xff]  }
  0xc3   : > { %2289 = vmatpush1.bf16.msra.mxu0 %v3128_v25  ;;  %2078 = vmatprep.subr.bf16.mxu1 %v3133_v26  ;;  %v3200_v25 = vld [vmem:[%s3292_s20 + $0x780] ss:$8 sps:$4 sm:$0xff]   ;;  %v3205_v26 = vld [vmem:[%s3292_s20 + $0x394] ss:$8 sps:$4 sm:$0xff]  }
  0xc4   : > { %2290 = vmatprep.subr.bf16.mxu0 %v3136_v27  ;;  %v3208_v27 = vld [vmem:[%s3292_s20 + $0x794] ss:$8 sps:$4 sm:$0xff]  }
  0xc6   : > { %2079 = vmatpush1.bf16.msra.mxu1 %v3131_v28  ;;  %v3203_v28 = vld [vmem:[%s3292_s20 + $0x390] ss:$8 sps:$4 sm:$0xff]  }
  0xc7   : > { %2291 = vmatpush1.bf16.msra.mxu0 %v3134_v29  ;;  %2080 = vmatprep.subr.bf16.mxu1 %v3139_v30  ;;  %v3206_v29 = vld [vmem:[%s3292_s20 + $0x790] ss:$8 sps:$4 sm:$0xff]   ;;  %v3211_v30 = vld [vmem:[%s3292_s20 + $0x3a4] ss:$8 sps:$4 sm:$0xff]  }
  0xc8   : > { %2292 = vmatprep.subr.bf16.mxu0 %v3142_v31  ;;  %v3214_v31 = vld [vmem:[%s3292_s20 + $0x7a4] ss:$8 sps:$4 sm:$0xff]  }
  0xca   : > { %2081 = vmatpush1.bf16.msra.mxu1 %v3137_v32  ;;  %v3209_v32 = vld [vmem:[%s3292_s20 + $0x3a0] ss:$8 sps:$4 sm:$0xff]  }
  0xcb   : > { %2293 = vmatpush1.bf16.msra.mxu0 %v3140_v33  ;;  %2082 = vmatprep.subr.bf16.mxu1 %v3145_v34  ;;  %v3212_v33 = vld [vmem:[%s3292_s20 + $0x7a0] ss:$8 sps:$4 sm:$0xff]   ;;  %v3217_v34 = vld [vmem:[%s3292_s20 + $0x3b4] ss:$8 sps:$4 sm:$0xff]  }
  0xcc   : > { %2294 = vmatprep.subr.bf16.mxu0 %v3148_v35  ;;  %v3220_v35 = vld [vmem:[%s3292_s20 + $0x7b4] ss:$8 sps:$4 sm:$0xff]  }
  0xce   : > { %2083 = vmatpush1.bf16.msra.mxu1 %v3143_v36  ;;  %v3215_v36 = vld [vmem:[%s3292_s20 + $0x3b0] ss:$8 sps:$4 sm:$0xff]  }
  0xcf   : > { %2295 = vmatpush1.bf16.msra.mxu0 %v3146_v37  ;;  %2105 = vmatprep.subr.bf16.mxu1 %v3151_v38  ;;  %v3218_v37 = vld [vmem:[%s3292_s20 + $0x7b0] ss:$8 sps:$4 sm:$0xff]   ;;  %v3223_v38 = vld [vmem:[%s3292_s20 + $0x3c4] ss:$8 sps:$4 sm:$0xff]  }
  0xd0   : > { %2317 = vmatprep.subr.bf16.mxu0 %v3154_v39  ;;  %v3226_v39 = vld [vmem:[%s3292_s20 + $0x7c4] ss:$8 sps:$4 sm:$0xff]  }
  0xd1   : > { %2085 = vmatmul.mubr.bf16.vlgmr.msra.gmra.mrb[0].mxu1 %v2508_v41  ;;  %v3224_v41 = vld [vmem:[%s3292_s20 + $0x7c0] ss:$8 sps:$4 sm:$0xff]  }
  0xd2   : > { %2297 = vmatmul.mubr.bf16.vlgmr.msra.gmra.mrb[0].mxu0 %v2516_v43  ;;  %2106 = vmatpush1.bf16.msra.mxu1 %v3149_v50  ;;  %v3229_v43 = vld [vmem:[%s3292_s20 + $0x3d4] ss:$8 sps:$4 sm:$0xff]   ;;  %v3235_v50 = vld [vmem:[%s3292_s20 + $0x3e4] ss:$8 sps:$4 sm:$0xff]  }
  0xd3   : > { %2318 = vmatpush1.bf16.msra.mxu0 %v3152_v51  ;;  %2107 = vmatprep.subr.bf16.mxu1 %v3157_v52  ;;  %v3238_v51 = vld [vmem:[%s3292_s20 + $0x7e4] ss:$8 sps:$4 sm:$0xff]   ;;  %v3233_v52 = vld [vmem:[%s3292_s20 + $0x3e0] ss:$8 sps:$4 sm:$0xff]  }
  0xd4   : > { %2319 = vmatprep.subr.bf16.mxu0 %v3160_v53  ;;  %2094 = vmatprep.mubr.bf16.mxu1 %v2525_v42  ;;  %v3236_v53 = vld [vmem:[%s3292_s20 + $0x7e0] ss:$8 sps:$4 sm:$0xff]   ;;  %v3241_v42 = vld [vmem:[%s3292_s20 + $0x3f4] ss:$8 sps:$4 sm:$0xff]  }
  0xd5   : > { %2306 = vmatprep.mubr.bf16.mxu0 %v2533_v45  ;;  %v3244_v45 = vld [vmem:[%s3292_s20 + $0x7f4] ss:$8 sps:$4 sm:$0xff]  }
  0xd6   : > { %2108 = vmatpush1.bf16.msra.mxu1 %v3155_v46  ;;  %v3239_v46 = vld [vmem:[%s3292_s20 + $0x3f0] ss:$8 sps:$4 sm:$0xff]  }
  0xd7   : > { %2320 = vmatpush1.bf16.msra.mxu0 %v3158_v47  ;;  %2109 = vmatprep.subr.bf16.mxu1 %v3163_v54  ;;  %v3242_v47 = vld [vmem:[%s3292_s20 + $0x7f0] ss:$8 sps:$4 sm:$0xff]  }
  0xd8   : > { %2321 = vmatprep.subr.bf16.mxu0 %v3166_v55  ;;  %v237_v54 = vld [vmem:[%s3342_s24 + $0x98] sm:$0xff] }
  0xd9   : > { %2095 = vmatmul.mubr.bf16.gmra.mrb[4].mxu1 %v2524_v57  ;;  %v245_v55 = vld [vmem:[%s3342_s24 + $0xd8] sm:$0xff] }
  0xda   : > { %2307 = vmatmul.mubr.bf16.gmra.mrb[4].mxu0 %v2532_v58  ;;  %2110 = vmatpush1.bf16.msra.mxu1 %v3161_v62  ;;  %v241_v57 = vld [vmem:[%s3342_s24 + $0xb8] sm:$0xff]  ;;  %v2510_v62 = vcombine.low %v3559_v56, %v3562_v59  ;;  %v2370_v56 = vld [vmem:[%s3661_s2] sm:$0x3] }
  0xdb   : > { %2322 = vmatpush1.bf16.msra.mxu0 %v3164_v63  ;;  %2111 = vmatprep.subr.bf16.mxu1 %v3169_v0  ;;  %v249_v58 = vld [vmem:[%s3342_s24 + $0xf8] sm:$0xff]  ;;  %v2518_v63 = vcombine.low %v3565_v60, %v3568_v61  ;;  %v2527_v0 = vcombine.high %v237_v54, %v245_v55  ;;  %v2390_v60 = vld [vmem:[%s3662_s3] sm:$0x3] }
  0xdc   : > { %2323 = vmatprep.subr.bf16.mxu0 %v3172_v1  ;;  %2137 = vmatprep.mubr.bf16.mxu1 %v2511_v2  ;;  %v2535_v1 = vcombine.high %v241_v57, %v249_v58  ;;  %v2526_v2 = vcombine.low %v237_v54, %v245_v55 }
  0xdd   : > { %2349 = vmatprep.mubr.bf16.mxu0 %v2519_v3  ;;  %v2534_v3 = vcombine.low %v241_v57, %v249_v58 }
  0xde   : > { %2112 = vmatpush1.bf16.msra.mxu1 %v3167_v4  ;;  %v2372_v4 = vlaneseq }
  0xdf   : > { %2324 = vmatpush1.bf16.msra.mxu0 %v3170_v5  ;;  %2113 = vmatprep.subr.bf16.mxu1 %v3175_v6 }
  0xe0   : > { %2325 = vmatprep.subr.bf16.mxu0 %v3178_v7  ;;  %v2373_v5 = vshrl.u32 %v2372_v4, 7 }
  0xe2   : > { %2114 = vmatpush1.bf16.msra.mxu1 %v3173_v8  ;;  %v2374_v6 = vsub.s32 0, %v2373_v5  ;;  %v2378_v59 = vsub.s32 1, %v2373_v5 }
  0xe3   : > { %2326 = vmatpush1.bf16.msra.mxu0 %v3176_v9  ;;  %2115 = vmatprep.subr.bf16.mxu1 %v3181_v10 }
  0xe4   : > { %2327 = vmatprep.subr.bf16.mxu0 %v3184_v11  ;;  %v2375_v61 = vrot.slane %v2370_v56, %v2374_v6  ;;  %v2379_v9 = vrot.slane %v2370_v56, %v2378_v59  ;;  %v2395_v11 = vrot.slane %v2390_v60, %v2374_v6 }
  0xe6   : > { %2116 = vmatpush1.bf16.msra.mxu1 %v3179_v12 }
  0xe7   : > { %2328 = vmatpush1.bf16.msra.mxu0 %v3182_v13  ;;  %2117 = vmatprep.subr.bf16.mxu1 %v3187_v14 }
  0xe8   : > { %2329 = vmatprep.subr.bf16.mxu0 %v3190_v15  ;;  %v2399_v15 = vrot.slane %v2390_v60, %v2378_v59 }
  0xea   : > { %2118 = vmatpush1.bf16.msra.mxu1 %v3185_v16 }
  0xeb   : > { %2330 = vmatpush1.bf16.msra.mxu0 %v3188_v17  ;;  %2119 = vmatprep.subr.bf16.mxu1 %v3193_v18 }
  0xec   : > { %2331 = vmatprep.subr.bf16.mxu0 %v3196_v19 }
  0xee   : > { %2120 = vmatpush1.bf16.msra.mxu1 %v3191_v20 }
  0xef   : > { %2332 = vmatpush1.bf16.msra.mxu0 %v3194_v21  ;;  %2121 = vmatprep.subr.bf16.mxu1 %v3199_v22 }
  0xf0   : > { %2333 = vmatprep.subr.bf16.mxu0 %v3202_v23 }
  0xf2   : > { %2122 = vmatpush1.bf16.msra.mxu1 %v3197_v24 }
  0xf3   : > { %2334 = vmatpush1.bf16.msra.mxu0 %v3200_v25  ;;  %2123 = vmatprep.subr.bf16.mxu1 %v3205_v26 }
  0xf4   : > { %2335 = vmatprep.subr.bf16.mxu0 %v3208_v27 }
  0xf6   : > { %2124 = vmatpush1.bf16.msra.mxu1 %v3203_v28 }
  0xf7   : > { %2336 = vmatpush1.bf16.msra.mxu0 %v3206_v29  ;;  %2125 = vmatprep.subr.bf16.mxu1 %v3211_v30 }
  0xf8   : > { %2337 = vmatprep.subr.bf16.mxu0 %v3214_v31 }
  0xfa   : > { %2126 = vmatpush1.bf16.msra.mxu1 %v3209_v32 }
  0xfb   : > { %2338 = vmatpush1.bf16.msra.mxu0 %v3212_v33  ;;  %2127 = vmatprep.subr.bf16.mxu1 %v3217_v34 }
  0xfc   : > { %2339 = vmatprep.subr.bf16.mxu0 %v3220_v35 }
  0xfe   : > { %2128 = vmatpush1.bf16.msra.mxu1 %v3215_v36 }
  0xff   : > { %2340 = vmatpush1.bf16.msra.mxu0 %v3218_v37  ;;  %2129 = vmatprep.subr.bf16.mxu1 %v3223_v38 }
 0x100   : > { %2341 = vmatprep.subr.bf16.mxu0 %v3226_v39 }
 0x102   : > { %2130 = vmatpush1.bf16.msra.mxu1 %v3221_v40 }
 0x103   : > { %2342 = vmatpush1.bf16.msra.mxu0 %v3224_v41  ;;  %2131 = vmatprep.subr.bf16.mxu1 %v3229_v43 }
 0x104   : > { %2343 = vmatprep.subr.bf16.mxu0 %v3232_v44 }
 0x106   : > { %2132 = vmatpush1.bf16.msra.mxu1 %v3227_v48 }
 0x107   : > { %2344 = vmatpush1.bf16.msra.mxu0 %v3230_v49  ;;  %2133 = vmatprep.subr.bf16.mxu1 %v3235_v50 }
 0x108   : > { %2345 = vmatprep.subr.bf16.mxu0 %v3238_v51 }
 0x10a   : > { %2134 = vmatpush1.bf16.msra.mxu1 %v3233_v52 }
 0x10b   : > { %2346 = vmatpush1.bf16.msra.mxu0 %v3236_v53  ;;  %2135 = vmatprep.subr.bf16.mxu1 %v3241_v42 }
 0x10c   : > { %2347 = vmatprep.subr.bf16.mxu0 %v3244_v45 }
 0x10e   : > { %2136 = vmatpush1.bf16.msra.mxu1 %v3239_v46 }
 0x10f   : > { %2348 = vmatpush1.bf16.msra.mxu0 %v3242_v47 }
 0x111   : > { %2138 = vmatmul.mubr.bf16.vlgmr.msra.gmra.mrb[0].mxu1 %v2510_v62 }
 0x112   : > { %2350 = vmatmul.mubr.bf16.vlgmr.msra.gmra.mrb[0].mxu0 %v2518_v63  ;;  %2147 = vmatprep.mubr.bf16.mxu1 %v2527_v0 }
 0x113   : > { %2359 = vmatprep.mubr.bf16.mxu0 %v2535_v1 }
 0x119   : > { %2148 = vmatmul.mubr.bf16.gmra.mrb[4].mxu1 %v2526_v2 }
 0x11a   : > { %2360 = vmatmul.mubr.bf16.gmra.mrb[4].mxu0 %v2534_v3 }
 0x1e4   : > { %v2139_v7 = vpop.f32.mrb[0].mxu1 }
 0x1e5   : > { %v2351_v8 = vpop.f32.mrb[0].mxu0  ;;  %v2141_v12 = vpop.f32.mrb[1].mxu1 }
 0x1e6   : > { %v2797_v10 = vadd.f32 %v2351_v8, %v2139_v7  ;;  %v2353_v13 = vpop.f32.mrb[1].mxu0  ;;  %v2143_v16 = vpop.f32.mrb[2].mxu1 }
 0x1e7   : > { %v2798_v14 = vadd.f32 %v2353_v13, %v2141_v12  ;;  %v2355_v17 = vpop.f32.mrb[2].mxu0  ;;  %v2145_v20 = vpop.f32.mrb[3].mxu1 }
 0x1e8   : > { %v2382_v18 = vmul.f32 %v2797_v10, %v2375_v61  ;;  %v2799_v19 = vadd.f32 %v2355_v17, %v2143_v16  ;;  %v2357_v21 = vpop.f32.mrb[3].mxu0 }
 0x1e9   : > { %v2383_v22 = vmul.f32 %v2798_v14, %v2379_v9  ;;  %v2800_v23 = vadd.f32 %v2357_v21, %v2145_v20 }
 0x1ea   : > { %v2402_v24 = vadd.f32 %v2395_v11, %v2382_v18  ;;  %v2384_v25 = vmul.f32 %v2799_v19, %v2375_v61 }
 0x1eb   : > { %v2403_v26 = vadd.f32 %v2399_v15, %v2383_v22  ;;  %v2385_v27 = vmul.f32 %v2800_v23, %v2379_v9 }
 0x1ec   : > { %v2410_v28 = vmax.f32 %v2402_v24, 0.0  ;;  %v2404_v29 = vadd.f32 %v2395_v11, %v2384_v25  ;;  %v2149_v32 = vpop.f32.mrb[4].mxu1 }
 0x1ed   : > { %v2411_v30 = vmax.f32 %v2403_v26, 0.0  ;;  %v2405_v31 = vadd.f32 %v2399_v15, %v2385_v27  ;;  %v2361_v33 = vpop.f32.mrb[4].mxu0  ;;  %v2151_v36 = vpop.f32.mrb[5].mxu1 }
 0x1ee   : > { %2418 = vst [vmem:[%s3646_s6] sm:$0xff] %v2410_v28  ;;  %v2412_v34 = vmax.f32 %v2404_v29, 0.0  ;;  %v2801_v35 = vadd.f32 %v2361_v33, %v2149_v32  ;;  %v2363_v37 = vpop.f32.mrb[5].mxu0  ;;  %v2153_v40 = vpop.f32.mrb[6].mxu1 }
 0x1ef   : > { %2419 = vst [vmem:[%s3646_s6 + $0x8] sm:$0xff] %v2411_v30  ;;  %v2413_v38 = vmax.f32 %v2405_v31, 0.0  ;;  %v2802_v39 = vadd.f32 %v2363_v37, %v2151_v36  ;;  %v2365_v41 = vpop.f32.mrb[6].mxu0  ;;  %v2155_v48 = vpop.f32.mrb[7].mxu1 }
 0x1f0   : > { %2420 = vst [vmem:[%s3646_s6 + $0x10] sm:$0xff] %v2412_v34  ;;  %v2386_v43 = vmul.f32 %v2801_v35, %v2375_v61  ;;  %v2803_v44 = vadd.f32 %v2365_v41, %v2153_v40  ;;  %v2367_v49 = vpop.f32.mrb[7].mxu0 }
 0x1f1   : > { %2421 = vst [vmem:[%s3646_s6 + $0x18] sm:$0xff] %v2413_v38  ;;  %v2387_v50 = vmul.f32 %v2802_v39, %v2379_v9  ;;  %v2804_v51 = vadd.f32 %v2367_v49, %v2155_v48 }
 0x1f2   : > { %v2406_v52 = vadd.f32 %v2395_v11, %v2386_v43  ;;  %v2388_v53 = vmul.f32 %v2803_v44, %v2375_v61 }
 0x1f3   : > { %v2407_v42 = vadd.f32 %v2399_v15, %v2387_v50  ;;  %v2389_v45 = vmul.f32 %v2804_v51, %v2379_v9 }
 0x1f4   : > { %v2414_v46 = vmax.f32 %v2406_v52, 0.0  ;;  %v2408_v47 = vadd.f32 %v2395_v11, %v2388_v53 }
 0x1f5   : > { %v2415_v54 = vmax.f32 %v2407_v42, 0.0  ;;  %v2409_v55 = vadd.f32 %v2399_v15, %v2389_v45 }
 0x1f6   : > { %2422 = vst [vmem:[%s3646_s6 + $0x20] sm:$0xff] %v2414_v46  ;;  %v2416_v57 = vmax.f32 %v2408_v47, 0.0 }
 0x1f7   : > { %2423 = vst [vmem:[%s3646_s6 + $0x28] sm:$0xff] %v2415_v54  ;;  %v2417_v58 = vmax.f32 %v2409_v55, 0.0 }
 0x1f8   : > { %2424 = vst [vmem:[%s3646_s6 + $0x30] sm:$0xff] %v2416_v57 }
 0x1f9   : > { %2425 = vst [vmem:[%s3646_s6 + $0x38] sm:$0xff] %v2417_v58 }
 0x1fa PF: > { %s14_s15 = sadd.s32 1, %s3251_s15  }
 0x1fb   : > { %p11_p4 = scmp.ge.s32.totalorder %s14_s15, 6  }
 0x1fd   :  { %13 = sbr.rel (!%p11_p4) target bundleno = 1 (0x1), region = 69 }

// kernel: forward.6
= control target key start
LH: loop header
LB: loop body
LE: loop exit
PB: predicated region body
PF: predicated region fallthrough
CT: control target
= control target key end

     0   :  { %s2155_s15 = smov 0   ;;  %s2423_s0 = inlined_call_operand.vmem [shape: bf16[4,128,1024], index: 0, kind: input, shape index: {}]   ;;  %s2424_s1 = inlined_call_operand.vmem [shape: bf16[4,1024,128], index: 1, kind: input, shape index: {}]   ;;  %s2425_s2 = inlined_call_operand.vmem [shape: f32[1,128], index: 2, kind: input, shape index: {}]   ;;  %s2426_s3 = inlined_call_operand.vmem [shape: f32[1,128], index: 3, kind: input, shape index: {}]   ;;  %s2427_s4 = inlined_call_operand.vmem [shape: f32[4,128,128], index: 4, kind: output, shape index: {}]  }
   0x1 LB: > { %s1648_s16 = sadd.s32 4294967295, %s2128_s15   ;;  %p1652_p0 = scmp.ge.s32.totalorder %s2128_s15, 1  ;;  %s2128_s15 = sphi %s2155_s15, %s14_s15  }
   0x2   : > { %p172_p1 = scmp.lt.s32.totalorder %s2128_s15, 5 }
   0x4   : > { %p173_p2 = pnand %p1652_p0, %p172_p1 }
   0x5   : > { %p203_p3 = scmp.lt.s32.totalorder (!%p173_p2), %s1648_s16, 3 }
   0x6   : > { %176 = sbr.rel (%p173_p2) target bundleno = 398 (0x18e), region = 36 }
   0xd   : > { %s2429_s16 = smov (!%p203_p3, %s1648_s16), 3 }
   0xe   : > { %s1791_s17 = sshll.u32 %s2429_s16, 9  ;;  %s1793_s28 = sshll.u32 %s2429_s16, 7 }
   0xf   : > { %s2171_s20 = scalar_lea.vmem %s2424_s1, %s1791_s17  ;;  %s2208_s23 = scalar_lea.vmem %s2423_s0, %s1791_s17 }
  0x10   : > { %v2058_v0 = vld [vmem:[%s2171_s20 + $0x40] sm:$0xff]   ;;  %v2062_v4 = vld [vmem:[%s2171_s20 + $0x48] sm:$0xff]   ;;  %v2066_v8 = vld [vmem:[%s2171_s20 + $0x50] sm:$0xff]   ;;  %s2359_s5 = scalar_lea.vmem %s2427_s4, %s1793_s28 }
  0x11   : > { %v2059_v1 = vld [vmem:[%s2171_s20 + $0xc0] sm:$0xff]   ;;  %1794 = vmatprep.subr.bf16.mxu0 %v2058_v0  ;;  %v2063_v5 = vld [vmem:[%s2171_s20 + $0xc8] sm:$0xff]   ;;  %v2067_v9 = vld [vmem:[%s2171_s20 + $0xd0] sm:$0xff]  }
  0x12   : > { %v2060_v2 = vld [vmem:[%s2171_s20] sm:$0xff]   ;;  %1858 = vmatprep.subr.bf16.mxu1 %v2059_v1  ;;  %v2064_v6 = vld [vmem:[%s2171_s20 + $0x8] sm:$0xff]   ;;  %v2068_v10 = vld [vmem:[%s2171_s20 + $0x10] sm:$0xff]  }
  0x13   : > { %v2061_v3 = vld [vmem:[%s2171_s20 + $0x80] sm:$0xff]   ;;  %1795 = vmatpush3.bf16.msra.mxu0 %v2060_v2  ;;  %v2065_v7 = vld [vmem:[%s2171_s20 + $0x88] sm:$0xff]   ;;  %v2069_v11 = vld [vmem:[%s2171_s20 + $0x90] sm:$0xff]  }
  0x14   : > { %1859 = vmatpush3.bf16.msra.mxu1 %v2061_v3  ;;  %1796 = vmatprep.subr.bf16.mxu0 %v2062_v4  ;;  %v2070_v12 = vld [vmem:[%s2171_s20 + $0x58] sm:$0xff]   ;;  %v2074_v16 = vld [vmem:[%s2171_s20 + $0x60] sm:$0xff]   ;;  %v2078_v20 = vld [vmem:[%s2171_s20 + $0x68] sm:$0xff]  }
  0x15   : > { %1860 = vmatprep.subr.bf16.mxu1 %v2063_v5  ;;  %v2071_v13 = vld [vmem:[%s2171_s20 + $0xd8] sm:$0xff]   ;;  %v2075_v17 = vld [vmem:[%s2171_s20 + $0xe0] sm:$0xff]   ;;  %v2079_v21 = vld [vmem:[%s2171_s20 + $0xe8] sm:$0xff]  }
  0x16   : > { %v2072_v14 = vld [vmem:[%s2171_s20 + $0x18] sm:$0xff]   ;;  %v2076_v18 = vld [vmem:[%s2171_s20 + $0x20] sm:$0xff]   ;;  %v2080_v22 = vld [vmem:[%s2171_s20 + $0x28] sm:$0xff]  }
  0x17   : > { %1797 = vmatpush3.bf16.msra.mxu0 %v2064_v6  ;;  %v2073_v15 = vld [vmem:[%s2171_s20 + $0x98] sm:$0xff]   ;;  %v2077_v19 = vld [vmem:[%s2171_s20 + $0xa0] sm:$0xff]   ;;  %v2081_v23 = vld [vmem:[%s2171_s20 + $0xa8] sm:$0xff]  }
  0x18   : > { %1861 = vmatpush3.bf16.msra.mxu1 %v2065_v7  ;;  %1798 = vmatprep.subr.bf16.mxu0 %v2066_v8  ;;  %v2082_v24 = vld [vmem:[%s2171_s20 + $0x70] sm:$0xff]   ;;  %v2086_v28 = vld [vmem:[%s2171_s20 + $0x78] sm:$0xff]   ;;  %v219_v32 = vld [vmem:[%s2208_s23] sm:$0xff] }
  0x19   : > { %1862 = vmatprep.subr.bf16.mxu1 %v2067_v9  ;;  %v2083_v25 = vld [vmem:[%s2171_s20 + $0xf0] sm:$0xff]   ;;  %v2087_v29 = vld [vmem:[%s2171_s20 + $0xf8] sm:$0xff]   ;;  %v223_v33 = vld [vmem:[%s2208_s23 + $0x20] sm:$0xff] }
  0x1a   : > { %v2084_v26 = vld [vmem:[%s2171_s20 + $0x30] sm:$0xff]   ;;  %v2088_v30 = vld [vmem:[%s2171_s20 + $0x38] sm:$0xff]   ;;  %v220_v34 = vld [vmem:[%s2208_s23 + $0x8] sm:$0xff]  ;;  %v1659_v35 = vcombine.low %v219_v32, %v223_v33  ;;  %v1660_v36 = vcombine.high %v219_v32, %v223_v33 }
  0x1b   : > { %1799 = vmatpush3.bf16.msra.mxu0 %v2068_v10  ;;  %v2085_v27 = vld [vmem:[%s2171_s20 + $0xb0] sm:$0xff]   ;;  %v2089_v31 = vld [vmem:[%s2171_s20 + $0xb8] sm:$0xff]   ;;  %v224_v37 = vld [vmem:[%s2208_s23 + $0x28] sm:$0xff] }
  0x1c   : > { %1863 = vmatpush3.bf16.msra.mxu1 %v2069_v11  ;;  %1800 = vmatprep.subr.bf16.mxu0 %v2070_v12  ;;  %v1661_v38 = vcombine.low %v220_v34, %v224_v37  ;;  %v1662_v39 = vcombine.high %v220_v34, %v224_v37  ;;  %v2090_v40 = vld [vmem:[%s2171_s20 + $0x140] sm:$0xff]   ;;  %v228_v47 = vld [vmem:[%s2208_s23 + $0x48] sm:$0xff]  ;;  %v2098_v62 = vld [vmem:[%s2171_s20 + $0x150] sm:$0xff]  }
  0x1d   : > { %1864 = vmatprep.subr.bf16.mxu1 %v2071_v13  ;;  %1147 = vmatprep.mubr.bf16.mxu0 %v1660_v36  ;;  %v2091_v41 = vld [vmem:[%s2171_s20 + $0x100] sm:$0xff]   ;;  %v232_v48 = vld [vmem:[%s2208_s23 + $0x68] sm:$0xff]  ;;  %v2099_v63 = vld [vmem:[%s2171_s20 + $0x110] sm:$0xff]  }
  0x1e   : > { %1244 = vmatprep.mubr.bf16.mxu1 %v1662_v39  ;;  %v2092_v42 = vld [vmem:[%s2171_s20 + $0x1c0] sm:$0xff]   ;;  %v1670_v49 = vcombine.high %v228_v47, %v232_v48  ;;  %v2094_v50 = vld [vmem:[%s2171_s20 + $0x148] sm:$0xff]   ;;  %v1669_v53 = vcombine.low %v228_v47, %v232_v48  ;;  %v2100_v0 = vld [vmem:[%s2171_s20 + $0x1d0] sm:$0xff]  }
  0x1f   : > { %1801 = vmatpush3.bf16.msra.mxu0 %v2072_v14  ;;  %v2093_v43 = vld [vmem:[%s2171_s20 + $0x180] sm:$0xff]   ;;  %v2095_v52 = vld [vmem:[%s2171_s20 + $0x108] sm:$0xff]   ;;  %v2101_v1 = vld [vmem:[%s2171_s20 + $0x190] sm:$0xff]  }
  0x20   : > { %1865 = vmatpush3.bf16.msra.mxu1 %v2073_v15  ;;  %1802 = vmatprep.subr.bf16.mxu0 %v2074_v16  ;;  %v227_v44 = vld [vmem:[%s2208_s23 + $0x40] sm:$0xff]  ;;  %v2096_v54 = vld [vmem:[%s2171_s20 + $0x1c8] sm:$0xff]   ;;  %v2102_v10 = vld [vmem:[%s2171_s20 + $0x158] sm:$0xff]  }
  0x21   : > { %1866 = vmatprep.subr.bf16.mxu1 %v2075_v17  ;;  %v231_v45 = vld [vmem:[%s2208_s23 + $0x60] sm:$0xff]  ;;  %v2097_v55 = vld [vmem:[%s2171_s20 + $0x188] sm:$0xff]   ;;  %v2103_v11 = vld [vmem:[%s2171_s20 + $0x118] sm:$0xff]  }
  0x22   : > { %v1668_v46 = vcombine.high %v227_v44, %v231_v45  ;;  %v1667_v51 = vcombine.low %v227_v44, %v231_v45  ;;  %v235_v56 = vld [vmem:[%s2208_s23 + $0x80] sm:$0xff]  ;;  %v236_v58 = vld [vmem:[%s2208_s23 + $0x88] sm:$0xff]  ;;  %v2104_v12 = vld [vmem:[%s2171_s20 + $0x1d8] sm:$0xff]  }
  0x23   : > { %1803 = vmatpush3.bf16.msra.mxu0 %v2076_v18  ;;  %v239_v57 = vld [vmem:[%s2208_s23 + $0xa0] sm:$0xff]  ;;  %v240_v59 = vld [vmem:[%s2208_s23 + $0xa8] sm:$0xff]  ;;  %v2105_v13 = vld [vmem:[%s2171_s20 + $0x198] sm:$0xff]  }
  0x24   : > { %1867 = vmatpush3.bf16.msra.mxu1 %v2077_v19  ;;  %1804 = vmatprep.subr.bf16.mxu0 %v2078_v20  ;;  %v1676_v60 = vcombine.high %v235_v56, %v239_v57  ;;  %v1678_v61 = vcombine.high %v236_v58, %v240_v59  ;;  %v1675_v2 = vcombine.low %v235_v56, %v239_v57  ;;  %v243_v3 = vld [vmem:[%s2208_s23 + $0xc0] sm:$0xff]  ;;  %v244_v5 = vld [vmem:[%s2208_s23 + $0xc8] sm:$0xff]  ;;  %v2115_v39 = vld [vmem:[%s2171_s20 + $0x130] sm:$0xff]  }
  0x25   : > { %1868 = vmatprep.subr.bf16.mxu1 %v2079_v21  ;;  %v247_v4 = vld [vmem:[%s2208_s23 + $0xe0] sm:$0xff]  ;;  %v1677_v6 = vcombine.low %v236_v58, %v240_v59  ;;  %v248_v8 = vld [vmem:[%s2208_s23 + $0xe8] sm:$0xff]  ;;  %v2119_v48 = vld [vmem:[%s2171_s20 + $0x138] sm:$0xff]  }
  0x26   : > { %v1684_v7 = vcombine.high %v243_v3, %v247_v4  ;;  %v1686_v9 = vcombine.high %v244_v5, %v248_v8  ;;  %v251_v14 = vld [vmem:[%s2208_s23 + $0x100] sm:$0xff]  ;;  %v252_v16 = vld [vmem:[%s2208_s23 + $0x108] sm:$0xff]  ;;  %v1683_v19 = vcombine.low %v243_v3, %v247_v4  ;;  %v1685_v21 = vcombine.low %v244_v5, %v248_v8  ;;  %v230_v8 = vld [vmem:[%s2208_s23 + $0x58] sm:$0xff] }
  0x27   : > { %1805 = vmatpush3.bf16.msra.mxu0 %v2080_v22  ;;  %v255_v15 = vld [vmem:[%s2208_s23 + $0x120] sm:$0xff]  ;;  %v256_v17 = vld [vmem:[%s2208_s23 + $0x128] sm:$0xff] }
  0x28   : > { %1869 = vmatpush3.bf16.msra.mxu1 %v2081_v23  ;;  %1806 = vmatprep.subr.bf16.mxu0 %v2082_v24  ;;  %v2106_v18 = vld [vmem:[%s2171_s20 + $0x160] sm:$0xff]   ;;  %v1692_v22 = vcombine.high %v251_v14, %v255_v15  ;;  %v1694_v24 = vcombine.high %v252_v16, %v256_v17  ;;  %v2112_v32 = vld [vmem:[%s2171_s20 + $0x1e8] sm:$0xff]   ;;  %v1691_v34 = vcombine.low %v251_v14, %v255_v15  ;;  %v237_v14 = vld [vmem:[%s2208_s23 + $0x90] sm:$0xff] }
  0x29   : > { %1870 = vmatprep.subr.bf16.mxu1 %v2083_v25  ;;  %v2107_v20 = vld [vmem:[%s2171_s20 + $0x120] sm:$0xff]   ;;  %v2113_v33 = vld [vmem:[%s2171_s20 + $0x1a8] sm:$0xff]   ;;  %v241_v15 = vld [vmem:[%s2208_s23 + $0xb0] sm:$0xff] }
  0x2a   : > { %v2108_v23 = vld [vmem:[%s2171_s20 + $0x1e0] sm:$0xff]   ;;  %v268_v44 = vld [vmem:[%s2208_s23 + $0x188] sm:$0xff] }
  0x2b   : > { %1807 = vmatpush3.bf16.msra.mxu0 %v2084_v26  ;;  %v2109_v25 = vld [vmem:[%s2171_s20 + $0x1a0] sm:$0xff]   ;;  %v272_v45 = vld [vmem:[%s2208_s23 + $0x1a8] sm:$0xff] }
  0x2c   : > { %1871 = vmatpush3.bf16.msra.mxu1 %v2085_v27  ;;  %1808 = vmatprep.subr.bf16.mxu0 %v2086_v28  ;;  %v259_v26 = vld [vmem:[%s2208_s23 + $0x140] sm:$0xff]  ;;  %v2110_v28 = vld [vmem:[%s2171_s20 + $0x168] sm:$0xff]   ;;  %v1709_v59 = vcombine.low %v268_v44, %v272_v45 }
  0x2d   : > { %1872 = vmatprep.subr.bf16.mxu1 %v2087_v29  ;;  %v263_v27 = vld [vmem:[%s2208_s23 + $0x160] sm:$0xff]  ;;  %v260_v29 = vld [vmem:[%s2208_s23 + $0x148] sm:$0xff] }
  0x2e   : > { %v1700_v36 = vcombine.high %v259_v26, %v263_v27  ;;  %v1699_v47 = vcombine.low %v259_v26, %v263_v27  ;;  %v276_v56 = vld [vmem:[%s2208_s23 + $0x1c8] sm:$0xff]  ;;  %v1679_v26 = vcombine.low %v237_v14, %v241_v15 }
  0x2f   : > { %1809 = vmatpush3.bf16.msra.mxu0 %v2088_v30  ;;  %v264_v30 = vld [vmem:[%s2208_s23 + $0x168] sm:$0xff] }
  0x30   : > { %1873 = vmatpush3.bf16.msra.mxu1 %v2089_v31  ;;  %1922 = vmatprep.subr.bf16.mxu0 %v2090_v40  ;;  %v2111_v31 = vld [vmem:[%s2171_s20 + $0x128] sm:$0xff]   ;;  %v1702_v37 = vcombine.high %v260_v29, %v264_v30  ;;  %v2116_v40 = vld [vmem:[%s2171_s20 + $0x1f0] sm:$0xff]  }
  0x31   : > { %1986 = vmatprep.subr.bf16.mxu1 %v2092_v42  ;;  %v271_v42 = vld [vmem:[%s2208_s23 + $0x1a0] sm:$0xff]  ;;  %v280_v57 = vld [vmem:[%s2208_s23 + $0x1e8] sm:$0xff] }
  0x32   : > { %1148 = vmatmul.mubr.bf16.vlgmr.msra.gmra.mrb[0].mxu0 %v1659_v35  ;;  %v1693_v35 = vcombine.low %v252_v16, %v256_v17  ;;  %v1717_v3 = vcombine.low %v276_v56, %v280_v57  ;;  %v238_v16 = vld [vmem:[%s2208_s23 + $0x98] sm:$0xff] }
  0x33   : > { %1245 = vmatmul.mubr.bf16.vlgmr.msra.gmra.mrb[0].mxu1 %v1661_v38  ;;  %1923 = vmatpush3.bf16.msra.mxu0 %v2091_v41  ;;  %v2114_v38 = vld [vmem:[%s2171_s20 + $0x170] sm:$0xff]   ;;  %v267_v41 = vld [vmem:[%s2208_s23 + $0x180] sm:$0xff]  ;;  %v242_v17 = vld [vmem:[%s2208_s23 + $0xb8] sm:$0xff] }
  0x34   : > { %1987 = vmatpush3.bf16.msra.mxu1 %v2093_v43  ;;  %1155 = vmatprep.mubr.bf16.mxu0 %v1668_v46  ;;  %v2117_v43 = vld [vmem:[%s2171_s20 + $0x1b0] sm:$0xff]   ;;  %v2118_v46 = vld [vmem:[%s2171_s20 + $0x178] sm:$0xff]   ;;  %v1707_v58 = vcombine.low %v267_v41, %v271_v42  ;;  %v1681_v27 = vcombine.low %v238_v16, %v242_v17 }
  0x35   : > { %1252 = vmatprep.mubr.bf16.mxu1 %v1670_v49  ;;  %1924 = vmatprep.subr.bf16.mxu0 %v2094_v50  ;;  %v1701_v49 = vcombine.low %v260_v29, %v264_v30  ;;  %v1708_v50 = vcombine.high %v267_v41, %v271_v42  ;;  %v253_v30 = vld [vmem:[%s2208_s23 + $0x110] sm:$0xff]  ;;  %v266_v41 = vld [vmem:[%s2208_s23 + $0x178] sm:$0xff] }
  0x36   : > { %1988 = vmatprep.subr.bf16.mxu1 %v2096_v54  ;;  %v275_v54 = vld [vmem:[%s2208_s23 + $0x1c0] sm:$0xff] }
  0x37   : > { %1925 = vmatpush3.bf16.msra.mxu0 %v2095_v52  ;;  %v1710_v52 = vcombine.high %v268_v44, %v272_v45 }
  0x38   : > { %1989 = vmatpush3.bf16.msra.mxu1 %v2097_v55  ;;  %1926 = vmatprep.subr.bf16.mxu0 %v2098_v62  ;;  %v279_v55 = vld [vmem:[%s2208_s23 + $0x1e0] sm:$0xff]  ;;  %v221_v62 = vld [vmem:[%s2208_s23 + $0x10] sm:$0xff] }
  0x39   : > { %1990 = vmatprep.subr.bf16.mxu1 %v2100_v0  ;;  %v222_v0 = vld [vmem:[%s2208_s23 + $0x18] sm:$0xff] }
  0x3a   : > { %1156 = vmatmul.mubr.bf16.gmra.mrb[4].mxu0 %v1667_v51  ;;  %v2120_v51 = vld [vmem:[%s2171_s20 + $0x1f8] sm:$0xff]  }
  0x3b   : > { %1253 = vmatmul.mubr.bf16.gmra.mrb[4].mxu1 %v1669_v53  ;;  %1163 = vmatprep.mubr.bf16.mxu0 %v1676_v60  ;;  %v2121_v53 = vld [vmem:[%s2171_s20 + $0x1b8] sm:$0xff]   ;;  %v1716_v60 = vcombine.high %v275_v54, %v279_v55 }
  0x3c   : > { %1260 = vmatprep.mubr.bf16.mxu1 %v1678_v61  ;;  %1927 = vmatpush3.bf16.msra.mxu0 %v2099_v63  ;;  %v1718_v61 = vcombine.high %v276_v56, %v280_v57  ;;  %v225_v63 = vld [vmem:[%s2208_s23 + $0x30] sm:$0xff]  ;;  %v278_v56 = vld [vmem:[%s2208_s23 + $0x1d8] sm:$0xff] }
  0x3d   : > { %1991 = vmatpush3.bf16.msra.mxu1 %v2101_v1  ;;  %1928 = vmatprep.subr.bf16.mxu0 %v2102_v10  ;;  %v226_v1 = vld [vmem:[%s2208_s23 + $0x38] sm:$0xff]  ;;  %v1664_v4 = vcombine.high %v221_v62, %v225_v63  ;;  %v1663_v10 = vcombine.low %v221_v62, %v225_v63 }
  0x3e   : > { %1992 = vmatprep.subr.bf16.mxu1 %v2104_v12  ;;  %v1666_v5 = vcombine.high %v222_v0, %v226_v1  ;;  %v282_v57 = vld [vmem:[%s2208_s23 + $0x1f8] sm:$0xff] }
  0x3f   : > { %v1721_v63 = vcombine.low %v278_v56, %v282_v57 }
  0x40   : > { %1929 = vmatpush3.bf16.msra.mxu0 %v2103_v11  ;;  %v1665_v11 = vcombine.low %v222_v0, %v226_v1 }
  0x41   : > { %1993 = vmatpush3.bf16.msra.mxu1 %v2105_v13  ;;  %1930 = vmatprep.subr.bf16.mxu0 %v2106_v18 }
  0x42   : > { %1164 = vmatmul.mubr.bf16.gmra.mrb[8].mxu0 %v1675_v2  ;;  %1994 = vmatprep.subr.bf16.mxu1 %v2108_v23  ;;  %v1715_v2 = vcombine.low %v275_v54, %v279_v55  ;;  %v249_v23 = vld [vmem:[%s2208_s23 + $0xf0] sm:$0xff] }
  0x43   : > { %1261 = vmatmul.mubr.bf16.gmra.mrb[8].mxu1 %v1677_v6  ;;  %1171 = vmatprep.mubr.bf16.mxu0 %v1684_v7  ;;  %v229_v6 = vld [vmem:[%s2208_s23 + $0x50] sm:$0xff] }
  0x44   : > { %1268 = vmatprep.mubr.bf16.mxu1 %v1686_v9  ;;  %1931 = vmatpush3.bf16.msra.mxu0 %v2107_v20  ;;  %v233_v7 = vld [vmem:[%s2208_s23 + $0x70] sm:$0xff]  ;;  %v234_v9 = vld [vmem:[%s2208_s23 + $0x78] sm:$0xff]  ;;  %v1680_v20 = vcombine.high %v237_v14, %v241_v15 }
  0x45   : > { %1995 = vmatpush3.bf16.msra.mxu1 %v2109_v25  ;;  %1932 = vmatprep.subr.bf16.mxu0 %v2110_v28  ;;  %v1672_v12 = vcombine.high %v229_v6, %v233_v7  ;;  %v1674_v13 = vcombine.high %v230_v8, %v234_v9  ;;  %v1671_v18 = vcombine.low %v229_v6, %v233_v7  ;;  %v250_v25 = vld [vmem:[%s2208_s23 + $0xf8] sm:$0xff]  ;;  %v277_v54 = vld [vmem:[%s2208_s23 + $0x1d0] sm:$0xff] }
  0x46   : > { %1996 = vmatprep.subr.bf16.mxu1 %v2112_v32  ;;  %v254_v32 = vld [vmem:[%s2208_s23 + $0x118] sm:$0xff]  ;;  %v281_v55 = vld [vmem:[%s2208_s23 + $0x1f0] sm:$0xff] }
  0x47   : > { %v1719_v62 = vcombine.low %v277_v54, %v281_v55 }
  0x48   : > { %1933 = vmatpush3.bf16.msra.mxu0 %v2111_v31  ;;  %v257_v31 = vld [vmem:[%s2208_s23 + $0x130] sm:$0xff] }
  0x49   : > { %1997 = vmatpush3.bf16.msra.mxu1 %v2113_v33  ;;  %1934 = vmatprep.subr.bf16.mxu0 %v2114_v38  ;;  %v258_v33 = vld [vmem:[%s2208_s23 + $0x138] sm:$0xff]  ;;  %v261_v38 = vld [vmem:[%s2208_s23 + $0x150] sm:$0xff]  ;;  %v1695_v42 = vcombine.low %v253_v30, %v257_v31 }
  0x4a   : > { %1172 = vmatmul.mubr.bf16.gmra.mrb[12].mxu0 %v1683_v19  ;;  %1998 = vmatprep.subr.bf16.mxu1 %v2116_v40  ;;  %v1673_v19 = vcombine.low %v230_v8, %v234_v9  ;;  %v262_v40 = vld [vmem:[%s2208_s23 + $0x158] sm:$0xff] }
  0x4b   : > { %1269 = vmatmul.mubr.bf16.gmra.mrb[12].mxu1 %v1685_v21  ;;  %1179 = vmatprep.mubr.bf16.mxu0 %v1692_v22  ;;  %v1682_v21 = vcombine.high %v238_v16, %v242_v17  ;;  %v245_v22 = vld [vmem:[%s2208_s23 + $0xd0] sm:$0xff]  ;;  %v1706_v45 = vcombine.high %v262_v40, %v266_v41 }
  0x4c   : > { %1276 = vmatprep.mubr.bf16.mxu1 %v1694_v24  ;;  %1935 = vmatpush3.bf16.msra.mxu0 %v2115_v39  ;;  %v246_v24 = vld [vmem:[%s2208_s23 + $0xd8] sm:$0xff]  ;;  %v1688_v28 = vcombine.high %v245_v22, %v249_v23  ;;  %v265_v39 = vld [vmem:[%s2208_s23 + $0x170] sm:$0xff] }
  0x4d   : > { %1999 = vmatpush3.bf16.msra.mxu1 %v2117_v43  ;;  %1936 = vmatprep.subr.bf16.mxu0 %v2118_v46  ;;  %v1690_v29 = vcombine.high %v246_v24, %v250_v25  ;;  %v1697_v43 = vcombine.low %v254_v32, %v258_v33  ;;  %v1704_v44 = vcombine.high %v261_v38, %v265_v39  ;;  %v269_v46 = vld [vmem:[%s2208_s23 + $0x190] sm:$0xff] }
  0x4e   : > { %2000 = vmatprep.subr.bf16.mxu1 %v2120_v51  ;;  %v1705_v51 = vcombine.low %v262_v40, %v266_v41 }
  0x50   : > { %1937 = vmatpush3.bf16.msra.mxu0 %v2119_v48  ;;  %v270_v48 = vld [vmem:[%s2208_s23 + $0x198] sm:$0xff] }
  0x51   : > { %2001 = vmatpush3.bf16.msra.mxu1 %v2121_v53 }
  0x52   : > { %1180 = vmatmul.mubr.bf16.gmra.mrb[16].mxu0 %v1691_v34  ;;  %v1687_v34 = vcombine.low %v245_v22, %v249_v23 }
  0x53   : > { %1277 = vmatmul.mubr.bf16.gmra.mrb[16].mxu1 %v1693_v35  ;;  %1187 = vmatprep.mubr.bf16.mxu0 %v1700_v36  ;;  %v1689_v35 = vcombine.low %v246_v24, %v250_v25  ;;  %v1696_v36 = vcombine.high %v253_v30, %v257_v31 }
  0x54   : > { %1284 = vmatprep.mubr.bf16.mxu1 %v1702_v37  ;;  %v1698_v37 = vcombine.high %v254_v32, %v258_v33 }
  0x5a   : > { %1188 = vmatmul.mubr.bf16.gmra.mrb[20].mxu0 %v1699_v47  ;;  %v273_v47 = vld [vmem:[%s2208_s23 + $0x1b0] sm:$0xff] }
  0x5b   : > { %1285 = vmatmul.mubr.bf16.gmra.mrb[20].mxu1 %v1701_v49  ;;  %1195 = vmatprep.mubr.bf16.mxu0 %v1708_v50  ;;  %v274_v49 = vld [vmem:[%s2208_s23 + $0x1b8] sm:$0xff]  ;;  %v1703_v50 = vcombine.low %v261_v38, %v265_v39 }
  0x5c   : > { %1292 = vmatprep.mubr.bf16.mxu1 %v1710_v52  ;;  %v1712_v52 = vcombine.high %v269_v46, %v273_v47  ;;  %v1714_v53 = vcombine.high %v270_v48, %v274_v49 }
  0x62   : > { %1196 = vmatmul.mubr.bf16.gmra.mrb[24].mxu0 %v1707_v58  ;;  %v1711_v58 = vcombine.low %v269_v46, %v273_v47 }
  0x63   : > { %1293 = vmatmul.mubr.bf16.gmra.mrb[24].mxu1 %v1709_v59  ;;  %1203 = vmatprep.mubr.bf16.mxu0 %v1716_v60  ;;  %v1713_v59 = vcombine.low %v270_v48, %v274_v49  ;;  %v1720_v60 = vcombine.high %v277_v54, %v281_v55 }
  0x64   : > { %1300 = vmatprep.mubr.bf16.mxu1 %v1718_v61  ;;  %v1722_v61 = vcombine.high %v278_v56, %v282_v57 }
  0x6a   : > { %1204 = vmatmul.mubr.bf16.gmra.mrb[28].mxu0 %v1715_v2 }
  0x6b   : > { %1301 = vmatmul.mubr.bf16.gmra.mrb[28].mxu1 %v1717_v3  ;;  %1341 = vmatprep.mubr.bf16.mxu0 %v1664_v4 }
  0x6c   : > { %1438 = vmatprep.mubr.bf16.mxu1 %v1666_v5 }
  0x72   : > { %1342 = vmatmul.mubr.bf16.vlgmr.msra.gmra.mrb[32].mxu0 %v1663_v10 }
  0x73   : > { %1439 = vmatmul.mubr.bf16.vlgmr.msra.gmra.mrb[32].mxu1 %v1665_v11  ;;  %1349 = vmatprep.mubr.bf16.mxu0 %v1672_v12 }
  0x74   : > { %1446 = vmatprep.mubr.bf16.mxu1 %v1674_v13 }
  0x7a   : > { %1350 = vmatmul.mubr.bf16.gmra.mrb[36].mxu0 %v1671_v18 }
  0x7b   : > { %1447 = vmatmul.mubr.bf16.gmra.mrb[36].mxu1 %v1673_v19  ;;  %1357 = vmatprep.mubr.bf16.mxu0 %v1680_v20 }
  0x7c   : > { %1454 = vmatprep.mubr.bf16.mxu1 %v1682_v21 }
  0x82   : > { %1358 = vmatmul.mubr.bf16.gmra.mrb[40].mxu0 %v1679_v26 }
  0x83   : > { %1455 = vmatmul.mubr.bf16.gmra.mrb[40].mxu1 %v1681_v27  ;;  %1365 = vmatprep.mubr.bf16.mxu0 %v1688_v28 }
  0x84   : > { %1462 = vmatprep.mubr.bf16.mxu1 %v1690_v29 }
  0x8a   : > { %1366 = vmatmul.mubr.bf16.gmra.mrb[44].mxu0 %v1687_v34 }
  0x8b   : > { %1463 = vmatmul.mubr.bf16.gmra.mrb[44].mxu1 %v1689_v35  ;;  %1373 = vmatprep.mubr.bf16.mxu0 %v1696_v36 }
  0x8c   : > { %1470 = vmatprep.mubr.bf16.mxu1 %v1698_v37 }
  0x92   : > { %1374 = vmatmul.mubr.bf16.gmra.mrb[48].mxu0 %v1695_v42 }
  0x93   : > { %1471 = vmatmul.mubr.bf16.gmra.mrb[48].mxu1 %v1697_v43  ;;  %1381 = vmatprep.mubr.bf16.mxu0 %v1704_v44 }
  0x94   : > { %1478 = vmatprep.mubr.bf16.mxu1 %v1706_v45 }
  0x9a   : > { %1382 = vmatmul.mubr.bf16.gmra.mrb[52].mxu0 %v1703_v50 }
  0x9b   : > { %1479 = vmatmul.mubr.bf16.gmra.mrb[52].mxu1 %v1705_v51  ;;  %1389 = vmatprep.mubr.bf16.mxu0 %v1712_v52 }
  0x9c   : > { %1486 = vmatprep.mubr.bf16.mxu1 %v1714_v53 }
  0xa2   : > { %1390 = vmatmul.mubr.bf16.gmra.mrb[56].mxu0 %v1711_v58 }
  0xa3   : > { %1487 = vmatmul.mubr.bf16.gmra.mrb[56].mxu1 %v1713_v59  ;;  %1397 = vmatprep.mubr.bf16.mxu0 %v1720_v60 }
  0xa4   : > { %1494 = vmatprep.mubr.bf16.mxu1 %v1722_v61 }
  0xaa   : > { %1398 = vmatmul.mubr.bf16.gmra.mrb[60].mxu0 %v1719_v62 }
  0xab   : > { %1495 = vmatmul.mubr.bf16.gmra.mrb[60].mxu1 %v1721_v63 }
 0x105   : > { %v1810_v0 = vpop.f32.mrb[0].mxu0 }
 0x106   : > { %v1874_v1 = vpop.f32.mrb[0].mxu1  ;;  %v1811_v2 = vpop.f32.mrb[1].mxu0 }
 0x107   : > { %v1812_v3 = vadd.f32 %v1811_v2, %v1810_v0  ;;  %v1875_v4 = vpop.f32.mrb[1].mxu1  ;;  %v1813_v5 = vpop.f32.mrb[2].mxu0 }
 0x108   : > { %v1876_v6 = vadd.f32 %v1875_v4, %v1874_v1  ;;  %v1877_v7 = vpop.f32.mrb[2].mxu1  ;;  %v1814_v8 = vpop.f32.mrb[3].mxu0 }
 0x109   : > { %v1815_v9 = vadd.f32 %v1814_v8, %v1813_v5  ;;  %v1878_v10 = vpop.f32.mrb[3].mxu1 }
 0x10a   : > { %v2308_v11 = vadd.f32 %v1876_v6, %v1812_v3  ;;  %v1879_v12 = vadd.f32 %v1878_v10, %v1877_v7 }
 0x10c   : > { %v2310_v13 = vadd.f32 %v1879_v12, %v1815_v9 }
 0x10d   : > { %v1816_v14 = vpop.f32.mrb[4].mxu0 }
 0x10e   : > { %v1880_v15 = vpop.f32.mrb[4].mxu1  ;;  %v1817_v16 = vpop.f32.mrb[5].mxu0 }
 0x10f   : > { %v1818_v17 = vadd.f32 %v1817_v16, %v1816_v14  ;;  %v1881_v18 = vpop.f32.mrb[5].mxu1  ;;  %v1819_v19 = vpop.f32.mrb[6].mxu0 }
 0x110   : > { %v1882_v20 = vadd.f32 %v1881_v18, %v1880_v15  ;;  %v1883_v21 = vpop.f32.mrb[6].mxu1  ;;  %v1820_v22 = vpop.f32.mrb[7].mxu0 }
 0x111   : > { %v1821_v23 = vadd.f32 %v1820_v22, %v1819_v19  ;;  %v1884_v24 = vpop.f32.mrb[7].mxu1 }
 0x112   : > { %v2312_v25 = vadd.f32 %v1882_v20, %v1818_v17  ;;  %v1885_v26 = vadd.f32 %v1884_v24, %v1883_v21 }
 0x114   : > { %v2314_v27 = vadd.f32 %v1885_v26, %v1821_v23 }
 0x115   : > { %v1822_v28 = vpop.f32.mrb[8].mxu0 }
 0x116   : > { %v1886_v29 = vpop.f32.mrb[8].mxu1  ;;  %v1823_v30 = vpop.f32.mrb[9].mxu0 }
 0x117   : > { %v1824_v31 = vadd.f32 %v1823_v30, %v1822_v28  ;;  %v1887_v32 = vpop.f32.mrb[9].mxu1  ;;  %v1825_v33 = vpop.f32.mrb[10].mxu0 }
 0x118   : > { %v1888_v34 = vadd.f32 %v1887_v32, %v1886_v29  ;;  %v1889_v35 = vpop.f32.mrb[10].mxu1  ;;  %v1826_v36 = vpop.f32.mrb[11].mxu0 }
 0x119   : > { %v1827_v37 = vadd.f32 %v1826_v36, %v1825_v33  ;;  %v1890_v38 = vpop.f32.mrb[11].mxu1 }
 0x11a   : > { %v2316_v39 = vadd.f32 %v1888_v34, %v1824_v31  ;;  %v1891_v40 = vadd.f32 %v1890_v38, %v1889_v35 }
 0x11c   : > { %v2318_v41 = vadd.f32 %v1891_v40, %v1827_v37 }
 0x11d   : > { %v1828_v42 = vpop.f32.mrb[12].mxu0 }
 0x11e   : > { %v1892_v43 = vpop.f32.mrb[12].mxu1  ;;  %v1829_v44 = vpop.f32.mrb[13].mxu0 }
 0x11f   : > { %v1830_v45 = vadd.f32 %v1829_v44, %v1828_v42  ;;  %v1893_v46 = vpop.f32.mrb[13].mxu1  ;;  %v1831_v47 = vpop.f32.mrb[14].mxu0 }
 0x120   : > { %v1894_v48 = vadd.f32 %v1893_v46, %v1892_v43  ;;  %v1895_v49 = vpop.f32.mrb[14].mxu1  ;;  %v1832_v50 = vpop.f32.mrb[15].mxu0 }
 0x121   : > { %v1833_v51 = vadd.f32 %v1832_v50, %v1831_v47  ;;  %v1896_v52 = vpop.f32.mrb[15].mxu1 }
 0x122   : > { %v2320_v53 = vadd.f32 %v1894_v48, %v1830_v45  ;;  %v1897_v54 = vadd.f32 %v1896_v52, %v1895_v49 }
 0x124   : > { %v2322_v55 = vadd.f32 %v1897_v54, %v1833_v51 }
 0x125   : > { %v1834_v56 = vpop.f32.mrb[16].mxu0 }
 0x126   : > { %v1898_v57 = vpop.f32.mrb[16].mxu1  ;;  %v1835_v58 = vpop.f32.mrb[17].mxu0 }
 0x127   : > { %v1836_v59 = vadd.f32 %v1835_v58, %v1834_v56  ;;  %v1899_v60 = vpop.f32.mrb[17].mxu1  ;;  %v1837_v61 = vpop.f32.mrb[18].mxu0 }
 0x128   : > { %v1900_v62 = vadd.f32 %v1899_v60, %v1898_v57  ;;  %v1901_v63 = vpop.f32.mrb[18].mxu1  ;;  %v1838_v0 = vpop.f32.mrb[19].mxu0 }
 0x129   : > { %v1839_v1 = vadd.f32 %v1838_v0, %v1837_v61  ;;  %v1902_v2 = vpop.f32.mrb[19].mxu1 }
 0x12a   : > { %v2324_v3 = vadd.f32 %v1900_v62, %v1836_v59  ;;  %v1903_v4 = vadd.f32 %v1902_v2, %v1901_v63 }
 0x12c   : > { %v2326_v5 = vadd.f32 %v1903_v4, %v1839_v1 }
 0x12d   : > { %v1840_v6 = vpop.f32.mrb[20].mxu0 }
 0x12e   : > { %v1904_v7 = vpop.f32.mrb[20].mxu1  ;;  %v1841_v8 = vpop.f32.mrb[21].mxu0 }
 0x12f   : > { %v1842_v9 = vadd.f32 %v1841_v8, %v1840_v6  ;;  %v1905_v10 = vpop.f32.mrb[21].mxu1  ;;  %v1843_v12 = vpop.f32.mrb[22].mxu0  ;;  %v2344_v6 = vld [vmem:[%s2425_s2] ss:$0 sm:$0xff] }
 0x130   : > { %v1906_v14 = vadd.f32 %v1905_v10, %v1904_v7  ;;  %v1907_v15 = vpop.f32.mrb[22].mxu1  ;;  %v1844_v16 = vpop.f32.mrb[23].mxu0  ;;  %v2350_v10 = vld [vmem:[%s2426_s3] ss:$0 sm:$0xff] }
 0x131   : > { %v1845_v17 = vadd.f32 %v1844_v16, %v1843_v12  ;;  %v1908_v18 = vpop.f32.mrb[23].mxu1 }
 0x132   : > { %v2328_v19 = vadd.f32 %v1906_v14, %v1842_v9  ;;  %v1909_v20 = vadd.f32 %v1908_v18, %v1907_v15 }
 0x134   : > { %v2330_v21 = vadd.f32 %v1909_v20, %v1845_v17 }
 0x135   : > { %v1846_v22 = vpop.f32.mrb[24].mxu0 }
 0x136   : > { %v1910_v23 = vpop.f32.mrb[24].mxu1  ;;  %v1847_v24 = vpop.f32.mrb[25].mxu0 }
 0x137   : > { %v1848_v26 = vadd.f32 %v1847_v24, %v1846_v22  ;;  %v1911_v28 = vpop.f32.mrb[25].mxu1  ;;  %v1849_v29 = vpop.f32.mrb[26].mxu0 }
 0x138   : > { %v1912_v30 = vadd.f32 %v1911_v28, %v1910_v23  ;;  %v1913_v31 = vpop.f32.mrb[26].mxu1  ;;  %v1850_v32 = vpop.f32.mrb[27].mxu0 }
 0x139   : > { %v1851_v33 = vadd.f32 %v1850_v32, %v1849_v29  ;;  %v1914_v34 = vpop.f32.mrb[27].mxu1 }
 0x13a   : > { %v2332_v35 = vadd.f32 %v1912_v30, %v1848_v26  ;;  %v1915_v36 = vadd.f32 %v1914_v34, %v1913_v31 }
 0x13c   : > { %v2334_v37 = vadd.f32 %v1915_v36, %v1851_v33 }
 0x13d   : > { %v1852_v38 = vpop.f32.mrb[28].mxu0 }
 0x13e   : > { %v1916_v40 = vpop.f32.mrb[28].mxu1  ;;  %v1853_v42 = vpop.f32.mrb[29].mxu0 }
 0x13f   : > { %v1854_v43 = vadd.f32 %v1853_v42, %v1852_v38  ;;  %v1917_v44 = vpop.f32.mrb[29].mxu1  ;;  %v1855_v45 = vpop.f32.mrb[30].mxu0 }
 0x140   : > { %v1918_v46 = vadd.f32 %v1917_v44, %v1916_v40  ;;  %v1919_v47 = vpop.f32.mrb[30].mxu1  ;;  %v1856_v48 = vpop.f32.mrb[31].mxu0 }
 0x141   : > { %v1857_v49 = vadd.f32 %v1856_v48, %v1855_v45  ;;  %v1920_v50 = vpop.f32.mrb[31].mxu1 }
 0x142   : > { %v2336_v51 = vadd.f32 %v1918_v46, %v1854_v43  ;;  %v1921_v52 = vadd.f32 %v1920_v50, %v1919_v47 }
 0x144   : > { %v2338_v54 = vadd.f32 %v1921_v52, %v1857_v49 }
 0x145   : > { %v1938_v56 = vpop.f32.mrb[32].mxu0 }
 0x146   : > { %v2002_v57 = vpop.f32.mrb[32].mxu1  ;;  %v1939_v58 = vpop.f32.mrb[33].mxu0 }
 0x147   : > { %v1940_v59 = vadd.f32 %v1939_v58, %v1938_v56  ;;  %v2003_v60 = vpop.f32.mrb[33].mxu1  ;;  %v1941_v61 = vpop.f32.mrb[34].mxu0 }
 0x148   : > { %v2004_v62 = vadd.f32 %v2003_v60, %v2002_v57  ;;  %v2005_v63 = vpop.f32.mrb[34].mxu1  ;;  %v1942_v0 = vpop.f32.mrb[35].mxu0 }
 0x149   : > { %v1344_v1 = vadd.f32 %v1940_v59, %v2308_v11  ;;  %v1943_v2 = vadd.f32 %v1942_v0, %v1941_v61  ;;  %v2006_v4 = vpop.f32.mrb[35].mxu1 }
 0x14a   : > { %v2007_v7 = vadd.f32 %v2006_v4, %v2005_v63 }
 0x14b   : > { %v1441_v8 = vadd.f32 %v2004_v62, %v1344_v1  ;;  %v1347_v9 = vadd.f32 %v1943_v2, %v2310_v13 }
 0x14d   : > { %v1510_v12 = vmul.f32 %v2344_v6, %v1441_v8  ;;  %v1444_v11 = vadd.f32 %v2007_v7, %v1347_v9  ;;  %v1944_v14 = vpop.f32.mrb[36].mxu0 }
 0x14e   : > { %v2008_v15 = vpop.f32.mrb[36].mxu1  ;;  %v1945_v16 = vpop.f32.mrb[37].mxu0 }
 0x14f   : > { %v1533_v17 = vadd.f32 %v2350_v10, %v1510_v12  ;;  %v1511_v18 = vmul.f32 %v2344_v6, %v1444_v11  ;;  %v1946_v20 = vadd.f32 %v1945_v16, %v1944_v14  ;;  %v2009_v22 = vpop.f32.mrb[37].mxu1  ;;  %v1947_v23 = vpop.f32.mrb[38].mxu0 }
 0x150   : > { %v2010_v13 = vadd.f32 %v2009_v22, %v2008_v15  ;;  %v2011_v24 = vpop.f32.mrb[38].mxu1  ;;  %v1948_v26 = vpop.f32.mrb[39].mxu0 }
 0x151   : > { %v1549_v28 = vmax.f32 %v1533_v17, 0.0  ;;  %v1534_v29 = vadd.f32 %v2350_v10, %v1511_v18  ;;  %v1352_v30 = vadd.f32 %v1946_v20, %v2312_v25  ;;  %v1949_v31 = vadd.f32 %v1948_v26, %v1947_v23  ;;  %v2012_v32 = vpop.f32.mrb[39].mxu1 }
 0x152   : > { %v2013_v33 = vadd.f32 %v2012_v32, %v2011_v24 }
 0x153   : > { %1565 = vst [vmem:[%s2359_s5] sm:$0xff] %v1549_v28  ;;  %v1550_v34 = vmax.f32 %v1534_v29, 0.0  ;;  %v1449_v36 = vadd.f32 %v2010_v13, %v1352_v30  ;;  %v1355_v38 = vadd.f32 %v1949_v31, %v2314_v27 }
 0x155   : > { %1566 = vst [vmem:[%s2359_s5 + $0x8] sm:$0xff] %v1550_v34  ;;  %v1512_v40 = vmul.f32 %v2344_v6, %v1449_v36  ;;  %v1452_v42 = vadd.f32 %v2013_v33, %v1355_v38  ;;  %v1950_v43 = vpop.f32.mrb[40].mxu0 }
 0x156   : > { %v2014_v44 = vpop.f32.mrb[40].mxu1  ;;  %v1951_v45 = vpop.f32.mrb[41].mxu0 }
 0x157   : > { %v1535_v46 = vadd.f32 %v2350_v10, %v1512_v40  ;;  %v1513_v25 = vmul.f32 %v2344_v6, %v1452_v42  ;;  %v1952_v47 = vadd.f32 %v1951_v45, %v1950_v43  ;;  %v2015_v48 = vpop.f32.mrb[41].mxu1  ;;  %v1953_v49 = vpop.f32.mrb[42].mxu0 }
 0x158   : > { %v2016_v50 = vadd.f32 %v2015_v48, %v2014_v44  ;;  %v2017_v52 = vpop.f32.mrb[42].mxu1  ;;  %v1954_v56 = vpop.f32.mrb[43].mxu0 }
 0x159   : > { %v1551_v27 = vmax.f32 %v1535_v46, 0.0  ;;  %v1536_v57 = vadd.f32 %v2350_v10, %v1513_v25  ;;  %v1360_v58 = vadd.f32 %v1952_v47, %v2316_v39  ;;  %v1955_v59 = vadd.f32 %v1954_v56, %v1953_v49  ;;  %v2018_v60 = vpop.f32.mrb[43].mxu1 }
 0x15a   : > { %v2019_v61 = vadd.f32 %v2018_v60, %v2017_v52 }
 0x15b   : > { %1567 = vst [vmem:[%s2359_s5 + $0x10] sm:$0xff] %v1551_v27  ;;  %v1552_v62 = vmax.f32 %v1536_v57, 0.0  ;;  %v1457_v63 = vadd.f32 %v2016_v50, %v1360_v58  ;;  %v1363_v0 = vadd.f32 %v1955_v59, %v2318_v41 }
 0x15d   : > { %1568 = vst [vmem:[%s2359_s5 + $0x18] sm:$0xff] %v1552_v62  ;;  %v1514_v1 = vmul.f32 %v2344_v6, %v1457_v63  ;;  %v1460_v2 = vadd.f32 %v2019_v61, %v1363_v0  ;;  %v1956_v4 = vpop.f32.mrb[44].mxu0 }
 0x15e   : > { %v2020_v7 = vpop.f32.mrb[44].mxu1  ;;  %v1957_v8 = vpop.f32.mrb[45].mxu0 }
 0x15f   : > { %v1537_v9 = vadd.f32 %v2350_v10, %v1514_v1  ;;  %v1515_v39 = vmul.f32 %v2344_v6, %v1460_v2  ;;  %v1958_v12 = vadd.f32 %v1957_v8, %v1956_v4  ;;  %v2021_v11 = vpop.f32.mrb[45].mxu1  ;;  %v1959_v14 = vpop.f32.mrb[46].mxu0 }
 0x160   : > { %v2022_v15 = vadd.f32 %v2021_v11, %v2020_v7  ;;  %v2023_v16 = vpop.f32.mrb[46].mxu1  ;;  %v1960_v17 = vpop.f32.mrb[47].mxu0 }
 0x161   : > { %v1553_v41 = vmax.f32 %v1537_v9, 0.0  ;;  %v1538_v18 = vadd.f32 %v2350_v10, %v1515_v39  ;;  %v1368_v20 = vadd.f32 %v1958_v12, %v2320_v53  ;;  %v1961_v22 = vadd.f32 %v1960_v17, %v1959_v14  ;;  %v2024_v23 = vpop.f32.mrb[47].mxu1 }
 0x162   : > { %v2025_v13 = vadd.f32 %v2024_v23, %v2023_v16 }
 0x163   : > { %1569 = vst [vmem:[%s2359_s5 + $0x20] sm:$0xff] %v1553_v41  ;;  %v1554_v24 = vmax.f32 %v1538_v18, 0.0  ;;  %v1465_v26 = vadd.f32 %v2022_v15, %v1368_v20  ;;  %v1371_v28 = vadd.f32 %v1961_v22, %v2322_v55 }
 0x165   : > { %1570 = vst [vmem:[%s2359_s5 + $0x28] sm:$0xff] %v1554_v24  ;;  %v1516_v29 = vmul.f32 %v2344_v6, %v1465_v26  ;;  %v1468_v30 = vadd.f32 %v2025_v13, %v1371_v28  ;;  %v1962_v31 = vpop.f32.mrb[48].mxu0 }
 0x166   : > { %v2026_v32 = vpop.f32.mrb[48].mxu1  ;;  %v1963_v33 = vpop.f32.mrb[49].mxu0 }
 0x167   : > { %v1539_v34 = vadd.f32 %v2350_v10, %v1516_v29  ;;  %v1517_v53 = vmul.f32 %v2344_v6, %v1468_v30  ;;  %v1964_v36 = vadd.f32 %v1963_v33, %v1962_v31  ;;  %v2027_v38 = vpop.f32.mrb[49].mxu1  ;;  %v1965_v40 = vpop.f32.mrb[50].mxu0 }
 0x168   : > { %v2028_v42 = vadd.f32 %v2027_v38, %v2026_v32  ;;  %v2029_v43 = vpop.f32.mrb[50].mxu1  ;;  %v1966_v44 = vpop.f32.mrb[51].mxu0 }
 0x169   : > { %v1555_v55 = vmax.f32 %v1539_v34, 0.0  ;;  %v1540_v45 = vadd.f32 %v2350_v10, %v1517_v53  ;;  %v1376_v46 = vadd.f32 %v1964_v36, %v2324_v3  ;;  %v1967_v25 = vadd.f32 %v1966_v44, %v1965_v40  ;;  %v2030_v47 = vpop.f32.mrb[51].mxu1 }
 0x16a   : > { %v2031_v48 = vadd.f32 %v2030_v47, %v2029_v43 }
 0x16b   : > { %1571 = vst [vmem:[%s2359_s5 + $0x30] sm:$0xff] %v1555_v55  ;;  %v1556_v49 = vmax.f32 %v1540_v45, 0.0  ;;  %v1473_v50 = vadd.f32 %v2028_v42, %v1376_v46  ;;  %v1379_v52 = vadd.f32 %v1967_v25, %v2326_v5 }
 0x16d   : > { %1572 = vst [vmem:[%s2359_s5 + $0x38] sm:$0xff] %v1556_v49  ;;  %v1518_v56 = vmul.f32 %v2344_v6, %v1473_v50  ;;  %v1476_v27 = vadd.f32 %v2031_v48, %v1379_v52  ;;  %v1968_v57 = vpop.f32.mrb[52].mxu0 }
 0x16e   : > { %v2032_v58 = vpop.f32.mrb[52].mxu1  ;;  %v1969_v59 = vpop.f32.mrb[53].mxu0 }
 0x16f   : > { %v1541_v60 = vadd.f32 %v2350_v10, %v1518_v56  ;;  %v1519_v3 = vmul.f32 %v2344_v6, %v1476_v27  ;;  %v1970_v61 = vadd.f32 %v1969_v59, %v1968_v57  ;;  %v2033_v62 = vpop.f32.mrb[53].mxu1  ;;  %v1971_v63 = vpop.f32.mrb[54].mxu0 }
 0x170   : > { %v2034_v0 = vadd.f32 %v2033_v62, %v2032_v58  ;;  %v2035_v1 = vpop.f32.mrb[54].mxu1  ;;  %v1972_v2 = vpop.f32.mrb[55].mxu0 }
 0x171   : > { %v1557_v5 = vmax.f32 %v1541_v60, 0.0  ;;  %v1542_v4 = vadd.f32 %v2350_v10, %v1519_v3  ;;  %v1384_v7 = vadd.f32 %v1970_v61, %v2328_v19  ;;  %v1973_v8 = vadd.f32 %v1972_v2, %v1971_v63  ;;  %v2036_v9 = vpop.f32.mrb[55].mxu1 }
 0x172   : > { %v2037_v39 = vadd.f32 %v2036_v9, %v2035_v1 }
 0x173   : > { %1573 = vst [vmem:[%s2359_s5 + $0x40] sm:$0xff] %v1557_v5  ;;  %v1558_v12 = vmax.f32 %v1542_v4, 0.0  ;;  %v1481_v11 = vadd.f32 %v2034_v0, %v1384_v7  ;;  %v1387_v14 = vadd.f32 %v1973_v8, %v2330_v21 }
 0x175   : > { %1574 = vst [vmem:[%s2359_s5 + $0x48] sm:$0xff] %v1558_v12  ;;  %v1520_v15 = vmul.f32 %v2344_v6, %v1481_v11  ;;  %v1484_v16 = vadd.f32 %v2037_v39, %v1387_v14  ;;  %v1974_v17 = vpop.f32.mrb[56].mxu0 }
 0x176   : > { %v2038_v41 = vpop.f32.mrb[56].mxu1  ;;  %v1975_v18 = vpop.f32.mrb[57].mxu0 }
 0x177   : > { %v1543_v20 = vadd.f32 %v2350_v10, %v1520_v15  ;;  %v1521_v19 = vmul.f32 %v2344_v6, %v1484_v16  ;;  %v1976_v22 = vadd.f32 %v1975_v18, %v1974_v17  ;;  %v2039_v23 = vpop.f32.mrb[57].mxu1  ;;  %v1977_v13 = vpop.f32.mrb[58].mxu0 }
 0x178   : > { %v2040_v24 = vadd.f32 %v2039_v23, %v2038_v41  ;;  %v2041_v26 = vpop.f32.mrb[58].mxu1  ;;  %v1978_v28 = vpop.f32.mrb[59].mxu0 }
 0x179   : > { %v1559_v21 = vmax.f32 %v1543_v20, 0.0  ;;  %v1544_v29 = vadd.f32 %v2350_v10, %v1521_v19  ;;  %v1392_v30 = vadd.f32 %v1976_v22, %v2332_v35  ;;  %v1979_v31 = vadd.f32 %v1978_v28, %v1977_v13  ;;  %v2042_v32 = vpop.f32.mrb[59].mxu1 }
 0x17a   : > { %v2043_v33 = vadd.f32 %v2042_v32, %v2041_v26 }
 0x17b   : > { %1575 = vst [vmem:[%s2359_s5 + $0x50] sm:$0xff] %v1559_v21  ;;  %v1560_v34 = vmax.f32 %v1544_v29, 0.0  ;;  %v1489_v53 = vadd.f32 %v2040_v24, %v1392_v30  ;;  %v1395_v36 = vadd.f32 %v1979_v31, %v2334_v37 }
 0x17d   : > { %1576 = vst [vmem:[%s2359_s5 + $0x58] sm:$0xff] %v1560_v34  ;;  %v1522_v38 = vmul.f32 %v2344_v6, %v1489_v53  ;;  %v1492_v40 = vadd.f32 %v2043_v33, %v1395_v36  ;;  %v1980_v42 = vpop.f32.mrb[60].mxu0 }
 0x17e   : > { %v2044_v43 = vpop.f32.mrb[60].mxu1  ;;  %v1981_v44 = vpop.f32.mrb[61].mxu0 }
 0x17f   : > { %v1545_v55 = vadd.f32 %v2350_v10, %v1522_v38  ;;  %v1523_v35 = vmul.f32 %v2344_v6, %v1492_v40  ;;  %v1982_v45 = vadd.f32 %v1981_v44, %v1980_v42  ;;  %v2045_v46 = vpop.f32.mrb[61].mxu1  ;;  %v1983_v25 = vpop.f32.mrb[62].mxu0 }
 0x180   : > { %v2046_v47 = vadd.f32 %v2045_v46, %v2044_v43  ;;  %v2047_v48 = vpop.f32.mrb[62].mxu1  ;;  %v1984_v49 = vpop.f32.mrb[63].mxu0 }
 0x181   : > { %v1561_v37 = vmax.f32 %v1545_v55, 0.0  ;;  %v1546_v50 = vadd.f32 %v2350_v10, %v1523_v35  ;;  %v1400_v52 = vadd.f32 %v1982_v45, %v2336_v51  ;;  %v1985_v56 = vadd.f32 %v1984_v49, %v1983_v25  ;;  %v2048_v27 = vpop.f32.mrb[63].mxu1 }
 0x182   : > { %v2049_v57 = vadd.f32 %v2048_v27, %v2047_v48 }
 0x183   : > { %1577 = vst [vmem:[%s2359_s5 + $0x60] sm:$0xff] %v1561_v37  ;;  %v1562_v58 = vmax.f32 %v1546_v50, 0.0  ;;  %v1497_v59 = vadd.f32 %v2046_v47, %v1400_v52  ;;  %v1403_v60 = vadd.f32 %v1985_v56, %v2338_v54 }
 0x185   : > { %1578 = vst [vmem:[%s2359_s5 + $0x68] sm:$0xff] %v1562_v58  ;;  %v1524_v3 = vmul.f32 %v2344_v6, %v1497_v59  ;;  %v1500_v61 = vadd.f32 %v2049_v57, %v1403_v60 }
 0x187   : > { %v1547_v62 = vadd.f32 %v2350_v10, %v1524_v3  ;;  %v1525_v63 = vmul.f32 %v2344_v6, %v1500_v61 }
 0x189   : > { %v1563_v0 = vmax.f32 %v1547_v62, 0.0  ;;  %v1548_v51 = vadd.f32 %v2350_v10, %v1525_v63 }
 0x18b   : > { %1579 = vst [vmem:[%s2359_s5 + $0x70] sm:$0xff] %v1563_v0  ;;  %v1564_v1 = vmax.f32 %v1548_v51, 0.0 }
 0x18d   : > { %1580 = vst [vmem:[%s2359_s5 + $0x78] sm:$0xff] %v1564_v1 }
 0x18e PF: > { %s14_s15 = sadd.s32 1, %s2128_s15  }
 0x18f   : > { %p11_p4 = scmp.ge.s32.totalorder %s14_s15, 6  }
 0x191   :  { %13 = sbr.rel (!%p11_p4) target bundleno = 1 (0x1), region = 69 }

// kernel: forward.7
= control target key start
LH: loop header
LB: loop body
LE: loop exit
PB: predicated region body
PF: predicated region fallthrough
CT: control target
= control target key end

     0   :  { %s2989_s15 = smov 0   ;;  %s3424_s0 = inlined_call_operand.vmem [shape: bf16[4,512,512], index: 0, kind: input, shape index: {}]   ;;  %s3425_s1 = inlined_call_operand.vmem [shape: bf16[4,512,128], index: 1, kind: input, shape index: {}]   ;;  %s3426_s2 = inlined_call_operand.vmem [shape: f32[1,128], index: 2, kind: input, shape index: {}]   ;;  %s3427_s3 = inlined_call_operand.vmem [shape: f32[1,128], index: 3, kind: input, shape index: {}]   ;;  %s3428_s4 = inlined_call_operand.vmem [shape: f32[4,512,128], index: 4, kind: output, shape index: {}]  }
   0x1 LB: > { %s2350_s16 = sadd.s32 4294967295, %s2961_s15   ;;  %p2354_p0 = scmp.ge.s32.totalorder %s2961_s15, 1  ;;  %s2961_s15 = sphi %s2989_s15, %s14_s15  }
   0x2   : > { %p172_p1 = scmp.lt.s32.totalorder %s2961_s15, 5 }
   0x4   : > { %p173_p2 = pnand %p2354_p0, %p172_p1 }
   0x5   : > { %p203_p3 = scmp.lt.s32.totalorder (!%p173_p2), %s2350_s16, 3  ;;  %v2963_v0 = vmov (!%p173_p2), 0  }
   0x6   : > { %176 = sbr.rel (%p173_p2) target bundleno = 567 (0x237), region = 36  ;;  %1243 = vmatprep.subr.bf16.mxu1 (!%p173_p2), %v2963_v0  ;;  %1532 = vmatprep.subr.bf16.mxu0 (!%p173_p2), %v2963_v0 }
   0xd   : > { %s3430_s16 = smov (!%p203_p3, %s2350_s16), 3 }
   0xe   : > { %s2526_s17 = sshll.u32 %s3430_s16, 8  ;;  %s2525_s21 = sshll.u32 %s3430_s16, 10 }
   0xf   : > { %s3005_s20 = scalar_lea.vmem %s3425_s1, %s2526_s17  ;;  %s3042_s24 = scalar_lea.vmem %s3424_s0, %s2525_s21 }
  0x10   : > { %v2601_v1 = vld [vmem:[%s3005_s20] sm:$0xff]   ;;  %v2603_v3 = vld [vmem:[%s3005_s20 + $0x8] sm:$0xff]   ;;  %v2605_v5 = vld [vmem:[%s3005_s20 + $0x10] sm:$0xff]   ;;  %s2527_s29 = sshll.u32 %s3430_s16, 9 }
  0x11   : > { %v2602_v2 = vld [vmem:[%s3005_s20 + $0x80] sm:$0xff]   ;;  %1244 = vmatpush1.bf16.msra.mxu1 %v2601_v1  ;;  %v2604_v4 = vld [vmem:[%s3005_s20 + $0x88] sm:$0xff]   ;;  %v2606_v6 = vld [vmem:[%s3005_s20 + $0x90] sm:$0xff]   ;;  %s3220_s6 = scalar_lea.vmem %s3428_s4, %s2527_s29 }
  0x12   : > { %1533 = vmatpush1.bf16.msra.mxu0 %v2602_v2  ;;  %1245 = vmatprep.subr.bf16.mxu1 %v2963_v0  ;;  %v2607_v7 = vld [vmem:[%s3005_s20 + $0x18] sm:$0xff]   ;;  %v2609_v9 = vld [vmem:[%s3005_s20 + $0x20] sm:$0xff]   ;;  %v2611_v11 = vld [vmem:[%s3005_s20 + $0x28] sm:$0xff]  }
  0x13   : > { %1534 = vmatprep.subr.bf16.mxu0 %v2963_v0  ;;  %v2608_v8 = vld [vmem:[%s3005_s20 + $0x98] sm:$0xff]   ;;  %v2610_v10 = vld [vmem:[%s3005_s20 + $0xa0] sm:$0xff]   ;;  %v2612_v12 = vld [vmem:[%s3005_s20 + $0xa8] sm:$0xff]  }
  0x14   : > { %v2613_v13 = vld [vmem:[%s3005_s20 + $0x30] sm:$0xff]   ;;  %v2615_v15 = vld [vmem:[%s3005_s20 + $0x38] sm:$0xff]   ;;  %v2617_v17 = vld [vmem:[%s3005_s20 + $0x40] sm:$0xff]  }
  0x15   : > { %1246 = vmatpush1.bf16.msra.mxu1 %v2603_v3  ;;  %v2614_v14 = vld [vmem:[%s3005_s20 + $0xb0] sm:$0xff]   ;;  %v2616_v16 = vld [vmem:[%s3005_s20 + $0xb8] sm:$0xff]   ;;  %v2618_v18 = vld [vmem:[%s3005_s20 + $0xc0] sm:$0xff]  }
  0x16   : > { %1535 = vmatpush1.bf16.msra.mxu0 %v2604_v4  ;;  %1247 = vmatprep.subr.bf16.mxu1 %v2963_v0  ;;  %v2635_v19 = vld [vmem:[%s3042_s24 + $0x4] ss:$16 sps:$4 sm:$0xff]   ;;  %v2619_v20 = vld [vmem:[%s3005_s20 + $0x48] sm:$0xff]   ;;  %v2623_v25 = vld [vmem:[%s3005_s20 + $0x58] sm:$0xff]  }
  0x17   : > { %1536 = vmatprep.subr.bf16.mxu0 %v2963_v0  ;;  %v2638_v21 = vld [vmem:[%s3042_s24 + $0xc] ss:$16 sps:$4 sm:$0xff]   ;;  %1275 = vmatprep.mubr.bf16.mxu1 %v2635_v19  ;;  %v2621_v23 = vld [vmem:[%s3005_s20 + $0x50] sm:$0xff]   ;;  %v2625_v27 = vld [vmem:[%s3005_s20 + $0x60] sm:$0xff]  }
  0x18   : > { %v2620_v22 = vld [vmem:[%s3005_s20 + $0xc8] sm:$0xff]   ;;  %1564 = vmatprep.mubr.bf16.mxu0 %v2638_v21  ;;  %v2622_v24 = vld [vmem:[%s3005_s20 + $0xd0] sm:$0xff]   ;;  %v2624_v26 = vld [vmem:[%s3005_s20 + $0xd8] sm:$0xff]  }
  0x19   : > { %1248 = vmatpush1.bf16.msra.mxu1 %v2605_v5  ;;  %v2626_v28 = vld [vmem:[%s3005_s20 + $0xe0] sm:$0xff]   ;;  %v2627_v29 = vld [vmem:[%s3005_s20 + $0x68] sm:$0xff]   ;;  %v2629_v31 = vld [vmem:[%s3005_s20 + $0x70] sm:$0xff]  }
  0x1a   : > { %1537 = vmatpush1.bf16.msra.mxu0 %v2606_v6  ;;  %1249 = vmatprep.subr.bf16.mxu1 %v2963_v0  ;;  %v2628_v30 = vld [vmem:[%s3005_s20 + $0xe8] sm:$0xff]   ;;  %v2630_v32 = vld [vmem:[%s3005_s20 + $0xf0] sm:$0xff]   ;;  %v2631_v33 = vld [vmem:[%s3005_s20 + $0x78] sm:$0xff]  }
  0x1b   : > { %1538 = vmatprep.subr.bf16.mxu0 %v2963_v0  ;;  %v2632_v34 = vld [vmem:[%s3005_s20 + $0xf8] sm:$0xff]   ;;  %v2633_v35 = vld [vmem:[%s3042_s24] ss:$16 sps:$4 sm:$0xff]   ;;  %v2639_v37 = vld [vmem:[%s3042_s24 + $0x24] ss:$16 sps:$4 sm:$0xff]  }
  0x1c   : > { %v2636_v36 = vld [vmem:[%s3042_s24 + $0x8] ss:$16 sps:$4 sm:$0xff]   ;;  %v2641_v38 = vld [vmem:[%s3042_s24 + $0x2c] ss:$16 sps:$4 sm:$0xff]   ;;  %v2643_v39 = vld [vmem:[%s3042_s24 + $0x20] ss:$16 sps:$4 sm:$0xff]  }
  0x1d   : > { %1250 = vmatpush1.bf16.msra.mxu1 %v2607_v7  ;;  %v2644_v40 = vld [vmem:[%s3042_s24 + $0x28] ss:$16 sps:$4 sm:$0xff]   ;;  %v2645_v41 = vld [vmem:[%s3042_s24 + $0x44] ss:$16 sps:$4 sm:$0xff]   ;;  %v2647_v42 = vld [vmem:[%s3042_s24 + $0x4c] ss:$16 sps:$4 sm:$0xff]  }
  0x1e   : > { %1539 = vmatpush1.bf16.msra.mxu0 %v2608_v8  ;;  %1251 = vmatprep.subr.bf16.mxu1 %v2963_v0  ;;  %v2649_v43 = vld [vmem:[%s3042_s24 + $0x40] ss:$16 sps:$4 sm:$0xff]   ;;  %v2650_v44 = vld [vmem:[%s3042_s24 + $0x48] ss:$16 sps:$4 sm:$0xff]   ;;  %v2651_v45 = vld [vmem:[%s3042_s24 + $0x64] ss:$16 sps:$4 sm:$0xff]  }
  0x1f   : > { %1540 = vmatprep.subr.bf16.mxu0 %v2963_v0  ;;  %v2653_v46 = vld [vmem:[%s3042_s24 + $0x6c] ss:$16 sps:$4 sm:$0xff]   ;;  %v2655_v47 = vld [vmem:[%s3042_s24 + $0x60] ss:$16 sps:$4 sm:$0xff]   ;;  %v2656_v48 = vld [vmem:[%s3042_s24 + $0x68] ss:$16 sps:$4 sm:$0xff]  }
  0x20   : > { %v2657_v49 = vld [vmem:[%s3042_s24 + $0x84] ss:$16 sps:$4 sm:$0xff]   ;;  %v2659_v50 = vld [vmem:[%s3042_s24 + $0x8c] ss:$16 sps:$4 sm:$0xff]   ;;  %v2661_v51 = vld [vmem:[%s3042_s24 + $0x80] ss:$16 sps:$4 sm:$0xff]  }
  0x21   : > { %1252 = vmatpush1.bf16.msra.mxu1 %v2609_v9  ;;  %v2662_v52 = vld [vmem:[%s3042_s24 + $0x88] ss:$16 sps:$4 sm:$0xff]   ;;  %v2663_v53 = vld [vmem:[%s3042_s24 + $0xa4] ss:$16 sps:$4 sm:$0xff]   ;;  %v2665_v54 = vld [vmem:[%s3042_s24 + $0xac] ss:$16 sps:$4 sm:$0xff]  }
  0x22   : > { %1541 = vmatpush1.bf16.msra.mxu0 %v2610_v10  ;;  %1253 = vmatprep.subr.bf16.mxu1 %v2963_v0  ;;  %v2667_v55 = vld [vmem:[%s3042_s24 + $0xa0] ss:$16 sps:$4 sm:$0xff]   ;;  %v2668_v56 = vld [vmem:[%s3042_s24 + $0xa8] ss:$16 sps:$4 sm:$0xff]   ;;  %v2669_v57 = vld [vmem:[%s3042_s24 + $0xc4] ss:$16 sps:$4 sm:$0xff]  }
  0x23   : > { %1542 = vmatprep.subr.bf16.mxu0 %v2963_v0  ;;  %v2671_v58 = vld [vmem:[%s3042_s24 + $0xcc] ss:$16 sps:$4 sm:$0xff]   ;;  %v2673_v59 = vld [vmem:[%s3042_s24 + $0xc0] ss:$16 sps:$4 sm:$0xff]   ;;  %v2674_v60 = vld [vmem:[%s3042_s24 + $0xc8] ss:$16 sps:$4 sm:$0xff]  }
  0x24   : > { %v2675_v61 = vld [vmem:[%s3042_s24 + $0xe4] ss:$16 sps:$4 sm:$0xff]   ;;  %v2677_v62 = vld [vmem:[%s3042_s24 + $0xec] ss:$16 sps:$4 sm:$0xff]   ;;  %v2679_v63 = vld [vmem:[%s3042_s24 + $0xe0] ss:$16 sps:$4 sm:$0xff]  }
  0x25   : > { %1254 = vmatpush1.bf16.msra.mxu1 %v2611_v11  ;;  %v2681_v1 = vld [vmem:[%s3042_s24 + $0x104] ss:$16 sps:$4 sm:$0xff]   ;;  %v2683_v2 = vld [vmem:[%s3042_s24 + $0x10c] ss:$16 sps:$4 sm:$0xff]   ;;  %v2685_v3 = vld [vmem:[%s3042_s24 + $0x100] ss:$16 sps:$4 sm:$0xff]  }
  0x26   : > { %1543 = vmatpush1.bf16.msra.mxu0 %v2612_v12  ;;  %1255 = vmatprep.subr.bf16.mxu1 %v2963_v0  ;;  %v2686_v4 = vld [vmem:[%s3042_s24 + $0x108] ss:$16 sps:$4 sm:$0xff]   ;;  %v2687_v5 = vld [vmem:[%s3042_s24 + $0x124] ss:$16 sps:$4 sm:$0xff]   ;;  %v2689_v6 = vld [vmem:[%s3042_s24 + $0x12c] ss:$16 sps:$4 sm:$0xff]  }
  0x27   : > { %1544 = vmatprep.subr.bf16.mxu0 %v2963_v0  ;;  %v2691_v7 = vld [vmem:[%s3042_s24 + $0x120] ss:$16 sps:$4 sm:$0xff]   ;;  %v2692_v8 = vld [vmem:[%s3042_s24 + $0x128] ss:$16 sps:$4 sm:$0xff]   ;;  %v2693_v9 = vld [vmem:[%s3042_s24 + $0x144] ss:$16 sps:$4 sm:$0xff]  }
  0x28   : > { %v2695_v10 = vld [vmem:[%s3042_s24 + $0x14c] ss:$16 sps:$4 sm:$0xff]   ;;  %v2697_v11 = vld [vmem:[%s3042_s24 + $0x140] ss:$16 sps:$4 sm:$0xff]   ;;  %v2698_v12 = vld [vmem:[%s3042_s24 + $0x148] ss:$16 sps:$4 sm:$0xff]  }
  0x29   : > { %1256 = vmatpush1.bf16.msra.mxu1 %v2613_v13  ;;  %v2699_v13 = vld [vmem:[%s3042_s24 + $0x164] ss:$16 sps:$4 sm:$0xff]   ;;  %v2709_v19 = vld [vmem:[%s3042_s24 + $0x180] ss:$16 sps:$4 sm:$0xff]  }
  0x2a   : > { %1545 = vmatpush1.bf16.msra.mxu0 %v2614_v14  ;;  %1257 = vmatprep.subr.bf16.mxu1 %v2963_v0  ;;  %v2701_v14 = vld [vmem:[%s3042_s24 + $0x16c] ss:$16 sps:$4 sm:$0xff]   ;;  %v2711_v21 = vld [vmem:[%s3042_s24 + $0x1a4] ss:$16 sps:$4 sm:$0xff]  }
  0x2b   : > { %1546 = vmatprep.subr.bf16.mxu0 %v2963_v0 }
  0x2d   : > { %1258 = vmatpush1.bf16.msra.mxu1 %v2615_v15  ;;  %v2703_v15 = vld [vmem:[%s3042_s24 + $0x160] ss:$16 sps:$4 sm:$0xff]  }
  0x2e   : > { %1547 = vmatpush1.bf16.msra.mxu0 %v2616_v16  ;;  %1259 = vmatprep.subr.bf16.mxu1 %v2963_v0  ;;  %v2704_v16 = vld [vmem:[%s3042_s24 + $0x168] ss:$16 sps:$4 sm:$0xff]  }
  0x2f   : > { %1548 = vmatprep.subr.bf16.mxu0 %v2963_v0 }
  0x31   : > { %1260 = vmatpush1.bf16.msra.mxu1 %v2617_v17  ;;  %v2705_v17 = vld [vmem:[%s3042_s24 + $0x184] ss:$16 sps:$4 sm:$0xff]  }
  0x32   : > { %1549 = vmatpush1.bf16.msra.mxu0 %v2618_v18  ;;  %1261 = vmatprep.subr.bf16.mxu1 %v2963_v0  ;;  %v2707_v18 = vld [vmem:[%s3042_s24 + $0x18c] ss:$16 sps:$4 sm:$0xff]  }
  0x33   : > { %1550 = vmatprep.subr.bf16.mxu0 %v2963_v0 }
  0x35   : > { %1262 = vmatpush1.bf16.msra.mxu1 %v2619_v20  ;;  %v2710_v20 = vld [vmem:[%s3042_s24 + $0x188] ss:$16 sps:$4 sm:$0xff]  }
  0x36   : > { %1551 = vmatpush1.bf16.msra.mxu0 %v2620_v22  ;;  %1263 = vmatprep.subr.bf16.mxu1 %v2963_v0  ;;  %v2713_v22 = vld [vmem:[%s3042_s24 + $0x1ac] ss:$16 sps:$4 sm:$0xff]  }
  0x37   : > { %1552 = vmatprep.subr.bf16.mxu0 %v2963_v0 }
  0x39   : > { %1264 = vmatpush1.bf16.msra.mxu1 %v2621_v23  ;;  %v2715_v23 = vld [vmem:[%s3042_s24 + $0x1a0] ss:$16 sps:$4 sm:$0xff]  }
  0x3a   : > { %1553 = vmatpush1.bf16.msra.mxu0 %v2622_v24  ;;  %1265 = vmatprep.subr.bf16.mxu1 %v2963_v0  ;;  %v2716_v24 = vld [vmem:[%s3042_s24 + $0x1a8] ss:$16 sps:$4 sm:$0xff]  }
  0x3b   : > { %1554 = vmatprep.subr.bf16.mxu0 %v2963_v0 }
  0x3d   : > { %1266 = vmatpush1.bf16.msra.mxu1 %v2623_v25  ;;  %v2717_v25 = vld [vmem:[%s3042_s24 + $0x1c4] ss:$16 sps:$4 sm:$0xff]  }
  0x3e   : > { %1555 = vmatpush1.bf16.msra.mxu0 %v2624_v26  ;;  %1267 = vmatprep.subr.bf16.mxu1 %v2963_v0  ;;  %v2719_v26 = vld [vmem:[%s3042_s24 + $0x1cc] ss:$16 sps:$4 sm:$0xff]  }
  0x3f   : > { %1556 = vmatprep.subr.bf16.mxu0 %v2963_v0 }
  0x41   : > { %1268 = vmatpush1.bf16.msra.mxu1 %v2625_v27  ;;  %v2721_v27 = vld [vmem:[%s3042_s24 + $0x1c0] ss:$16 sps:$4 sm:$0xff]  }
  0x42   : > { %1557 = vmatpush1.bf16.msra.mxu0 %v2626_v28  ;;  %1269 = vmatprep.subr.bf16.mxu1 %v2963_v0  ;;  %v2722_v28 = vld [vmem:[%s3042_s24 + $0x1c8] ss:$16 sps:$4 sm:$0xff]  }
  0x43   : > { %1558 = vmatprep.subr.bf16.mxu0 %v2963_v0 }
  0x45   : > { %1270 = vmatpush1.bf16.msra.mxu1 %v2627_v29  ;;  %v2723_v29 = vld [vmem:[%s3042_s24 + $0x1e4] ss:$16 sps:$4 sm:$0xff]  }
  0x46   : > { %1559 = vmatpush1.bf16.msra.mxu0 %v2628_v30  ;;  %1271 = vmatprep.subr.bf16.mxu1 %v2963_v0  ;;  %v2725_v30 = vld [vmem:[%s3042_s24 + $0x1ec] ss:$16 sps:$4 sm:$0xff]  }
  0x47   : > { %1560 = vmatprep.subr.bf16.mxu0 %v2963_v0 }
  0x49   : > { %1272 = vmatpush1.bf16.msra.mxu1 %v2629_v31  ;;  %v2727_v31 = vld [vmem:[%s3042_s24 + $0x1e0] ss:$16 sps:$4 sm:$0xff]  }
  0x4a   : > { %1561 = vmatpush1.bf16.msra.mxu0 %v2630_v32  ;;  %1273 = vmatprep.subr.bf16.mxu1 %v2963_v0  ;;  %v2728_v32 = vld [vmem:[%s3042_s24 + $0x1e8] ss:$16 sps:$4 sm:$0xff]  }
  0x4b   : > { %1562 = vmatprep.subr.bf16.mxu0 %v2963_v0  ;;  %v2680_v0 = vld [vmem:[%s3042_s24 + $0xe8] ss:$16 sps:$4 sm:$0xff]  }
  0x4d   : > { %1274 = vmatpush1.bf16.msra.mxu1 %v2631_v33  ;;  %v2729_v33 = vld [vmem:[%s3042_s24 + $0x204] ss:$16 sps:$4 sm:$0xff]  }
  0x4e   : > { %1563 = vmatpush1.bf16.msra.mxu0 %v2632_v34  ;;  %v2731_v34 = vld [vmem:[%s3042_s24 + $0x20c] ss:$16 sps:$4 sm:$0xff]  }
  0x50   : > { %1276 = vmatmul.mubr.bf16.vlgmr.msra.gmra.mrb[0].mxu1 %v2633_v35  ;;  %v2733_v35 = vld [vmem:[%s3042_s24 + $0x200] ss:$16 sps:$4 sm:$0xff]  }
  0x51   : > { %1565 = vmatmul.mubr.bf16.vlgmr.msra.gmra.mrb[0].mxu0 %v2636_v36  ;;  %1283 = vmatprep.mubr.bf16.mxu1 %v2639_v37  ;;  %v2734_v36 = vld [vmem:[%s3042_s24 + $0x208] ss:$16 sps:$4 sm:$0xff]   ;;  %v2735_v37 = vld [vmem:[%s3042_s24 + $0x224] ss:$16 sps:$4 sm:$0xff]  }
  0x52   : > { %1572 = vmatprep.mubr.bf16.mxu0 %v2641_v38  ;;  %v2737_v38 = vld [vmem:[%s3042_s24 + $0x22c] ss:$16 sps:$4 sm:$0xff]  }
  0x58   : > { %1284 = vmatmul.mubr.bf16.gmra.mrb[4].mxu1 %v2643_v39  ;;  %v2739_v39 = vld [vmem:[%s3042_s24 + $0x220] ss:$16 sps:$4 sm:$0xff]  }
  0x59   : > { %1573 = vmatmul.mubr.bf16.gmra.mrb[4].mxu0 %v2644_v40  ;;  %1291 = vmatprep.mubr.bf16.mxu1 %v2645_v41  ;;  %v2740_v40 = vld [vmem:[%s3042_s24 + $0x228] ss:$16 sps:$4 sm:$0xff]   ;;  %v2741_v41 = vld [vmem:[%s3042_s24 + $0x244] ss:$16 sps:$4 sm:$0xff]  }
  0x5a   : > { %1580 = vmatprep.mubr.bf16.mxu0 %v2647_v42  ;;  %v2743_v42 = vld [vmem:[%s3042_s24 + $0x24c] ss:$16 sps:$4 sm:$0xff]  }
  0x60   : > { %1292 = vmatmul.mubr.bf16.gmra.mrb[8].mxu1 %v2649_v43  ;;  %v2745_v43 = vld [vmem:[%s3042_s24 + $0x240] ss:$16 sps:$4 sm:$0xff]  }
  0x61   : > { %1581 = vmatmul.mubr.bf16.gmra.mrb[8].mxu0 %v2650_v44  ;;  %1299 = vmatprep.mubr.bf16.mxu1 %v2651_v45  ;;  %v2746_v44 = vld [vmem:[%s3042_s24 + $0x248] ss:$16 sps:$4 sm:$0xff]   ;;  %v2747_v45 = vld [vmem:[%s3042_s24 + $0x264] ss:$16 sps:$4 sm:$0xff]  }
  0x62   : > { %1588 = vmatprep.mubr.bf16.mxu0 %v2653_v46  ;;  %v2749_v46 = vld [vmem:[%s3042_s24 + $0x26c] ss:$16 sps:$4 sm:$0xff]  }
  0x68   : > { %1300 = vmatmul.mubr.bf16.gmra.mrb[12].mxu1 %v2655_v47  ;;  %v2751_v47 = vld [vmem:[%s3042_s24 + $0x260] ss:$16 sps:$4 sm:$0xff]  }
  0x69   : > { %1589 = vmatmul.mubr.bf16.gmra.mrb[12].mxu0 %v2656_v48  ;;  %1307 = vmatprep.mubr.bf16.mxu1 %v2657_v49  ;;  %v2752_v48 = vld [vmem:[%s3042_s24 + $0x268] ss:$16 sps:$4 sm:$0xff]   ;;  %v2753_v49 = vld [vmem:[%s3042_s24 + $0x284] ss:$16 sps:$4 sm:$0xff]  }
  0x6a   : > { %1596 = vmatprep.mubr.bf16.mxu0 %v2659_v50  ;;  %v2755_v50 = vld [vmem:[%s3042_s24 + $0x28c] ss:$16 sps:$4 sm:$0xff]  }
  0x70   : > { %1308 = vmatmul.mubr.bf16.gmra.mrb[16].mxu1 %v2661_v51  ;;  %v2757_v51 = vld [vmem:[%s3042_s24 + $0x280] ss:$16 sps:$4 sm:$0xff]  }
  0x71   : > { %1597 = vmatmul.mubr.bf16.gmra.mrb[16].mxu0 %v2662_v52  ;;  %1315 = vmatprep.mubr.bf16.mxu1 %v2663_v53  ;;  %v2758_v52 = vld [vmem:[%s3042_s24 + $0x288] ss:$16 sps:$4 sm:$0xff]   ;;  %v2759_v53 = vld [vmem:[%s3042_s24 + $0x2a4] ss:$16 sps:$4 sm:$0xff]  }
  0x72   : > { %1604 = vmatprep.mubr.bf16.mxu0 %v2665_v54  ;;  %v2761_v54 = vld [vmem:[%s3042_s24 + $0x2ac] ss:$16 sps:$4 sm:$0xff]  }
  0x78   : > { %1316 = vmatmul.mubr.bf16.gmra.mrb[20].mxu1 %v2667_v55  ;;  %v2763_v55 = vld [vmem:[%s3042_s24 + $0x2a0] ss:$16 sps:$4 sm:$0xff]  }
  0x79   : > { %1605 = vmatmul.mubr.bf16.gmra.mrb[20].mxu0 %v2668_v56  ;;  %1323 = vmatprep.mubr.bf16.mxu1 %v2669_v57  ;;  %v2764_v56 = vld [vmem:[%s3042_s24 + $0x2a8] ss:$16 sps:$4 sm:$0xff]   ;;  %v2765_v57 = vld [vmem:[%s3042_s24 + $0x2c4] ss:$16 sps:$4 sm:$0xff]  }
  0x7a   : > { %1612 = vmatprep.mubr.bf16.mxu0 %v2671_v58  ;;  %v2767_v58 = vld [vmem:[%s3042_s24 + $0x2cc] ss:$16 sps:$4 sm:$0xff]  }
  0x80   : > { %1324 = vmatmul.mubr.bf16.gmra.mrb[24].mxu1 %v2673_v59  ;;  %v2769_v59 = vld [vmem:[%s3042_s24 + $0x2c0] ss:$16 sps:$4 sm:$0xff]  }
  0x81   : > { %1613 = vmatmul.mubr.bf16.gmra.mrb[24].mxu0 %v2674_v60  ;;  %1331 = vmatprep.mubr.bf16.mxu1 %v2675_v61  ;;  %v2770_v60 = vld [vmem:[%s3042_s24 + $0x2c8] ss:$16 sps:$4 sm:$0xff]   ;;  %v2771_v61 = vld [vmem:[%s3042_s24 + $0x2e4] ss:$16 sps:$4 sm:$0xff]  }
  0x82   : > { %1620 = vmatprep.mubr.bf16.mxu0 %v2677_v62  ;;  %v2773_v62 = vld [vmem:[%s3042_s24 + $0x2ec] ss:$16 sps:$4 sm:$0xff]  }
  0x88   : > { %1332 = vmatmul.mubr.bf16.gmra.mrb[28].mxu1 %v2679_v63  ;;  %v2775_v63 = vld [vmem:[%s3042_s24 + $0x2e0] ss:$16 sps:$4 sm:$0xff]  }
  0x89   : > { %1621 = vmatmul.mubr.bf16.gmra.mrb[28].mxu0 %v2680_v0  ;;  %1339 = vmatprep.mubr.bf16.mxu1 %v2681_v1  ;;  %v2776_v0 = vld [vmem:[%s3042_s24 + $0x2e8] ss:$16 sps:$4 sm:$0xff]   ;;  %v2777_v1 = vld [vmem:[%s3042_s24 + $0x304] ss:$16 sps:$4 sm:$0xff]  }
  0x8a   : > { %1628 = vmatprep.mubr.bf16.mxu0 %v2683_v2  ;;  %v2779_v2 = vld [vmem:[%s3042_s24 + $0x30c] ss:$16 sps:$4 sm:$0xff]  }
  0x90   : > { %1340 = vmatmul.mubr.bf16.gmra.mrb[32].mxu1 %v2685_v3  ;;  %v2781_v3 = vld [vmem:[%s3042_s24 + $0x300] ss:$16 sps:$4 sm:$0xff]  }
  0x91   : > { %1629 = vmatmul.mubr.bf16.gmra.mrb[32].mxu0 %v2686_v4  ;;  %1347 = vmatprep.mubr.bf16.mxu1 %v2687_v5  ;;  %v2782_v4 = vld [vmem:[%s3042_s24 + $0x308] ss:$16 sps:$4 sm:$0xff]   ;;  %v2783_v5 = vld [vmem:[%s3042_s24 + $0x324] ss:$16 sps:$4 sm:$0xff]  }
  0x92   : > { %1636 = vmatprep.mubr.bf16.mxu0 %v2689_v6  ;;  %v2785_v6 = vld [vmem:[%s3042_s24 + $0x32c] ss:$16 sps:$4 sm:$0xff]  }
  0x98   : > { %1348 = vmatmul.mubr.bf16.gmra.mrb[36].mxu1 %v2691_v7  ;;  %v2787_v7 = vld [vmem:[%s3042_s24 + $0x320] ss:$16 sps:$4 sm:$0xff]  }
  0x99   : > { %1637 = vmatmul.mubr.bf16.gmra.mrb[36].mxu0 %v2692_v8  ;;  %1355 = vmatprep.mubr.bf16.mxu1 %v2693_v9  ;;  %v2788_v8 = vld [vmem:[%s3042_s24 + $0x328] ss:$16 sps:$4 sm:$0xff]   ;;  %v2789_v9 = vld [vmem:[%s3042_s24 + $0x344] ss:$16 sps:$4 sm:$0xff]  }
  0x9a   : > { %1644 = vmatprep.mubr.bf16.mxu0 %v2695_v10  ;;  %v2791_v10 = vld [vmem:[%s3042_s24 + $0x34c] ss:$16 sps:$4 sm:$0xff]  }
  0xa0   : > { %1356 = vmatmul.mubr.bf16.gmra.mrb[40].mxu1 %v2697_v11  ;;  %v2793_v11 = vld [vmem:[%s3042_s24 + $0x340] ss:$16 sps:$4 sm:$0xff]  }
  0xa1   : > { %1645 = vmatmul.mubr.bf16.gmra.mrb[40].mxu0 %v2698_v12  ;;  %1363 = vmatprep.mubr.bf16.mxu1 %v2699_v13  ;;  %v2794_v12 = vld [vmem:[%s3042_s24 + $0x348] ss:$16 sps:$4 sm:$0xff]   ;;  %v2795_v13 = vld [vmem:[%s3042_s24 + $0x364] ss:$16 sps:$4 sm:$0xff]  }
  0xa2   : > { %1652 = vmatprep.mubr.bf16.mxu0 %v2701_v14  ;;  %v2797_v14 = vld [vmem:[%s3042_s24 + $0x36c] ss:$16 sps:$4 sm:$0xff]  }
  0xa8   : > { %1364 = vmatmul.mubr.bf16.gmra.mrb[44].mxu1 %v2703_v15 }
  0xa9   : > { %1653 = vmatmul.mubr.bf16.gmra.mrb[44].mxu0 %v2704_v16  ;;  %1371 = vmatprep.mubr.bf16.mxu1 %v2705_v17  ;;  %v3188_v17 = vld [vmem:[%s3426_s2] ss:$0 sm:$0xff] }
  0xaa   : > { %1660 = vmatprep.mubr.bf16.mxu0 %v2707_v18 }
  0xb0   : > { %1372 = vmatmul.mubr.bf16.gmra.mrb[48].mxu1 %v2709_v19  ;;  %v2799_v19 = vld [vmem:[%s3042_s24 + $0x360] ss:$16 sps:$4 sm:$0xff]  }
  0xb1   : > { %1661 = vmatmul.mubr.bf16.gmra.mrb[48].mxu0 %v2710_v20  ;;  %1379 = vmatprep.mubr.bf16.mxu1 %v2711_v21 }
  0xb2   : > { %1668 = vmatprep.mubr.bf16.mxu0 %v2713_v22 }
  0xb8   : > { %1380 = vmatmul.mubr.bf16.gmra.mrb[52].mxu1 %v2715_v23  ;;  %v2800_v23 = vld [vmem:[%s3042_s24 + $0x368] ss:$16 sps:$4 sm:$0xff]  }
  0xb9   : > { %1669 = vmatmul.mubr.bf16.gmra.mrb[52].mxu0 %v2716_v24  ;;  %1387 = vmatprep.mubr.bf16.mxu1 %v2717_v25  ;;  %v2801_v24 = vld [vmem:[%s3042_s24 + $0x384] ss:$16 sps:$4 sm:$0xff]   ;;  %v3196_v25 = vld [vmem:[%s3427_s3] ss:$0 sm:$0xff] }
  0xba   : > { %1676 = vmatprep.mubr.bf16.mxu0 %v2719_v26 }
  0xc0   : > { %1388 = vmatmul.mubr.bf16.gmra.mrb[56].mxu1 %v2721_v27 }
  0xc1   : > { %1677 = vmatmul.mubr.bf16.gmra.mrb[56].mxu0 %v2722_v28  ;;  %1395 = vmatprep.mubr.bf16.mxu1 %v2723_v29  ;;  %v2803_v28 = vld [vmem:[%s3042_s24 + $0x38c] ss:$16 sps:$4 sm:$0xff]  }
  0xc2   : > { %1684 = vmatprep.mubr.bf16.mxu0 %v2725_v30 }
  0xc8   : > { %1396 = vmatmul.mubr.bf16.gmra.mrb[60].mxu1 %v2727_v31 }
  0xc9   : > { %1685 = vmatmul.mubr.bf16.gmra.mrb[60].mxu0 %v2728_v32  ;;  %1403 = vmatprep.mubr.bf16.mxu1 %v2729_v33 }
  0xca   : > { %1692 = vmatprep.mubr.bf16.mxu0 %v2731_v34 }
  0xd0   : > { %1404 = vmatmul.mubr.bf16.gmra.mrb[64].mxu1 %v2733_v35 }
  0xd1   : > { %1693 = vmatmul.mubr.bf16.gmra.mrb[64].mxu0 %v2734_v36  ;;  %1411 = vmatprep.mubr.bf16.mxu1 %v2735_v37 }
  0xd2   : > { %1700 = vmatprep.mubr.bf16.mxu0 %v2737_v38 }
  0xd8   : > { %1412 = vmatmul.mubr.bf16.gmra.mrb[68].mxu1 %v2739_v39  ;;  %v2805_v39 = vld [vmem:[%s3042_s24 + $0x380] ss:$16 sps:$4 sm:$0xff]  }
  0xd9   : > { %1701 = vmatmul.mubr.bf16.gmra.mrb[68].mxu0 %v2740_v40  ;;  %1419 = vmatprep.mubr.bf16.mxu1 %v2741_v41  ;;  %v2806_v40 = vld [vmem:[%s3042_s24 + $0x388] ss:$16 sps:$4 sm:$0xff]  }
  0xda   : > { %1708 = vmatprep.mubr.bf16.mxu0 %v2743_v42 }
  0xe0   : > { %1420 = vmatmul.mubr.bf16.gmra.mrb[72].mxu1 %v2745_v43 }
  0xe1   : > { %1709 = vmatmul.mubr.bf16.gmra.mrb[72].mxu0 %v2746_v44  ;;  %1427 = vmatprep.mubr.bf16.mxu1 %v2747_v45  ;;  %v2807_v45 = vld [vmem:[%s3042_s24 + $0x3a4] ss:$16 sps:$4 sm:$0xff]  }
  0xe2   : > { %1716 = vmatprep.mubr.bf16.mxu0 %v2749_v46 }
  0xe8   : > { %1428 = vmatmul.mubr.bf16.gmra.mrb[76].mxu1 %v2751_v47 }
  0xe9   : > { %1717 = vmatmul.mubr.bf16.gmra.mrb[76].mxu0 %v2752_v48  ;;  %1435 = vmatprep.mubr.bf16.mxu1 %v2753_v49  ;;  %v2809_v48 = vld [vmem:[%s3042_s24 + $0x3ac] ss:$16 sps:$4 sm:$0xff]  }
  0xea   : > { %1724 = vmatprep.mubr.bf16.mxu0 %v2755_v50 }
  0xf0   : > { %1436 = vmatmul.mubr.bf16.gmra.mrb[80].mxu1 %v2757_v51 }
  0xf1   : > { %1725 = vmatmul.mubr.bf16.gmra.mrb[80].mxu0 %v2758_v52  ;;  %1443 = vmatprep.mubr.bf16.mxu1 %v2759_v53 }
  0xf2   : > { %1732 = vmatprep.mubr.bf16.mxu0 %v2761_v54 }
  0xf8   : > { %1444 = vmatmul.mubr.bf16.gmra.mrb[84].mxu1 %v2763_v55 }
  0xf9   : > { %1733 = vmatmul.mubr.bf16.gmra.mrb[84].mxu0 %v2764_v56  ;;  %1451 = vmatprep.mubr.bf16.mxu1 %v2765_v57 }
  0xfa   : > { %1740 = vmatprep.mubr.bf16.mxu0 %v2767_v58 }
 0x100   : > { %1452 = vmatmul.mubr.bf16.gmra.mrb[88].mxu1 %v2769_v59  ;;  %v2811_v59 = vld [vmem:[%s3042_s24 + $0x3a0] ss:$16 sps:$4 sm:$0xff]  }
 0x101   : > { %1741 = vmatmul.mubr.bf16.gmra.mrb[88].mxu0 %v2770_v60  ;;  %1459 = vmatprep.mubr.bf16.mxu1 %v2771_v61  ;;  %v2812_v60 = vld [vmem:[%s3042_s24 + $0x3a8] ss:$16 sps:$4 sm:$0xff]  }
 0x102   : > { %1748 = vmatprep.mubr.bf16.mxu0 %v2773_v62 }
 0x108   : > { %1460 = vmatmul.mubr.bf16.gmra.mrb[92].mxu1 %v2775_v63 }
 0x109   : > { %1749 = vmatmul.mubr.bf16.gmra.mrb[92].mxu0 %v2776_v0  ;;  %1467 = vmatprep.mubr.bf16.mxu1 %v2777_v1  ;;  %v2813_v1 = vld [vmem:[%s3042_s24 + $0x3c4] ss:$16 sps:$4 sm:$0xff]  }
 0x10a   : > { %1756 = vmatprep.mubr.bf16.mxu0 %v2779_v2 }
 0x110   : > { %1468 = vmatmul.mubr.bf16.gmra.mrb[96].mxu1 %v2781_v3 }
 0x111   : > { %1757 = vmatmul.mubr.bf16.gmra.mrb[96].mxu0 %v2782_v4  ;;  %1475 = vmatprep.mubr.bf16.mxu1 %v2783_v5  ;;  %v2815_v4 = vld [vmem:[%s3042_s24 + $0x3cc] ss:$16 sps:$4 sm:$0xff]  }
 0x112   : > { %1764 = vmatprep.mubr.bf16.mxu0 %v2785_v6 }
 0x118   : > { %1476 = vmatmul.mubr.bf16.gmra.mrb[100].mxu1 %v2787_v7 }
 0x119   : > { %1765 = vmatmul.mubr.bf16.gmra.mrb[100].mxu0 %v2788_v8  ;;  %1483 = vmatprep.mubr.bf16.mxu1 %v2789_v9 }
 0x11a   : > { %1772 = vmatprep.mubr.bf16.mxu0 %v2791_v10 }
 0x120   : > { %1484 = vmatmul.mubr.bf16.gmra.mrb[104].mxu1 %v2793_v11 }
 0x121   : > { %1773 = vmatmul.mubr.bf16.gmra.mrb[104].mxu0 %v2794_v12  ;;  %1491 = vmatprep.mubr.bf16.mxu1 %v2795_v13 }
 0x122   : > { %1780 = vmatprep.mubr.bf16.mxu0 %v2797_v14 }
 0x123   : > { %v1277_v15 = vpop.f32.mrb[0].mxu1 }
 0x124   : > { %v1566_v16 = vpop.f32.mrb[0].mxu0  ;;  %v1279_v18 = vpop.f32.mrb[1].mxu1 }
 0x125   : > { %v1567_v20 = vadd.f32 %v1566_v16, %v1277_v15  ;;  %v1568_v21 = vpop.f32.mrb[1].mxu0  ;;  %v1280_v22 = vpop.f32.mrb[2].mxu1 }
 0x126   : > { %v1569_v26 = vpop.f32.mrb[2].mxu0  ;;  %v1282_v27 = vpop.f32.mrb[3].mxu1 }
 0x127   : > { %v1828_v29 = vmul.f32 %v3188_v17, %v1567_v20  ;;  %v1570_v30 = vadd.f32 %v1569_v26, %v1280_v22  ;;  %v1571_v31 = vpop.f32.mrb[3].mxu0 }
 0x128   : > { %1492 = vmatmul.mubr.bf16.gmra.mrb[108].mxu1 %v2799_v19  ;;  %v2817_v19 = vld [vmem:[%s3042_s24 + $0x3c0] ss:$16 sps:$4 sm:$0xff]  }
 0x129   : > { %v1899_v32 = vadd.f32 %v3196_v25, %v1828_v29  ;;  %v1829_v33 = vmul.f32 %v3188_v17, %v1570_v30  ;;  %1781 = vmatmul.mubr.bf16.gmra.mrb[108].mxu0 %v2800_v23  ;;  %1499 = vmatprep.mubr.bf16.mxu1 %v2801_v24  ;;  %v2818_v23 = vld [vmem:[%s3042_s24 + $0x3c8] ss:$16 sps:$4 sm:$0xff]   ;;  %v2819_v29 = vld [vmem:[%s3042_s24 + $0x3e4] ss:$16 sps:$4 sm:$0xff]  }
 0x12a   : > { %1788 = vmatprep.mubr.bf16.mxu0 %v2803_v28 }
 0x12b   : > { %v1963_v34 = vmul.f32 0.5, %v1899_v32  ;;  %v1900_v35 = vadd.f32 %v3196_v25, %v1829_v33  ;;  %v1285_v36 = vpop.f32.mrb[4].mxu1  ;;  %v2821_v32 = vld [vmem:[%s3042_s24 + $0x3ec] ss:$16 sps:$4 sm:$0xff]  }
 0x12c   : > { %v1574_v37 = vpop.f32.mrb[4].mxu0  ;;  %v1287_v38 = vpop.f32.mrb[5].mxu1 }
 0x12d   : > { %2825 = vtanh.f32 %v1963_v34  ;;  %v1964_v41 = vmul.f32 0.5, %v1900_v35  ;;  %v1575_v42 = vadd.f32 %v1574_v37, %v1285_v36  ;;  %v1576_v43 = vpop.f32.mrb[5].mxu0  ;;  %v1288_v44 = vpop.f32.mrb[6].mxu1 }
 0x12e   : > { %v1577_v46 = vpop.f32.mrb[6].mxu0  ;;  %v1290_v47 = vpop.f32.mrb[7].mxu1 }
 0x12f   : > { %2827 = vtanh.f32 %v1964_v41  ;;  %v1830_v49 = vmul.f32 %v3188_v17, %v1575_v42  ;;  %v1578_v50 = vadd.f32 %v1577_v46, %v1288_v44  ;;  %v1579_v51 = vpop.f32.mrb[7].mxu0 }
 0x130   : > { %1500 = vmatmul.mubr.bf16.gmra.mrb[112].mxu1 %v2805_v39 }
 0x131   : > { %v1901_v52 = vadd.f32 %v3196_v25, %v1830_v49  ;;  %v1831_v53 = vmul.f32 %v3188_v17, %v1578_v50  ;;  %1789 = vmatmul.mubr.bf16.gmra.mrb[112].mxu0 %v2806_v40  ;;  %1507 = vmatprep.mubr.bf16.mxu1 %v2807_v45  ;;  %v2823_v49 = vld [vmem:[%s3042_s24 + $0x3e0] ss:$16 sps:$4 sm:$0xff]  }
 0x132   : > { %1796 = vmatprep.mubr.bf16.mxu0 %v2809_v48 }
 0x133   : > { %v1965_v54 = vmul.f32 0.5, %v1901_v52  ;;  %v1902_v55 = vadd.f32 %v3196_v25, %v1831_v53  ;;  %v1293_v56 = vpop.f32.mrb[8].mxu1 }
 0x134   : > { %v1582_v57 = vpop.f32.mrb[8].mxu0  ;;  %v1295_v58 = vpop.f32.mrb[9].mxu1 }
 0x135   : > { %2829 = vtanh.f32 %v1965_v54  ;;  %v1966_v61 = vmul.f32 0.5, %v1902_v55  ;;  %v1583_v62 = vadd.f32 %v1582_v57, %v1293_v56  ;;  %v1584_v63 = vpop.f32.mrb[9].mxu0  ;;  %v1296_v0 = vpop.f32.mrb[10].mxu1  ;;  %v2824_v54 = vld [vmem:[%s3042_s24 + $0x3e8] ss:$16 sps:$4 sm:$0xff]  }
 0x136   : > { %v1585_v2 = vpop.f32.mrb[10].mxu0  ;;  %v1298_v3 = vpop.f32.mrb[11].mxu1 }
 0x137   : > { %v2826_v5 = vpop.eup %2825  ;;  %2831 = vtanh.f32 %v1966_v61  ;;  %v1832_v6 = vmul.f32 %v3188_v17, %v1583_v62  ;;  %v1586_v7 = vadd.f32 %v1585_v2, %v1296_v0  ;;  %v1587_v8 = vpop.f32.mrb[11].mxu0 }
 0x138   : > { %v2091_v9 = vadd.f32 1.0, %v2826_v5  ;;  %1508 = vmatmul.mubr.bf16.gmra.mrb[116].mxu1 %v2811_v59 }
 0x139   : > { %v2828_v10 = vpop.eup %2827  ;;  %v1903_v11 = vadd.f32 %v3196_v25, %v1832_v6  ;;  %v1833_v12 = vmul.f32 %v3188_v17, %v1586_v7  ;;  %1797 = vmatmul.mubr.bf16.gmra.mrb[116].mxu0 %v2812_v60  ;;  %1515 = vmatprep.mubr.bf16.mxu1 %v2813_v1 }
 0x13a   : > { %v2155_v13 = vmul.f32 0.5, %v2091_v9  ;;  %v2092_v14 = vadd.f32 1.0, %v2828_v10  ;;  %1804 = vmatprep.mubr.bf16.mxu0 %v2815_v4 }
 0x13b   : > { %v1967_v15 = vmul.f32 0.5, %v1903_v11  ;;  %v1904_v16 = vadd.f32 %v3196_v25, %v1833_v12  ;;  %v1301_v18 = vpop.f32.mrb[12].mxu1 }
 0x13c   : > { %2219 = vst [vmem:[%s3220_s6] sm:$0xff] %v2155_v13  ;;  %v2156_v20 = vmul.f32 0.5, %v2092_v14  ;;  %v1590_v21 = vpop.f32.mrb[12].mxu0  ;;  %v1303_v22 = vpop.f32.mrb[13].mxu1 }
 0x13d   : > { %2833 = vtanh.f32 %v1967_v15  ;;  %v1968_v24 = vmul.f32 0.5, %v1904_v16  ;;  %v1591_v26 = vadd.f32 %v1590_v21, %v1301_v18  ;;  %v1592_v27 = vpop.f32.mrb[13].mxu0  ;;  %v1304_v28 = vpop.f32.mrb[14].mxu1 }
 0x13e   : > { %2220 = vst [vmem:[%s3220_s6 + $0x8] sm:$0xff] %v2156_v20  ;;  %v1593_v30 = vpop.f32.mrb[14].mxu0  ;;  %v1306_v31 = vpop.f32.mrb[15].mxu1 }
 0x13f   : > { %v2830_v33 = vpop.eup %2829  ;;  %2835 = vtanh.f32 %v1968_v24  ;;  %v1834_v34 = vmul.f32 %v3188_v17, %v1591_v26  ;;  %v1594_v35 = vadd.f32 %v1593_v30, %v1304_v28  ;;  %v1595_v36 = vpop.f32.mrb[15].mxu0 }
 0x140   : > { %v2093_v37 = vadd.f32 1.0, %v2830_v33  ;;  %1516 = vmatmul.mubr.bf16.gmra.mrb[120].mxu1 %v2817_v19 }
 0x141   : > { %v2832_v38 = vpop.eup %2831  ;;  %v1905_v39 = vadd.f32 %v3196_v25, %v1834_v34  ;;  %v1835_v40 = vmul.f32 %v3188_v17, %v1594_v35  ;;  %1805 = vmatmul.mubr.bf16.gmra.mrb[120].mxu0 %v2818_v23  ;;  %1523 = vmatprep.mubr.bf16.mxu1 %v2819_v29 }
 0x142   : > { %v2157_v41 = vmul.f32 0.5, %v2093_v37  ;;  %v2094_v42 = vadd.f32 1.0, %v2832_v38  ;;  %1812 = vmatprep.mubr.bf16.mxu0 %v2821_v32 }
 0x143   : > { %v1969_v43 = vmul.f32 0.5, %v1905_v39  ;;  %v1906_v44 = vadd.f32 %v3196_v25, %v1835_v40  ;;  %v1309_v45 = vpop.f32.mrb[16].mxu1 }
 0x144   : > { %2221 = vst [vmem:[%s3220_s6 + $0x10] sm:$0xff] %v2157_v41  ;;  %v2158_v46 = vmul.f32 0.5, %v2094_v42  ;;  %v1598_v47 = vpop.f32.mrb[16].mxu0  ;;  %v1311_v48 = vpop.f32.mrb[17].mxu1 }
 0x145   : > { %2837 = vtanh.f32 %v1969_v43  ;;  %v1970_v50 = vmul.f32 0.5, %v1906_v44  ;;  %v1599_v51 = vadd.f32 %v1598_v47, %v1309_v45  ;;  %v1600_v52 = vpop.f32.mrb[17].mxu0  ;;  %v1312_v53 = vpop.f32.mrb[18].mxu1 }
 0x146   : > { %2222 = vst [vmem:[%s3220_s6 + $0x18] sm:$0xff] %v2158_v46  ;;  %v1601_v55 = vpop.f32.mrb[18].mxu0  ;;  %v1314_v56 = vpop.f32.mrb[19].mxu1 }
 0x147   : > { %v2834_v57 = vpop.eup %2833  ;;  %2839 = vtanh.f32 %v1970_v50  ;;  %v1836_v58 = vmul.f32 %v3188_v17, %v1599_v51  ;;  %v1602_v59 = vadd.f32 %v1601_v55, %v1312_v53  ;;  %v1603_v60 = vpop.f32.mrb[19].mxu0 }
 0x148   : > { %v2095_v61 = vadd.f32 1.0, %v2834_v57  ;;  %1524 = vmatmul.mubr.bf16.gmra.mrb[124].mxu1 %v2823_v49 }
 0x149   : > { %v2836_v62 = vpop.eup %2835  ;;  %v1907_v63 = vadd.f32 %v3196_v25, %v1836_v58  ;;  %v1837_v0 = vmul.f32 %v3188_v17, %v1602_v59  ;;  %1813 = vmatmul.mubr.bf16.gmra.mrb[124].mxu0 %v2824_v54 }
 0x14a   : > { %v2159_v1 = vmul.f32 0.5, %v2095_v61  ;;  %v2096_v2 = vadd.f32 1.0, %v2836_v62 }
 0x14b   : > { %v1971_v3 = vmul.f32 0.5, %v1907_v63  ;;  %v1908_v4 = vadd.f32 %v3196_v25, %v1837_v0  ;;  %v1317_v5 = vpop.f32.mrb[20].mxu1 }
 0x14c   : > { %2223 = vst [vmem:[%s3220_s6 + $0x20] sm:$0xff] %v2159_v1  ;;  %v2160_v6 = vmul.f32 0.5, %v2096_v2  ;;  %v1606_v7 = vpop.f32.mrb[20].mxu0  ;;  %v1319_v8 = vpop.f32.mrb[21].mxu1 }
 0x14d   : > { %2841 = vtanh.f32 %v1971_v3  ;;  %v1972_v9 = vmul.f32 0.5, %v1908_v4  ;;  %v1607_v10 = vadd.f32 %v1606_v7, %v1317_v5  ;;  %v1608_v11 = vpop.f32.mrb[21].mxu0  ;;  %v1320_v12 = vpop.f32.mrb[22].mxu1 }
 0x14e   : > { %2224 = vst [vmem:[%s3220_s6 + $0x28] sm:$0xff] %v2160_v6  ;;  %v1609_v13 = vpop.f32.mrb[22].mxu0  ;;  %v1322_v14 = vpop.f32.mrb[23].mxu1 }
 0x14f   : > { %v2838_v15 = vpop.eup %2837  ;;  %2843 = vtanh.f32 %v1972_v9  ;;  %v1838_v16 = vmul.f32 %v3188_v17, %v1607_v10  ;;  %v1610_v18 = vadd.f32 %v1609_v13, %v1320_v12  ;;  %v1611_v19 = vpop.f32.mrb[23].mxu0 }
 0x150   : > { %v2097_v20 = vadd.f32 1.0, %v2838_v15 }
 0x151   : > { %v2840_v21 = vpop.eup %2839  ;;  %v1909_v22 = vadd.f32 %v3196_v25, %v1838_v16  ;;  %v1839_v23 = vmul.f32 %v3188_v17, %v1610_v18 }
 0x152   : > { %v2161_v24 = vmul.f32 0.5, %v2097_v20  ;;  %v2098_v26 = vadd.f32 1.0, %v2840_v21 }
 0x153   : > { %v1973_v27 = vmul.f32 0.5, %v1909_v22  ;;  %v1910_v28 = vadd.f32 %v3196_v25, %v1839_v23  ;;  %v1325_v29 = vpop.f32.mrb[24].mxu1 }
 0x154   : > { %2225 = vst [vmem:[%s3220_s6 + $0x30] sm:$0xff] %v2161_v24  ;;  %v2162_v30 = vmul.f32 0.5, %v2098_v26  ;;  %v1614_v31 = vpop.f32.mrb[24].mxu0  ;;  %v1327_v32 = vpop.f32.mrb[25].mxu1 }
 0x155   : > { %2845 = vtanh.f32 %v1973_v27  ;;  %v1974_v33 = vmul.f32 0.5, %v1910_v28  ;;  %v1615_v34 = vadd.f32 %v1614_v31, %v1325_v29  ;;  %v1616_v35 = vpop.f32.mrb[25].mxu0  ;;  %v1328_v36 = vpop.f32.mrb[26].mxu1 }
 0x156   : > { %2226 = vst [vmem:[%s3220_s6 + $0x38] sm:$0xff] %v2162_v30  ;;  %v1617_v37 = vpop.f32.mrb[26].mxu0  ;;  %v1330_v38 = vpop.f32.mrb[27].mxu1 }
 0x157   : > { %v2842_v39 = vpop.eup %2841  ;;  %2847 = vtanh.f32 %v1974_v33  ;;  %v1840_v40 = vmul.f32 %v3188_v17, %v1615_v34  ;;  %v1618_v41 = vadd.f32 %v1617_v37, %v1328_v36  ;;  %v1619_v42 = vpop.f32.mrb[27].mxu0 }
 0x158   : > { %v2099_v43 = vadd.f32 1.0, %v2842_v39 }
 0x159   : > { %v2844_v44 = vpop.eup %2843  ;;  %v1911_v45 = vadd.f32 %v3196_v25, %v1840_v40  ;;  %v1841_v46 = vmul.f32 %v3188_v17, %v1618_v41 }
 0x15a   : > { %v2163_v47 = vmul.f32 0.5, %v2099_v43  ;;  %v2100_v48 = vadd.f32 1.0, %v2844_v44 }
 0x15b   : > { %v1975_v49 = vmul.f32 0.5, %v1911_v45  ;;  %v1912_v50 = vadd.f32 %v3196_v25, %v1841_v46  ;;  %v1333_v51 = vpop.f32.mrb[28].mxu1 }
 0x15c   : > { %2227 = vst [vmem:[%s3220_s6 + $0x40] sm:$0xff] %v2163_v47  ;;  %v2164_v52 = vmul.f32 0.5, %v2100_v48  ;;  %v1622_v53 = vpop.f32.mrb[28].mxu0  ;;  %v1335_v54 = vpop.f32.mrb[29].mxu1 }
 0x15d   : > { %2849 = vtanh.f32 %v1975_v49  ;;  %v1976_v55 = vmul.f32 0.5, %v1912_v50  ;;  %v1623_v56 = vadd.f32 %v1622_v53, %v1333_v51  ;;  %v1624_v57 = vpop.f32.mrb[29].mxu0  ;;  %v1336_v58 = vpop.f32.mrb[30].mxu1 }
 0x15e   : > { %2228 = vst [vmem:[%s3220_s6 + $0x48] sm:$0xff] %v2164_v52  ;;  %v1625_v59 = vpop.f32.mrb[30].mxu0  ;;  %v1338_v60 = vpop.f32.mrb[31].mxu1 }
 0x15f   : > { %v2846_v61 = vpop.eup %2845  ;;  %2851 = vtanh.f32 %v1976_v55  ;;  %v1842_v62 = vmul.f32 %v3188_v17, %v1623_v56  ;;  %v1626_v63 = vadd.f32 %v1625_v59, %v1336_v58  ;;  %v1627_v0 = vpop.f32.mrb[31].mxu0 }
 0x160   : > { %v2101_v1 = vadd.f32 1.0, %v2846_v61 }
 0x161   : > { %v2848_v2 = vpop.eup %2847  ;;  %v1913_v3 = vadd.f32 %v3196_v25, %v1842_v62  ;;  %v1843_v4 = vmul.f32 %v3188_v17, %v1626_v63 }
 0x162   : > { %v2165_v5 = vmul.f32 0.5, %v2101_v1  ;;  %v2102_v6 = vadd.f32 1.0, %v2848_v2 }
 0x163   : > { %v1977_v7 = vmul.f32 0.5, %v1913_v3  ;;  %v1914_v8 = vadd.f32 %v3196_v25, %v1843_v4  ;;  %v1341_v9 = vpop.f32.mrb[32].mxu1 }
 0x164   : > { %2229 = vst [vmem:[%s3220_s6 + $0x50] sm:$0xff] %v2165_v5  ;;  %v2166_v10 = vmul.f32 0.5, %v2102_v6  ;;  %v1630_v11 = vpop.f32.mrb[32].mxu0  ;;  %v1343_v12 = vpop.f32.mrb[33].mxu1 }
 0x165   : > { %2853 = vtanh.f32 %v1977_v7  ;;  %v1978_v13 = vmul.f32 0.5, %v1914_v8  ;;  %v1631_v14 = vadd.f32 %v1630_v11, %v1341_v9  ;;  %v1632_v15 = vpop.f32.mrb[33].mxu0  ;;  %v1344_v16 = vpop.f32.mrb[34].mxu1 }
 0x166   : > { %2230 = vst [vmem:[%s3220_s6 + $0x58] sm:$0xff] %v2166_v10  ;;  %v1633_v18 = vpop.f32.mrb[34].mxu0  ;;  %v1346_v19 = vpop.f32.mrb[35].mxu1 }
 0x167   : > { %v2850_v20 = vpop.eup %2849  ;;  %2855 = vtanh.f32 %v1978_v13  ;;  %v1844_v21 = vmul.f32 %v3188_v17, %v1631_v14  ;;  %v1634_v22 = vadd.f32 %v1633_v18, %v1344_v16  ;;  %v1635_v23 = vpop.f32.mrb[35].mxu0 }
 0x168   : > { %v2103_v24 = vadd.f32 1.0, %v2850_v20 }
 0x169   : > { %v2852_v26 = vpop.eup %2851  ;;  %v1915_v27 = vadd.f32 %v3196_v25, %v1844_v21  ;;  %v1845_v28 = vmul.f32 %v3188_v17, %v1634_v22 }
 0x16a   : > { %v2167_v29 = vmul.f32 0.5, %v2103_v24  ;;  %v2104_v30 = vadd.f32 1.0, %v2852_v26 }
 0x16b   : > { %v1979_v31 = vmul.f32 0.5, %v1915_v27  ;;  %v1916_v32 = vadd.f32 %v3196_v25, %v1845_v28  ;;  %v1349_v33 = vpop.f32.mrb[36].mxu1 }
 0x16c   : > { %2231 = vst [vmem:[%s3220_s6 + $0x60] sm:$0xff] %v2167_v29  ;;  %v2168_v34 = vmul.f32 0.5, %v2104_v30  ;;  %v1638_v35 = vpop.f32.mrb[36].mxu0  ;;  %v1351_v36 = vpop.f32.mrb[37].mxu1 }
 0x16d   : > { %2857 = vtanh.f32 %v1979_v31  ;;  %v1980_v37 = vmul.f32 0.5, %v1916_v32  ;;  %v1639_v38 = vadd.f32 %v1638_v35, %v1349_v33  ;;  %v1640_v39 = vpop.f32.mrb[37].mxu0  ;;  %v1352_v40 = vpop.f32.mrb[38].mxu1 }
 0x16e   : > { %2232 = vst [vmem:[%s3220_s6 + $0x68] sm:$0xff] %v2168_v34  ;;  %v1641_v41 = vpop.f32.mrb[38].mxu0  ;;  %v1354_v42 = vpop.f32.mrb[39].mxu1 }
 0x16f   : > { %v2854_v43 = vpop.eup %2853  ;;  %2859 = vtanh.f32 %v1980_v37  ;;  %v1846_v44 = vmul.f32 %v3188_v17, %v1639_v38  ;;  %v1642_v45 = vadd.f32 %v1641_v41, %v1352_v40  ;;  %v1643_v46 = vpop.f32.mrb[39].mxu0 }
 0x170   : > { %v2105_v47 = vadd.f32 1.0, %v2854_v43 }
 0x171   : > { %v2856_v48 = vpop.eup %2855  ;;  %v1917_v49 = vadd.f32 %v3196_v25, %v1846_v44  ;;  %v1847_v50 = vmul.f32 %v3188_v17, %v1642_v45 }
 0x172   : > { %v2169_v51 = vmul.f32 0.5, %v2105_v47  ;;  %v2106_v52 = vadd.f32 1.0, %v2856_v48 }
 0x173   : > { %v1981_v53 = vmul.f32 0.5, %v1917_v49  ;;  %v1918_v54 = vadd.f32 %v3196_v25, %v1847_v50  ;;  %v1357_v55 = vpop.f32.mrb[40].mxu1 }
 0x174   : > { %2233 = vst [vmem:[%s3220_s6 + $0x70] sm:$0xff] %v2169_v51  ;;  %v2170_v56 = vmul.f32 0.5, %v2106_v52  ;;  %v1646_v57 = vpop.f32.mrb[40].mxu0  ;;  %v1359_v58 = vpop.f32.mrb[41].mxu1 }
 0x175   : > { %2861 = vtanh.f32 %v1981_v53  ;;  %v1982_v59 = vmul.f32 0.5, %v1918_v54  ;;  %v1647_v60 = vadd.f32 %v1646_v57, %v1357_v55  ;;  %v1648_v61 = vpop.f32.mrb[41].mxu0  ;;  %v1360_v62 = vpop.f32.mrb[42].mxu1 }
 0x176   : > { %2234 = vst [vmem:[%s3220_s6 + $0x78] sm:$0xff] %v2170_v56  ;;  %v1649_v63 = vpop.f32.mrb[42].mxu0  ;;  %v1362_v0 = vpop.f32.mrb[43].mxu1 }
 0x177   : > { %v2858_v1 = vpop.eup %2857  ;;  %2863 = vtanh.f32 %v1982_v59  ;;  %v1848_v2 = vmul.f32 %v3188_v17, %v1647_v60  ;;  %v1650_v3 = vadd.f32 %v1649_v63, %v1360_v62  ;;  %v1651_v4 = vpop.f32.mrb[43].mxu0 }
 0x178   : > { %v2107_v5 = vadd.f32 1.0, %v2858_v1 }
 0x179   : > { %v2860_v6 = vpop.eup %2859  ;;  %v1919_v7 = vadd.f32 %v3196_v25, %v1848_v2  ;;  %v1849_v8 = vmul.f32 %v3188_v17, %v1650_v3 }
 0x17a   : > { %v2171_v9 = vmul.f32 0.5, %v2107_v5  ;;  %v2108_v10 = vadd.f32 1.0, %v2860_v6 }
 0x17b   : > { %v1983_v11 = vmul.f32 0.5, %v1919_v7  ;;  %v1920_v12 = vadd.f32 %v3196_v25, %v1849_v8  ;;  %v1365_v13 = vpop.f32.mrb[44].mxu1 }
 0x17c   : > { %2235 = vst [vmem:[%s3220_s6 + $0x80] sm:$0xff] %v2171_v9  ;;  %v2172_v14 = vmul.f32 0.5, %v2108_v10  ;;  %v1654_v15 = vpop.f32.mrb[44].mxu0  ;;  %v1367_v16 = vpop.f32.mrb[45].mxu1 }
 0x17d   : > { %2865 = vtanh.f32 %v1983_v11  ;;  %v1984_v18 = vmul.f32 0.5, %v1920_v12  ;;  %v1655_v19 = vadd.f32 %v1654_v15, %v1365_v13  ;;  %v1656_v20 = vpop.f32.mrb[45].mxu0  ;;  %v1368_v21 = vpop.f32.mrb[46].mxu1 }
 0x17e   : > { %2236 = vst [vmem:[%s3220_s6 + $0x88] sm:$0xff] %v2172_v14  ;;  %v1657_v22 = vpop.f32.mrb[46].mxu0  ;;  %v1370_v23 = vpop.f32.mrb[47].mxu1 }
 0x17f   : > { %v2862_v24 = vpop.eup %2861  ;;  %2867 = vtanh.f32 %v1984_v18  ;;  %v1850_v26 = vmul.f32 %v3188_v17, %v1655_v19  ;;  %v1658_v27 = vadd.f32 %v1657_v22, %v1368_v21  ;;  %v1659_v28 = vpop.f32.mrb[47].mxu0 }
 0x180   : > { %v2109_v29 = vadd.f32 1.0, %v2862_v24 }
 0x181   : > { %v2864_v30 = vpop.eup %2863  ;;  %v1921_v31 = vadd.f32 %v3196_v25, %v1850_v26  ;;  %v1851_v32 = vmul.f32 %v3188_v17, %v1658_v27 }
 0x182   : > { %v2173_v33 = vmul.f32 0.5, %v2109_v29  ;;  %v2110_v34 = vadd.f32 1.0, %v2864_v30 }
 0x183   : > { %v1985_v35 = vmul.f32 0.5, %v1921_v31  ;;  %v1922_v36 = vadd.f32 %v3196_v25, %v1851_v32  ;;  %v1373_v37 = vpop.f32.mrb[48].mxu1 }
 0x184   : > { %2237 = vst [vmem:[%s3220_s6 + $0x90] sm:$0xff] %v2173_v33  ;;  %v2174_v38 = vmul.f32 0.5, %v2110_v34  ;;  %v1662_v39 = vpop.f32.mrb[48].mxu0  ;;  %v1375_v40 = vpop.f32.mrb[49].mxu1 }
 0x185   : > { %2869 = vtanh.f32 %v1985_v35  ;;  %v1986_v41 = vmul.f32 0.5, %v1922_v36  ;;  %v1663_v42 = vadd.f32 %v1662_v39, %v1373_v37  ;;  %v1664_v43 = vpop.f32.mrb[49].mxu0  ;;  %v1376_v44 = vpop.f32.mrb[50].mxu1 }
 0x186   : > { %2238 = vst [vmem:[%s3220_s6 + $0x98] sm:$0xff] %v2174_v38  ;;  %v1665_v45 = vpop.f32.mrb[50].mxu0  ;;  %v1378_v46 = vpop.f32.mrb[51].mxu1 }
 0x187   : > { %v2866_v47 = vpop.eup %2865  ;;  %2871 = vtanh.f32 %v1986_v41  ;;  %v1852_v48 = vmul.f32 %v3188_v17, %v1663_v42  ;;  %v1666_v49 = vadd.f32 %v1665_v45, %v1376_v44  ;;  %v1667_v50 = vpop.f32.mrb[51].mxu0 }
 0x188   : > { %v2111_v51 = vadd.f32 1.0, %v2866_v47 }
 0x189   : > { %v2868_v52 = vpop.eup %2867  ;;  %v1923_v53 = vadd.f32 %v3196_v25, %v1852_v48  ;;  %v1853_v54 = vmul.f32 %v3188_v17, %v1666_v49 }
 0x18a   : > { %v2175_v55 = vmul.f32 0.5, %v2111_v51  ;;  %v2112_v56 = vadd.f32 1.0, %v2868_v52 }
 0x18b   : > { %v1987_v57 = vmul.f32 0.5, %v1923_v53  ;;  %v1924_v58 = vadd.f32 %v3196_v25, %v1853_v54  ;;  %v1381_v59 = vpop.f32.mrb[52].mxu1 }
 0x18c   : > { %2239 = vst [vmem:[%s3220_s6 + $0xa0] sm:$0xff] %v2175_v55  ;;  %v2176_v60 = vmul.f32 0.5, %v2112_v56  ;;  %v1670_v61 = vpop.f32.mrb[52].mxu0  ;;  %v1383_v62 = vpop.f32.mrb[53].mxu1 }
 0x18d   : > { %2873 = vtanh.f32 %v1987_v57  ;;  %v1988_v63 = vmul.f32 0.5, %v1924_v58  ;;  %v1671_v0 = vadd.f32 %v1670_v61, %v1381_v59  ;;  %v1672_v1 = vpop.f32.mrb[53].mxu0  ;;  %v1384_v2 = vpop.f32.mrb[54].mxu1 }
 0x18e   : > { %2240 = vst [vmem:[%s3220_s6 + $0xa8] sm:$0xff] %v2176_v60  ;;  %v1673_v3 = vpop.f32.mrb[54].mxu0  ;;  %v1386_v4 = vpop.f32.mrb[55].mxu1 }
 0x18f   : > { %v2870_v5 = vpop.eup %2869  ;;  %2875 = vtanh.f32 %v1988_v63  ;;  %v1854_v6 = vmul.f32 %v3188_v17, %v1671_v0  ;;  %v1674_v7 = vadd.f32 %v1673_v3, %v1384_v2  ;;  %v1675_v8 = vpop.f32.mrb[55].mxu0 }
 0x190   : > { %v2113_v9 = vadd.f32 1.0, %v2870_v5 }
 0x191   : > { %v2872_v10 = vpop.eup %2871  ;;  %v1925_v11 = vadd.f32 %v3196_v25, %v1854_v6  ;;  %v1855_v12 = vmul.f32 %v3188_v17, %v1674_v7 }
 0x192   : > { %v2177_v13 = vmul.f32 0.5, %v2113_v9  ;;  %v2114_v14 = vadd.f32 1.0, %v2872_v10 }
 0x193   : > { %v1989_v15 = vmul.f32 0.5, %v1925_v11  ;;  %v1926_v16 = vadd.f32 %v3196_v25, %v1855_v12  ;;  %v1389_v18 = vpop.f32.mrb[56].mxu1 }
 0x194   : > { %2241 = vst [vmem:[%s3220_s6 + $0xb0] sm:$0xff] %v2177_v13  ;;  %v2178_v19 = vmul.f32 0.5, %v2114_v14  ;;  %v1678_v20 = vpop.f32.mrb[56].mxu0  ;;  %v1391_v21 = vpop.f32.mrb[57].mxu1 }
 0x195   : > { %2877 = vtanh.f32 %v1989_v15  ;;  %v1990_v22 = vmul.f32 0.5, %v1926_v16  ;;  %v1679_v23 = vadd.f32 %v1678_v20, %v1389_v18  ;;  %v1680_v24 = vpop.f32.mrb[57].mxu0  ;;  %v1392_v26 = vpop.f32.mrb[58].mxu1 }
 0x196   : > { %2242 = vst [vmem:[%s3220_s6 + $0xb8] sm:$0xff] %v2178_v19  ;;  %v1681_v27 = vpop.f32.mrb[58].mxu0  ;;  %v1394_v28 = vpop.f32.mrb[59].mxu1 }
 0x197   : > { %v2874_v29 = vpop.eup %2873  ;;  %2879 = vtanh.f32 %v1990_v22  ;;  %v1856_v30 = vmul.f32 %v3188_v17, %v1679_v23  ;;  %v1682_v31 = vadd.f32 %v1681_v27, %v1392_v26  ;;  %v1683_v32 = vpop.f32.mrb[59].mxu0 }
 0x198   : > { %v2115_v33 = vadd.f32 1.0, %v2874_v29 }
 0x199   : > { %v2876_v34 = vpop.eup %2875  ;;  %v1927_v35 = vadd.f32 %v3196_v25, %v1856_v30  ;;  %v1857_v36 = vmul.f32 %v3188_v17, %v1682_v31 }
 0x19a   : > { %v2179_v37 = vmul.f32 0.5, %v2115_v33  ;;  %v2116_v38 = vadd.f32 1.0, %v2876_v34 }
 0x19b   : > { %v1991_v39 = vmul.f32 0.5, %v1927_v35  ;;  %v1928_v40 = vadd.f32 %v3196_v25, %v1857_v36  ;;  %v1397_v41 = vpop.f32.mrb[60].mxu1 }
 0x19c   : > { %2243 = vst [vmem:[%s3220_s6 + $0xc0] sm:$0xff] %v2179_v37  ;;  %v2180_v42 = vmul.f32 0.5, %v2116_v38  ;;  %v1686_v43 = vpop.f32.mrb[60].mxu0  ;;  %v1399_v44 = vpop.f32.mrb[61].mxu1 }
 0x19d   : > { %2881 = vtanh.f32 %v1991_v39  ;;  %v1992_v45 = vmul.f32 0.5, %v1928_v40  ;;  %v1687_v46 = vadd.f32 %v1686_v43, %v1397_v41  ;;  %v1688_v47 = vpop.f32.mrb[61].mxu0  ;;  %v1400_v48 = vpop.f32.mrb[62].mxu1 }
 0x19e   : > { %2244 = vst [vmem:[%s3220_s6 + $0xc8] sm:$0xff] %v2180_v42  ;;  %v1689_v49 = vpop.f32.mrb[62].mxu0  ;;  %v1402_v50 = vpop.f32.mrb[63].mxu1 }
 0x19f   : > { %v2878_v51 = vpop.eup %2877  ;;  %2883 = vtanh.f32 %v1992_v45  ;;  %v1858_v52 = vmul.f32 %v3188_v17, %v1687_v46  ;;  %v1690_v53 = vadd.f32 %v1689_v49, %v1400_v48  ;;  %v1691_v54 = vpop.f32.mrb[63].mxu0 }
 0x1a0   : > { %v2117_v55 = vadd.f32 1.0, %v2878_v51 }
 0x1a1   : > { %v2880_v56 = vpop.eup %2879  ;;  %v1929_v57 = vadd.f32 %v3196_v25, %v1858_v52  ;;  %v1859_v58 = vmul.f32 %v3188_v17, %v1690_v53 }
 0x1a2   : > { %v2181_v59 = vmul.f32 0.5, %v2117_v55  ;;  %v2118_v60 = vadd.f32 1.0, %v2880_v56 }
 0x1a3   : > { %v1993_v61 = vmul.f32 0.5, %v1929_v57  ;;  %v1930_v62 = vadd.f32 %v3196_v25, %v1859_v58  ;;  %v1405_v63 = vpop.f32.mrb[64].mxu1 }
 0x1a4   : > { %2245 = vst [vmem:[%s3220_s6 + $0xd0] sm:$0xff] %v2181_v59  ;;  %v2182_v0 = vmul.f32 0.5, %v2118_v60  ;;  %v1694_v1 = vpop.f32.mrb[64].mxu0  ;;  %v1407_v2 = vpop.f32.mrb[65].mxu1 }
 0x1a5   : > { %2885 = vtanh.f32 %v1993_v61  ;;  %v1994_v3 = vmul.f32 0.5, %v1930_v62  ;;  %v1695_v4 = vadd.f32 %v1694_v1, %v1405_v63  ;;  %v1696_v5 = vpop.f32.mrb[65].mxu0  ;;  %v1408_v6 = vpop.f32.mrb[66].mxu1 }
 0x1a6   : > { %2246 = vst [vmem:[%s3220_s6 + $0xd8] sm:$0xff] %v2182_v0  ;;  %v1697_v7 = vpop.f32.mrb[66].mxu0  ;;  %v1410_v8 = vpop.f32.mrb[67].mxu1 }
 0x1a7   : > { %v2882_v9 = vpop.eup %2881  ;;  %2887 = vtanh.f32 %v1994_v3  ;;  %v1860_v10 = vmul.f32 %v3188_v17, %v1695_v4  ;;  %v1698_v11 = vadd.f32 %v1697_v7, %v1408_v6  ;;  %v1699_v12 = vpop.f32.mrb[67].mxu0 }
 0x1a8   : > { %v2119_v13 = vadd.f32 1.0, %v2882_v9 }
 0x1a9   : > { %v2884_v14 = vpop.eup %2883  ;;  %v1931_v15 = vadd.f32 %v3196_v25, %v1860_v10  ;;  %v1861_v16 = vmul.f32 %v3188_v17, %v1698_v11 }
 0x1aa   : > { %v2183_v18 = vmul.f32 0.5, %v2119_v13  ;;  %v2120_v19 = vadd.f32 1.0, %v2884_v14 }
 0x1ab   : > { %v1995_v20 = vmul.f32 0.5, %v1931_v15  ;;  %v1932_v21 = vadd.f32 %v3196_v25, %v1861_v16  ;;  %v1413_v22 = vpop.f32.mrb[68].mxu1 }
 0x1ac   : > { %2247 = vst [vmem:[%s3220_s6 + $0xe0] sm:$0xff] %v2183_v18  ;;  %v2184_v23 = vmul.f32 0.5, %v2120_v19  ;;  %v1702_v24 = vpop.f32.mrb[68].mxu0  ;;  %v1415_v26 = vpop.f32.mrb[69].mxu1  ;;  %v3338_v19 = vld [vmem:[%s3427_s3] ss:$0 sm:$0xff] }
 0x1ad   : > { %2889 = vtanh.f32 %v1995_v20  ;;  %v1996_v27 = vmul.f32 0.5, %v1932_v21  ;;  %v1703_v28 = vadd.f32 %v1702_v24, %v1413_v22  ;;  %v1704_v29 = vpop.f32.mrb[69].mxu0  ;;  %v1416_v30 = vpop.f32.mrb[70].mxu1 }
 0x1ae   : > { %2248 = vst [vmem:[%s3220_s6 + $0xe8] sm:$0xff] %v2184_v23  ;;  %v1705_v31 = vpop.f32.mrb[70].mxu0  ;;  %v1418_v32 = vpop.f32.mrb[71].mxu1 }
 0x1af   : > { %v2886_v33 = vpop.eup %2885  ;;  %2891 = vtanh.f32 %v1996_v27  ;;  %v1862_v34 = vmul.f32 %v3188_v17, %v1703_v28  ;;  %v1706_v35 = vadd.f32 %v1705_v31, %v1416_v30  ;;  %v1707_v36 = vpop.f32.mrb[71].mxu0 }
 0x1b0   : > { %v2121_v37 = vadd.f32 1.0, %v2886_v33 }
 0x1b1   : > { %v2888_v38 = vpop.eup %2887  ;;  %v1933_v39 = vadd.f32 %v3196_v25, %v1862_v34  ;;  %v1863_v40 = vmul.f32 %v3188_v17, %v1706_v35 }
 0x1b2   : > { %v2185_v41 = vmul.f32 0.5, %v2121_v37  ;;  %v2122_v42 = vadd.f32 1.0, %v2888_v38 }
 0x1b3   : > { %v1997_v43 = vmul.f32 0.5, %v1933_v39  ;;  %v1934_v44 = vadd.f32 %v3196_v25, %v1863_v40  ;;  %v1421_v45 = vpop.f32.mrb[72].mxu1 }
 0x1b4   : > { %2249 = vst [vmem:[%s3220_s6 + $0xf0] sm:$0xff] %v2185_v41  ;;  %v2186_v46 = vmul.f32 0.5, %v2122_v42  ;;  %v1710_v47 = vpop.f32.mrb[72].mxu0  ;;  %v1423_v48 = vpop.f32.mrb[73].mxu1 }
 0x1b5   : > { %2893 = vtanh.f32 %v1997_v43  ;;  %v1998_v49 = vmul.f32 0.5, %v1934_v44  ;;  %v1711_v50 = vadd.f32 %v1710_v47, %v1421_v45  ;;  %v1712_v51 = vpop.f32.mrb[73].mxu0  ;;  %v1424_v52 = vpop.f32.mrb[74].mxu1 }
 0x1b6   : > { %2250 = vst [vmem:[%s3220_s6 + $0xf8] sm:$0xff] %v2186_v46  ;;  %v1713_v53 = vpop.f32.mrb[74].mxu0  ;;  %v1426_v54 = vpop.f32.mrb[75].mxu1 }
 0x1b7   : > { %v2890_v55 = vpop.eup %2889  ;;  %2895 = vtanh.f32 %v1998_v49  ;;  %v1864_v56 = vmul.f32 %v3188_v17, %v1711_v50  ;;  %v1714_v57 = vadd.f32 %v1713_v53, %v1424_v52  ;;  %v1715_v58 = vpop.f32.mrb[75].mxu0 }
 0x1b8   : > { %v2123_v59 = vadd.f32 1.0, %v2890_v55 }
 0x1b9   : > { %v2892_v60 = vpop.eup %2891  ;;  %v1935_v61 = vadd.f32 %v3196_v25, %v1864_v56  ;;  %v1865_v62 = vmul.f32 %v3188_v17, %v1714_v57  ;;  %v3332_v17 = vld [vmem:[%s3426_s2] ss:$0 sm:$0xff] }
 0x1ba   : > { %v2187_v63 = vmul.f32 0.5, %v2123_v59  ;;  %v2124_v0 = vadd.f32 1.0, %v2892_v60 }
 0x1bb   : > { %v1999_v1 = vmul.f32 0.5, %v1935_v61  ;;  %v1936_v2 = vadd.f32 %v3196_v25, %v1865_v62  ;;  %v1429_v3 = vpop.f32.mrb[76].mxu1 }
 0x1bc   : > { %2251 = vst [vmem:[%s3220_s6 + $0x100] sm:$0xff] %v2187_v63  ;;  %v2188_v4 = vmul.f32 0.5, %v2124_v0  ;;  %v1718_v5 = vpop.f32.mrb[76].mxu0  ;;  %v1431_v6 = vpop.f32.mrb[77].mxu1 }
 0x1bd   : > { %2897 = vtanh.f32 %v1999_v1  ;;  %v2000_v7 = vmul.f32 0.5, %v1936_v2  ;;  %v1719_v8 = vadd.f32 %v1718_v5, %v1429_v3  ;;  %v1720_v9 = vpop.f32.mrb[77].mxu0  ;;  %v1432_v10 = vpop.f32.mrb[78].mxu1 }
 0x1be   : > { %2252 = vst [vmem:[%s3220_s6 + $0x108] sm:$0xff] %v2188_v4  ;;  %v1721_v11 = vpop.f32.mrb[78].mxu0  ;;  %v1434_v12 = vpop.f32.mrb[79].mxu1 }
 0x1bf   : > { %v2894_v13 = vpop.eup %2893  ;;  %2899 = vtanh.f32 %v2000_v7  ;;  %v1866_v25 = vmul.f32 %v3332_v17, %v1719_v8  ;;  %v1722_v14 = vadd.f32 %v1721_v11, %v1432_v10  ;;  %v1723_v15 = vpop.f32.mrb[79].mxu0 }
 0x1c0   : > { %v2125_v16 = vadd.f32 1.0, %v2894_v13 }
 0x1c1   : > { %v2896_v18 = vpop.eup %2895  ;;  %v1937_v20 = vadd.f32 %v3338_v19, %v1866_v25  ;;  %v1867_v21 = vmul.f32 %v3332_v17, %v1722_v14 }
 0x1c2   : > { %v2189_v22 = vmul.f32 0.5, %v2125_v16  ;;  %v2126_v23 = vadd.f32 1.0, %v2896_v18 }
 0x1c3   : > { %v2001_v24 = vmul.f32 0.5, %v1937_v20  ;;  %v1938_v26 = vadd.f32 %v3338_v19, %v1867_v21  ;;  %v1437_v27 = vpop.f32.mrb[80].mxu1 }
 0x1c4   : > { %2253 = vst [vmem:[%s3220_s6 + $0x110] sm:$0xff] %v2189_v22  ;;  %v2190_v28 = vmul.f32 0.5, %v2126_v23  ;;  %v1726_v29 = vpop.f32.mrb[80].mxu0  ;;  %v1439_v30 = vpop.f32.mrb[81].mxu1 }
 0x1c5   : > { %2901 = vtanh.f32 %v2001_v24  ;;  %v2002_v31 = vmul.f32 0.5, %v1938_v26  ;;  %v1727_v32 = vadd.f32 %v1726_v29, %v1437_v27  ;;  %v1728_v33 = vpop.f32.mrb[81].mxu0  ;;  %v1440_v34 = vpop.f32.mrb[82].mxu1 }
 0x1c6   : > { %2254 = vst [vmem:[%s3220_s6 + $0x118] sm:$0xff] %v2190_v28  ;;  %v1729_v35 = vpop.f32.mrb[82].mxu0  ;;  %v1442_v36 = vpop.f32.mrb[83].mxu1 }
 0x1c7   : > { %v2898_v37 = vpop.eup %2897  ;;  %2903 = vtanh.f32 %v2002_v31  ;;  %v1868_v38 = vmul.f32 %v3332_v17, %v1727_v32  ;;  %v1730_v39 = vadd.f32 %v1729_v35, %v1440_v34  ;;  %v1731_v40 = vpop.f32.mrb[83].mxu0 }
 0x1c8   : > { %v2127_v41 = vadd.f32 1.0, %v2898_v37 }
 0x1c9   : > { %v2900_v42 = vpop.eup %2899  ;;  %v1939_v43 = vadd.f32 %v3338_v19, %v1868_v38  ;;  %v1869_v44 = vmul.f32 %v3332_v17, %v1730_v39 }
 0x1ca   : > { %v2191_v45 = vmul.f32 0.5, %v2127_v41  ;;  %v2128_v46 = vadd.f32 1.0, %v2900_v42 }
 0x1cb   : > { %v2003_v47 = vmul.f32 0.5, %v1939_v43  ;;  %v1940_v48 = vadd.f32 %v3338_v19, %v1869_v44  ;;  %v1445_v49 = vpop.f32.mrb[84].mxu1 }
 0x1cc   : > { %2255 = vst [vmem:[%s3220_s6 + $0x120] sm:$0xff] %v2191_v45  ;;  %v2192_v50 = vmul.f32 0.5, %v2128_v46  ;;  %v1734_v51 = vpop.f32.mrb[84].mxu0  ;;  %v1447_v52 = vpop.f32.mrb[85].mxu1 }
 0x1cd   : > { %2905 = vtanh.f32 %v2003_v47  ;;  %v2004_v53 = vmul.f32 0.5, %v1940_v48  ;;  %v1735_v54 = vadd.f32 %v1734_v51, %v1445_v49  ;;  %v1736_v55 = vpop.f32.mrb[85].mxu0  ;;  %v1448_v56 = vpop.f32.mrb[86].mxu1 }
 0x1ce   : > { %2256 = vst [vmem:[%s3220_s6 + $0x128] sm:$0xff] %v2192_v50  ;;  %v1737_v57 = vpop.f32.mrb[86].mxu0  ;;  %v1450_v58 = vpop.f32.mrb[87].mxu1 }
 0x1cf   : > { %v2902_v59 = vpop.eup %2901  ;;  %2907 = vtanh.f32 %v2004_v53  ;;  %v1870_v60 = vmul.f32 %v3332_v17, %v1735_v54  ;;  %v1738_v61 = vadd.f32 %v1737_v57, %v1448_v56  ;;  %v1739_v62 = vpop.f32.mrb[87].mxu0 }
 0x1d0   : > { %v2129_v63 = vadd.f32 1.0, %v2902_v59 }
 0x1d1   : > { %v2904_v0 = vpop.eup %2903  ;;  %v1941_v1 = vadd.f32 %v3338_v19, %v1870_v60  ;;  %v1871_v2 = vmul.f32 %v3332_v17, %v1738_v61 }
 0x1d2   : > { %v2193_v3 = vmul.f32 0.5, %v2129_v63  ;;  %v2130_v4 = vadd.f32 1.0, %v2904_v0 }
 0x1d3   : > { %v2005_v5 = vmul.f32 0.5, %v1941_v1  ;;  %v1942_v6 = vadd.f32 %v3338_v19, %v1871_v2  ;;  %v1453_v7 = vpop.f32.mrb[88].mxu1 }
 0x1d4   : > { %2257 = vst [vmem:[%s3220_s6 + $0x130] sm:$0xff] %v2193_v3  ;;  %v2194_v8 = vmul.f32 0.5, %v2130_v4  ;;  %v1742_v9 = vpop.f32.mrb[88].mxu0  ;;  %v1455_v10 = vpop.f32.mrb[89].mxu1 }
 0x1d5   : > { %2909 = vtanh.f32 %v2005_v5  ;;  %v2006_v11 = vmul.f32 0.5, %v1942_v6  ;;  %v1743_v12 = vadd.f32 %v1742_v9, %v1453_v7  ;;  %v1744_v13 = vpop.f32.mrb[89].mxu0  ;;  %v1456_v25 = vpop.f32.mrb[90].mxu1 }
 0x1d6   : > { %2258 = vst [vmem:[%s3220_s6 + $0x138] sm:$0xff] %v2194_v8  ;;  %v1745_v14 = vpop.f32.mrb[90].mxu0  ;;  %v1458_v15 = vpop.f32.mrb[91].mxu1 }
 0x1d7   : > { %v2906_v16 = vpop.eup %2905  ;;  %2911 = vtanh.f32 %v2006_v11  ;;  %v1872_v18 = vmul.f32 %v3332_v17, %v1743_v12  ;;  %v1746_v20 = vadd.f32 %v1745_v14, %v1456_v25  ;;  %v1747_v21 = vpop.f32.mrb[91].mxu0 }
 0x1d8   : > { %v2131_v22 = vadd.f32 1.0, %v2906_v16 }
 0x1d9   : > { %v2908_v23 = vpop.eup %2907  ;;  %v1943_v24 = vadd.f32 %v3338_v19, %v1872_v18  ;;  %v1873_v26 = vmul.f32 %v3332_v17, %v1746_v20 }
 0x1da   : > { %v2195_v27 = vmul.f32 0.5, %v2131_v22  ;;  %v2132_v28 = vadd.f32 1.0, %v2908_v23 }
 0x1db   : > { %v2007_v29 = vmul.f32 0.5, %v1943_v24  ;;  %v1944_v30 = vadd.f32 %v3338_v19, %v1873_v26  ;;  %v1461_v31 = vpop.f32.mrb[92].mxu1 }
 0x1dc   : > { %2259 = vst [vmem:[%s3220_s6 + $0x140] sm:$0xff] %v2195_v27  ;;  %v2196_v32 = vmul.f32 0.5, %v2132_v28  ;;  %v1750_v33 = vpop.f32.mrb[92].mxu0  ;;  %v1463_v34 = vpop.f32.mrb[93].mxu1 }
 0x1dd   : > { %2913 = vtanh.f32 %v2007_v29  ;;  %v2008_v35 = vmul.f32 0.5, %v1944_v30  ;;  %v1751_v36 = vadd.f32 %v1750_v33, %v1461_v31  ;;  %v1752_v37 = vpop.f32.mrb[93].mxu0  ;;  %v1464_v38 = vpop.f32.mrb[94].mxu1 }
 0x1de   : > { %2260 = vst [vmem:[%s3220_s6 + $0x148] sm:$0xff] %v2196_v32  ;;  %v1753_v39 = vpop.f32.mrb[94].mxu0  ;;  %v1466_v40 = vpop.f32.mrb[95].mxu1 }
 0x1df   : > { %v2910_v41 = vpop.eup %2909  ;;  %2915 = vtanh.f32 %v2008_v35  ;;  %v1874_v42 = vmul.f32 %v3332_v17, %v1751_v36  ;;  %v1754_v43 = vadd.f32 %v1753_v39, %v1464_v38  ;;  %v1755_v44 = vpop.f32.mrb[95].mxu0 }
 0x1e0   : > { %v2133_v45 = vadd.f32 1.0, %v2910_v41 }
 0x1e1   : > { %v2912_v46 = vpop.eup %2911  ;;  %v1945_v47 = vadd.f32 %v3338_v19, %v1874_v42  ;;  %v1875_v48 = vmul.f32 %v3332_v17, %v1754_v43 }
 0x1e2   : > { %v2197_v49 = vmul.f32 0.5, %v2133_v45  ;;  %v2134_v50 = vadd.f32 1.0, %v2912_v46 }
 0x1e3   : > { %v2009_v51 = vmul.f32 0.5, %v1945_v47  ;;  %v1946_v52 = vadd.f32 %v3338_v19, %v1875_v48  ;;  %v1469_v53 = vpop.f32.mrb[96].mxu1 }
 0x1e4   : > { %2261 = vst [vmem:[%s3220_s6 + $0x150] sm:$0xff] %v2197_v49  ;;  %v2198_v54 = vmul.f32 0.5, %v2134_v50  ;;  %v1758_v55 = vpop.f32.mrb[96].mxu0  ;;  %v1471_v56 = vpop.f32.mrb[97].mxu1 }
 0x1e5   : > { %2917 = vtanh.f32 %v2009_v51  ;;  %v2010_v57 = vmul.f32 0.5, %v1946_v52  ;;  %v1759_v58 = vadd.f32 %v1758_v55, %v1469_v53  ;;  %v1760_v59 = vpop.f32.mrb[97].mxu0  ;;  %v1472_v60 = vpop.f32.mrb[98].mxu1 }
 0x1e6   : > { %2262 = vst [vmem:[%s3220_s6 + $0x158] sm:$0xff] %v2198_v54  ;;  %v1761_v61 = vpop.f32.mrb[98].mxu0  ;;  %v1474_v62 = vpop.f32.mrb[99].mxu1 }
 0x1e7   : > { %v2914_v63 = vpop.eup %2913  ;;  %2919 = vtanh.f32 %v2010_v57  ;;  %v1876_v0 = vmul.f32 %v3332_v17, %v1759_v58  ;;  %v1762_v1 = vadd.f32 %v1761_v61, %v1472_v60  ;;  %v1763_v2 = vpop.f32.mrb[99].mxu0 }
 0x1e8   : > { %v2135_v3 = vadd.f32 1.0, %v2914_v63 }
 0x1e9   : > { %v2916_v4 = vpop.eup %2915  ;;  %v1947_v5 = vadd.f32 %v3338_v19, %v1876_v0  ;;  %v1877_v6 = vmul.f32 %v3332_v17, %v1762_v1 }
 0x1ea   : > { %v2199_v7 = vmul.f32 0.5, %v2135_v3  ;;  %v2136_v8 = vadd.f32 1.0, %v2916_v4 }
 0x1eb   : > { %v2011_v9 = vmul.f32 0.5, %v1947_v5  ;;  %v1948_v10 = vadd.f32 %v3338_v19, %v1877_v6  ;;  %v1477_v11 = vpop.f32.mrb[100].mxu1 }
 0x1ec   : > { %2263 = vst [vmem:[%s3220_s6 + $0x160] sm:$0xff] %v2199_v7  ;;  %v2200_v12 = vmul.f32 0.5, %v2136_v8  ;;  %v1766_v13 = vpop.f32.mrb[100].mxu0  ;;  %v1479_v25 = vpop.f32.mrb[101].mxu1 }
 0x1ed   : > { %2921 = vtanh.f32 %v2011_v9  ;;  %v2012_v14 = vmul.f32 0.5, %v1948_v10  ;;  %v1767_v15 = vadd.f32 %v1766_v13, %v1477_v11  ;;  %v1768_v16 = vpop.f32.mrb[101].mxu0  ;;  %v1480_v18 = vpop.f32.mrb[102].mxu1 }
 0x1ee   : > { %2264 = vst [vmem:[%s3220_s6 + $0x168] sm:$0xff] %v2200_v12  ;;  %v1769_v20 = vpop.f32.mrb[102].mxu0  ;;  %v1482_v21 = vpop.f32.mrb[103].mxu1 }
 0x1ef   : > { %v2918_v22 = vpop.eup %2917  ;;  %2923 = vtanh.f32 %v2012_v14  ;;  %v1878_v23 = vmul.f32 %v3332_v17, %v1767_v15  ;;  %v1770_v24 = vadd.f32 %v1769_v20, %v1480_v18  ;;  %v1771_v26 = vpop.f32.mrb[103].mxu0 }
 0x1f0   : > { %v2137_v27 = vadd.f32 1.0, %v2918_v22 }
 0x1f1   : > { %v2920_v28 = vpop.eup %2919  ;;  %v1949_v29 = vadd.f32 %v3338_v19, %v1878_v23  ;;  %v1879_v30 = vmul.f32 %v3332_v17, %v1770_v24 }
 0x1f2   : > { %v2201_v31 = vmul.f32 0.5, %v2137_v27  ;;  %v2138_v32 = vadd.f32 1.0, %v2920_v28 }
 0x1f3   : > { %v2013_v33 = vmul.f32 0.5, %v1949_v29  ;;  %v1950_v34 = vadd.f32 %v3338_v19, %v1879_v30  ;;  %v1485_v35 = vpop.f32.mrb[104].mxu1 }
 0x1f4   : > { %2265 = vst [vmem:[%s3220_s6 + $0x170] sm:$0xff] %v2201_v31  ;;  %v2202_v36 = vmul.f32 0.5, %v2138_v32  ;;  %v1774_v37 = vpop.f32.mrb[104].mxu0  ;;  %v1487_v38 = vpop.f32.mrb[105].mxu1 }
 0x1f5   : > { %2925 = vtanh.f32 %v2013_v33  ;;  %v2014_v39 = vmul.f32 0.5, %v1950_v34  ;;  %v1775_v40 = vadd.f32 %v1774_v37, %v1485_v35  ;;  %v1776_v41 = vpop.f32.mrb[105].mxu0  ;;  %v1488_v42 = vpop.f32.mrb[106].mxu1 }
 0x1f6   : > { %2266 = vst [vmem:[%s3220_s6 + $0x178] sm:$0xff] %v2202_v36  ;;  %v1777_v43 = vpop.f32.mrb[106].mxu0  ;;  %v1490_v44 = vpop.f32.mrb[107].mxu1 }
 0x1f7   : > { %v2922_v45 = vpop.eup %2921  ;;  %2927 = vtanh.f32 %v2014_v39  ;;  %v1880_v46 = vmul.f32 %v3332_v17, %v1775_v40  ;;  %v1778_v47 = vadd.f32 %v1777_v43, %v1488_v42  ;;  %v1779_v48 = vpop.f32.mrb[107].mxu0 }
 0x1f8   : > { %v2139_v49 = vadd.f32 1.0, %v2922_v45 }
 0x1f9   : > { %v2924_v50 = vpop.eup %2923  ;;  %v1951_v51 = vadd.f32 %v3338_v19, %v1880_v46  ;;  %v1881_v52 = vmul.f32 %v3332_v17, %v1778_v47 }
 0x1fa   : > { %v2203_v53 = vmul.f32 0.5, %v2139_v49  ;;  %v2140_v54 = vadd.f32 1.0, %v2924_v50 }
 0x1fb   : > { %v2015_v55 = vmul.f32 0.5, %v1951_v51  ;;  %v1952_v56 = vadd.f32 %v3338_v19, %v1881_v52  ;;  %v1493_v57 = vpop.f32.mrb[108].mxu1 }
 0x1fc   : > { %2267 = vst [vmem:[%s3220_s6 + $0x180] sm:$0xff] %v2203_v53  ;;  %v2204_v58 = vmul.f32 0.5, %v2140_v54  ;;  %v1782_v59 = vpop.f32.mrb[108].mxu0  ;;  %v1495_v60 = vpop.f32.mrb[109].mxu1 }
 0x1fd   : > { %2929 = vtanh.f32 %v2015_v55  ;;  %v2016_v61 = vmul.f32 0.5, %v1952_v56  ;;  %v1783_v62 = vadd.f32 %v1782_v59, %v1493_v57  ;;  %v1784_v63 = vpop.f32.mrb[109].mxu0  ;;  %v1496_v0 = vpop.f32.mrb[110].mxu1 }
 0x1fe   : > { %2268 = vst [vmem:[%s3220_s6 + $0x188] sm:$0xff] %v2204_v58  ;;  %v1785_v1 = vpop.f32.mrb[110].mxu0  ;;  %v1498_v2 = vpop.f32.mrb[111].mxu1 }
 0x1ff   : > { %v2926_v3 = vpop.eup %2925  ;;  %2931 = vtanh.f32 %v2016_v61  ;;  %v1882_v4 = vmul.f32 %v3332_v17, %v1783_v62  ;;  %v1786_v5 = vadd.f32 %v1785_v1, %v1496_v0  ;;  %v1787_v6 = vpop.f32.mrb[111].mxu0 }
 0x200   : > { %v2141_v7 = vadd.f32 1.0, %v2926_v3 }
 0x201   : > { %v2928_v8 = vpop.eup %2927  ;;  %v1953_v9 = vadd.f32 %v3338_v19, %v1882_v4  ;;  %v1883_v10 = vmul.f32 %v3332_v17, %v1786_v5 }
 0x202   : > { %v2205_v11 = vmul.f32 0.5, %v2141_v7  ;;  %v2142_v12 = vadd.f32 1.0, %v2928_v8 }
 0x203   : > { %v2017_v13 = vmul.f32 0.5, %v1953_v9  ;;  %v1954_v25 = vadd.f32 %v3338_v19, %v1883_v10  ;;  %v1501_v14 = vpop.f32.mrb[112].mxu1 }
 0x204   : > { %2269 = vst [vmem:[%s3220_s6 + $0x190] sm:$0xff] %v2205_v11  ;;  %v2206_v15 = vmul.f32 0.5, %v2142_v12  ;;  %v1790_v16 = vpop.f32.mrb[112].mxu0  ;;  %v1503_v18 = vpop.f32.mrb[113].mxu1 }
 0x205   : > { %2933 = vtanh.f32 %v2017_v13  ;;  %v2018_v20 = vmul.f32 0.5, %v1954_v25  ;;  %v1791_v21 = vadd.f32 %v1790_v16, %v1501_v14  ;;  %v1792_v22 = vpop.f32.mrb[113].mxu0  ;;  %v1504_v23 = vpop.f32.mrb[114].mxu1 }
 0x206   : > { %2270 = vst [vmem:[%s3220_s6 + $0x198] sm:$0xff] %v2206_v15  ;;  %v1793_v24 = vpop.f32.mrb[114].mxu0  ;;  %v1506_v26 = vpop.f32.mrb[115].mxu1 }
 0x207   : > { %v2930_v27 = vpop.eup %2929  ;;  %2935 = vtanh.f32 %v2018_v20  ;;  %v1884_v28 = vmul.f32 %v3332_v17, %v1791_v21  ;;  %v1794_v29 = vadd.f32 %v1793_v24, %v1504_v23  ;;  %v1795_v30 = vpop.f32.mrb[115].mxu0 }
 0x208   : > { %v2143_v31 = vadd.f32 1.0, %v2930_v27 }
 0x209   : > { %v2932_v32 = vpop.eup %2931  ;;  %v1955_v33 = vadd.f32 %v3338_v19, %v1884_v28  ;;  %v1885_v34 = vmul.f32 %v3332_v17, %v1794_v29 }
 0x20a   : > { %v2207_v35 = vmul.f32 0.5, %v2143_v31  ;;  %v2144_v36 = vadd.f32 1.0, %v2932_v32 }
 0x20b   : > { %v2019_v37 = vmul.f32 0.5, %v1955_v33  ;;  %v1956_v38 = vadd.f32 %v3338_v19, %v1885_v34  ;;  %v1509_v39 = vpop.f32.mrb[116].mxu1 }
 0x20c   : > { %2271 = vst [vmem:[%s3220_s6 + $0x1a0] sm:$0xff] %v2207_v35  ;;  %v2208_v40 = vmul.f32 0.5, %v2144_v36  ;;  %v1798_v41 = vpop.f32.mrb[116].mxu0  ;;  %v1511_v42 = vpop.f32.mrb[117].mxu1 }
 0x20d   : > { %2937 = vtanh.f32 %v2019_v37  ;;  %v2020_v43 = vmul.f32 0.5, %v1956_v38  ;;  %v1799_v44 = vadd.f32 %v1798_v41, %v1509_v39  ;;  %v1800_v45 = vpop.f32.mrb[117].mxu0  ;;  %v1512_v46 = vpop.f32.mrb[118].mxu1 }
 0x20e   : > { %2272 = vst [vmem:[%s3220_s6 + $0x1a8] sm:$0xff] %v2208_v40  ;;  %v1801_v47 = vpop.f32.mrb[118].mxu0  ;;  %v1514_v48 = vpop.f32.mrb[119].mxu1 }
 0x20f   : > { %v2934_v49 = vpop.eup %2933  ;;  %2939 = vtanh.f32 %v2020_v43  ;;  %v1886_v50 = vmul.f32 %v3332_v17, %v1799_v44  ;;  %v1802_v51 = vadd.f32 %v1801_v47, %v1512_v46  ;;  %v1803_v52 = vpop.f32.mrb[119].mxu0 }
 0x210   : > { %v2145_v53 = vadd.f32 1.0, %v2934_v49 }
 0x211   : > { %v2936_v54 = vpop.eup %2935  ;;  %v1957_v55 = vadd.f32 %v3338_v19, %v1886_v50  ;;  %v1887_v56 = vmul.f32 %v3332_v17, %v1802_v51 }
 0x212   : > { %v2209_v57 = vmul.f32 0.5, %v2145_v53  ;;  %v2146_v58 = vadd.f32 1.0, %v2936_v54 }
 0x213   : > { %v2021_v59 = vmul.f32 0.5, %v1957_v55  ;;  %v1958_v60 = vadd.f32 %v3338_v19, %v1887_v56  ;;  %v1517_v61 = vpop.f32.mrb[120].mxu1 }
 0x214   : > { %2273 = vst [vmem:[%s3220_s6 + $0x1b0] sm:$0xff] %v2209_v57  ;;  %v2210_v62 = vmul.f32 0.5, %v2146_v58  ;;  %v1806_v63 = vpop.f32.mrb[120].mxu0  ;;  %v1519_v0 = vpop.f32.mrb[121].mxu1 }
 0x215   : > { %2941 = vtanh.f32 %v2021_v59  ;;  %v2022_v1 = vmul.f32 0.5, %v1958_v60  ;;  %v1807_v2 = vadd.f32 %v1806_v63, %v1517_v61  ;;  %v1808_v3 = vpop.f32.mrb[121].mxu0  ;;  %v1520_v4 = vpop.f32.mrb[122].mxu1 }
 0x216   : > { %2274 = vst [vmem:[%s3220_s6 + $0x1b8] sm:$0xff] %v2210_v62  ;;  %v1809_v5 = vpop.f32.mrb[122].mxu0  ;;  %v1522_v6 = vpop.f32.mrb[123].mxu1 }
 0x217   : > { %v2938_v7 = vpop.eup %2937  ;;  %2943 = vtanh.f32 %v2022_v1  ;;  %v1888_v8 = vmul.f32 %v3332_v17, %v1807_v2  ;;  %v1810_v9 = vadd.f32 %v1809_v5, %v1520_v4  ;;  %v1811_v10 = vpop.f32.mrb[123].mxu0 }
 0x218   : > { %v2147_v11 = vadd.f32 1.0, %v2938_v7 }
 0x219   : > { %v2940_v12 = vpop.eup %2939  ;;  %v1959_v13 = vadd.f32 %v3338_v19, %v1888_v8  ;;  %v1889_v25 = vmul.f32 %v3332_v17, %v1810_v9 }
 0x21a   : > { %v2211_v14 = vmul.f32 0.5, %v2147_v11  ;;  %v2148_v15 = vadd.f32 1.0, %v2940_v12 }
 0x21b   : > { %v2023_v16 = vmul.f32 0.5, %v1959_v13  ;;  %v1960_v18 = vadd.f32 %v3338_v19, %v1889_v25  ;;  %v1525_v20 = vpop.f32.mrb[124].mxu1 }
 0x21c   : > { %2275 = vst [vmem:[%s3220_s6 + $0x1c0] sm:$0xff] %v2211_v14  ;;  %v2212_v21 = vmul.f32 0.5, %v2148_v15  ;;  %v1814_v22 = vpop.f32.mrb[124].mxu0  ;;  %v1527_v23 = vpop.f32.mrb[125].mxu1 }
 0x21d   : > { %2945 = vtanh.f32 %v2023_v16  ;;  %v2024_v24 = vmul.f32 0.5, %v1960_v18  ;;  %v1815_v26 = vadd.f32 %v1814_v22, %v1525_v20  ;;  %v1816_v27 = vpop.f32.mrb[125].mxu0  ;;  %v1528_v28 = vpop.f32.mrb[126].mxu1 }
 0x21e   : > { %2276 = vst [vmem:[%s3220_s6 + $0x1c8] sm:$0xff] %v2212_v21  ;;  %v1817_v29 = vpop.f32.mrb[126].mxu0  ;;  %v1530_v30 = vpop.f32.mrb[127].mxu1 }
 0x21f   : > { %v2942_v31 = vpop.eup %2941  ;;  %2947 = vtanh.f32 %v2024_v24  ;;  %v1890_v32 = vmul.f32 %v3332_v17, %v1815_v26  ;;  %v1818_v33 = vadd.f32 %v1817_v29, %v1528_v28  ;;  %v1819_v34 = vpop.f32.mrb[127].mxu0 }
 0x220   : > { %v2149_v35 = vadd.f32 1.0, %v2942_v31 }
 0x221   : > { %v2944_v36 = vpop.eup %2943  ;;  %v1961_v37 = vadd.f32 %v3338_v19, %v1890_v32  ;;  %v1891_v38 = vmul.f32 %v3332_v17, %v1818_v33 }
 0x222   : > { %v2213_v39 = vmul.f32 0.5, %v2149_v35  ;;  %v2150_v40 = vadd.f32 1.0, %v2944_v36 }
 0x223   : > { %v2025_v41 = vmul.f32 0.5, %v1961_v37  ;;  %v1962_v42 = vadd.f32 %v3338_v19, %v1891_v38 }
 0x224   : > { %2277 = vst [vmem:[%s3220_s6 + $0x1d0] sm:$0xff] %v2213_v39  ;;  %v2214_v43 = vmul.f32 0.5, %v2150_v40 }
 0x225   : > { %2949 = vtanh.f32 %v2025_v41  ;;  %v2026_v44 = vmul.f32 0.5, %v1962_v42 }
 0x226   : > { %2278 = vst [vmem:[%s3220_s6 + $0x1d8] sm:$0xff] %v2214_v43 }
 0x227   : > { %v2946_v45 = vpop.eup %2945  ;;  %2951 = vtanh.f32 %v2026_v44 }
 0x228   : > { %v2151_v46 = vadd.f32 1.0, %v2946_v45 }
 0x229   : > { %v2948_v47 = vpop.eup %2947 }
 0x22a   : > { %v2215_v48 = vmul.f32 0.5, %v2151_v46  ;;  %v2152_v17 = vadd.f32 1.0, %v2948_v47 }
 0x22c   : > { %2279 = vst [vmem:[%s3220_s6 + $0x1e0] sm:$0xff] %v2215_v48  ;;  %v2216_v49 = vmul.f32 0.5, %v2152_v17 }
 0x22e   : > { %2280 = vst [vmem:[%s3220_s6 + $0x1e8] sm:$0xff] %v2216_v49 }
 0x22f   : > { %v2950_v50 = vpop.eup %2949 }
 0x230   : > { %v2153_v51 = vadd.f32 1.0, %v2950_v50 }
 0x231   : > { %v2952_v52 = vpop.eup %2951 }
 0x232   : > { %v2217_v19 = vmul.f32 0.5, %v2153_v51  ;;  %v2154_v53 = vadd.f32 1.0, %v2952_v52 }
 0x234   : > { %2281 = vst [vmem:[%s3220_s6 + $0x1f0] sm:$0xff] %v2217_v19  ;;  %v2218_v54 = vmul.f32 0.5, %v2154_v53 }
 0x236   : > { %2282 = vst [vmem:[%s3220_s6 + $0x1f8] sm:$0xff] %v2218_v54 }
 0x237 PF: > { %s14_s15 = sadd.s32 1, %s2961_s15  }
 0x238   : > { %p11_p4 = scmp.ge.s32.totalorder %s14_s15, 6  }
 0x23a   :  { %13 = sbr.rel (!%p11_p4) target bundleno = 1 (0x1), region = 69 }

</bundles_post_ra>
